<compile_context>
chip_gen: v7x
topology: tpu7x:2x2x1
jax: 0.10.0
libtpu: 0.0.40
codegen_flags: <defaults>
</compile_context>

<pallas_src>
import jax
import jax.numpy as jnp
from jax.experimental import pallas as pl
from jax.experimental.pallas import tpu as pltpu

# Real layer widths: 784 -> 1000 -> 800 -> 500 -> 100 -> 10 -> 2 -> (mirror) -> 784
DIMS = [28 * 28, 1000, 800, 500, 100, 10, 2]
# Lane-padded widths (multiples of 128).
PAD = [896, 1024, 896, 512, 128, 128, 128]
BIAS_ROWS = 8          # 7 biases (b1..b6, out_bias) padded to 8 sublanes
BIAS_W = 1024          # max(PAD)


def _round_up(n, m):
    return ((n + m - 1) // m) * m


# ---------------------------------------------------------------------------
# Kernel
# ---------------------------------------------------------------------------
def autoencoder_kernel(x_ref,
                       w1_ref, w2_ref, w3_ref, w4_ref, w5_ref, w6_ref,
                       b_ref, o_ref):
    w_refs = (w1_ref, w2_ref, w3_ref, w4_ref, w5_ref, w6_ref)

    def enc_layer(h, k):
        # h @ W_k.T + b_k ; W_k stored (out_pad, in_pad) bf16 -> contract dim 1 of both
        acc = jax.lax.dot_general(
            h, w_refs[k - 1][...], (((1,), (1,)), ((), ())),
            preferred_element_type=jnp.float32)
        acc = acc + b_ref[k - 1:k, :PAD[k]]
        return jnp.maximum(acc, 0.0).astype(jnp.bfloat16)

    def dec_layer(h, k, bias_row, last=False):
        # tied decoder: h @ W_k + bias ; contract dim 1 of h with dim 0 of W_k
        acc = jax.lax.dot_general(
            h, w_refs[k - 1][...], (((1,), (0,)), ((), ())),
            preferred_element_type=jnp.float32)
        acc = acc + b_ref[bias_row:bias_row + 1, :PAD[k - 1]]
        if last:
            return jax.nn.sigmoid(acc)
        return jnp.maximum(acc, 0.0).astype(jnp.bfloat16)

    h = x_ref[...]                      # (TILE_B, 896) bf16
    # ----- encode: fc1..fc6, ReLU after each -----
    for k in range(1, 7):
        h = enc_layer(h, k)
    # ----- decode: tied (transposed) weights, previous layer's bias -----
    for k in range(6, 1, -1):
        h = dec_layer(h, k, bias_row=k - 2)
    out = dec_layer(h, 1, bias_row=6, last=True)   # out_bias row, sigmoid
    o_ref[...] = out.astype(o_ref.dtype)


# ---------------------------------------------------------------------------
# Parameter preparation
# ---------------------------------------------------------------------------
def init_params(key):
    """Deterministic synthetic parameters matching the PyTorch module's shapes."""
    params = {}
    for i in range(6):
        in_d, out_d = DIMS[i], DIMS[i + 1]
        key, kw, kb = jax.random.split(key, 3)
        scale = 1.0 / jnp.sqrt(jnp.float32(in_d))
        # PyTorch nn.Linear convention: weight is (out_features, in_features)
        params[f"w{i + 1}"] = jax.random.uniform(
            kw, (out_d, in_d), jnp.float32, -scale, scale)
        params[f"b{i + 1}"] = jax.random.uniform(
            kb, (1, out_d), jnp.float32, -scale, scale)
    params["out_bias"] = jnp.zeros((1, DIMS[0]), jnp.float32)
    return params


def pack_params(params):
    """One-time prep: zero-pad + bf16-cast weights, pack all biases into one f32 buffer."""
    packed = {}
    for k in range(1, 7):
        w = params[f"w{k}"]                         # (out_d, in_d)
        out_d, in_d = w.shape
        wp = jnp.zeros((PAD[k], PAD[k - 1]), jnp.bfloat16)
        packed[f"w{k}"] = wp.at[:out_d, :in_d].set(w.astype(jnp.bfloat16))
    b = jnp.zeros((BIAS_ROWS, BIAS_W), jnp.float32)
    for k in range(1, 7):
        bk = params[f"b{k}"].reshape(-1).astype(jnp.float32)
        b = b.at[k - 1, :bk.shape[0]].set(bk)
    ob = params["out_bias"].reshape(-1).astype(jnp.float32)
    b = b.at[6, :ob.shape[0]].set(ob)
    packed["bias"] = b
    return packed


# ---------------------------------------------------------------------------
# Forward wrapper
# ---------------------------------------------------------------------------
@jax.jit
def autoencoder_forward(x, packed):
    B = x.shape[0]
    xf = x.reshape(B, -1).astype(jnp.bfloat16)      # flatten(start_dim=1)

    bp8 = max(8, _round_up(B, 8))
    tile_b = min(256, bp8)
    bp = _round_up(bp8, tile_b)
    xp = jnp.pad(xf, ((0, bp - B), (0, PAD[0] - DIMS[0])))

    grid = (bp // tile_b,)
    x_spec = pl.BlockSpec((tile_b, PAD[0]), lambda i: (i, 0))
    o_spec = pl.BlockSpec((tile_b, PAD[0]), lambda i: (i, 0))
    # Constant index_map -> weights/bias DMA'd once and kept VMEM-resident.
    w_specs = [pl.BlockSpec((PAD[k], PAD[k - 1]), lambda i: (0, 0))
               for k in range(1, 7)]
    b_spec = pl.BlockSpec((BIAS_ROWS, BIAS_W), lambda i: (0, 0))

    out = pl.pallas_call(
        autoencoder_kernel,
        out_shape=jax.ShapeDtypeStruct((bp, PAD[0]), jnp.float32),
        grid=grid,
        in_specs=[x_spec] + w_specs + [b_spec],
        out_specs=o_spec,
        compiler_params=pltpu.CompilerParams(
            dimension_semantics=("parallel",),
            vmem_limit_bytes=32 << 20),
    )(xp, packed["w1"], packed["w2"], packed["w3"],
      packed["w4"], packed["w5"], packed["w6"], packed["bias"])

    return out[:B, :DIMS[0]]


# ---------------------------------------------------------------------------
# References
# ---------------------------------------------------------------------------
def autoencoder_ref_f32(x, params):
    """Pure-JAX f32 reference mirroring the PyTorch forward."""
    h = x.reshape(x.shape[0], -1).astype(jnp.float32)
    for i in range(1, 7):
        h = jnp.maximum(h @ params[f"w{i}"].T + params[f"b{i}"], 0.0)
    for i in range(6, 1, -1):
        h = jnp.maximum(h @ params[f"w{i}"] + params[f"b{i - 1}"], 0.0)
    return jax.nn.sigmoid(h @ params["w1"] + params["out_bias"])


def autoencoder_ref_bf16(x, params):
    """Reference with the same mixed precision as the kernel (bf16 operands, f32 accum)."""
    h = x.reshape(x.shape[0], -1).astype(jnp.bfloat16)
    ws = [params[f"w{k}"].astype(jnp.bfloat16) for k in range(1, 7)]
    bs = [params[f"b{k}"].astype(jnp.float32) for k in range(1, 7)]
    for k in range(6):
        acc = jax.lax.dot_general(h, ws[k], (((1,), (1,)), ((), ())),
                                  preferred_element_type=jnp.float32) + bs[k]
        h = jnp.maximum(acc, 0.0).astype(jnp.bfloat16)
    for k in range(5, 0, -1):
        acc = jax.lax.dot_general(h, ws[k], (((1,), (0,)), ((), ())),
                                  preferred_element_type=jnp.float32) + bs[k - 1]
        h = jnp.maximum(acc, 0.0).astype(jnp.bfloat16)
    acc = jax.lax.dot_general(h, ws[0], (((1,), (0,)), ((), ())),
                              preferred_element_type=jnp.float32) + params["out_bias"]
    return jax.nn.sigmoid(acc)


if __name__ == "__main__":
    key = jax.random.PRNGKey(0)
    kp, kx = jax.random.split(key)
    params = init_params(kp)
    packed = pack_params(params)

    # Small MNIST-like batch: NCHW (2, 1, 28, 28)
    x = jax.random.uniform(kx, (2, 1, 28, 28), jnp.float32)

    out = jax.block_until_ready(autoencoder_forward(x, packed))
    assert out.shape == (2, 28 * 28), out.shape

    # Strict check vs. a reference with matching (bf16/f32-accum) numerics.
    ref_q = autoencoder_ref_bf16(x, params)
    assert jnp.allclose(out, ref_q, atol=5e-3, rtol=0.0), "mismatch vs bf16 reference"

    # Loose sanity check vs. the full-f32 PyTorch-equivalent reference.
    ref_f = autoencoder_ref_f32(x, params)
    assert jnp.allclose(out, ref_f, atol=1e-1, rtol=0.0), "mismatch vs f32 reference"

    print("KERNEL_OK")
</pallas_src>

<mosaic_0001>
module attributes {stable_mosaic.version = 11 : i64} {
  func.func @autoencoder_kernel(%arg0: i32, %arg1: memref<8x896xbf16, #tpu.memory_space<vmem>>, %arg2: memref<1024x896xbf16, #tpu.memory_space<vmem>>, %arg3: memref<896x1024xbf16, #tpu.memory_space<vmem>>, %arg4: memref<512x896xbf16, #tpu.memory_space<vmem>>, %arg5: memref<128x512xbf16, #tpu.memory_space<vmem>>, %arg6: memref<128x128xbf16, #tpu.memory_space<vmem>>, %arg7: memref<128x128xbf16, #tpu.memory_space<vmem>>, %arg8: memref<8x1024xf32, #tpu.memory_space<vmem>>, %arg9: memref<8x896xf32, #tpu.memory_space<vmem>>) attributes {dimension_semantics = [#tpu.dimension_semantics<parallel>], iteration_bounds = array<i64: 1>, scalar_prefetch = 0 : i64, scratch_operands = 0 : i64, tpu.core_type = #tpu.core_type<tc>, window_params = [{transform_indices = @transform_0, window_bounds = array<i64: 8, 896>}, {pipeline_mode = #tpu.pipeline_mode<synchronous>, transform_indices = @transform_1, window_bounds = array<i64: 1024, 896>}, {pipeline_mode = #tpu.pipeline_mode<synchronous>, transform_indices = @transform_2, window_bounds = array<i64: 896, 1024>}, {pipeline_mode = #tpu.pipeline_mode<synchronous>, transform_indices = @transform_3, window_bounds = array<i64: 512, 896>}, {pipeline_mode = #tpu.pipeline_mode<synchronous>, transform_indices = @transform_4, window_bounds = array<i64: 128, 512>}, {pipeline_mode = #tpu.pipeline_mode<synchronous>, transform_indices = @transform_5, window_bounds = array<i64: 128, 128>}, {pipeline_mode = #tpu.pipeline_mode<synchronous>, transform_indices = @transform_6, window_bounds = array<i64: 128, 128>}, {pipeline_mode = #tpu.pipeline_mode<synchronous>, transform_indices = @transform_7, window_bounds = array<i64: 8, 1024>}, {transform_indices = @transform_8, window_bounds = array<i64: 8, 896>}]} {
    %c0 = arith.constant 0 : index
    %c0_0 = arith.constant 0 : index
    %0 = vector.load %arg1[%c0, %c0_0] : memref<8x896xbf16, #tpu.memory_space<vmem>>, vector<8x896xbf16>
    %c0_1 = arith.constant 0 : index
    %c0_2 = arith.constant 0 : index
    %1 = vector.load %arg2[%c0_1, %c0_2] : memref<1024x896xbf16, #tpu.memory_space<vmem>>, vector<1024x896xbf16>
    %cst = arith.constant dense<0.000000e+00> : vector<8x1024xf32>
    %2 = tpu.matmul %0, %1, %cst {dimension_numbers = #tpu.dot_dimension_numbers<[1], [1], [0], [0], [0, 0, 1, 0], [], []>} : vector<8x896xbf16>, vector<1024x896xbf16>, vector<8x1024xf32> -> vector<8x1024xf32>
    %c0_3 = arith.constant 0 : index
    %c0_4 = arith.constant 0 : index
    %3 = vector.load %arg8[%c0_3, %c0_4] : memref<8x1024xf32, #tpu.memory_space<vmem>>, vector<1x1024xf32>
    %4 = vector.broadcast %3 : vector<1x1024xf32> to vector<8x1024xf32>
    %5 = arith.addf %2, %4 : vector<8x1024xf32>
    %cst_5 = arith.constant 0.000000e+00 : f32
    %6 = vector.broadcast %cst_5 : f32 to vector<8x1024xf32>
    %7 = arith.maximumf %5, %6 : vector<8x1024xf32>
    %8 = arith.truncf %7 : vector<8x1024xf32> to vector<8x1024xbf16>
    %c0_6 = arith.constant 0 : index
    %c0_7 = arith.constant 0 : index
    %9 = vector.load %arg3[%c0_6, %c0_7] : memref<896x1024xbf16, #tpu.memory_space<vmem>>, vector<896x1024xbf16>
    %cst_8 = arith.constant dense<0.000000e+00> : vector<8x896xf32>
    %10 = tpu.matmul %8, %9, %cst_8 {dimension_numbers = #tpu.dot_dimension_numbers<[1], [1], [0], [0], [0, 0, 1, 0], [], []>} : vector<8x1024xbf16>, vector<896x1024xbf16>, vector<8x896xf32> -> vector<8x896xf32>
    %c1 = arith.constant 1 : index
    %c0_9 = arith.constant 0 : index
    %11 = vector.load %arg8[%c1, %c0_9] : memref<8x1024xf32, #tpu.memory_space<vmem>>, vector<1x896xf32>
    %12 = vector.broadcast %11 : vector<1x896xf32> to vector<8x896xf32>
    %13 = arith.addf %10, %12 : vector<8x896xf32>
    %cst_10 = arith.constant 0.000000e+00 : f32
    %14 = vector.broadcast %cst_10 : f32 to vector<8x896xf32>
    %15 = arith.maximumf %13, %14 : vector<8x896xf32>
    %16 = arith.truncf %15 : vector<8x896xf32> to vector<8x896xbf16>
    %c0_11 = arith.constant 0 : index
    %c0_12 = arith.constant 0 : index
    %17 = vector.load %arg4[%c0_11, %c0_12] : memref<512x896xbf16, #tpu.memory_space<vmem>>, vector<512x896xbf16>
    %cst_13 = arith.constant dense<0.000000e+00> : vector<8x512xf32>
    %18 = tpu.matmul %16, %17, %cst_13 {dimension_numbers = #tpu.dot_dimension_numbers<[1], [1], [0], [0], [0, 0, 1, 0], [], []>} : vector<8x896xbf16>, vector<512x896xbf16>, vector<8x512xf32> -> vector<8x512xf32>
    %c2 = arith.constant 2 : index
    %c0_14 = arith.constant 0 : index
    %19 = vector.load %arg8[%c2, %c0_14] : memref<8x1024xf32, #tpu.memory_space<vmem>>, vector<1x512xf32>
    %20 = vector.broadcast %19 : vector<1x512xf32> to vector<8x512xf32>
    %21 = arith.addf %18, %20 : vector<8x512xf32>
    %cst_15 = arith.constant 0.000000e+00 : f32
    %22 = vector.broadcast %cst_15 : f32 to vector<8x512xf32>
    %23 = arith.maximumf %21, %22 : vector<8x512xf32>
    %24 = arith.truncf %23 : vector<8x512xf32> to vector<8x512xbf16>
    %c0_16 = arith.constant 0 : index
    %c0_17 = arith.constant 0 : index
    %25 = vector.load %arg5[%c0_16, %c0_17] : memref<128x512xbf16, #tpu.memory_space<vmem>>, vector<128x512xbf16>
    %cst_18 = arith.constant dense<0.000000e+00> : vector<8x128xf32>
    %26 = tpu.matmul %24, %25, %cst_18 {dimension_numbers = #tpu.dot_dimension_numbers<[1], [1], [0], [0], [0, 0, 1, 0], [], []>} : vector<8x512xbf16>, vector<128x512xbf16>, vector<8x128xf32> -> vector<8x128xf32>
    %c3 = arith.constant 3 : index
    %c0_19 = arith.constant 0 : index
    %27 = vector.load %arg8[%c3, %c0_19] : memref<8x1024xf32, #tpu.memory_space<vmem>>, vector<1x128xf32>
    %28 = vector.broadcast %27 : vector<1x128xf32> to vector<8x128xf32>
    %29 = arith.addf %26, %28 : vector<8x128xf32>
    %cst_20 = arith.constant 0.000000e+00 : f32
    %30 = vector.broadcast %cst_20 : f32 to vector<8x128xf32>
    %31 = arith.maximumf %29, %30 : vector<8x128xf32>
    %32 = arith.truncf %31 : vector<8x128xf32> to vector<8x128xbf16>
    %c0_21 = arith.constant 0 : index
    %c0_22 = arith.constant 0 : index
    %33 = vector.load %arg6[%c0_21, %c0_22] : memref<128x128xbf16, #tpu.memory_space<vmem>>, vector<128x128xbf16>
    %cst_23 = arith.constant dense<0.000000e+00> : vector<8x128xf32>
    %34 = tpu.matmul %32, %33, %cst_23 {dimension_numbers = #tpu.dot_dimension_numbers<[1], [1], [0], [0], [0, 0, 1, 0], [], []>} : vector<8x128xbf16>, vector<128x128xbf16>, vector<8x128xf32> -> vector<8x128xf32>
    %c4 = arith.constant 4 : index
    %c0_24 = arith.constant 0 : index
    %35 = vector.load %arg8[%c4, %c0_24] : memref<8x1024xf32, #tpu.memory_space<vmem>>, vector<1x128xf32>
    %36 = vector.broadcast %35 : vector<1x128xf32> to vector<8x128xf32>
    %37 = arith.addf %34, %36 : vector<8x128xf32>
    %cst_25 = arith.constant 0.000000e+00 : f32
    %38 = vector.broadcast %cst_25 : f32 to vector<8x128xf32>
    %39 = arith.maximumf %37, %38 : vector<8x128xf32>
    %40 = arith.truncf %39 : vector<8x128xf32> to vector<8x128xbf16>
    %c0_26 = arith.constant 0 : index
    %c0_27 = arith.constant 0 : index
    %41 = vector.load %arg7[%c0_26, %c0_27] : memref<128x128xbf16, #tpu.memory_space<vmem>>, vector<128x128xbf16>
    %cst_28 = arith.constant dense<0.000000e+00> : vector<8x128xf32>
    %42 = tpu.matmul %40, %41, %cst_28 {dimension_numbers = #tpu.dot_dimension_numbers<[1], [1], [0], [0], [0, 0, 1, 0], [], []>} : vector<8x128xbf16>, vector<128x128xbf16>, vector<8x128xf32> -> vector<8x128xf32>
    %c5 = arith.constant 5 : index
    %c0_29 = arith.constant 0 : index
    %43 = vector.load %arg8[%c5, %c0_29] : memref<8x1024xf32, #tpu.memory_space<vmem>>, vector<1x128xf32>
    %44 = vector.broadcast %43 : vector<1x128xf32> to vector<8x128xf32>
    %45 = arith.addf %42, %44 : vector<8x128xf32>
    %cst_30 = arith.constant 0.000000e+00 : f32
    %46 = vector.broadcast %cst_30 : f32 to vector<8x128xf32>
    %47 = arith.maximumf %45, %46 : vector<8x128xf32>
    %48 = arith.truncf %47 : vector<8x128xf32> to vector<8x128xbf16>
    %c0_31 = arith.constant 0 : index
    %c0_32 = arith.constant 0 : index
    %49 = vector.load %arg7[%c0_31, %c0_32] : memref<128x128xbf16, #tpu.memory_space<vmem>>, vector<128x128xbf16>
    %cst_33 = arith.constant dense<0.000000e+00> : vector<8x128xf32>
    %50 = tpu.matmul %48, %49, %cst_33 {dimension_numbers = #tpu.dot_dimension_numbers<[1], [0], [0], [1], [0, 0, 1, 1], [], []>} : vector<8x128xbf16>, vector<128x128xbf16>, vector<8x128xf32> -> vector<8x128xf32>
    %c4_34 = arith.constant 4 : index
    %c0_35 = arith.constant 0 : index
    %51 = vector.load %arg8[%c4_34, %c0_35] : memref<8x1024xf32, #tpu.memory_space<vmem>>, vector<1x128xf32>
    %52 = vector.broadcast %51 : vector<1x128xf32> to vector<8x128xf32>
    %53 = arith.addf %50, %52 : vector<8x128xf32>
    %cst_36 = arith.constant 0.000000e+00 : f32
    %54 = vector.broadcast %cst_36 : f32 to vector<8x128xf32>
    %55 = arith.maximumf %53, %54 : vector<8x128xf32>
    %56 = arith.truncf %55 : vector<8x128xf32> to vector<8x128xbf16>
    %c0_37 = arith.constant 0 : index
    %c0_38 = arith.constant 0 : index
    %57 = vector.load %arg6[%c0_37, %c0_38] : memref<128x128xbf16, #tpu.memory_space<vmem>>, vector<128x128xbf16>
    %cst_39 = arith.constant dense<0.000000e+00> : vector<8x128xf32>
    %58 = tpu.matmul %56, %57, %cst_39 {dimension_numbers = #tpu.dot_dimension_numbers<[1], [0], [0], [1], [0, 0, 1, 1], [], []>} : vector<8x128xbf16>, vector<128x128xbf16>, vector<8x128xf32> -> vector<8x128xf32>
    %c3_40 = arith.constant 3 : index
    %c0_41 = arith.constant 0 : index
    %59 = vector.load %arg8[%c3_40, %c0_41] : memref<8x1024xf32, #tpu.memory_space<vmem>>, vector<1x128xf32>
    %60 = vector.broadcast %59 : vector<1x128xf32> to vector<8x128xf32>
    %61 = arith.addf %58, %60 : vector<8x128xf32>
    %cst_42 = arith.constant 0.000000e+00 : f32
    %62 = vector.broadcast %cst_42 : f32 to vector<8x128xf32>
    %63 = arith.maximumf %61, %62 : vector<8x128xf32>
    %64 = arith.truncf %63 : vector<8x128xf32> to vector<8x128xbf16>
    %c0_43 = arith.constant 0 : index
    %c0_44 = arith.constant 0 : index
    %65 = vector.load %arg5[%c0_43, %c0_44] : memref<128x512xbf16, #tpu.memory_space<vmem>>, vector<128x512xbf16>
    %cst_45 = arith.constant dense<0.000000e+00> : vector<8x512xf32>
    %66 = tpu.matmul %64, %65, %cst_45 {dimension_numbers = #tpu.dot_dimension_numbers<[1], [0], [0], [1], [0, 0, 1, 1], [], []>} : vector<8x128xbf16>, vector<128x512xbf16>, vector<8x512xf32> -> vector<8x512xf32>
    %c2_46 = arith.constant 2 : index
    %c0_47 = arith.constant 0 : index
    %67 = vector.load %arg8[%c2_46, %c0_47] : memref<8x1024xf32, #tpu.memory_space<vmem>>, vector<1x512xf32>
    %68 = vector.broadcast %67 : vector<1x512xf32> to vector<8x512xf32>
    %69 = arith.addf %66, %68 : vector<8x512xf32>
    %cst_48 = arith.constant 0.000000e+00 : f32
    %70 = vector.broadcast %cst_48 : f32 to vector<8x512xf32>
    %71 = arith.maximumf %69, %70 : vector<8x512xf32>
    %72 = arith.truncf %71 : vector<8x512xf32> to vector<8x512xbf16>
    %c0_49 = arith.constant 0 : index
    %c0_50 = arith.constant 0 : index
    %73 = vector.load %arg4[%c0_49, %c0_50] : memref<512x896xbf16, #tpu.memory_space<vmem>>, vector<512x896xbf16>
    %cst_51 = arith.constant dense<0.000000e+00> : vector<8x896xf32>
    %74 = tpu.matmul %72, %73, %cst_51 {dimension_numbers = #tpu.dot_dimension_numbers<[1], [0], [0], [1], [0, 0, 1, 1], [], []>} : vector<8x512xbf16>, vector<512x896xbf16>, vector<8x896xf32> -> vector<8x896xf32>
    %c1_52 = arith.constant 1 : index
    %c0_53 = arith.constant 0 : index
    %75 = vector.load %arg8[%c1_52, %c0_53] : memref<8x1024xf32, #tpu.memory_space<vmem>>, vector<1x896xf32>
    %76 = vector.broadcast %75 : vector<1x896xf32> to vector<8x896xf32>
    %77 = arith.addf %74, %76 : vector<8x896xf32>
    %cst_54 = arith.constant 0.000000e+00 : f32
    %78 = vector.broadcast %cst_54 : f32 to vector<8x896xf32>
    %79 = arith.maximumf %77, %78 : vector<8x896xf32>
    %80 = arith.truncf %79 : vector<8x896xf32> to vector<8x896xbf16>
    %c0_55 = arith.constant 0 : index
    %c0_56 = arith.constant 0 : index
    %81 = vector.load %arg3[%c0_55, %c0_56] : memref<896x1024xbf16, #tpu.memory_space<vmem>>, vector<896x1024xbf16>
    %cst_57 = arith.constant dense<0.000000e+00> : vector<8x1024xf32>
    %82 = tpu.matmul %80, %81, %cst_57 {dimension_numbers = #tpu.dot_dimension_numbers<[1], [0], [0], [1], [0, 0, 1, 1], [], []>} : vector<8x896xbf16>, vector<896x1024xbf16>, vector<8x1024xf32> -> vector<8x1024xf32>
    %c0_58 = arith.constant 0 : index
    %c0_59 = arith.constant 0 : index
    %83 = vector.load %arg8[%c0_58, %c0_59] : memref<8x1024xf32, #tpu.memory_space<vmem>>, vector<1x1024xf32>
    %84 = vector.broadcast %83 : vector<1x1024xf32> to vector<8x1024xf32>
    %85 = arith.addf %82, %84 : vector<8x1024xf32>
    %cst_60 = arith.constant 0.000000e+00 : f32
    %86 = vector.broadcast %cst_60 : f32 to vector<8x1024xf32>
    %87 = arith.maximumf %85, %86 : vector<8x1024xf32>
    %88 = arith.truncf %87 : vector<8x1024xf32> to vector<8x1024xbf16>
    %c0_61 = arith.constant 0 : index
    %c0_62 = arith.constant 0 : index
    %89 = vector.load %arg2[%c0_61, %c0_62] : memref<1024x896xbf16, #tpu.memory_space<vmem>>, vector<1024x896xbf16>
    %cst_63 = arith.constant dense<0.000000e+00> : vector<8x896xf32>
    %90 = tpu.matmul %88, %89, %cst_63 {dimension_numbers = #tpu.dot_dimension_numbers<[1], [0], [0], [1], [0, 0, 1, 1], [], []>} : vector<8x1024xbf16>, vector<1024x896xbf16>, vector<8x896xf32> -> vector<8x896xf32>
    %c6 = arith.constant 6 : index
    %c0_64 = arith.constant 0 : index
    %91 = vector.load %arg8[%c6, %c0_64] : memref<8x1024xf32, #tpu.memory_space<vmem>>, vector<1x896xf32>
    %92 = vector.broadcast %91 : vector<1x896xf32> to vector<8x896xf32>
    %93 = arith.addf %90, %92 : vector<8x896xf32>
    %94 = arith.negf %93 : vector<8x896xf32>
    %95 = math.exp %94 : vector<8x896xf32>
    %cst_65 = arith.constant 1.000000e+00 : f32
    %96 = vector.broadcast %cst_65 : f32 to vector<8x896xf32>
    %97 = arith.addf %96, %95 : vector<8x896xf32>
    %98 = arith.divf %96, %97 : vector<8x896xf32>
    %c0_66 = arith.constant 0 : index
    %c0_67 = arith.constant 0 : index
    %99 = vector.load %arg9[%c0_66, %c0_67] : memref<8x896xf32, #tpu.memory_space<vmem>>, vector<8x896xf32>
    tpu.vector_store %arg9[%c0_66, %c0_67], %98 {strides = array<i32>} : memref<8x896xf32, #tpu.memory_space<vmem>>, vector<8x896xf32>,
    return
  }
  func.func @transform_0(%arg0: i32) -> (i32, i32) {
    %c0_i32 = arith.constant 0 : i32
    %c0_i32_0 = arith.constant 0 : i32
    return %arg0, %c0_i32 : i32, i32
  }
  func.func @transform_1(%arg0: i32) -> (i32, i32) {
    %c0_i32 = arith.constant 0 : i32
    %c0_i32_0 = arith.constant 0 : i32
    %c0_i32_1 = arith.constant 0 : i32
    return %c0_i32, %c0_i32_0 : i32, i32
  }
  func.func @transform_2(%arg0: i32) -> (i32, i32) {
    %c0_i32 = arith.constant 0 : i32
    %c0_i32_0 = arith.constant 0 : i32
    %c0_i32_1 = arith.constant 0 : i32
    return %c0_i32, %c0_i32_0 : i32, i32
  }
  func.func @transform_3(%arg0: i32) -> (i32, i32) {
    %c0_i32 = arith.constant 0 : i32
    %c0_i32_0 = arith.constant 0 : i32
    %c0_i32_1 = arith.constant 0 : i32
    return %c0_i32, %c0_i32_0 : i32, i32
  }
  func.func @transform_4(%arg0: i32) -> (i32, i32) {
    %c0_i32 = arith.constant 0 : i32
    %c0_i32_0 = arith.constant 0 : i32
    %c0_i32_1 = arith.constant 0 : i32
    return %c0_i32, %c0_i32_0 : i32, i32
  }
  func.func @transform_5(%arg0: i32) -> (i32, i32) {
    %c0_i32 = arith.constant 0 : i32
    %c0_i32_0 = arith.constant 0 : i32
    %c0_i32_1 = arith.constant 0 : i32
    return %c0_i32, %c0_i32_0 : i32, i32
  }
  func.func @transform_6(%arg0: i32) -> (i32, i32) {
    %c0_i32 = arith.constant 0 : i32
    %c0_i32_0 = arith.constant 0 : i32
    %c0_i32_1 = arith.constant 0 : i32
    return %c0_i32, %c0_i32_0 : i32, i32
  }
  func.func @transform_7(%arg0: i32) -> (i32, i32) {
    %c0_i32 = arith.constant 0 : i32
    %c0_i32_0 = arith.constant 0 : i32
    %c0_i32_1 = arith.constant 0 : i32
    return %c0_i32, %c0_i32_0 : i32, i32
  }
  func.func @transform_8(%arg0: i32) -> (i32, i32) {
    %c0_i32 = arith.constant 0 : i32
    %c0_i32_0 = arith.constant 0 : i32
    return %arg0, %c0_i32 : i32, i32
  }
}

</mosaic_0001>

<bundles_post_ra>
// kernel: autoencoder_forward.1
= control target key start
LH: loop header
LB: loop body
LE: loop exit
PB: predicated region body
PF: predicated region fallthrough
CT: control target
= control target key end

     0   :  { %13 = vsyncpa [#allocation3], 0  ;;  %s17692_s0 = inlined_call_operand.vmem [shape: bf16[8,896], index: 0, kind: input, shape index: {}]   ;;  %s17693_s1 = inlined_call_operand.hbm [shape: bf16[1024,896], index: 1, kind: input, shape index: {}]   ;;  %s17694_s2 = inlined_call_operand.hbm [shape: bf16[896,1024], index: 2, kind: input, shape index: {}]   ;;  %s17695_s3 = inlined_call_operand.hbm [shape: bf16[512,896], index: 3, kind: input, shape index: {}]   ;;  %s17696_s4 = inlined_call_operand.hbm [shape: bf16[128,512], index: 4, kind: input, shape index: {}]   ;;  %s17697_s5 = inlined_call_operand.hbm [shape: bf16[128,128], index: 5, kind: input, shape index: {}]   ;;  %s17698_s6 = inlined_call_operand.hbm [shape: bf16[128,128], index: 6, kind: input, shape index: {}]   ;;  %s17699_s7 = inlined_call_operand.hbm [shape: f32[8,1024], index: 7, kind: input, shape index: {}]   ;;  %s17700_s8 = inlined_call_operand.vmem [shape: f32[8,896], index: 8, kind: output, shape index: {}]  }
   0x1   :  { %14 = vsyncpa [#allocation5], 0 }
   0x2   :  { %15 = vsyncpa [#allocation8], 0 }
   0x3   :  { %16 = vsyncpa [#allocation11], 0  ;;  %s14963_s27 = smov [#allocation4]   ;;  %s14801_s9 = scalar_lea.hbm %s17694_s2, 57344 }
   0x4   :  { %s36_s28 = sshll.u32 %s14963_s27, 4  ;;  %p14802_p0 = scmp.ne.s32.totalorder %s17694_s2, %s14801_s9  ;;  %s37_s28 = int_to_ptr.vmem [resolvable:$true] %s36_s28 }
   0x5   :  { %p14805_p1 = scmp.lt.u32.totalorder %s14801_s9, %s17694_s2 }
   0x7   :  { %p14807_p2 = pnand %p14805_p1, %p14802_p0 }
   0x9   :  { %14810 = shalt.err (!%p14807_p2)
}
   0xa   :  { %s14811_s14 = scalar_lea.vmem %s37_s28, 57344  ;;  %p14816_p4 = scmp.lt.s32.totalorder %s37_s28, %s37_s28 }
   0xb   :  { %p14812_p3 = scmp.ne.s32.totalorder %s37_s28, %s14811_s14  ;;  %p14817_p5 = scmp.lt.s32.totalorder %s14811_s14, %s14811_s14 }
   0xd   :  { %p14818_p6 = por %p14817_p5, %p14816_p4 }
   0xf   :  { %p14819_p7 = pnand %p14818_p6, %p14812_p3 }
  0x11   :  { %14822 = shalt.err (!%p14819_p7)
}
  0x12   :  { %s14964_s15 = smov 512   ;;  %s14965_s16 = smov 32  }
  0x13   :  { %42 = dma.hbm_to_vmem [thread:$0]  %s17694_s2, 57344, %s37_s28, [#allocation5], %s14964_s15, %s14964_s15, %s14965_s16  }
  0x14   :  { %s14966_s19 = smov [#allocation7]   ;;  %s14823_s23 = scalar_lea.hbm %s17696_s4, 4096 }
  0x15   :  { %s60_s20 = sshll.u32 %s14966_s19, 4  ;;  %p14824_p8 = scmp.ne.s32.totalorder %s17696_s4, %s14823_s23  ;;  %s61_s20 = int_to_ptr.vmem [resolvable:$true] %s60_s20 }
  0x16   :  { %p14827_p9 = scmp.lt.u32.totalorder %s14823_s23, %s17696_s4 }
  0x18   :  { %p14829_p10 = pnand %p14827_p9, %p14824_p8 }
  0x1a   :  { %14832 = shalt.err (!%p14829_p10)
}
  0x1b   :  { %s14833_s29 = scalar_lea.vmem %s61_s20, 4096  ;;  %p14838_p12 = scmp.lt.s32.totalorder %s61_s20, %s61_s20 }
  0x1c   :  { %p14834_p11 = scmp.ne.s32.totalorder %s61_s20, %s14833_s29  ;;  %p14839_p13 = scmp.lt.s32.totalorder %s14833_s29, %s14833_s29 }
  0x1e   :  { %p14840_p0 = por %p14839_p13, %p14838_p12 }
  0x20   :  { %p14841_p1 = pnand %p14840_p0, %p14834_p11 }
  0x22   :  { %14844 = shalt.err (!%p14841_p1)
}
  0x23   :  { %s14967_s2 = smov 256   ;;  %s14968_s28 = smov 16  }
  0x24   :  { %66 = dma.hbm_to_vmem [thread:$0]  %s17696_s4, 4096, %s61_s20, [#allocation8], %s14967_s2, %s14967_s2, %s14968_s28  }
  0x25   :  { %s14969_s10 = smov [#allocation10]   ;;  %s14970_s12 = smov [#allocation2]  }
  0x26   :  { %s84_s11 = sshll.u32 %s14969_s10, 4  ;;  %s24_s13 = sshll.u32 %s14970_s12, 4  ;;  %s85_s11 = int_to_ptr.vmem [resolvable:$true] %s84_s11  ;;  %s15050_s13 = int_to_ptr.vmem [resolvable:$true] %s24_s13 }
  0x27   :  { %s14845_s16 = scalar_lea.hbm %s17698_s6, 1024 }
  0x28   :  { %p14846_p2 = scmp.ne.s32.totalorder %s17698_s6, %s14845_s16  ;;  %p14849_p3 = scmp.lt.u32.totalorder %s14845_s16, %s17698_s6 }
  0x2a   :  { %p14851_p4 = pnand %p14849_p3, %p14846_p2 }
  0x2c   :  { %14854 = shalt.err (!%p14851_p4)
}
  0x2d   :  { %s14855_s4 = scalar_lea.vmem %s85_s11, 1024  ;;  %p14860_p6 = scmp.lt.s32.totalorder %s85_s11, %s85_s11 }
  0x2e   :  { %p14856_p5 = scmp.ne.s32.totalorder %s85_s11, %s14855_s4  ;;  %p14861_p7 = scmp.lt.s32.totalorder %s14855_s4, %s14855_s4 }
  0x30   :  { %p14862_p8 = por %p14861_p7, %p14860_p6 }
  0x32   :  { %p14863_p9 = pnand %p14862_p8, %p14856_p5 }
  0x34   :  { %14866 = shalt.err (!%p14863_p9)
}
  0x35   :  { %s14971_s20 = smov 64   ;;  %s14972_s22 = smov 4  }
  0x36   :  { %90 = dma.hbm_to_vmem [thread:$0]  %s17698_s6, 1024, %s85_s11, [#allocation11], %s14971_s20, %s14971_s20, %s14972_s22  }
  0x37   :  { %s14867_s27 = scalar_lea.hbm %s17693_s1, 57344 }
  0x38   :  { %p14868_p10 = scmp.ne.s32.totalorder %s17693_s1, %s14867_s27  ;;  %p14871_p11 = scmp.lt.u32.totalorder %s14867_s27, %s17693_s1 }
  0x3a   :  { %p14873_p12 = pnand %p14871_p11, %p14868_p10 }
  0x3c   :  { %14876 = shalt.err (!%p14873_p12)
}
  0x3d   :  { %s14877_s9 = scalar_lea.vmem %s15050_s13, 57344  ;;  %p14882_p0 = scmp.lt.s32.totalorder %s15050_s13, %s15050_s13 }
  0x3e   :  { %p14878_p13 = scmp.ne.s32.totalorder %s15050_s13, %s14877_s9  ;;  %p14883_p1 = scmp.lt.s32.totalorder %s14877_s9, %s14877_s9 }
  0x40   :  { %p14884_p2 = por %p14883_p1, %p14882_p0 }
  0x42   :  { %p14885_p3 = pnand %p14884_p2, %p14878_p13 }
  0x44   :  { %14888 = shalt.err (!%p14885_p3)
}
  0x45   :  { %s14973_s6 = smov 448   ;;  %s14974_s10 = smov 28  }
  0x46   :  { %30 = dma.hbm_to_vmem [thread:$0]  %s17693_s1, 57344, %s15050_s13, [#allocation3], %s14973_s6, %s14973_s6, %s14974_s10  }
  0x47   :  { %s14975_s14 = smov [#allocation6]   ;;  %s14976_s16 = smov [#allocation9]  }
  0x48   :  { %s48_s15 = sshll.u32 %s14975_s14, 4  ;;  %s72_s17 = sshll.u32 %s14976_s16, 4  ;;  %s49_s15 = int_to_ptr.vmem [resolvable:$true] %s48_s15  ;;  %s15084_s17 = int_to_ptr.vmem [resolvable:$true] %s72_s17 }
  0x49   :  { %s14889_s21 = scalar_lea.hbm %s17695_s3, 28672 }
  0x4a   :  { %p14890_p4 = scmp.ne.s32.totalorder %s17695_s3, %s14889_s21  ;;  %p14893_p5 = scmp.lt.u32.totalorder %s14889_s21, %s17695_s3 }
  0x4c   :  { %p14895_p6 = pnand %p14893_p5, %p14890_p4 }
  0x4e   :  { %14898 = shalt.err (!%p14895_p6)
}
  0x4f   :  { %s14899_s1 = scalar_lea.vmem %s49_s15, 28672  ;;  %p14904_p8 = scmp.lt.s32.totalorder %s49_s15, %s49_s15 }
  0x50   :  { %p14900_p7 = scmp.ne.s32.totalorder %s49_s15, %s14899_s1  ;;  %p14905_p9 = scmp.lt.s32.totalorder %s14899_s1, %s14899_s1 }
  0x52   :  { %p14906_p10 = por %p14905_p9, %p14904_p8 }
  0x54   :  { %p14907_p11 = pnand %p14906_p10, %p14900_p7 }
  0x56   :  { %14910 = shalt.err (!%p14907_p11)
}
  0x57   :  { %54 = dma.hbm_to_vmem [thread:$0]  %s17695_s3, 28672, %s49_s15, [#allocation5], %s14973_s6, %s14973_s6, %s14974_s10  }
  0x58   :  { %s14911_s2 = scalar_lea.hbm %s17697_s5, 1024 }
  0x59   :  { %p14912_p12 = scmp.ne.s32.totalorder %s17697_s5, %s14911_s2  ;;  %p14915_p13 = scmp.lt.u32.totalorder %s14911_s2, %s17697_s5 }
  0x5b   :  { %p14917_p0 = pnand %p14915_p13, %p14912_p12 }
  0x5d   :  { %14920 = shalt.err (!%p14917_p0)
}
  0x5e   :  { %s14921_s12 = scalar_lea.vmem %s15084_s17, 1024  ;;  %p14926_p2 = scmp.lt.s32.totalorder %s15084_s17, %s15084_s17 }
  0x5f   :  { %p14922_p1 = scmp.ne.s32.totalorder %s15084_s17, %s14921_s12  ;;  %p14927_p3 = scmp.lt.s32.totalorder %s14921_s12, %s14921_s12 }
  0x61   :  { %p14928_p4 = por %p14927_p3, %p14926_p2 }
  0x63   :  { %p14929_p5 = pnand %p14928_p4, %p14922_p1 }
  0x65   :  { %14932 = shalt.err (!%p14929_p5)
}
  0x66   :  { %78 = dma.hbm_to_vmem [thread:$0]  %s17697_s5, 1024, %s15084_s17, [#allocation8], %s14971_s20, %s14971_s20, %s14972_s22  }
  0x67   :  { %s14977_s10 = smov [#allocation12]   ;;  %s14933_s18 = scalar_lea.hbm %s17699_s7, 1024 }
  0x68   :  { %s97_s14 = sshll.u32 %s14977_s10, 4  ;;  %p14934_p6 = scmp.ne.s32.totalorder %s17699_s7, %s14933_s18  ;;  %s98_s14 = int_to_ptr.vmem [resolvable:$true] %s97_s14 }
  0x69   :  { %p14937_p7 = scmp.lt.u32.totalorder %s14933_s18, %s17699_s7 }
  0x6b   :  { %p14939_p8 = pnand %p14937_p7, %p14934_p6 }
  0x6d   :  { %14942 = shalt.err (!%p14939_p8)
}
  0x6e   :  { %s14943_s24 = scalar_lea.vmem %s98_s14, 1024  ;;  %p14948_p10 = scmp.lt.s32.totalorder %s98_s14, %s98_s14 }
  0x6f   :  { %p14944_p9 = scmp.ne.s32.totalorder %s98_s14, %s14943_s24  ;;  %p14949_p11 = scmp.lt.s32.totalorder %s14943_s24, %s14943_s24 }
  0x71   :  { %p14950_p12 = por %p14949_p11, %p14948_p10 }
  0x73   :  { %p14951_p13 = pnand %p14950_p12, %p14944_p9 }
  0x75   :  { %14954 = shalt.err (!%p14951_p13)
}
  0x76   :  { %100 = dma.hbm_to_vmem [thread:$0]  %s17699_s7, 1024, %s98_s14, [#allocation11]  }
  0x77   :  { %14955 = dma.done.wait [#allocation3], 57344  }
  0x78   :  { %14956 = vsyncadd [#allocation3], 4294909952 }
  0x79   :  { %14957 = dma.done.wait [#allocation5], 86016  }
  0x7a   :  { %14958 = vsyncadd [#allocation5], 4294881280 }
  0x7b   :  { %14959 = dma.done.wait [#allocation8], 5120  }
  0x7c   :  { %14960 = vsyncadd [#allocation8], 4294962176 }
  0x7d   :  { %14961 = dma.done.wait [#allocation11], 2048  }
  0x7e   :  { %14962 = vsyncadd [#allocation11], 4294965248  ;;  %v13085_v0 = vld [vmem:[#allocation2 + $0x4] ss:$28 sps:$4 sm:$0xff]   ;;  %v13091_v4 = vld [vmem:[#allocation2 + $0x3c] ss:$28 sps:$4 sm:$0xff]  }
  0x7f   :  { %v13087_v1 = vld [vmem:[#allocation2 + $0x384] ss:$28 sps:$4 sm:$0xff]   ;;  %3012 = vmatprep.subr.bf16.mxu0 %v13085_v0  ;;  %v13093_v5 = vld [vmem:[#allocation2 + $0x3bc] ss:$28 sps:$4 sm:$0xff]   ;;  %v13097_v8 = vld [vmem:[#allocation2 + $0x74] ss:$28 sps:$4 sm:$0xff]  }
  0x80   :  { %v13089_v2 = vld [vmem:[#allocation2] ss:$28 sps:$4 sm:$0xff]   ;;  %3176 = vmatprep.subr.bf16.mxu1 %v13087_v1  ;;  %v13095_v6 = vld [vmem:[#allocation2 + $0x38] ss:$28 sps:$4 sm:$0xff]   ;;  %v13101_v10 = vld [vmem:[#allocation2 + $0x70] ss:$28 sps:$4 sm:$0xff]  }
  0x81   :  { %v13090_v3 = vld [vmem:[#allocation2 + $0x380] ss:$28 sps:$4 sm:$0xff]   ;;  %3013 = vmatpush1.bf16.xpose.msra.mxu0 %v13089_v2  ;;  %v13096_v7 = vld [vmem:[#allocation2 + $0x3b8] ss:$28 sps:$4 sm:$0xff]   ;;  %v13102_v11 = vld [vmem:[#allocation2 + $0x3f0] ss:$28 sps:$4 sm:$0xff]  }
  0x82   :  { %3177 = vmatpush1.bf16.xpose.msra.mxu1 %v13090_v3  ;;  %3014 = vmatprep.subr.bf16.mxu0 %v13091_v4  ;;  %v13099_v9 = vld [vmem:[#allocation2 + $0x3f4] ss:$28 sps:$4 sm:$0xff]   ;;  %v13103_v12 = vld [vmem:[#allocation2 + $0xac] ss:$28 sps:$4 sm:$0xff]   ;;  %v13109_v16 = vld [vmem:[#allocation2 + $0xe4] ss:$28 sps:$4 sm:$0xff]  }
  0x83   :  { %3178 = vmatprep.subr.bf16.mxu1 %v13093_v5  ;;  %v13105_v13 = vld [vmem:[#allocation2 + $0x42c] ss:$28 sps:$4 sm:$0xff]   ;;  %v13111_v17 = vld [vmem:[#allocation2 + $0x464] ss:$28 sps:$4 sm:$0xff]   ;;  %v13115_v20 = vld [vmem:[#allocation2 + $0x11c] ss:$28 sps:$4 sm:$0xff]  }
  0x84   :  { %v13107_v14 = vld [vmem:[#allocation2 + $0xa8] ss:$28 sps:$4 sm:$0xff]   ;;  %v13113_v18 = vld [vmem:[#allocation2 + $0xe0] ss:$28 sps:$4 sm:$0xff]   ;;  %v13119_v22 = vld [vmem:[#allocation2 + $0x118] ss:$28 sps:$4 sm:$0xff]  }
  0x85   :  { %v13108_v15 = vld [vmem:[#allocation2 + $0x428] ss:$28 sps:$4 sm:$0xff]   ;;  %v13114_v19 = vld [vmem:[#allocation2 + $0x460] ss:$28 sps:$4 sm:$0xff]   ;;  %v13120_v23 = vld [vmem:[#allocation2 + $0x498] ss:$28 sps:$4 sm:$0xff]  }
  0x86   :  { %v13117_v21 = vld [vmem:[#allocation2 + $0x49c] ss:$28 sps:$4 sm:$0xff]   ;;  %v13121_v24 = vld [vmem:[#allocation2 + $0x154] ss:$28 sps:$4 sm:$0xff]   ;;  %v15133_v26 = vld [vmem:[%s17692_s0] sm:$0xff]  ;;  %vm14979_vm0 = vmmov 0  }
  0x87   :  { %v13123_v25 = vld [vmem:[#allocation2 + $0x4d4] ss:$28 sps:$4 sm:$0xff]   ;;  %v15137_v27 = vcombine.high %v15133_v26, %v15133_v26  ;;  %v13127_v30 = vld [vmem:[#allocation2 + $0x18c] ss:$28 sps:$4 sm:$0xff]   ;;  %v13133_v34 = vld [vmem:[#allocation2 + $0x1c4] ss:$28 sps:$4 sm:$0xff]  }
  0x88   :  { %v13125_v28 = vld [vmem:[#allocation2 + $0x150] ss:$28 sps:$4 sm:$0xff]   ;;  %v13131_v32 = vld [vmem:[#allocation2 + $0x188] ss:$28 sps:$4 sm:$0xff]   ;;  %v13137_v36 = vld [vmem:[#allocation2 + $0x1c0] ss:$28 sps:$4 sm:$0xff]  }
  0x89   :  { %3015 = vmatpush1.bf16.xpose.msra.mxu0 %v13095_v6  ;;  %3044 = vmatprep.mubr.bf16.mxu0 %v15137_v27  ;;  %v13126_v29 = vld [vmem:[#allocation2 + $0x4d0] ss:$28 sps:$4 sm:$0xff]   ;;  %v13132_v33 = vld [vmem:[#allocation2 + $0x508] ss:$28 sps:$4 sm:$0xff]   ;;  %v13138_v37 = vld [vmem:[#allocation2 + $0x540] ss:$28 sps:$4 sm:$0xff]  }
  0x8a   :  { %3179 = vmatpush1.bf16.xpose.msra.mxu1 %v13096_v7  ;;  %3016 = vmatprep.subr.bf16.mxu0 %v13097_v8  ;;  %v13129_v31 = vld [vmem:[#allocation2 + $0x50c] ss:$28 sps:$4 sm:$0xff]   ;;  %v13135_v35 = vld [vmem:[#allocation2 + $0x544] ss:$28 sps:$4 sm:$0xff]   ;;  %v13139_v38 = vld [vmem:[#allocation2 + $0x1fc] ss:$28 sps:$4 sm:$0xff]   ;;  %v15148_v7 = vcombine.low %v15133_v26, %v15133_v26 }
  0x8b   :  { %3180 = vmatprep.subr.bf16.mxu1 %v13099_v9  ;;  %3208 = vmatprep.mubr.bf16.mxu1 %v15137_v27  ;;  %v13141_v39 = vld [vmem:[#allocation2 + $0x57c] ss:$28 sps:$4 sm:$0xff]   ;;  %v13145_v42 = vld [vmem:[#allocation2 + $0x234] ss:$28 sps:$4 sm:$0xff]   ;;  %v13151_v46 = vld [vmem:[#allocation2 + $0x26c] ss:$28 sps:$4 sm:$0xff]  }
  0x8c   :  { %v13143_v40 = vld [vmem:[#allocation2 + $0x1f8] ss:$28 sps:$4 sm:$0xff]   ;;  %v13149_v44 = vld [vmem:[#allocation2 + $0x230] ss:$28 sps:$4 sm:$0xff]   ;;  %v13155_v48 = vld [vmem:[#allocation2 + $0x268] ss:$28 sps:$4 sm:$0xff]  }
  0x8d   :  { %v13144_v41 = vld [vmem:[#allocation2 + $0x578] ss:$28 sps:$4 sm:$0xff]   ;;  %v13150_v45 = vld [vmem:[#allocation2 + $0x5b0] ss:$28 sps:$4 sm:$0xff]   ;;  %v13156_v49 = vld [vmem:[#allocation2 + $0x5e8] ss:$28 sps:$4 sm:$0xff]  }
  0x8e   :  { %v13147_v43 = vld [vmem:[#allocation2 + $0x5b4] ss:$28 sps:$4 sm:$0xff]   ;;  %v13153_v47 = vld [vmem:[#allocation2 + $0x5ec] ss:$28 sps:$4 sm:$0xff]   ;;  %v13157_v50 = vld [vmem:[#allocation2 + $0x2a4] ss:$28 sps:$4 sm:$0xff]  }
  0x8f   :  { %v13159_v51 = vld [vmem:[#allocation2 + $0x624] ss:$28 sps:$4 sm:$0xff]   ;;  %v13163_v54 = vld [vmem:[#allocation2 + $0x2dc] ss:$28 sps:$4 sm:$0xff]   ;;  %v13169_v58 = vld [vmem:[#allocation2 + $0x314] ss:$28 sps:$4 sm:$0xff]  }
  0x90   :  { %v13161_v52 = vld [vmem:[#allocation2 + $0x2a0] ss:$28 sps:$4 sm:$0xff]   ;;  %v13167_v56 = vld [vmem:[#allocation2 + $0x2d8] ss:$28 sps:$4 sm:$0xff]   ;;  %v13173_v60 = vld [vmem:[#allocation2 + $0x310] ss:$28 sps:$4 sm:$0xff]  }
  0x91   :  { %3017 = vmatpush1.bf16.xpose.msra.mxu0 %v13101_v10  ;;  %v13162_v53 = vld [vmem:[#allocation2 + $0x620] ss:$28 sps:$4 sm:$0xff]   ;;  %v13168_v57 = vld [vmem:[#allocation2 + $0x658] ss:$28 sps:$4 sm:$0xff]   ;;  %v13174_v61 = vld [vmem:[#allocation2 + $0x690] ss:$28 sps:$4 sm:$0xff]  }
  0x92   :  { %3181 = vmatpush1.bf16.xpose.msra.mxu1 %v13102_v11  ;;  %3018 = vmatprep.subr.bf16.mxu0 %v13103_v12  ;;  %v13165_v55 = vld [vmem:[#allocation2 + $0x65c] ss:$28 sps:$4 sm:$0xff]   ;;  %v13171_v59 = vld [vmem:[#allocation2 + $0x694] ss:$28 sps:$4 sm:$0xff]   ;;  %v13175_v62 = vld [vmem:[#allocation2 + $0x34c] ss:$28 sps:$4 sm:$0xff]  }
  0x93   :  { %3182 = vmatprep.subr.bf16.mxu1 %v13105_v13  ;;  %v13177_v63 = vld [vmem:[#allocation2 + $0x6cc] ss:$28 sps:$4 sm:$0xff]   ;;  %v13191_v8 = vld [vmem:[#allocation2 + $0x44] ss:$28 sps:$4 sm:$0xff]   ;;  %v13197_v13 = vld [vmem:[#allocation2 + $0x7c] ss:$28 sps:$4 sm:$0xff]  }
  0x94   :  { %v13179_v0 = vld [vmem:[#allocation2 + $0x348] ss:$28 sps:$4 sm:$0xff]   ;;  %v13189_v11 = vld [vmem:[#allocation2 + $0x40] ss:$28 sps:$4 sm:$0xff]  }
  0x95   :  { %v13180_v1 = vld [vmem:[#allocation2 + $0x6c8] ss:$28 sps:$4 sm:$0xff]   ;;  %v13192_v12 = vld [vmem:[#allocation2 + $0x3c0] ss:$28 sps:$4 sm:$0xff]  }
  0x96   :  { %v13184_v2 = vld [vmem:[#allocation2 + $0xc] ss:$28 sps:$4 sm:$0xff]   ;;  %v13194_v9 = vld [vmem:[#allocation2 + $0x3c4] ss:$28 sps:$4 sm:$0xff]  }
  0x97   :  { %v13187_v3 = vld [vmem:[#allocation2 + $0x38c] ss:$28 sps:$4 sm:$0xff]   ;;  %v13218_v26 = vld [vmem:[#allocation2 + $0x4a4] ss:$28 sps:$4 sm:$0xff]  }
  0x98   :  { %v15144_v4 = vld [vmem:[%s17692_s0 + $0x8] sm:$0xff] }
  0x99   :  { %3019 = vmatpush1.bf16.xpose.msra.mxu0 %v13107_v14  ;;  %v13182_v5 = vld [vmem:[#allocation2 + $0x8] ss:$28 sps:$4 sm:$0xff]   ;;  %v15152_v10 = vcombine.high %v15144_v4, %v15144_v4  ;;  %v13200_v14 = vld [vmem:[#allocation2 + $0x3fc] ss:$28 sps:$4 sm:$0xff]  }
  0x9a   :  { %3183 = vmatpush1.bf16.xpose.msra.mxu1 %v13108_v15  ;;  %3020 = vmatprep.subr.bf16.mxu0 %v13109_v16  ;;  %v13185_v6 = vld [vmem:[#allocation2 + $0x388] ss:$28 sps:$4 sm:$0xff]   ;;  %v13195_v15 = vld [vmem:[#allocation2 + $0x78] ss:$28 sps:$4 sm:$0xff]  }
  0x9b   :  { %3184 = vmatprep.subr.bf16.mxu1 %v13111_v17  ;;  %v13198_v16 = vld [vmem:[#allocation2 + $0x3f8] ss:$28 sps:$4 sm:$0xff]  }
  0x9c   :  { %v13203_v17 = vld [vmem:[#allocation2 + $0xb4] ss:$28 sps:$4 sm:$0xff]  }
  0xa1   :  { %3021 = vmatpush1.bf16.xpose.msra.mxu0 %v13113_v18  ;;  %v13206_v18 = vld [vmem:[#allocation2 + $0x434] ss:$28 sps:$4 sm:$0xff]  }
  0xa2   :  { %3185 = vmatpush1.bf16.xpose.msra.mxu1 %v13114_v19  ;;  %3022 = vmatprep.subr.bf16.mxu0 %v13115_v20  ;;  %v13201_v19 = vld [vmem:[#allocation2 + $0xb0] ss:$28 sps:$4 sm:$0xff]  }
  0xa3   :  { %3186 = vmatprep.subr.bf16.mxu1 %v13117_v21  ;;  %v13204_v20 = vld [vmem:[#allocation2 + $0x430] ss:$28 sps:$4 sm:$0xff]  }
  0xa4   :  { %v13209_v21 = vld [vmem:[#allocation2 + $0xec] ss:$28 sps:$4 sm:$0xff]  }
  0xa9   :  { %3023 = vmatpush1.bf16.xpose.msra.mxu0 %v13119_v22  ;;  %v13212_v22 = vld [vmem:[#allocation2 + $0x46c] ss:$28 sps:$4 sm:$0xff]  }
  0xaa   :  { %3187 = vmatpush1.bf16.xpose.msra.mxu1 %v13120_v23  ;;  %3024 = vmatprep.subr.bf16.mxu0 %v13121_v24  ;;  %v13207_v23 = vld [vmem:[#allocation2 + $0xe8] ss:$28 sps:$4 sm:$0xff]  }
  0xab   :  { %3188 = vmatprep.subr.bf16.mxu1 %v13123_v25  ;;  %v13210_v24 = vld [vmem:[#allocation2 + $0x468] ss:$28 sps:$4 sm:$0xff]  }
  0xac   :  { %v13215_v25 = vld [vmem:[#allocation2 + $0x124] ss:$28 sps:$4 sm:$0xff]  }
  0xb1   :  { %3025 = vmatpush1.bf16.xpose.msra.mxu0 %v13125_v28  ;;  %v13213_v28 = vld [vmem:[#allocation2 + $0x120] ss:$28 sps:$4 sm:$0xff]  }
  0xb2   :  { %3189 = vmatpush1.bf16.xpose.msra.mxu1 %v13126_v29  ;;  %3026 = vmatprep.subr.bf16.mxu0 %v13127_v30  ;;  %v13216_v29 = vld [vmem:[#allocation2 + $0x4a0] ss:$28 sps:$4 sm:$0xff]  }
  0xb3   :  { %3190 = vmatprep.subr.bf16.mxu1 %v13129_v31  ;;  %v13221_v30 = vld [vmem:[#allocation2 + $0x15c] ss:$28 sps:$4 sm:$0xff]  }
  0xb4   :  { %v13224_v31 = vld [vmem:[#allocation2 + $0x4dc] ss:$28 sps:$4 sm:$0xff]  }
  0xb9   :  { %3027 = vmatpush1.bf16.xpose.msra.mxu0 %v13131_v32  ;;  %v13219_v32 = vld [vmem:[#allocation2 + $0x158] ss:$28 sps:$4 sm:$0xff]  }
  0xba   :  { %3191 = vmatpush1.bf16.xpose.msra.mxu1 %v13132_v33  ;;  %3028 = vmatprep.subr.bf16.mxu0 %v13133_v34  ;;  %v13222_v33 = vld [vmem:[#allocation2 + $0x4d8] ss:$28 sps:$4 sm:$0xff]  }
  0xbb   :  { %3192 = vmatprep.subr.bf16.mxu1 %v13135_v35  ;;  %v13227_v34 = vld [vmem:[#allocation2 + $0x194] ss:$28 sps:$4 sm:$0xff]  }
  0xbc   :  { %v13230_v35 = vld [vmem:[#allocation2 + $0x514] ss:$28 sps:$4 sm:$0xff]  }
  0xc1   :  { %3029 = vmatpush1.bf16.xpose.msra.mxu0 %v13137_v36  ;;  %v13225_v36 = vld [vmem:[#allocation2 + $0x190] ss:$28 sps:$4 sm:$0xff]  }
  0xc2   :  { %3193 = vmatpush1.bf16.xpose.msra.mxu1 %v13138_v37  ;;  %3030 = vmatprep.subr.bf16.mxu0 %v13139_v38  ;;  %v13228_v37 = vld [vmem:[#allocation2 + $0x510] ss:$28 sps:$4 sm:$0xff]  }
  0xc3   :  { %3194 = vmatprep.subr.bf16.mxu1 %v13141_v39  ;;  %v13233_v38 = vld [vmem:[#allocation2 + $0x1cc] ss:$28 sps:$4 sm:$0xff]  }
  0xc4   :  { %v13236_v39 = vld [vmem:[#allocation2 + $0x54c] ss:$28 sps:$4 sm:$0xff]  }
  0xc9   :  { %3031 = vmatpush1.bf16.xpose.msra.mxu0 %v13143_v40  ;;  %v13231_v40 = vld [vmem:[#allocation2 + $0x1c8] ss:$28 sps:$4 sm:$0xff]  }
  0xca   :  { %3195 = vmatpush1.bf16.xpose.msra.mxu1 %v13144_v41  ;;  %3032 = vmatprep.subr.bf16.mxu0 %v13145_v42  ;;  %v13234_v41 = vld [vmem:[#allocation2 + $0x548] ss:$28 sps:$4 sm:$0xff]  }
  0xcb   :  { %3196 = vmatprep.subr.bf16.mxu1 %v13147_v43  ;;  %v13239_v42 = vld [vmem:[#allocation2 + $0x204] ss:$28 sps:$4 sm:$0xff]  }
  0xcc   :  { %v13242_v43 = vld [vmem:[#allocation2 + $0x584] ss:$28 sps:$4 sm:$0xff]  }
  0xd1   :  { %3033 = vmatpush1.bf16.xpose.msra.mxu0 %v13149_v44  ;;  %v13237_v44 = vld [vmem:[#allocation2 + $0x200] ss:$28 sps:$4 sm:$0xff]  }
  0xd2   :  { %3197 = vmatpush1.bf16.xpose.msra.mxu1 %v13150_v45  ;;  %3034 = vmatprep.subr.bf16.mxu0 %v13151_v46  ;;  %v13240_v45 = vld [vmem:[#allocation2 + $0x580] ss:$28 sps:$4 sm:$0xff]  }
  0xd3   :  { %3198 = vmatprep.subr.bf16.mxu1 %v13153_v47  ;;  %v13245_v46 = vld [vmem:[#allocation2 + $0x23c] ss:$28 sps:$4 sm:$0xff]  }
  0xd4   :  { %v13248_v47 = vld [vmem:[#allocation2 + $0x5bc] ss:$28 sps:$4 sm:$0xff]  }
  0xd9   :  { %3035 = vmatpush1.bf16.xpose.msra.mxu0 %v13155_v48  ;;  %v13243_v48 = vld [vmem:[#allocation2 + $0x238] ss:$28 sps:$4 sm:$0xff]  }
  0xda   :  { %3199 = vmatpush1.bf16.xpose.msra.mxu1 %v13156_v49  ;;  %3036 = vmatprep.subr.bf16.mxu0 %v13157_v50  ;;  %v13246_v49 = vld [vmem:[#allocation2 + $0x5b8] ss:$28 sps:$4 sm:$0xff]  }
  0xdb   :  { %3200 = vmatprep.subr.bf16.mxu1 %v13159_v51  ;;  %v13251_v50 = vld [vmem:[#allocation2 + $0x274] ss:$28 sps:$4 sm:$0xff]  }
  0xdc   :  { %v13254_v51 = vld [vmem:[#allocation2 + $0x5f4] ss:$28 sps:$4 sm:$0xff]  }
  0xe1   :  { %3037 = vmatpush1.bf16.xpose.msra.mxu0 %v13161_v52  ;;  %v13249_v52 = vld [vmem:[#allocation2 + $0x270] ss:$28 sps:$4 sm:$0xff]  }
  0xe2   :  { %3201 = vmatpush1.bf16.xpose.msra.mxu1 %v13162_v53  ;;  %3038 = vmatprep.subr.bf16.mxu0 %v13163_v54  ;;  %v13252_v53 = vld [vmem:[#allocation2 + $0x5f0] ss:$28 sps:$4 sm:$0xff]  }
  0xe3   :  { %3202 = vmatprep.subr.bf16.mxu1 %v13165_v55  ;;  %v13257_v54 = vld [vmem:[#allocation2 + $0x2ac] ss:$28 sps:$4 sm:$0xff]  }
  0xe4   :  { %v13260_v55 = vld [vmem:[#allocation2 + $0x62c] ss:$28 sps:$4 sm:$0xff]  }
  0xe9   :  { %3039 = vmatpush1.bf16.xpose.msra.mxu0 %v13167_v56  ;;  %v13255_v56 = vld [vmem:[#allocation2 + $0x2a8] ss:$28 sps:$4 sm:$0xff]  }
  0xea   :  { %3203 = vmatpush1.bf16.xpose.msra.mxu1 %v13168_v57  ;;  %3040 = vmatprep.subr.bf16.mxu0 %v13169_v58  ;;  %v13258_v57 = vld [vmem:[#allocation2 + $0x628] ss:$28 sps:$4 sm:$0xff]  }
  0xeb   :  { %3204 = vmatprep.subr.bf16.mxu1 %v13171_v59  ;;  %v13263_v58 = vld [vmem:[#allocation2 + $0x2e4] ss:$28 sps:$4 sm:$0xff]  }
  0xec   :  { %v13266_v59 = vld [vmem:[#allocation2 + $0x664] ss:$28 sps:$4 sm:$0xff]  }
  0xf1   :  { %3041 = vmatpush1.bf16.xpose.msra.mxu0 %v13173_v60  ;;  %v13261_v60 = vld [vmem:[#allocation2 + $0x2e0] ss:$28 sps:$4 sm:$0xff]  }
  0xf2   :  { %3205 = vmatpush1.bf16.xpose.msra.mxu1 %v13174_v61  ;;  %3042 = vmatprep.subr.bf16.mxu0 %v13175_v62  ;;  %v13264_v61 = vld [vmem:[#allocation2 + $0x660] ss:$28 sps:$4 sm:$0xff]  }
  0xf3   :  { %3206 = vmatprep.subr.bf16.mxu1 %v13177_v63  ;;  %v13269_v62 = vld [vmem:[#allocation2 + $0x31c] ss:$28 sps:$4 sm:$0xff]  }
  0xf4   :  { %v13272_v63 = vld [vmem:[#allocation2 + $0x69c] ss:$28 sps:$4 sm:$0xff]  }
  0xf9   :  { %3043 = vmatpush1.bf16.xpose.msra.mxu0 %v13179_v0  ;;  %v13267_v0 = vld [vmem:[#allocation2 + $0x318] ss:$28 sps:$4 sm:$0xff]  }
  0xfa   :  { %3207 = vmatpush1.bf16.xpose.msra.mxu1 %v13180_v1  ;;  %3053 = vmatprep.subr.bf16.mxu0 %v13184_v2  ;;  %v13270_v1 = vld [vmem:[#allocation2 + $0x698] ss:$28 sps:$4 sm:$0xff]  }
  0xfb   :  { %3217 = vmatprep.subr.bf16.mxu1 %v13187_v3  ;;  %v13275_v2 = vld [vmem:[#allocation2 + $0x354] ss:$28 sps:$4 sm:$0xff]  }
  0xfc   :  { %v13278_v3 = vld [vmem:[#allocation2 + $0x6d4] ss:$28 sps:$4 sm:$0xff]  }
 0x100   :  { %3045 = vmatmul.mubr.bf16.vlgmr.msra.gmra.mrb[0].mxu0 %v15148_v7 }
 0x101   :  { %3209 = vmatmul.mubr.bf16.vlgmr.msra.gmra.mrb[0].mxu1 %v15148_v7  ;;  %3054 = vmatpush1.bf16.xpose.msra.mxu0 %v13182_v5  ;;  %v13273_v5 = vld [vmem:[#allocation2 + $0x350] ss:$28 sps:$4 sm:$0xff]  }
 0x102   :  { %3218 = vmatpush1.bf16.xpose.msra.mxu1 %v13185_v6  ;;  %3055 = vmatprep.subr.bf16.mxu0 %v13191_v8  ;;  %v13276_v6 = vld [vmem:[#allocation2 + $0x6d0] ss:$28 sps:$4 sm:$0xff]  }
 0x103   :  { %3219 = vmatprep.subr.bf16.mxu1 %v13194_v9  ;;  %3085 = vmatprep.mubr.bf16.mxu0 %v15152_v10  ;;  %v13282_v8 = vld [vmem:[#allocation2 + $0x14] ss:$28 sps:$4 sm:$0xff]  }
 0x104   :  { %3249 = vmatprep.mubr.bf16.mxu1 %v15152_v10  ;;  %v13285_v9 = vld [vmem:[#allocation2 + $0x394] ss:$28 sps:$4 sm:$0xff]  }
 0x109   :  { %3056 = vmatpush1.bf16.xpose.msra.mxu0 %v13189_v11  ;;  %v15161_v11 = vld [vmem:[%s17692_s0 + $0x10] sm:$0xff] }
 0x10a   :  { %3220 = vmatpush1.bf16.xpose.msra.mxu1 %v13192_v12  ;;  %3057 = vmatprep.subr.bf16.mxu0 %v13197_v13  ;;  %v13280_v12 = vld [vmem:[#allocation2 + $0x10] ss:$28 sps:$4 sm:$0xff]  }
 0x10b   :  { %3221 = vmatprep.subr.bf16.mxu1 %v13200_v14  ;;  %v13283_v13 = vld [vmem:[#allocation2 + $0x390] ss:$28 sps:$4 sm:$0xff]   ;;  %v15165_v14 = vcombine.low %v15144_v4, %v15144_v4  ;;  %v13295_v4 = vld [vmem:[#allocation2 + $0x84] ss:$28 sps:$4 sm:$0xff]  }
 0x111   :  { %3058 = vmatpush1.bf16.xpose.msra.mxu0 %v13195_v15  ;;  %v13289_v15 = vld [vmem:[#allocation2 + $0x4c] ss:$28 sps:$4 sm:$0xff]  }
 0x112   :  { %3222 = vmatpush1.bf16.xpose.msra.mxu1 %v13198_v16  ;;  %3059 = vmatprep.subr.bf16.mxu0 %v13203_v17  ;;  %v13292_v16 = vld [vmem:[#allocation2 + $0x3cc] ss:$28 sps:$4 sm:$0xff]   ;;  %v15169_v17 = vcombine.high %v15161_v11, %v15161_v11 }
 0x113   :  { %3223 = vmatprep.subr.bf16.mxu1 %v13206_v18  ;;  %v13287_v18 = vld [vmem:[#allocation2 + $0x48] ss:$28 sps:$4 sm:$0xff]  }
 0x119   :  { %3060 = vmatpush1.bf16.xpose.msra.mxu0 %v13201_v19  ;;  %v13290_v19 = vld [vmem:[#allocation2 + $0x3c8] ss:$28 sps:$4 sm:$0xff]  }
 0x11a   :  { %3224 = vmatpush1.bf16.xpose.msra.mxu1 %v13204_v20  ;;  %3061 = vmatprep.subr.bf16.mxu0 %v13209_v21  ;;  %v13298_v20 = vld [vmem:[#allocation2 + $0x404] ss:$28 sps:$4 sm:$0xff]  }
 0x11b   :  { %3225 = vmatprep.subr.bf16.mxu1 %v13212_v22  ;;  %v13293_v21 = vld [vmem:[#allocation2 + $0x80] ss:$28 sps:$4 sm:$0xff]  }
 0x11c   :  { %v13296_v22 = vld [vmem:[#allocation2 + $0x400] ss:$28 sps:$4 sm:$0xff]  }
 0x121   :  { %3062 = vmatpush1.bf16.xpose.msra.mxu0 %v13207_v23  ;;  %v13301_v23 = vld [vmem:[#allocation2 + $0xbc] ss:$28 sps:$4 sm:$0xff]  }
 0x122   :  { %3226 = vmatpush1.bf16.xpose.msra.mxu1 %v13210_v24  ;;  %3063 = vmatprep.subr.bf16.mxu0 %v13215_v25  ;;  %v13304_v24 = vld [vmem:[#allocation2 + $0x43c] ss:$28 sps:$4 sm:$0xff]  }
 0x123   :  { %3227 = vmatprep.subr.bf16.mxu1 %v13218_v26  ;;  %v13299_v25 = vld [vmem:[#allocation2 + $0xb8] ss:$28 sps:$4 sm:$0xff]  }
 0x124   :  { %v13302_v26 = vld [vmem:[#allocation2 + $0x438] ss:$28 sps:$4 sm:$0xff]  }
 0x129   :  { %3064 = vmatpush1.bf16.xpose.msra.mxu0 %v13213_v28  ;;  %v13307_v28 = vld [vmem:[#allocation2 + $0xf4] ss:$28 sps:$4 sm:$0xff]  }
 0x12a   :  { %3228 = vmatpush1.bf16.xpose.msra.mxu1 %v13216_v29  ;;  %3065 = vmatprep.subr.bf16.mxu0 %v13221_v30  ;;  %v13310_v29 = vld [vmem:[#allocation2 + $0x474] ss:$28 sps:$4 sm:$0xff]  }
 0x12b   :  { %3229 = vmatprep.subr.bf16.mxu1 %v13224_v31  ;;  %v13305_v30 = vld [vmem:[#allocation2 + $0xf0] ss:$28 sps:$4 sm:$0xff]  }
 0x12c   :  { %v13308_v31 = vld [vmem:[#allocation2 + $0x470] ss:$28 sps:$4 sm:$0xff]  }
 0x131   :  { %3066 = vmatpush1.bf16.xpose.msra.mxu0 %v13219_v32  ;;  %v13313_v32 = vld [vmem:[#allocation2 + $0x12c] ss:$28 sps:$4 sm:$0xff]  }
 0x132   :  { %3230 = vmatpush1.bf16.xpose.msra.mxu1 %v13222_v33  ;;  %3067 = vmatprep.subr.bf16.mxu0 %v13227_v34  ;;  %v13316_v33 = vld [vmem:[#allocation2 + $0x4ac] ss:$28 sps:$4 sm:$0xff]  }
 0x133   :  { %3231 = vmatprep.subr.bf16.mxu1 %v13230_v35  ;;  %v13311_v34 = vld [vmem:[#allocation2 + $0x128] ss:$28 sps:$4 sm:$0xff]  }
 0x134   :  { %v13314_v35 = vld [vmem:[#allocation2 + $0x4a8] ss:$28 sps:$4 sm:$0xff]  }
 0x139   :  { %3068 = vmatpush1.bf16.xpose.msra.mxu0 %v13225_v36  ;;  %v13319_v36 = vld [vmem:[#allocation2 + $0x164] ss:$28 sps:$4 sm:$0xff]  }
 0x13a   :  { %3232 = vmatpush1.bf16.xpose.msra.mxu1 %v13228_v37  ;;  %3069 = vmatprep.subr.bf16.mxu0 %v13233_v38  ;;  %v13322_v37 = vld [vmem:[#allocation2 + $0x4e4] ss:$28 sps:$4 sm:$0xff]  }
 0x13b   :  { %3233 = vmatprep.subr.bf16.mxu1 %v13236_v39  ;;  %v13317_v38 = vld [vmem:[#allocation2 + $0x160] ss:$28 sps:$4 sm:$0xff]  }
 0x13c   :  { %v13320_v39 = vld [vmem:[#allocation2 + $0x4e0] ss:$28 sps:$4 sm:$0xff]  }
 0x141   :  { %3070 = vmatpush1.bf16.xpose.msra.mxu0 %v13231_v40  ;;  %v13325_v40 = vld [vmem:[#allocation2 + $0x19c] ss:$28 sps:$4 sm:$0xff]  }
 0x142   :  { %3234 = vmatpush1.bf16.xpose.msra.mxu1 %v13234_v41  ;;  %3071 = vmatprep.subr.bf16.mxu0 %v13239_v42  ;;  %v13328_v41 = vld [vmem:[#allocation2 + $0x51c] ss:$28 sps:$4 sm:$0xff]  }
 0x143   :  { %3235 = vmatprep.subr.bf16.mxu1 %v13242_v43  ;;  %v13323_v42 = vld [vmem:[#allocation2 + $0x198] ss:$28 sps:$4 sm:$0xff]  }
 0x144   :  { %v13326_v43 = vld [vmem:[#allocation2 + $0x518] ss:$28 sps:$4 sm:$0xff]  }
 0x149   :  { %3072 = vmatpush1.bf16.xpose.msra.mxu0 %v13237_v44  ;;  %v13331_v44 = vld [vmem:[#allocation2 + $0x1d4] ss:$28 sps:$4 sm:$0xff]  }
 0x14a   :  { %3236 = vmatpush1.bf16.xpose.msra.mxu1 %v13240_v45  ;;  %3073 = vmatprep.subr.bf16.mxu0 %v13245_v46  ;;  %v13334_v45 = vld [vmem:[#allocation2 + $0x554] ss:$28 sps:$4 sm:$0xff]  }
 0x14b   :  { %3237 = vmatprep.subr.bf16.mxu1 %v13248_v47  ;;  %v13329_v46 = vld [vmem:[#allocation2 + $0x1d0] ss:$28 sps:$4 sm:$0xff]  }
 0x14c   :  { %v13332_v47 = vld [vmem:[#allocation2 + $0x550] ss:$28 sps:$4 sm:$0xff]  }
 0x151   :  { %3074 = vmatpush1.bf16.xpose.msra.mxu0 %v13243_v48  ;;  %v13337_v48 = vld [vmem:[#allocation2 + $0x20c] ss:$28 sps:$4 sm:$0xff]  }
 0x152   :  { %3238 = vmatpush1.bf16.xpose.msra.mxu1 %v13246_v49  ;;  %3075 = vmatprep.subr.bf16.mxu0 %v13251_v50  ;;  %v13340_v49 = vld [vmem:[#allocation2 + $0x58c] ss:$28 sps:$4 sm:$0xff]  }
 0x153   :  { %3239 = vmatprep.subr.bf16.mxu1 %v13254_v51  ;;  %v13335_v50 = vld [vmem:[#allocation2 + $0x208] ss:$28 sps:$4 sm:$0xff]  }
 0x154   :  { %v13338_v51 = vld [vmem:[#allocation2 + $0x588] ss:$28 sps:$4 sm:$0xff]  }
 0x159   :  { %3076 = vmatpush1.bf16.xpose.msra.mxu0 %v13249_v52  ;;  %v13343_v52 = vld [vmem:[#allocation2 + $0x244] ss:$28 sps:$4 sm:$0xff]  }
 0x15a   :  { %3240 = vmatpush1.bf16.xpose.msra.mxu1 %v13252_v53  ;;  %3077 = vmatprep.subr.bf16.mxu0 %v13257_v54  ;;  %v13346_v53 = vld [vmem:[#allocation2 + $0x5c4] ss:$28 sps:$4 sm:$0xff]  }
 0x15b   :  { %3241 = vmatprep.subr.bf16.mxu1 %v13260_v55  ;;  %v13341_v54 = vld [vmem:[#allocation2 + $0x240] ss:$28 sps:$4 sm:$0xff]  }
 0x15c   :  { %v13344_v55 = vld [vmem:[#allocation2 + $0x5c0] ss:$28 sps:$4 sm:$0xff]  }
 0x161   :  { %3078 = vmatpush1.bf16.xpose.msra.mxu0 %v13255_v56  ;;  %v13349_v56 = vld [vmem:[#allocation2 + $0x27c] ss:$28 sps:$4 sm:$0xff]  }
 0x162   :  { %3242 = vmatpush1.bf16.xpose.msra.mxu1 %v13258_v57  ;;  %3079 = vmatprep.subr.bf16.mxu0 %v13263_v58  ;;  %v13352_v57 = vld [vmem:[#allocation2 + $0x5fc] ss:$28 sps:$4 sm:$0xff]  }
 0x163   :  { %3243 = vmatprep.subr.bf16.mxu1 %v13266_v59  ;;  %v13347_v58 = vld [vmem:[#allocation2 + $0x278] ss:$28 sps:$4 sm:$0xff]  }
 0x164   :  { %v13350_v59 = vld [vmem:[#allocation2 + $0x5f8] ss:$28 sps:$4 sm:$0xff]  }
 0x169   :  { %3080 = vmatpush1.bf16.xpose.msra.mxu0 %v13261_v60  ;;  %v13355_v60 = vld [vmem:[#allocation2 + $0x2b4] ss:$28 sps:$4 sm:$0xff]  }
 0x16a   :  { %3244 = vmatpush1.bf16.xpose.msra.mxu1 %v13264_v61  ;;  %3081 = vmatprep.subr.bf16.mxu0 %v13269_v62  ;;  %v13358_v61 = vld [vmem:[#allocation2 + $0x634] ss:$28 sps:$4 sm:$0xff]  }
 0x16b   :  { %3245 = vmatprep.subr.bf16.mxu1 %v13272_v63  ;;  %v13353_v62 = vld [vmem:[#allocation2 + $0x2b0] ss:$28 sps:$4 sm:$0xff]  }
 0x16c   :  { %v13356_v63 = vld [vmem:[#allocation2 + $0x630] ss:$28 sps:$4 sm:$0xff]  }
 0x171   :  { %3082 = vmatpush1.bf16.xpose.msra.mxu0 %v13267_v0  ;;  %v13361_v0 = vld [vmem:[#allocation2 + $0x2ec] ss:$28 sps:$4 sm:$0xff]  }
 0x172   :  { %3246 = vmatpush1.bf16.xpose.msra.mxu1 %v13270_v1  ;;  %3083 = vmatprep.subr.bf16.mxu0 %v13275_v2  ;;  %v13364_v1 = vld [vmem:[#allocation2 + $0x66c] ss:$28 sps:$4 sm:$0xff]  }
 0x173   :  { %3247 = vmatprep.subr.bf16.mxu1 %v13278_v3  ;;  %v13359_v2 = vld [vmem:[#allocation2 + $0x2e8] ss:$28 sps:$4 sm:$0xff]  }
 0x174   :  { %v13362_v3 = vld [vmem:[#allocation2 + $0x668] ss:$28 sps:$4 sm:$0xff]  }
 0x179   :  { %3084 = vmatpush1.bf16.xpose.msra.mxu0 %v13273_v5  ;;  %v13367_v5 = vld [vmem:[#allocation2 + $0x324] ss:$28 sps:$4 sm:$0xff]  }
 0x17a   :  { %3248 = vmatpush1.bf16.xpose.msra.mxu1 %v13276_v6  ;;  %3094 = vmatprep.subr.bf16.mxu0 %v13282_v8  ;;  %v13370_v6 = vld [vmem:[#allocation2 + $0x6a4] ss:$28 sps:$4 sm:$0xff]  }
 0x17b   :  { %3258 = vmatprep.subr.bf16.mxu1 %v13285_v9  ;;  %v13365_v8 = vld [vmem:[#allocation2 + $0x320] ss:$28 sps:$4 sm:$0xff]  }
 0x17c   :  { %v13368_v9 = vld [vmem:[#allocation2 + $0x6a0] ss:$28 sps:$4 sm:$0xff]  }
 0x180   :  { %3086 = vmatmul.mubr.bf16.vlgmr.msra.gmra.mrb[0].mxu0 %v15165_v14 }
 0x181   :  { %3250 = vmatmul.mubr.bf16.vlgmr.msra.gmra.mrb[0].mxu1 %v15165_v14  ;;  %3095 = vmatpush1.bf16.xpose.msra.mxu0 %v13280_v12  ;;  %v13373_v12 = vld [vmem:[#allocation2 + $0x35c] ss:$28 sps:$4 sm:$0xff]  }
 0x182   :  { %3259 = vmatpush1.bf16.xpose.msra.mxu1 %v13283_v13  ;;  %3096 = vmatprep.subr.bf16.mxu0 %v13289_v15  ;;  %v13376_v13 = vld [vmem:[#allocation2 + $0x6dc] ss:$28 sps:$4 sm:$0xff]  }
 0x183   :  { %3260 = vmatprep.subr.bf16.mxu1 %v13292_v16  ;;  %3126 = vmatprep.mubr.bf16.mxu0 %v15169_v17  ;;  %v13371_v15 = vld [vmem:[#allocation2 + $0x358] ss:$28 sps:$4 sm:$0xff]  }
 0x184   :  { %3290 = vmatprep.mubr.bf16.mxu1 %v15169_v17  ;;  %v13374_v16 = vld [vmem:[#allocation2 + $0x6d8] ss:$28 sps:$4 sm:$0xff]  }
 0x189   :  { %3097 = vmatpush1.bf16.xpose.msra.mxu0 %v13287_v18  ;;  %v13378_v18 = vld [vmem:[#allocation2 + $0x1d8] ss:$28 sps:$4 sm:$0xff]  }
 0x18a   :  { %3261 = vmatpush1.bf16.xpose.msra.mxu1 %v13290_v19  ;;  %3098 = vmatprep.subr.bf16.mxu0 %v13295_v4  ;;  %v13379_v19 = vld [vmem:[#allocation2 + $0x558] ss:$28 sps:$4 sm:$0xff]   ;;  %v15177_v4 = vcombine.low %v15161_v11, %v15161_v11  ;;  %v13385_v11 = vld [vmem:[#allocation2 + $0x50] ss:$28 sps:$4 sm:$0xff]  }
 0x18b   :  { %3262 = vmatprep.subr.bf16.mxu1 %v13298_v20  ;;  %v13381_v20 = vld [vmem:[#allocation2 + $0x18] ss:$28 sps:$4 sm:$0xff]  }
 0x191   :  { %3099 = vmatpush1.bf16.xpose.msra.mxu0 %v13293_v21  ;;  %v13382_v21 = vld [vmem:[#allocation2 + $0x398] ss:$28 sps:$4 sm:$0xff]  }
 0x192   :  { %3263 = vmatpush1.bf16.xpose.msra.mxu1 %v13296_v22  ;;  %3100 = vmatprep.subr.bf16.mxu0 %v13301_v23  ;;  %v13383_v22 = vld [vmem:[#allocation2 + $0x210] ss:$28 sps:$4 sm:$0xff]  }
 0x193   :  { %3264 = vmatprep.subr.bf16.mxu1 %v13304_v24  ;;  %v13384_v23 = vld [vmem:[#allocation2 + $0x590] ss:$28 sps:$4 sm:$0xff]   ;;  %v15182_v24 = vld [vmem:[%s17692_s0 + $0x18] ss:$0 sps:$4 sm:$0xff]  }
 0x199   :  { %3101 = vmatpush1.bf16.xpose.msra.mxu0 %v13299_v25  ;;  %v13386_v25 = vld [vmem:[#allocation2 + $0x3d0] ss:$28 sps:$4 sm:$0xff]  }
 0x19a   :  { %3265 = vmatpush1.bf16.xpose.msra.mxu1 %v13302_v26  ;;  %3102 = vmatprep.subr.bf16.mxu0 %v13307_v28  ;;  %v13387_v26 = vld [vmem:[#allocation2 + $0x248] ss:$28 sps:$4 sm:$0xff]  }
 0x19b   :  { %3266 = vmatprep.subr.bf16.mxu1 %v13310_v29  ;;  %v13388_v28 = vld [vmem:[#allocation2 + $0x5c8] ss:$28 sps:$4 sm:$0xff]  }
 0x19c   :  { %v13389_v29 = vld [vmem:[#allocation2 + $0x88] ss:$28 sps:$4 sm:$0xff]  }
 0x1a1   :  { %3103 = vmatpush1.bf16.xpose.msra.mxu0 %v13305_v30  ;;  %v13390_v30 = vld [vmem:[#allocation2 + $0x408] ss:$28 sps:$4 sm:$0xff]  }
 0x1a2   :  { %3267 = vmatpush1.bf16.xpose.msra.mxu1 %v13308_v31  ;;  %3104 = vmatprep.subr.bf16.mxu0 %v13313_v32  ;;  %v13391_v31 = vld [vmem:[#allocation2 + $0x280] ss:$28 sps:$4 sm:$0xff]  }
 0x1a3   :  { %3268 = vmatprep.subr.bf16.mxu1 %v13316_v33  ;;  %v13392_v32 = vld [vmem:[#allocation2 + $0x600] ss:$28 sps:$4 sm:$0xff]  }
 0x1a4   :  { %v13393_v33 = vld [vmem:[#allocation2 + $0xc0] ss:$28 sps:$4 sm:$0xff]  }
 0x1a9   :  { %3105 = vmatpush1.bf16.xpose.msra.mxu0 %v13311_v34  ;;  %v13394_v34 = vld [vmem:[#allocation2 + $0x440] ss:$28 sps:$4 sm:$0xff]  }
 0x1aa   :  { %3269 = vmatpush1.bf16.xpose.msra.mxu1 %v13314_v35  ;;  %3106 = vmatprep.subr.bf16.mxu0 %v13319_v36  ;;  %v13395_v35 = vld [vmem:[#allocation2 + $0x2b8] ss:$28 sps:$4 sm:$0xff]  }
 0x1ab   :  { %3270 = vmatprep.subr.bf16.mxu1 %v13322_v37  ;;  %v13396_v36 = vld [vmem:[#allocation2 + $0x638] ss:$28 sps:$4 sm:$0xff]  }
 0x1ac   :  { %v13397_v37 = vld [vmem:[#allocation2 + $0xf8] ss:$28 sps:$4 sm:$0xff]  }
 0x1b1   :  { %3107 = vmatpush1.bf16.xpose.msra.mxu0 %v13317_v38  ;;  %v13398_v38 = vld [vmem:[#allocation2 + $0x478] ss:$28 sps:$4 sm:$0xff]  }
 0x1b2   :  { %3271 = vmatpush1.bf16.xpose.msra.mxu1 %v13320_v39  ;;  %3108 = vmatprep.subr.bf16.mxu0 %v13325_v40  ;;  %v13399_v39 = vld [vmem:[#allocation2 + $0x2f0] ss:$28 sps:$4 sm:$0xff]  }
 0x1b3   :  { %3272 = vmatprep.subr.bf16.mxu1 %v13328_v41  ;;  %v13400_v40 = vld [vmem:[#allocation2 + $0x670] ss:$28 sps:$4 sm:$0xff]  }
 0x1b4   :  { %v13401_v41 = vld [vmem:[#allocation2 + $0x130] ss:$28 sps:$4 sm:$0xff]  }
 0x1b9   :  { %3109 = vmatpush1.bf16.xpose.msra.mxu0 %v13323_v42  ;;  %v13402_v42 = vld [vmem:[#allocation2 + $0x4b0] ss:$28 sps:$4 sm:$0xff]  }
 0x1ba   :  { %3273 = vmatpush1.bf16.xpose.msra.mxu1 %v13326_v43  ;;  %3110 = vmatprep.subr.bf16.mxu0 %v13331_v44  ;;  %v13403_v43 = vld [vmem:[#allocation2 + $0x328] ss:$28 sps:$4 sm:$0xff]  }
 0x1bb   :  { %3274 = vmatprep.subr.bf16.mxu1 %v13334_v45  ;;  %v13404_v44 = vld [vmem:[#allocation2 + $0x6a8] ss:$28 sps:$4 sm:$0xff]  }
 0x1bc   :  { %v13405_v45 = vld [vmem:[#allocation2 + $0x168] ss:$28 sps:$4 sm:$0xff]  }
 0x1c1   :  { %3111 = vmatpush1.bf16.xpose.msra.mxu0 %v13329_v46  ;;  %v13406_v46 = vld [vmem:[#allocation2 + $0x4e8] ss:$28 sps:$4 sm:$0xff]  }
 0x1c2   :  { %3275 = vmatpush1.bf16.xpose.msra.mxu1 %v13332_v47  ;;  %3112 = vmatprep.subr.bf16.mxu0 %v13337_v48  ;;  %v13407_v47 = vld [vmem:[#allocation2 + $0x360] ss:$28 sps:$4 sm:$0xff]  }
 0x1c3   :  { %3276 = vmatprep.subr.bf16.mxu1 %v13340_v49  ;;  %v13408_v48 = vld [vmem:[#allocation2 + $0x6e0] ss:$28 sps:$4 sm:$0xff]  }
 0x1c4   :  { %v13409_v49 = vld [vmem:[#allocation2 + $0x1a0] ss:$28 sps:$4 sm:$0xff]  }
 0x1c9   :  { %3113 = vmatpush1.bf16.xpose.msra.mxu0 %v13335_v50  ;;  %v13410_v50 = vld [vmem:[#allocation2 + $0x520] ss:$28 sps:$4 sm:$0xff]  }
 0x1ca   :  { %3277 = vmatpush1.bf16.xpose.msra.mxu1 %v13338_v51  ;;  %3114 = vmatprep.subr.bf16.mxu0 %v13343_v52  ;;  %v13414_v51 = vld [vmem:[#allocation2 + $0x704] ss:$28 sps:$4 sm:$0xff]  }
 0x1cb   :  { %3278 = vmatprep.subr.bf16.mxu1 %v13346_v53  ;;  %v13417_v52 = vld [vmem:[#allocation2 + $0xa84] ss:$28 sps:$4 sm:$0xff]  }
 0x1cc   :  { %v13412_v53 = vld [vmem:[#allocation2 + $0x700] ss:$28 sps:$4 sm:$0xff]  }
 0x1d1   :  { %3115 = vmatpush1.bf16.xpose.msra.mxu0 %v13341_v54  ;;  %v13415_v54 = vld [vmem:[#allocation2 + $0xa80] ss:$28 sps:$4 sm:$0xff]  }
 0x1d2   :  { %3279 = vmatpush1.bf16.xpose.msra.mxu1 %v13344_v55  ;;  %3116 = vmatprep.subr.bf16.mxu0 %v13349_v56  ;;  %v13420_v55 = vld [vmem:[#allocation2 + $0x73c] ss:$28 sps:$4 sm:$0xff]  }
 0x1d3   :  { %3280 = vmatprep.subr.bf16.mxu1 %v13352_v57  ;;  %v13423_v56 = vld [vmem:[#allocation2 + $0xabc] ss:$28 sps:$4 sm:$0xff]  }
 0x1d4   :  { %v13418_v57 = vld [vmem:[#allocation2 + $0x738] ss:$28 sps:$4 sm:$0xff]  }
 0x1d9   :  { %3117 = vmatpush1.bf16.xpose.msra.mxu0 %v13347_v58  ;;  %v13421_v58 = vld [vmem:[#allocation2 + $0xab8] ss:$28 sps:$4 sm:$0xff]  }
 0x1da   :  { %3281 = vmatpush1.bf16.xpose.msra.mxu1 %v13350_v59  ;;  %3118 = vmatprep.subr.bf16.mxu0 %v13355_v60  ;;  %v13426_v59 = vld [vmem:[#allocation2 + $0x774] ss:$28 sps:$4 sm:$0xff]  }
 0x1db   :  { %3282 = vmatprep.subr.bf16.mxu1 %v13358_v61  ;;  %v13429_v60 = vld [vmem:[#allocation2 + $0xaf4] ss:$28 sps:$4 sm:$0xff]  }
 0x1dc   :  { %v13424_v61 = vld [vmem:[#allocation2 + $0x770] ss:$28 sps:$4 sm:$0xff]  }
 0x1e1   :  { %3119 = vmatpush1.bf16.xpose.msra.mxu0 %v13353_v62  ;;  %v13427_v62 = vld [vmem:[#allocation2 + $0xaf0] ss:$28 sps:$4 sm:$0xff]  }
 0x1e2   :  { %3283 = vmatpush1.bf16.xpose.msra.mxu1 %v13356_v63  ;;  %3120 = vmatprep.subr.bf16.mxu0 %v13361_v0  ;;  %v13432_v63 = vld [vmem:[#allocation2 + $0x7ac] ss:$28 sps:$4 sm:$0xff]  }
 0x1e3   :  { %3284 = vmatprep.subr.bf16.mxu1 %v13364_v1  ;;  %v13435_v0 = vld [vmem:[#allocation2 + $0xb2c] ss:$28 sps:$4 sm:$0xff]  }
 0x1e4   :  { %v13430_v1 = vld [vmem:[#allocation2 + $0x7a8] ss:$28 sps:$4 sm:$0xff]  }
 0x1e9   :  { %3121 = vmatpush1.bf16.xpose.msra.mxu0 %v13359_v2  ;;  %v13433_v2 = vld [vmem:[#allocation2 + $0xb28] ss:$28 sps:$4 sm:$0xff]  }
 0x1ea   :  { %3285 = vmatpush1.bf16.xpose.msra.mxu1 %v13362_v3  ;;  %3122 = vmatprep.subr.bf16.mxu0 %v13367_v5  ;;  %v13438_v3 = vld [vmem:[#allocation2 + $0x7e4] ss:$28 sps:$4 sm:$0xff]  }
 0x1eb   :  { %3286 = vmatprep.subr.bf16.mxu1 %v13370_v6  ;;  %v13436_v5 = vld [vmem:[#allocation2 + $0x7e0] ss:$28 sps:$4 sm:$0xff]  }
 0x1ec   :  { %v13439_v6 = vld [vmem:[#allocation2 + $0xb60] ss:$28 sps:$4 sm:$0xff]  }
 0x1f1   :  { %3123 = vmatpush1.bf16.xpose.msra.mxu0 %v13365_v8  ;;  %v13444_v8 = vld [vmem:[#allocation2 + $0x81c] ss:$28 sps:$4 sm:$0xff]  }
 0x1f2   :  { %3287 = vmatpush1.bf16.xpose.msra.mxu1 %v13368_v9  ;;  %3124 = vmatprep.subr.bf16.mxu0 %v13373_v12  ;;  %v13447_v9 = vld [vmem:[#allocation2 + $0xb9c] ss:$28 sps:$4 sm:$0xff]  }
 0x1f3   :  { %3288 = vmatprep.subr.bf16.mxu1 %v13376_v13  ;;  %v13442_v12 = vld [vmem:[#allocation2 + $0x818] ss:$28 sps:$4 sm:$0xff]  }
 0x1f4   :  { %v13445_v13 = vld [vmem:[#allocation2 + $0xb98] ss:$28 sps:$4 sm:$0xff]  }
 0x1f9   :  { %3125 = vmatpush1.bf16.xpose.msra.mxu0 %v13371_v15  ;;  %v13450_v15 = vld [vmem:[#allocation2 + $0x854] ss:$28 sps:$4 sm:$0xff]  }
 0x1fa   :  { %3289 = vmatpush1.bf16.xpose.msra.mxu1 %v13374_v16  ;;  %12451 = vmatprep.subr.bf16.mxu0 %v13378_v18  ;;  %v13453_v16 = vld [vmem:[#allocation2 + $0xbd4] ss:$28 sps:$4 sm:$0xff]  }
 0x1fb   :  { %12469 = vmatprep.subr.bf16.mxu1 %v13379_v19  ;;  %v13448_v18 = vld [vmem:[#allocation2 + $0x850] ss:$28 sps:$4 sm:$0xff]  }
 0x1fc   :  { %v13451_v19 = vld [vmem:[#allocation2 + $0xbd0] ss:$28 sps:$4 sm:$0xff]  }
 0x200   :  { %3127 = vmatmul.mubr.bf16.vlgmr.msra.gmra.mrb[0].mxu0 %v15177_v4 }
 0x201   :  { %3291 = vmatmul.mubr.bf16.vlgmr.msra.gmra.mrb[0].mxu1 %v15177_v4  ;;  %12452 = vmatpush3.bf16.xpose.msra.mxu0 %v13381_v20  ;;  %v13456_v20 = vld [vmem:[#allocation2 + $0x88c] ss:$28 sps:$4 sm:$0xff]  }
 0x202   :  { %12470 = vmatpush3.bf16.xpose.msra.mxu1 %v13382_v21  ;;  %12453 = vmatprep.subr.bf16.mxu0 %v13383_v22  ;;  %v13459_v21 = vld [vmem:[#allocation2 + $0xc0c] ss:$28 sps:$4 sm:$0xff]  }
 0x203   :  { %12471 = vmatprep.subr.bf16.mxu1 %v13384_v23  ;;  %12467 = vmatprep.mubr.bf16.mxu0 %v15182_v24  ;;  %v13454_v22 = vld [vmem:[#allocation2 + $0x888] ss:$28 sps:$4 sm:$0xff]  }
 0x204   :  { %12485 = vmatprep.mubr.bf16.mxu1 %v15182_v24  ;;  %v13457_v23 = vld [vmem:[#allocation2 + $0xc08] ss:$28 sps:$4 sm:$0xff]  }
 0x209   :  { %12454 = vmatpush3.bf16.xpose.msra.mxu0 %v13385_v11  ;;  %v13462_v11 = vld [vmem:[#allocation2 + $0x8c4] ss:$28 sps:$4 sm:$0xff]  }
 0x20a   :  { %12472 = vmatpush3.bf16.xpose.msra.mxu1 %v13386_v25  ;;  %12455 = vmatprep.subr.bf16.mxu0 %v13387_v26  ;;  %v13465_v25 = vld [vmem:[#allocation2 + $0xc44] ss:$28 sps:$4 sm:$0xff]  }
 0x20b   :  { %12473 = vmatprep.subr.bf16.mxu1 %v13388_v28  ;;  %v13460_v26 = vld [vmem:[#allocation2 + $0x8c0] ss:$28 sps:$4 sm:$0xff]  }
 0x20c   :  { %v13463_v28 = vld [vmem:[#allocation2 + $0xc40] ss:$28 sps:$4 sm:$0xff]  }
 0x211   :  { %12456 = vmatpush3.bf16.xpose.msra.mxu0 %v13389_v29  ;;  %v13468_v29 = vld [vmem:[#allocation2 + $0x8fc] ss:$28 sps:$4 sm:$0xff]  }
 0x212   :  { %12474 = vmatpush3.bf16.xpose.msra.mxu1 %v13390_v30  ;;  %12457 = vmatprep.subr.bf16.mxu0 %v13391_v31  ;;  %v13471_v30 = vld [vmem:[#allocation2 + $0xc7c] ss:$28 sps:$4 sm:$0xff]  }
 0x213   :  { %12475 = vmatprep.subr.bf16.mxu1 %v13392_v32  ;;  %v13466_v31 = vld [vmem:[#allocation2 + $0x8f8] ss:$28 sps:$4 sm:$0xff]  }
 0x214   :  { %v13469_v32 = vld [vmem:[#allocation2 + $0xc78] ss:$28 sps:$4 sm:$0xff]  }
 0x219   :  { %12458 = vmatpush3.bf16.xpose.msra.mxu0 %v13393_v33  ;;  %v13474_v33 = vld [vmem:[#allocation2 + $0x934] ss:$28 sps:$4 sm:$0xff]  }
 0x21a   :  { %12476 = vmatpush3.bf16.xpose.msra.mxu1 %v13394_v34  ;;  %12459 = vmatprep.subr.bf16.mxu0 %v13395_v35  ;;  %v13477_v34 = vld [vmem:[#allocation2 + $0xcb4] ss:$28 sps:$4 sm:$0xff]  }
 0x21b   :  { %12477 = vmatprep.subr.bf16.mxu1 %v13396_v36  ;;  %v13472_v35 = vld [vmem:[#allocation2 + $0x930] ss:$28 sps:$4 sm:$0xff]  }
 0x21c   :  { %v13475_v36 = vld [vmem:[#allocation2 + $0xcb0] ss:$28 sps:$4 sm:$0xff]  }
 0x221   :  { %12460 = vmatpush3.bf16.xpose.msra.mxu0 %v13397_v37  ;;  %v13480_v37 = vld [vmem:[#allocation2 + $0x96c] ss:$28 sps:$4 sm:$0xff]  }
 0x222   :  { %12478 = vmatpush3.bf16.xpose.msra.mxu1 %v13398_v38  ;;  %12461 = vmatprep.subr.bf16.mxu0 %v13399_v39  ;;  %v13483_v38 = vld [vmem:[#allocation2 + $0xcec] ss:$28 sps:$4 sm:$0xff]  }
 0x223   :  { %12479 = vmatprep.subr.bf16.mxu1 %v13400_v40  ;;  %v13478_v39 = vld [vmem:[#allocation2 + $0x968] ss:$28 sps:$4 sm:$0xff]  }
 0x224   :  { %v13481_v40 = vld [vmem:[#allocation2 + $0xce8] ss:$28 sps:$4 sm:$0xff]  }
 0x229   :  { %12462 = vmatpush3.bf16.xpose.msra.mxu0 %v13401_v41  ;;  %v13486_v41 = vld [vmem:[#allocation2 + $0x9a4] ss:$28 sps:$4 sm:$0xff]  }
 0x22a   :  { %12480 = vmatpush3.bf16.xpose.msra.mxu1 %v13402_v42  ;;  %12463 = vmatprep.subr.bf16.mxu0 %v13403_v43  ;;  %v13489_v42 = vld [vmem:[#allocation2 + $0xd24] ss:$28 sps:$4 sm:$0xff]  }
 0x22b   :  { %12481 = vmatprep.subr.bf16.mxu1 %v13404_v44  ;;  %v13484_v43 = vld [vmem:[#allocation2 + $0x9a0] ss:$28 sps:$4 sm:$0xff]  }
 0x22c   :  { %v13487_v44 = vld [vmem:[#allocation2 + $0xd20] ss:$28 sps:$4 sm:$0xff]  }
 0x231   :  { %12464 = vmatpush3.bf16.xpose.msra.mxu0 %v13405_v45  ;;  %v13492_v45 = vld [vmem:[#allocation2 + $0x9dc] ss:$28 sps:$4 sm:$0xff]  }
 0x232   :  { %12482 = vmatpush3.bf16.xpose.msra.mxu1 %v13406_v46  ;;  %12465 = vmatprep.subr.bf16.mxu0 %v13407_v47  ;;  %v13495_v46 = vld [vmem:[#allocation2 + $0xd5c] ss:$28 sps:$4 sm:$0xff]  }
 0x233   :  { %12483 = vmatprep.subr.bf16.mxu1 %v13408_v48  ;;  %v13490_v47 = vld [vmem:[#allocation2 + $0x9d8] ss:$28 sps:$4 sm:$0xff]  }
 0x234   :  { %v13493_v48 = vld [vmem:[#allocation2 + $0xd58] ss:$28 sps:$4 sm:$0xff]  }
 0x239   :  { %12466 = vmatpush3.bf16.xpose.msra.mxu0 %v13409_v49  ;;  %v13498_v49 = vld [vmem:[#allocation2 + $0xa14] ss:$28 sps:$4 sm:$0xff]  }
 0x23a   :  { %12484 = vmatpush3.bf16.xpose.msra.mxu1 %v13410_v50  ;;  %3340 = vmatprep.subr.bf16.mxu0 %v13414_v51  ;;  %v13501_v50 = vld [vmem:[#allocation2 + $0xd94] ss:$28 sps:$4 sm:$0xff]  }
 0x23b   :  { %3504 = vmatprep.subr.bf16.mxu1 %v13417_v52  ;;  %v13496_v51 = vld [vmem:[#allocation2 + $0xa10] ss:$28 sps:$4 sm:$0xff]  }
 0x23c   :  { %v13499_v52 = vld [vmem:[#allocation2 + $0xd90] ss:$28 sps:$4 sm:$0xff]  }
 0x240   :  { %12468 = vmatmul.mubr.bf16.vlgmr.msra.gmra.mrb[0].mxu0 %v15182_v24 }
 0x241   :  { %12486 = vmatmul.mubr.bf16.vlgmr.msra.gmra.mrb[0].mxu1 %v15182_v24  ;;  %3341 = vmatpush1.bf16.xpose.msra.mxu0 %v13412_v53  ;;  %v13504_v53 = vld [vmem:[#allocation2 + $0xa4c] ss:$28 sps:$4 sm:$0xff]  }
 0x242   :  { %3505 = vmatpush1.bf16.xpose.msra.mxu1 %v13415_v54  ;;  %3342 = vmatprep.subr.bf16.mxu0 %v13420_v55  ;;  %v13507_v54 = vld [vmem:[#allocation2 + $0xdcc] ss:$28 sps:$4 sm:$0xff]  }
 0x243   :  { %3506 = vmatprep.subr.bf16.mxu1 %v13423_v56  ;;  %3372 = vmatprep.mubr.bf16.mxu0 %v15137_v27  ;;  %v13502_v55 = vld [vmem:[#allocation2 + $0xa48] ss:$28 sps:$4 sm:$0xff]  }
 0x244   :  { %3536 = vmatprep.mubr.bf16.mxu1 %v15137_v27  ;;  %v13441_v27 = vld [vmem:[#allocation2 + $0xb64] ss:$28 sps:$4 sm:$0xff]  }
 0x245   :  { %v13505_v56 = vld [vmem:[#allocation2 + $0xdc8] ss:$28 sps:$4 sm:$0xff]  }
 0x249   :  { %3343 = vmatpush1.bf16.xpose.msra.mxu0 %v13418_v57  ;;  %v13510_v57 = vld [vmem:[#allocation2 + $0x70c] ss:$28 sps:$4 sm:$0xff]  }
 0x24a   :  { %3507 = vmatpush1.bf16.xpose.msra.mxu1 %v13421_v58  ;;  %3344 = vmatprep.subr.bf16.mxu0 %v13426_v59  ;;  %v13513_v58 = vld [vmem:[#allocation2 + $0xa8c] ss:$28 sps:$4 sm:$0xff]  }
 0x24b   :  { %3508 = vmatprep.subr.bf16.mxu1 %v13429_v60  ;;  %v13508_v59 = vld [vmem:[#allocation2 + $0x708] ss:$28 sps:$4 sm:$0xff]  }
 0x24c   :  { %v13511_v60 = vld [vmem:[#allocation2 + $0xa88] ss:$28 sps:$4 sm:$0xff]  }
 0x251   :  { %3345 = vmatpush1.bf16.xpose.msra.mxu0 %v13424_v61  ;;  %v13516_v61 = vld [vmem:[#allocation2 + $0x744] ss:$28 sps:$4 sm:$0xff]  }
 0x252   :  { %3509 = vmatpush1.bf16.xpose.msra.mxu1 %v13427_v62  ;;  %3346 = vmatprep.subr.bf16.mxu0 %v13432_v63  ;;  %v13519_v62 = vld [vmem:[#allocation2 + $0xac4] ss:$28 sps:$4 sm:$0xff]  }
 0x253   :  { %3510 = vmatprep.subr.bf16.mxu1 %v13435_v0  ;;  %v13514_v63 = vld [vmem:[#allocation2 + $0x740] ss:$28 sps:$4 sm:$0xff]  }
 0x254   :  { %v13517_v0 = vld [vmem:[#allocation2 + $0xac0] ss:$28 sps:$4 sm:$0xff]  }
 0x259   :  { %3347 = vmatpush1.bf16.xpose.msra.mxu0 %v13430_v1  ;;  %v13522_v1 = vld [vmem:[#allocation2 + $0x77c] ss:$28 sps:$4 sm:$0xff]  }
 0x25a   :  { %3511 = vmatpush1.bf16.xpose.msra.mxu1 %v13433_v2  ;;  %3348 = vmatprep.subr.bf16.mxu0 %v13438_v3  ;;  %v13525_v2 = vld [vmem:[#allocation2 + $0xafc] ss:$28 sps:$4 sm:$0xff]  }
 0x25b   :  { %3512 = vmatprep.subr.bf16.mxu1 %v13441_v27  ;;  %v13520_v3 = vld [vmem:[#allocation2 + $0x778] ss:$28 sps:$4 sm:$0xff]  }
 0x25c   :  { %v13523_v27 = vld [vmem:[#allocation2 + $0xaf8] ss:$28 sps:$4 sm:$0xff]  }
 0x261   :  { %3349 = vmatpush1.bf16.xpose.msra.mxu0 %v13436_v5  ;;  %v13528_v5 = vld [vmem:[#allocation2 + $0x7b4] ss:$28 sps:$4 sm:$0xff]  }
 0x262   :  { %3513 = vmatpush1.bf16.xpose.msra.mxu1 %v13439_v6  ;;  %3350 = vmatprep.subr.bf16.mxu0 %v13444_v8  ;;  %v13526_v6 = vld [vmem:[#allocation2 + $0x7b0] ss:$28 sps:$4 sm:$0xff]  }
 0x263   :  { %3514 = vmatprep.subr.bf16.mxu1 %v13447_v9  ;;  %v13529_v8 = vld [vmem:[#allocation2 + $0xb30] ss:$28 sps:$4 sm:$0xff]  }
 0x264   :  { %v13534_v9 = vld [vmem:[#allocation2 + $0x7ec] ss:$28 sps:$4 sm:$0xff]  }
 0x269   :  { %3351 = vmatpush1.bf16.xpose.msra.mxu0 %v13442_v12  ;;  %v13532_v12 = vld [vmem:[#allocation2 + $0x7e8] ss:$28 sps:$4 sm:$0xff]  }
 0x26a   :  { %3515 = vmatpush1.bf16.xpose.msra.mxu1 %v13445_v13  ;;  %3352 = vmatprep.subr.bf16.mxu0 %v13450_v15  ;;  %v13535_v13 = vld [vmem:[#allocation2 + $0xb68] ss:$28 sps:$4 sm:$0xff]  }
 0x26b   :  { %3516 = vmatprep.subr.bf16.mxu1 %v13453_v16  ;;  %v13540_v15 = vld [vmem:[#allocation2 + $0x824] ss:$28 sps:$4 sm:$0xff]  }
 0x26c   :  { %v13543_v16 = vld [vmem:[#allocation2 + $0xba4] ss:$28 sps:$4 sm:$0xff]  }
 0x271   :  { %3353 = vmatpush1.bf16.xpose.msra.mxu0 %v13448_v18  ;;  %v13538_v18 = vld [vmem:[#allocation2 + $0x820] ss:$28 sps:$4 sm:$0xff]  }
 0x272   :  { %3517 = vmatpush1.bf16.xpose.msra.mxu1 %v13451_v19  ;;  %3354 = vmatprep.subr.bf16.mxu0 %v13456_v20  ;;  %v13541_v19 = vld [vmem:[#allocation2 + $0xba0] ss:$28 sps:$4 sm:$0xff]  }
 0x273   :  { %3518 = vmatprep.subr.bf16.mxu1 %v13459_v21  ;;  %v13546_v20 = vld [vmem:[#allocation2 + $0x85c] ss:$28 sps:$4 sm:$0xff]  }
 0x274   :  { %v13549_v21 = vld [vmem:[#allocation2 + $0xbdc] ss:$28 sps:$4 sm:$0xff]  }
 0x279   :  { %3355 = vmatpush1.bf16.xpose.msra.mxu0 %v13454_v22  ;;  %v13544_v22 = vld [vmem:[#allocation2 + $0x858] ss:$28 sps:$4 sm:$0xff]  }
 0x27a   :  { %3519 = vmatpush1.bf16.xpose.msra.mxu1 %v13457_v23  ;;  %3356 = vmatprep.subr.bf16.mxu0 %v13462_v11  ;;  %v13547_v23 = vld [vmem:[#allocation2 + $0xbd8] ss:$28 sps:$4 sm:$0xff]  }
 0x27b   :  { %3520 = vmatprep.subr.bf16.mxu1 %v13465_v25  ;;  %v13552_v11 = vld [vmem:[#allocation2 + $0x894] ss:$28 sps:$4 sm:$0xff]  }
 0x27c   :  { %v13555_v25 = vld [vmem:[#allocation2 + $0xc14] ss:$28 sps:$4 sm:$0xff]  }
 0x281   :  { %3357 = vmatpush1.bf16.xpose.msra.mxu0 %v13460_v26  ;;  %v13550_v26 = vld [vmem:[#allocation2 + $0x890] ss:$28 sps:$4 sm:$0xff]  }
 0x282   :  { %3521 = vmatpush1.bf16.xpose.msra.mxu1 %v13463_v28  ;;  %3358 = vmatprep.subr.bf16.mxu0 %v13468_v29  ;;  %v13553_v28 = vld [vmem:[#allocation2 + $0xc10] ss:$28 sps:$4 sm:$0xff]  }
 0x283   :  { %3522 = vmatprep.subr.bf16.mxu1 %v13471_v30  ;;  %v13558_v29 = vld [vmem:[#allocation2 + $0x8cc] ss:$28 sps:$4 sm:$0xff]  }
 0x284   :  { %v13561_v30 = vld [vmem:[#allocation2 + $0xc4c] ss:$28 sps:$4 sm:$0xff]  }
 0x289   :  { %3359 = vmatpush1.bf16.xpose.msra.mxu0 %v13466_v31  ;;  %v13556_v31 = vld [vmem:[#allocation2 + $0x8c8] ss:$28 sps:$4 sm:$0xff]  }
 0x28a   :  { %3523 = vmatpush1.bf16.xpose.msra.mxu1 %v13469_v32  ;;  %3360 = vmatprep.subr.bf16.mxu0 %v13474_v33  ;;  %v13559_v32 = vld [vmem:[#allocation2 + $0xc48] ss:$28 sps:$4 sm:$0xff]  }
 0x28b   :  { %3524 = vmatprep.subr.bf16.mxu1 %v13477_v34  ;;  %v13564_v33 = vld [vmem:[#allocation2 + $0x904] ss:$28 sps:$4 sm:$0xff]  }
 0x28c   :  { %v13567_v34 = vld [vmem:[#allocation2 + $0xc84] ss:$28 sps:$4 sm:$0xff]  }
 0x291   :  { %3361 = vmatpush1.bf16.xpose.msra.mxu0 %v13472_v35  ;;  %v13562_v35 = vld [vmem:[#allocation2 + $0x900] ss:$28 sps:$4 sm:$0xff]  }
 0x292   :  { %3525 = vmatpush1.bf16.xpose.msra.mxu1 %v13475_v36  ;;  %3362 = vmatprep.subr.bf16.mxu0 %v13480_v37  ;;  %v13565_v36 = vld [vmem:[#allocation2 + $0xc80] ss:$28 sps:$4 sm:$0xff]  }
 0x293   :  { %3526 = vmatprep.subr.bf16.mxu1 %v13483_v38  ;;  %v13570_v37 = vld [vmem:[#allocation2 + $0x93c] ss:$28 sps:$4 sm:$0xff]  }
 0x294   :  { %v13573_v38 = vld [vmem:[#allocation2 + $0xcbc] ss:$28 sps:$4 sm:$0xff]  }
 0x299   :  { %3363 = vmatpush1.bf16.xpose.msra.mxu0 %v13478_v39  ;;  %v13568_v39 = vld [vmem:[#allocation2 + $0x938] ss:$28 sps:$4 sm:$0xff]  }
 0x29a   :  { %3527 = vmatpush1.bf16.xpose.msra.mxu1 %v13481_v40  ;;  %3364 = vmatprep.subr.bf16.mxu0 %v13486_v41  ;;  %v13571_v40 = vld [vmem:[#allocation2 + $0xcb8] ss:$28 sps:$4 sm:$0xff]  }
 0x29b   :  { %3528 = vmatprep.subr.bf16.mxu1 %v13489_v42  ;;  %v13576_v41 = vld [vmem:[#allocation2 + $0x974] ss:$28 sps:$4 sm:$0xff]  }
 0x29c   :  { %v13579_v42 = vld [vmem:[#allocation2 + $0xcf4] ss:$28 sps:$4 sm:$0xff]  }
 0x2a1   :  { %3365 = vmatpush1.bf16.xpose.msra.mxu0 %v13484_v43 }
 0x2a2   :  { %3529 = vmatpush1.bf16.xpose.msra.mxu1 %v13487_v44  ;;  %3366 = vmatprep.subr.bf16.mxu0 %v13492_v45 }
 0x2a3   :  { %3530 = vmatprep.subr.bf16.mxu1 %v13495_v46 }
 0x2a9   :  { %3367 = vmatpush1.bf16.xpose.msra.mxu0 %v13490_v47 }
 0x2aa   :  { %3531 = vmatpush1.bf16.xpose.msra.mxu1 %v13493_v48  ;;  %3368 = vmatprep.subr.bf16.mxu0 %v13498_v49  ;;  %v13574_v49 = vld [vmem:[#allocation2 + $0x970] ss:$28 sps:$4 sm:$0xff]  }
 0x2ab   :  { %3532 = vmatprep.subr.bf16.mxu1 %v13501_v50  ;;  %v13577_v50 = vld [vmem:[#allocation2 + $0xcf0] ss:$28 sps:$4 sm:$0xff]  }
 0x2b1   :  { %3369 = vmatpush1.bf16.xpose.msra.mxu0 %v13496_v51 }
 0x2b2   :  { %3533 = vmatpush1.bf16.xpose.msra.mxu1 %v13499_v52  ;;  %3370 = vmatprep.subr.bf16.mxu0 %v13504_v53  ;;  %v13582_v53 = vld [vmem:[#allocation2 + $0x9ac] ss:$28 sps:$4 sm:$0xff]  }
 0x2b3   :  { %3534 = vmatprep.subr.bf16.mxu1 %v13507_v54  ;;  %v13585_v54 = vld [vmem:[#allocation2 + $0xd2c] ss:$28 sps:$4 sm:$0xff]  }
 0x2b9   :  { %3371 = vmatpush1.bf16.xpose.msra.mxu0 %v13502_v55  ;;  %v13580_v55 = vld [vmem:[#allocation2 + $0x9a8] ss:$28 sps:$4 sm:$0xff]  }
 0x2ba   :  { %3535 = vmatpush1.bf16.xpose.msra.mxu1 %v13505_v56  ;;  %3381 = vmatprep.subr.bf16.mxu0 %v13510_v57  ;;  %v13583_v56 = vld [vmem:[#allocation2 + $0xd28] ss:$28 sps:$4 sm:$0xff]  }
 0x2bb   :  { %3545 = vmatprep.subr.bf16.mxu1 %v13513_v58  ;;  %v13588_v57 = vld [vmem:[#allocation2 + $0x9e4] ss:$28 sps:$4 sm:$0xff]  }
 0x2bc   :  { %v13591_v58 = vld [vmem:[#allocation2 + $0xd64] ss:$28 sps:$4 sm:$0xff]  }
 0x2c0   :  { %3373 = vmatmul.mubr.bf16.vlgmr.msra.gmra.mrb[4].mxu0 %v15148_v7 }
 0x2c1   :  { %3537 = vmatmul.mubr.bf16.vlgmr.msra.gmra.mrb[4].mxu1 %v15148_v7  ;;  %3382 = vmatpush1.bf16.xpose.msra.mxu0 %v13508_v59  ;;  %v13531_v7 = vld [vmem:[#allocation2 + $0xb34] ss:$28 sps:$4 sm:$0xff]   ;;  %v13586_v59 = vld [vmem:[#allocation2 + $0x9e0] ss:$28 sps:$4 sm:$0xff]  }
 0x2c2   :  { %3546 = vmatpush1.bf16.xpose.msra.mxu1 %v13511_v60  ;;  %3383 = vmatprep.subr.bf16.mxu0 %v13516_v61  ;;  %v13589_v60 = vld [vmem:[#allocation2 + $0xd60] ss:$28 sps:$4 sm:$0xff]  }
 0x2c3   :  { %3547 = vmatprep.subr.bf16.mxu1 %v13519_v62  ;;  %3413 = vmatprep.mubr.bf16.mxu0 %v15152_v10  ;;  %v13594_v61 = vld [vmem:[#allocation2 + $0xa1c] ss:$28 sps:$4 sm:$0xff]  }
 0x2c4   :  { %3577 = vmatprep.mubr.bf16.mxu1 %v15152_v10  ;;  %v13537_v10 = vld [vmem:[#allocation2 + $0xb6c] ss:$28 sps:$4 sm:$0xff]   ;;  %v13597_v62 = vld [vmem:[#allocation2 + $0xd9c] ss:$28 sps:$4 sm:$0xff]  }
 0x2c9   :  { %3384 = vmatpush1.bf16.xpose.msra.mxu0 %v13514_v63  ;;  %v13592_v63 = vld [vmem:[#allocation2 + $0xa18] ss:$28 sps:$4 sm:$0xff]  }
 0x2ca   :  { %3548 = vmatpush1.bf16.xpose.msra.mxu1 %v13517_v0  ;;  %3385 = vmatprep.subr.bf16.mxu0 %v13522_v1  ;;  %v13595_v0 = vld [vmem:[#allocation2 + $0xd98] ss:$28 sps:$4 sm:$0xff]  }
 0x2cb   :  { %3549 = vmatprep.subr.bf16.mxu1 %v13525_v2  ;;  %v13600_v1 = vld [vmem:[#allocation2 + $0xa54] ss:$28 sps:$4 sm:$0xff]  }
 0x2cc   :  { %v13603_v2 = vld [vmem:[#allocation2 + $0xdd4] ss:$28 sps:$4 sm:$0xff]  }
 0x2d1   :  { %3386 = vmatpush1.bf16.xpose.msra.mxu0 %v13520_v3  ;;  %v13598_v3 = vld [vmem:[#allocation2 + $0xa50] ss:$28 sps:$4 sm:$0xff]  }
 0x2d2   :  { %3550 = vmatpush1.bf16.xpose.msra.mxu1 %v13523_v27  ;;  %3387 = vmatprep.subr.bf16.mxu0 %v13528_v5  ;;  %v13601_v27 = vld [vmem:[#allocation2 + $0xdd0] ss:$28 sps:$4 sm:$0xff]  }
 0x2d3   :  { %3551 = vmatprep.subr.bf16.mxu1 %v13531_v7  ;;  %v13606_v5 = vld [vmem:[#allocation2 + $0x714] ss:$28 sps:$4 sm:$0xff]  }
 0x2d4   :  { %v13609_v7 = vld [vmem:[#allocation2 + $0xa94] ss:$28 sps:$4 sm:$0xff]  }
 0x2d9   :  { %3388 = vmatpush1.bf16.xpose.msra.mxu0 %v13526_v6  ;;  %v13604_v6 = vld [vmem:[#allocation2 + $0x710] ss:$28 sps:$4 sm:$0xff]  }
 0x2da   :  { %3552 = vmatpush1.bf16.xpose.msra.mxu1 %v13529_v8  ;;  %3389 = vmatprep.subr.bf16.mxu0 %v13534_v9  ;;  %v13607_v8 = vld [vmem:[#allocation2 + $0xa90] ss:$28 sps:$4 sm:$0xff]  }
 0x2db   :  { %3553 = vmatprep.subr.bf16.mxu1 %v13537_v10  ;;  %v13612_v9 = vld [vmem:[#allocation2 + $0x74c] ss:$28 sps:$4 sm:$0xff]  }
 0x2dc   :  { %v13615_v10 = vld [vmem:[#allocation2 + $0xacc] ss:$28 sps:$4 sm:$0xff]  }
 0x2e1   :  { %3390 = vmatpush1.bf16.xpose.msra.mxu0 %v13532_v12  ;;  %v13610_v12 = vld [vmem:[#allocation2 + $0x748] ss:$28 sps:$4 sm:$0xff]  }
 0x2e2   :  { %3554 = vmatpush1.bf16.xpose.msra.mxu1 %v13535_v13  ;;  %3391 = vmatprep.subr.bf16.mxu0 %v13540_v15  ;;  %v13613_v13 = vld [vmem:[#allocation2 + $0xac8] ss:$28 sps:$4 sm:$0xff]  }
 0x2e3   :  { %3555 = vmatprep.subr.bf16.mxu1 %v13543_v16  ;;  %v13618_v15 = vld [vmem:[#allocation2 + $0x784] ss:$28 sps:$4 sm:$0xff]  }
 0x2e4   :  { %v13621_v16 = vld [vmem:[#allocation2 + $0xb04] ss:$28 sps:$4 sm:$0xff]  }
 0x2e9   :  { %3392 = vmatpush1.bf16.xpose.msra.mxu0 %v13538_v18  ;;  %v13616_v18 = vld [vmem:[#allocation2 + $0x780] ss:$28 sps:$4 sm:$0xff]  }
 0x2ea   :  { %3556 = vmatpush1.bf16.xpose.msra.mxu1 %v13541_v19  ;;  %3393 = vmatprep.subr.bf16.mxu0 %v13546_v20  ;;  %v13619_v19 = vld [vmem:[#allocation2 + $0xb00] ss:$28 sps:$4 sm:$0xff]  }
 0x2eb   :  { %3557 = vmatprep.subr.bf16.mxu1 %v13549_v21  ;;  %v13624_v20 = vld [vmem:[#allocation2 + $0x7bc] ss:$28 sps:$4 sm:$0xff]  }
 0x2ec   :  { %v13622_v21 = vld [vmem:[#allocation2 + $0x7b8] ss:$28 sps:$4 sm:$0xff]  }
 0x2f1   :  { %3394 = vmatpush1.bf16.xpose.msra.mxu0 %v13544_v22  ;;  %v13625_v22 = vld [vmem:[#allocation2 + $0xb38] ss:$28 sps:$4 sm:$0xff]  }
 0x2f2   :  { %3558 = vmatpush1.bf16.xpose.msra.mxu1 %v13547_v23  ;;  %3395 = vmatprep.subr.bf16.mxu0 %v13552_v11  ;;  %v13630_v23 = vld [vmem:[#allocation2 + $0x7f4] ss:$28 sps:$4 sm:$0xff]  }
 0x2f3   :  { %3559 = vmatprep.subr.bf16.mxu1 %v13555_v25  ;;  %v13628_v11 = vld [vmem:[#allocation2 + $0x7f0] ss:$28 sps:$4 sm:$0xff]  }
 0x2f4   :  { %v13631_v25 = vld [vmem:[#allocation2 + $0xb70] ss:$28 sps:$4 sm:$0xff]  }
 0x2f9   :  { %3396 = vmatpush1.bf16.xpose.msra.mxu0 %v13550_v26  ;;  %v13636_v26 = vld [vmem:[#allocation2 + $0x82c] ss:$28 sps:$4 sm:$0xff]  }
 0x2fa   :  { %3560 = vmatpush1.bf16.xpose.msra.mxu1 %v13553_v28  ;;  %3397 = vmatprep.subr.bf16.mxu0 %v13558_v29  ;;  %v13639_v28 = vld [vmem:[#allocation2 + $0xbac] ss:$28 sps:$4 sm:$0xff]  }
 0x2fb   :  { %3561 = vmatprep.subr.bf16.mxu1 %v13561_v30  ;;  %v13634_v29 = vld [vmem:[#allocation2 + $0x828] ss:$28 sps:$4 sm:$0xff]  }
 0x2fc   :  { %v13637_v30 = vld [vmem:[#allocation2 + $0xba8] ss:$28 sps:$4 sm:$0xff]  }
 0x301   :  { %3398 = vmatpush1.bf16.xpose.msra.mxu0 %v13556_v31  ;;  %v13642_v31 = vld [vmem:[#allocation2 + $0x864] ss:$28 sps:$4 sm:$0xff]  }
 0x302   :  { %3562 = vmatpush1.bf16.xpose.msra.mxu1 %v13559_v32  ;;  %3399 = vmatprep.subr.bf16.mxu0 %v13564_v33  ;;  %v13645_v32 = vld [vmem:[#allocation2 + $0xbe4] ss:$28 sps:$4 sm:$0xff]  }
 0x303   :  { %3563 = vmatprep.subr.bf16.mxu1 %v13567_v34  ;;  %v13640_v33 = vld [vmem:[#allocation2 + $0x860] ss:$28 sps:$4 sm:$0xff]  }
 0x304   :  { %v13643_v34 = vld [vmem:[#allocation2 + $0xbe0] ss:$28 sps:$4 sm:$0xff]  }
 0x309   :  { %3400 = vmatpush1.bf16.xpose.msra.mxu0 %v13562_v35  ;;  %v13648_v35 = vld [vmem:[#allocation2 + $0x89c] ss:$28 sps:$4 sm:$0xff]  }
 0x30a   :  { %3564 = vmatpush1.bf16.xpose.msra.mxu1 %v13565_v36  ;;  %3401 = vmatprep.subr.bf16.mxu0 %v13570_v37  ;;  %v13651_v36 = vld [vmem:[#allocation2 + $0xc1c] ss:$28 sps:$4 sm:$0xff]  }
 0x30b   :  { %3565 = vmatprep.subr.bf16.mxu1 %v13573_v38  ;;  %v13646_v37 = vld [vmem:[#allocation2 + $0x898] ss:$28 sps:$4 sm:$0xff]  }
 0x30c   :  { %v13649_v38 = vld [vmem:[#allocation2 + $0xc18] ss:$28 sps:$4 sm:$0xff]  }
 0x311   :  { %3402 = vmatpush1.bf16.xpose.msra.mxu0 %v13568_v39  ;;  %v13654_v39 = vld [vmem:[#allocation2 + $0x8d4] ss:$28 sps:$4 sm:$0xff]  }
 0x312   :  { %3566 = vmatpush1.bf16.xpose.msra.mxu1 %v13571_v40  ;;  %3403 = vmatprep.subr.bf16.mxu0 %v13576_v41  ;;  %v13657_v40 = vld [vmem:[#allocation2 + $0xc54] ss:$28 sps:$4 sm:$0xff]  }
 0x313   :  { %3567 = vmatprep.subr.bf16.mxu1 %v13579_v42  ;;  %v15196_v43 = vpop.f32.mrb[0].mxu0  ;;  %v13652_v41 = vld [vmem:[#allocation2 + $0x8d0] ss:$28 sps:$4 sm:$0xff]  }
 0x314   :  { %v15198_v44 = vpop.f32.mrb[0].mxu1  ;;  %v15200_v45 = vpop.f32.mrb[1].mxu0  ;;  %v13655_v42 = vld [vmem:[#allocation2 + $0xc50] ss:$28 sps:$4 sm:$0xff]  }
 0x315   :  { %v15202_v46 = vpop.f32.mrb[1].mxu1  ;;  %v3173_v47 = vpop.f32.mrb[2].mxu0 }
 0x316   :  { %v3337_v48 = vpop.f32.mrb[2].mxu1  ;;  %v3174_v51 = vpop.f32.mrb[3].mxu0  ;;  %v13660_v47 = vld [vmem:[#allocation2 + $0x90c] ss:$28 sps:$4 sm:$0xff]  }
 0x317   :  { %v3338_v52 = vpop.f32.mrb[3].mxu1  ;;  %v13663_v48 = vld [vmem:[#allocation2 + $0xc8c] ss:$28 sps:$4 sm:$0xff]   ;;  %v13666_v51 = vld [vmem:[#allocation2 + $0x944] ss:$28 sps:$4 sm:$0xff]  }
 0x318   :  { %v13669_v52 = vld [vmem:[#allocation2 + $0xcc4] ss:$28 sps:$4 sm:$0xff]  }
 0x319   :  { %3404 = vmatpush1.bf16.xpose.msra.mxu0 %v13574_v49  ;;  %v13658_v49 = vld [vmem:[#allocation2 + $0x908] ss:$28 sps:$4 sm:$0xff]  }
 0x31a   :  { %3568 = vmatpush1.bf16.xpose.msra.mxu1 %v13577_v50  ;;  %3405 = vmatprep.subr.bf16.mxu0 %v13582_v53  ;;  %v13661_v50 = vld [vmem:[#allocation2 + $0xc88] ss:$28 sps:$4 sm:$0xff]   ;;  %v13664_v53 = vld [vmem:[#allocation2 + $0x940] ss:$28 sps:$4 sm:$0xff]  }
 0x31b   :  { %3569 = vmatprep.subr.bf16.mxu1 %v13585_v54  ;;  %v13667_v54 = vld [vmem:[#allocation2 + $0xcc0] ss:$28 sps:$4 sm:$0xff]  }
 0x321   :  { %3406 = vmatpush1.bf16.xpose.msra.mxu0 %v13580_v55  ;;  %v13672_v55 = vld [vmem:[#allocation2 + $0x97c] ss:$28 sps:$4 sm:$0xff]  }
 0x322   :  { %3570 = vmatpush1.bf16.xpose.msra.mxu1 %v13583_v56  ;;  %3407 = vmatprep.subr.bf16.mxu0 %v13588_v57  ;;  %v13675_v56 = vld [vmem:[#allocation2 + $0xcfc] ss:$28 sps:$4 sm:$0xff]  }
 0x323   :  { %3571 = vmatprep.subr.bf16.mxu1 %v13591_v58  ;;  %v13670_v57 = vld [vmem:[#allocation2 + $0x978] ss:$28 sps:$4 sm:$0xff]  }
 0x324   :  { %v13673_v58 = vld [vmem:[#allocation2 + $0xcf8] ss:$28 sps:$4 sm:$0xff]  }
 0x329   :  { %3408 = vmatpush1.bf16.xpose.msra.mxu0 %v13586_v59  ;;  %v13678_v59 = vld [vmem:[#allocation2 + $0x9b4] ss:$28 sps:$4 sm:$0xff]  }
 0x32a   :  { %3572 = vmatpush1.bf16.xpose.msra.mxu1 %v13589_v60  ;;  %3409 = vmatprep.subr.bf16.mxu0 %v13594_v61  ;;  %v13681_v60 = vld [vmem:[#allocation2 + $0xd34] ss:$28 sps:$4 sm:$0xff]  }
 0x32b   :  { %3573 = vmatprep.subr.bf16.mxu1 %v13597_v62  ;;  %v13676_v61 = vld [vmem:[#allocation2 + $0x9b0] ss:$28 sps:$4 sm:$0xff]  }
 0x32c   :  { %v13679_v62 = vld [vmem:[#allocation2 + $0xd30] ss:$28 sps:$4 sm:$0xff]  }
 0x331   :  { %3410 = vmatpush1.bf16.xpose.msra.mxu0 %v13592_v63  ;;  %v13684_v63 = vld [vmem:[#allocation2 + $0x9ec] ss:$28 sps:$4 sm:$0xff]  }
 0x332   :  { %3574 = vmatpush1.bf16.xpose.msra.mxu1 %v13595_v0  ;;  %3411 = vmatprep.subr.bf16.mxu0 %v13600_v1  ;;  %v13687_v0 = vld [vmem:[#allocation2 + $0xd6c] ss:$28 sps:$4 sm:$0xff]  }
 0x333   :  { %3575 = vmatprep.subr.bf16.mxu1 %v13603_v2  ;;  %v13682_v1 = vld [vmem:[#allocation2 + $0x9e8] ss:$28 sps:$4 sm:$0xff]  }
 0x334   :  { %v13685_v2 = vld [vmem:[#allocation2 + $0xd68] ss:$28 sps:$4 sm:$0xff]  }
 0x339   :  { %3412 = vmatpush1.bf16.xpose.msra.mxu0 %v13598_v3  ;;  %v13690_v3 = vld [vmem:[#allocation2 + $0xa24] ss:$28 sps:$4 sm:$0xff]  }
 0x33a   :  { %3576 = vmatpush1.bf16.xpose.msra.mxu1 %v13601_v27  ;;  %3422 = vmatprep.subr.bf16.mxu0 %v13606_v5  ;;  %v13693_v27 = vld [vmem:[#allocation2 + $0xda4] ss:$28 sps:$4 sm:$0xff]  }
 0x33b   :  { %3586 = vmatprep.subr.bf16.mxu1 %v13609_v7  ;;  %v13688_v5 = vld [vmem:[#allocation2 + $0xa20] ss:$28 sps:$4 sm:$0xff]  }
 0x33c   :  { %v13691_v7 = vld [vmem:[#allocation2 + $0xda0] ss:$28 sps:$4 sm:$0xff]  }
 0x340   :  { %3414 = vmatmul.mubr.bf16.vlgmr.msra.gmra.mrb[4].mxu0 %v15165_v14 }
 0x341   :  { %3578 = vmatmul.mubr.bf16.vlgmr.msra.gmra.mrb[4].mxu1 %v15165_v14  ;;  %3423 = vmatpush1.bf16.xpose.msra.mxu0 %v13604_v6  ;;  %v13627_v14 = vld [vmem:[#allocation2 + $0xb3c] ss:$28 sps:$4 sm:$0xff]  }
 0x342   :  { %3587 = vmatpush1.bf16.xpose.msra.mxu1 %v13607_v8  ;;  %3424 = vmatprep.subr.bf16.mxu0 %v13612_v9  ;;  %v13696_v6 = vld [vmem:[#allocation2 + $0xa5c] ss:$28 sps:$4 sm:$0xff]  }
 0x343   :  { %3588 = vmatprep.subr.bf16.mxu1 %v13615_v10  ;;  %3454 = vmatprep.mubr.bf16.mxu0 %v15169_v17  ;;  %v13699_v8 = vld [vmem:[#allocation2 + $0xddc] ss:$28 sps:$4 sm:$0xff]  }
 0x344   :  { %3618 = vmatprep.mubr.bf16.mxu1 %v15169_v17  ;;  %v13633_v17 = vld [vmem:[#allocation2 + $0xb74] ss:$28 sps:$4 sm:$0xff]  }
 0x345   :  { %v13694_v9 = vld [vmem:[#allocation2 + $0xa58] ss:$28 sps:$4 sm:$0xff]  }
 0x346   :  { %v13697_v10 = vld [vmem:[#allocation2 + $0xdd8] ss:$28 sps:$4 sm:$0xff]  }
 0x349   :  { %3425 = vmatpush1.bf16.xpose.msra.mxu0 %v13610_v12  ;;  %v13700_v12 = vld [vmem:[#allocation2 + $0x8d8] ss:$28 sps:$4 sm:$0xff]  }
 0x34a   :  { %3589 = vmatpush1.bf16.xpose.msra.mxu1 %v13613_v13  ;;  %3426 = vmatprep.subr.bf16.mxu0 %v13618_v15  ;;  %v13701_v13 = vld [vmem:[#allocation2 + $0xc58] ss:$28 sps:$4 sm:$0xff]  }
 0x34b   :  { %3590 = vmatprep.subr.bf16.mxu1 %v13621_v16  ;;  %v13702_v15 = vld [vmem:[#allocation2 + $0x718] ss:$28 sps:$4 sm:$0xff]  }
 0x34c   :  { %v13703_v16 = vld [vmem:[#allocation2 + $0xa98] ss:$28 sps:$4 sm:$0xff]  }
 0x351   :  { %3427 = vmatpush1.bf16.xpose.msra.mxu0 %v13616_v18  ;;  %v13704_v18 = vld [vmem:[#allocation2 + $0x910] ss:$28 sps:$4 sm:$0xff]  }
 0x352   :  { %3591 = vmatpush1.bf16.xpose.msra.mxu1 %v13619_v19  ;;  %3428 = vmatprep.subr.bf16.mxu0 %v13624_v20  ;;  %v13705_v19 = vld [vmem:[#allocation2 + $0xc90] ss:$28 sps:$4 sm:$0xff]  }
 0x353   :  { %3592 = vmatprep.subr.bf16.mxu1 %v13627_v14  ;;  %v13706_v20 = vld [vmem:[#allocation2 + $0x750] ss:$28 sps:$4 sm:$0xff]  }
 0x354   :  { %v13707_v14 = vld [vmem:[#allocation2 + $0xad0] ss:$28 sps:$4 sm:$0xff]  }
 0x359   :  { %3429 = vmatpush1.bf16.xpose.msra.mxu0 %v13622_v21  ;;  %v13708_v21 = vld [vmem:[#allocation2 + $0x948] ss:$28 sps:$4 sm:$0xff]  }
 0x35a   :  { %3593 = vmatpush1.bf16.xpose.msra.mxu1 %v13625_v22  ;;  %3430 = vmatprep.subr.bf16.mxu0 %v13630_v23  ;;  %v13709_v22 = vld [vmem:[#allocation2 + $0xcc8] ss:$28 sps:$4 sm:$0xff]  }
 0x35b   :  { %3594 = vmatprep.subr.bf16.mxu1 %v13633_v17  ;;  %v13710_v23 = vld [vmem:[#allocation2 + $0x788] ss:$28 sps:$4 sm:$0xff]  }
 0x35c   :  { %v13711_v17 = vld [vmem:[#allocation2 + $0xb08] ss:$28 sps:$4 sm:$0xff]  }
 0x361   :  { %3431 = vmatpush1.bf16.xpose.msra.mxu0 %v13628_v11  ;;  %v13712_v11 = vld [vmem:[#allocation2 + $0x980] ss:$28 sps:$4 sm:$0xff]  }
 0x362   :  { %3595 = vmatpush1.bf16.xpose.msra.mxu1 %v13631_v25  ;;  %3432 = vmatprep.subr.bf16.mxu0 %v13636_v26  ;;  %v13714_v25 = vld [vmem:[#allocation2 + $0x7c0] ss:$28 sps:$4 sm:$0xff]  }
 0x363   :  { %3596 = vmatprep.subr.bf16.mxu1 %v13639_v28  ;;  %v13715_v26 = vld [vmem:[#allocation2 + $0xb40] ss:$28 sps:$4 sm:$0xff]   ;;  %v13716_v28 = vld [vmem:[#allocation2 + $0x9b8] ss:$28 sps:$4 sm:$0xff]  }
 0x369   :  { %3433 = vmatpush1.bf16.xpose.msra.mxu0 %v13634_v29  ;;  %v13718_v29 = vld [vmem:[#allocation2 + $0x7f8] ss:$28 sps:$4 sm:$0xff]  }
 0x36a   :  { %3597 = vmatpush1.bf16.xpose.msra.mxu1 %v13637_v30  ;;  %3434 = vmatprep.subr.bf16.mxu0 %v13642_v31  ;;  %v13719_v30 = vld [vmem:[#allocation2 + $0xb78] ss:$28 sps:$4 sm:$0xff]   ;;  %v13720_v31 = vld [vmem:[#allocation2 + $0x9f0] ss:$28 sps:$4 sm:$0xff]  }
 0x36b   :  { %3598 = vmatprep.subr.bf16.mxu1 %v13645_v32  ;;  %v13721_v32 = vld [vmem:[#allocation2 + $0xd70] ss:$28 sps:$4 sm:$0xff]  }
 0x371   :  { %3435 = vmatpush1.bf16.xpose.msra.mxu0 %v13640_v33  ;;  %v13722_v33 = vld [vmem:[#allocation2 + $0x830] ss:$28 sps:$4 sm:$0xff]  }
 0x372   :  { %3599 = vmatpush1.bf16.xpose.msra.mxu1 %v13643_v34  ;;  %3436 = vmatprep.subr.bf16.mxu0 %v13648_v35  ;;  %v13723_v34 = vld [vmem:[#allocation2 + $0xbb0] ss:$28 sps:$4 sm:$0xff]   ;;  %v13724_v35 = vld [vmem:[#allocation2 + $0xa28] ss:$28 sps:$4 sm:$0xff]  }
 0x373   :  { %3600 = vmatprep.subr.bf16.mxu1 %v13651_v36  ;;  %v13725_v36 = vld [vmem:[#allocation2 + $0xda8] ss:$28 sps:$4 sm:$0xff]  }
 0x379   :  { %3437 = vmatpush1.bf16.xpose.msra.mxu0 %v13646_v37  ;;  %v643_v37 = vlaneseq }
 0x37a   :  { %3601 = vmatpush1.bf16.xpose.msra.mxu1 %v13649_v38  ;;  %3438 = vmatprep.subr.bf16.mxu0 %v13654_v39  ;;  %v639_v39 = vld [vmem:[#allocation12] ss:$8 sm:$0xf] }
 0x37b   :  { %3602 = vmatprep.subr.bf16.mxu1 %v13657_v40  ;;  %v15212_v38 = vshrl.u32 %v643_v37, 7  ;;  %v640_v40 = vld [vmem:[#allocation12] ss:$8 sm:$0xf0] }
 0x381   :  { %3439 = vmatpush1.bf16.xpose.msra.mxu0 %v13652_v41  ;;  %v13726_v41 = vld [vmem:[#allocation2 + $0x868] ss:$28 sps:$4 sm:$0xff]  }
 0x382   :  { %3603 = vmatpush1.bf16.xpose.msra.mxu1 %v13655_v42  ;;  %3440 = vmatprep.subr.bf16.mxu0 %v13660_v47  ;;  %v13727_v42 = vld [vmem:[#allocation2 + $0xbe8] ss:$28 sps:$4 sm:$0xff]   ;;  %v13728_v47 = vld [vmem:[#allocation2 + $0xa60] ss:$28 sps:$4 sm:$0xff]  }
 0x383   :  { %3604 = vmatprep.subr.bf16.mxu1 %v13663_v48  ;;  %v13729_v48 = vld [vmem:[#allocation2 + $0xde0] ss:$28 sps:$4 sm:$0xff]  }
 0x389   :  { %3441 = vmatpush1.bf16.xpose.msra.mxu0 %v13658_v49  ;;  %v15214_v49 = vor.u32 %v640_v40, %v639_v39  ;;  %v3732_v40 = vld [vmem:[#allocation4 + $0x180] sm:$0xff] }
 0x38a   :  { %3605 = vmatpush1.bf16.xpose.msra.mxu1 %v13661_v50  ;;  %3442 = vmatprep.subr.bf16.mxu0 %v13666_v51  ;;  %v15217_v50 = vsub.s32 1, %v15212_v38  ;;  %v3684_v51 = vld [vmem:[#allocation4] sm:$0xff] }
 0x38b   :  { %3606 = vmatprep.subr.bf16.mxu1 %v13669_v52 }
 0x38c   :  { %18185 = vst [vmem:[#allocation17_spill] sm:$0xff] %v15217_v50  ;;  %v15221_v52 = vrot.slane %v15214_v49, %v15217_v50 }
 0x38e   :  { %18186 = vst [vmem:[#allocation18_spill] sm:$0xff] %v15221_v52 }
 0x391   :  { %3443 = vmatpush1.bf16.xpose.msra.mxu0 %v13664_v53  ;;  %v3688_v53 = vld [vmem:[#allocation4 + $0x20] sm:$0xff] }
 0x392   :  { %3607 = vmatpush1.bf16.xpose.msra.mxu1 %v13667_v54  ;;  %3444 = vmatprep.subr.bf16.mxu0 %v13672_v55  ;;  %v3812_v54 = vld [vmem:[#allocation4 + $0x400] sm:$0xff] }
 0x393   :  { %3608 = vmatprep.subr.bf16.mxu1 %v13675_v56  ;;  %v3816_v55 = vld [vmem:[#allocation4 + $0x420] sm:$0xff] }
 0x394   :  { %v13730_v56 = vld [vmem:[#allocation2 + $0x8a0] ss:$28 sps:$4 sm:$0xff]  }
 0x399   :  { %3445 = vmatpush1.bf16.xpose.msra.mxu0 %v13670_v57  ;;  %v13731_v57 = vld [vmem:[#allocation2 + $0xc20] ss:$28 sps:$4 sm:$0xff]  }
 0x39a   :  { %3609 = vmatpush1.bf16.xpose.msra.mxu1 %v13673_v58  ;;  %3446 = vmatprep.subr.bf16.mxu0 %v13678_v59  ;;  %v15223_v58 = vcombine.high %v3684_v51, %v3688_v53  ;;  %v15225_v59 = vcombine.high %v3812_v54, %v3816_v55 }
 0x39b   :  { %3610 = vmatprep.subr.bf16.mxu1 %v13681_v60  ;;  %v12808_v60 = vadd.f32 %v15200_v45, %v15221_v52  ;;  %v3908_v52 = vld [vmem:[#allocation4 + $0x700] sm:$0xff] }
 0x39c   :  { %18187 = vst [vmem:[#allocation19_spill] sm:$0xff] %v15223_v58  ;;  %18188 = vst [vmem:[#allocation20_spill] sm:$0xff] %v15225_v59 }
 0x3a1   :  { %3447 = vmatpush1.bf16.xpose.msra.mxu0 %v13676_v61  ;;  %v3669_v61 = vmax.f32 %v12808_v60, 0.0  ;;  %v3872_v60 = vld [vmem:[#allocation4 + $0x5e0] sm:$0xff] }
 0x3a2   :  { %3611 = vmatpush1.bf16.xpose.msra.mxu1 %v13679_v62  ;;  %3448 = vmatprep.subr.bf16.mxu0 %v13684_v63  ;;  %v3692_v62 = vld [vmem:[#allocation4 + $0x40] sm:$0xff] }
 0x3a3   :  { %3612 = vmatprep.subr.bf16.mxu1 %v13687_v0  ;;  %v3696_v63 = vld [vmem:[#allocation4 + $0x60] sm:$0xff] }
 0x3a4   :  { %v3820_v0 = vld [vmem:[#allocation4 + $0x440] sm:$0xff] }
 0x3a9   :  { %3449 = vmatpush1.bf16.xpose.msra.mxu0 %v13682_v1  ;;  %v3824_v1 = vld [vmem:[#allocation4 + $0x460] sm:$0xff] }
 0x3aa   :  { %3613 = vmatpush1.bf16.xpose.msra.mxu1 %v13685_v2  ;;  %3450 = vmatprep.subr.bf16.mxu0 %v13690_v3  ;;  %v15231_v2 = vcombine.low %v3684_v51, %v3688_v53  ;;  %v15233_v3 = vcombine.low %v3812_v54, %v3816_v55  ;;  %v15239_v45 = vcombine.high %v3820_v0, %v3824_v1  ;;  %v3740_v55 = vld [vmem:[#allocation4 + $0x1c0] sm:$0xff] }
 0x3ab   :  { %3614 = vmatprep.subr.bf16.mxu1 %v13693_v27  ;;  %v15235_v27 = vpack.c.bf16 %v3669_v61, %v3669_v61 }
 0x3ac   :  { %18189 = vst [vmem:[#allocation21_spill] sm:$0xff] %v15231_v2  ;;  %18190 = vst [vmem:[#allocation22_spill] sm:$0xff] %v15233_v3 }
 0x3ad   :  { %18192 = vst [vmem:[#allocation24_spill] sm:$0xff] %v15239_v45 }
 0x3b1   :  { %3451 = vmatpush1.bf16.xpose.msra.mxu0 %v13688_v5  ;;  %v15237_v5 = vcombine.high %v3692_v62, %v3696_v63 }
 0x3b2   :  { %3615 = vmatpush1.bf16.xpose.msra.mxu1 %v13691_v7  ;;  %3452 = vmatprep.subr.bf16.mxu0 %v13696_v6  ;;  %v14144_v7 = vld [vmem:[%s17692_s0 + $0x18] ss:$0 sps:$4 sm:$0xff]   ;;  %v3700_v6 = vld [vmem:[#allocation4 + $0x80] sm:$0xff] }
 0x3b3   :  { %3616 = vmatprep.subr.bf16.mxu1 %v13699_v8  ;;  %18191 = vst [vmem:[#allocation23_spill] sm:$0xff] %v15237_v5  ;;  %v3704_v8 = vld [vmem:[#allocation4 + $0xa0] sm:$0xff] }
 0x3b9   :  { %3453 = vmatpush1.bf16.xpose.msra.mxu0 %v13694_v9  ;;  %v3828_v9 = vld [vmem:[#allocation4 + $0x480] sm:$0xff] }
 0x3ba   :  { %3617 = vmatpush1.bf16.xpose.msra.mxu1 %v13697_v10  ;;  %12487 = vmatprep.subr.bf16.mxu0 %v13700_v12  ;;  %v3832_v10 = vld [vmem:[#allocation4 + $0x4a0] sm:$0xff]  ;;  %v15250_v12 = vcombine.low %v3692_v62, %v3696_v63 }
 0x3bb   :  { %12505 = vmatprep.subr.bf16.mxu1 %v13701_v13  ;;  %v15252_v13 = vcombine.low %v3820_v0, %v3824_v1  ;;  %v3748_v1 = vld [vmem:[#allocation4 + $0x200] sm:$0xff] }
 0x3bc   :  { %18193 = vst [vmem:[#allocation25_spill] sm:$0xff] %v15250_v12 }
 0x3bd   :  { %18194 = vst [vmem:[#allocation26_spill] sm:$0xff] %v15252_v13 }
 0x3c0   :  { %3455 = vmatmul.mubr.bf16.vlgmr.msra.gmra.mrb[4].mxu0 %v15177_v4 }
 0x3c1   :  { %3619 = vmatmul.mubr.bf16.vlgmr.msra.gmra.mrb[4].mxu1 %v15177_v4  ;;  %12488 = vmatpush3.bf16.xpose.msra.mxu0 %v13702_v15  ;;  %v13713_v4 = vld [vmem:[#allocation2 + $0xd00] ss:$28 sps:$4 sm:$0xff]   ;;  %v15254_v15 = vcombine.high %v3700_v6, %v3704_v8 }
 0x3c2   :  { %12506 = vmatpush3.bf16.xpose.msra.mxu1 %v13703_v16  ;;  %12489 = vmatprep.subr.bf16.mxu0 %v13704_v18  ;;  %v15256_v16 = vcombine.high %v3828_v9, %v3832_v10  ;;  %v3708_v18 = vld [vmem:[#allocation4 + $0xc0] sm:$0xff] }
 0x3c3   :  { %12507 = vmatprep.subr.bf16.mxu1 %v13705_v19  ;;  %12503 = vmatprep.mubr.bf16.mxu0 %v15182_v24  ;;  %18195 = vst [vmem:[#allocation27_spill] sm:$0xff] %v15254_v15  ;;  %v3712_v19 = vld [vmem:[#allocation4 + $0xe0] sm:$0xff] }
 0x3c4   :  { %12521 = vmatprep.mubr.bf16.mxu1 %v15182_v24  ;;  %v13717_v24 = vld [vmem:[#allocation2 + $0xd38] ss:$28 sps:$4 sm:$0xff]   ;;  %18196 = vst [vmem:[#allocation28_spill] sm:$0xff] %v15256_v16 }
 0x3c9   :  { %12490 = vmatpush3.bf16.xpose.msra.mxu0 %v13706_v20  ;;  %v3836_v20 = vld [vmem:[#allocation4 + $0x4c0] sm:$0xff] }
 0x3ca   :  { %12508 = vmatpush3.bf16.xpose.msra.mxu1 %v13707_v14  ;;  %12491 = vmatprep.subr.bf16.mxu0 %v13708_v21  ;;  %v3840_v14 = vld [vmem:[#allocation4 + $0x4e0] sm:$0xff]  ;;  %v15262_v21 = vcombine.low %v3700_v6, %v3704_v8 }
 0x3cb   :  { %12509 = vmatprep.subr.bf16.mxu1 %v13709_v22  ;;  %v15264_v22 = vcombine.low %v3828_v9, %v3832_v10  ;;  %v3876_v6 = vld [vmem:[#allocation4 + $0x600] sm:$0xff] }
 0x3cc   :  { %18197 = vst [vmem:[#allocation29_spill] sm:$0xff] %v15262_v21  ;;  %v3880_v8 = vld [vmem:[#allocation4 + $0x620] sm:$0xff] }
 0x3cd   :  { %18198 = vst [vmem:[#allocation30_spill] sm:$0xff] %v15264_v22 }
 0x3d1   :  { %12492 = vmatpush3.bf16.xpose.msra.mxu0 %v13710_v23  ;;  %v15266_v23 = vcombine.high %v3708_v18, %v3712_v19 }
 0x3d2   :  { %12510 = vmatpush3.bf16.xpose.msra.mxu1 %v13711_v17  ;;  %12493 = vmatprep.subr.bf16.mxu0 %v13712_v11  ;;  %v15268_v17 = vcombine.high %v3836_v20, %v3840_v14  ;;  %v3716_v11 = vld [vmem:[#allocation4 + $0x100] sm:$0xff] }
 0x3d3   :  { %12511 = vmatprep.subr.bf16.mxu1 %v13713_v4  ;;  %18199 = vst [vmem:[#allocation31_spill] sm:$0xff] %v15266_v23  ;;  %v3720_v4 = vld [vmem:[#allocation4 + $0x120] sm:$0xff] }
 0x3d4   :  { %18200 = vst [vmem:[#allocation32_spill] sm:$0xff] %v15268_v17 }
 0x3d9   :  { %12494 = vmatpush3.bf16.xpose.msra.mxu0 %v13714_v25  ;;  %v3844_v25 = vld [vmem:[#allocation4 + $0x500] sm:$0xff] }
 0x3da   :  { %12512 = vmatpush3.bf16.xpose.msra.mxu1 %v13715_v26  ;;  %12495 = vmatprep.subr.bf16.mxu0 %v13716_v28  ;;  %v3848_v26 = vld [vmem:[#allocation4 + $0x520] sm:$0xff]  ;;  %v15274_v28 = vcombine.low %v3708_v18, %v3712_v19  ;;  %v15328_v19 = vcombine.high %v3876_v6, %v3880_v8 }
 0x3db   :  { %12513 = vmatprep.subr.bf16.mxu1 %v13717_v24  ;;  %v15276_v24 = vcombine.low %v3836_v20, %v3840_v14  ;;  %v3756_v20 = vld [vmem:[#allocation4 + $0x240] sm:$0xff] }
 0x3dc   :  { %18201 = vst [vmem:[#allocation33_spill] sm:$0xff] %v15274_v28  ;;  %18220 = vst [vmem:[#allocation52_spill] sm:$0xff] %v15328_v19  ;;  %v3760_v14 = vld [vmem:[#allocation4 + $0x260] sm:$0xff] }
 0x3dd   :  { %18202 = vst [vmem:[#allocation34_spill] sm:$0xff] %v15276_v24 }
 0x3e1   :  { %12496 = vmatpush3.bf16.xpose.msra.mxu0 %v13718_v29  ;;  %v15278_v29 = vcombine.high %v3716_v11, %v3720_v4 }
 0x3e2   :  { %12514 = vmatpush3.bf16.xpose.msra.mxu1 %v13719_v30  ;;  %12497 = vmatprep.subr.bf16.mxu0 %v13720_v31  ;;  %v15280_v30 = vcombine.high %v3844_v25, %v3848_v26  ;;  %v3724_v31 = vld [vmem:[#allocation4 + $0x140] sm:$0xff] }
 0x3e3   :  { %12515 = vmatprep.subr.bf16.mxu1 %v13721_v32  ;;  %18203 = vst [vmem:[#allocation35_spill] sm:$0xff] %v15278_v29  ;;  %v3728_v32 = vld [vmem:[#allocation4 + $0x160] sm:$0xff] }
 0x3e4   :  { %18204 = vst [vmem:[#allocation36_spill] sm:$0xff] %v15280_v30  ;;  %v15290_v37 = vcombine.high %v3724_v31, %v3728_v32 }
 0x3e6   :  { %18207 = vst [vmem:[#allocation39_spill] sm:$0xff] %v15290_v37 }
 0x3e9   :  { %12498 = vmatpush3.bf16.xpose.msra.mxu0 %v13722_v33  ;;  %v3852_v33 = vld [vmem:[#allocation4 + $0x540] sm:$0xff] }
 0x3ea   :  { %12516 = vmatpush3.bf16.xpose.msra.mxu1 %v13723_v34  ;;  %12499 = vmatprep.subr.bf16.mxu0 %v13724_v35  ;;  %v3856_v34 = vld [vmem:[#allocation4 + $0x560] sm:$0xff]  ;;  %v15286_v35 = vcombine.low %v3716_v11, %v3720_v4 }
 0x3eb   :  { %12517 = vmatprep.subr.bf16.mxu1 %v13725_v36  ;;  %v15288_v36 = vcombine.low %v3844_v25, %v3848_v26  ;;  %v15292_v39 = vcombine.high %v3852_v33, %v3856_v34  ;;  %v15300_v51 = vcombine.low %v3852_v33, %v3856_v34  ;;  %v3884_v11 = vld [vmem:[#allocation4 + $0x640] sm:$0xff]  ;;  %v15336_v26 = vcombine.low %v3876_v6, %v3880_v8 }
 0x3ec   :  { %18205 = vst [vmem:[#allocation37_spill] sm:$0xff] %v15286_v35  ;;  %v3888_v4 = vld [vmem:[#allocation4 + $0x660] sm:$0xff] }
 0x3ed   :  { %18206 = vst [vmem:[#allocation38_spill] sm:$0xff] %v15288_v36  ;;  %18208 = vst [vmem:[#allocation40_spill] sm:$0xff] %v15292_v39  ;;  %v3764_v33 = vld [vmem:[#allocation4 + $0x280] sm:$0xff] }
 0x3ee   :  { %18210 = vst [vmem:[#allocation42_spill] sm:$0xff] %v15300_v51  ;;  %18222 = vst [vmem:[#allocation54_spill] sm:$0xff] %v15336_v26  ;;  %v3768_v34 = vld [vmem:[#allocation4 + $0x2a0] sm:$0xff] }
 0x3ef   :  { %v15358_v6 = vcombine.low %v3764_v33, %v3768_v34 }
 0x3f1   :  { %12500 = vmatpush3.bf16.xpose.msra.mxu0 %v13726_v41  ;;  %v3736_v41 = vld [vmem:[#allocation4 + $0x1a0] sm:$0xff]  ;;  %18229 = vst [vmem:[#allocation61_spill] sm:$0xff] %v15358_v6 }
 0x3f2   :  { %12518 = vmatpush3.bf16.xpose.msra.mxu1 %v13727_v42  ;;  %12501 = vmatprep.subr.bf16.mxu0 %v13728_v47  ;;  %v3860_v42 = vld [vmem:[#allocation4 + $0x580] sm:$0xff]  ;;  %v15302_v53 = vcombine.high %v3732_v40, %v3736_v41  ;;  %v15310_v61 = vcombine.low %v3732_v40, %v3736_v41 }
 0x3f3   :  { %12519 = vmatprep.subr.bf16.mxu1 %v13729_v48  ;;  %v3864_v47 = vld [vmem:[#allocation4 + $0x5a0] sm:$0xff]  ;;  %v15298_v48 = vcombine.low %v3724_v31, %v3728_v32  ;;  %v15338_v31 = vcombine.high %v3756_v20, %v3760_v14  ;;  %v15340_v32 = vcombine.high %v3884_v11, %v3888_v4 }
 0x3f4   :  { %18211 = vst [vmem:[#allocation43_spill] sm:$0xff] %v15302_v53  ;;  %v15304_v54 = vcombine.high %v3860_v42, %v3864_v47  ;;  %18213 = vst [vmem:[#allocation45_spill] sm:$0xff] %v15310_v61  ;;  %v15312_v62 = vcombine.low %v3860_v42, %v3864_v47  ;;  %v3892_v40 = vld [vmem:[#allocation4 + $0x680] sm:$0xff]  ;;  %v15346_v42 = vcombine.low %v3756_v20, %v3760_v14 }
 0x3f5   :  { %18209 = vst [vmem:[#allocation41_spill] sm:$0xff] %v15298_v48  ;;  %18223 = vst [vmem:[#allocation55_spill] sm:$0xff] %v15338_v31  ;;  %v3896_v41 = vld [vmem:[#allocation4 + $0x6a0] sm:$0xff]  ;;  %v15348_v47 = vcombine.low %v3884_v11, %v3888_v4 }
 0x3f6   :  { %18212 = vst [vmem:[#allocation44_spill] sm:$0xff] %v15304_v54  ;;  %18214 = vst [vmem:[#allocation46_spill] sm:$0xff] %v15312_v62  ;;  %v15360_v8 = vcombine.low %v3892_v40, %v3896_v41  ;;  %v3780_v11 = vld [vmem:[#allocation4 + $0x300] sm:$0xff] }
 0x3f7   :  { %18224 = vst [vmem:[#allocation56_spill] sm:$0xff] %v15340_v32  ;;  %18225 = vst [vmem:[#allocation57_spill] sm:$0xff] %v15346_v42  ;;  %v3784_v4 = vld [vmem:[#allocation4 + $0x320] sm:$0xff] }
 0x3f8   :  { %18226 = vst [vmem:[#allocation58_spill] sm:$0xff] %v15348_v47  ;;  %18230 = vst [vmem:[#allocation62_spill] sm:$0xff] %v15360_v8 }
 0x3f9   :  { %12502 = vmatpush3.bf16.xpose.msra.mxu0 %v13730_v56  ;;  %v3744_v56 = vld [vmem:[#allocation4 + $0x1e0] sm:$0xff] }
 0x3fa   :  { %12520 = vmatpush3.bf16.xpose.msra.mxu1 %v13731_v57  ;;  %6412 = vmatprep.subr.bf16.mxu0 %v15223_v58  ;;  %v3868_v57 = vld [vmem:[#allocation4 + $0x5c0] sm:$0xff]  ;;  %v15314_v63 = vcombine.high %v3740_v55, %v3744_v56  ;;  %v15322_v9 = vcombine.low %v3740_v55, %v3744_v56  ;;  %v15350_v55 = vcombine.high %v3764_v33, %v3768_v34 }
 0x3fb   :  { %6576 = vmatprep.subr.bf16.mxu1 %v15225_v59  ;;  %v15316_v0 = vcombine.high %v3868_v57, %v3872_v60  ;;  %v15324_v10 = vcombine.low %v3868_v57, %v3872_v60  ;;  %v15352_v56 = vcombine.high %v3892_v40, %v3896_v41  ;;  %v3772_v57 = vld [vmem:[#allocation4 + $0x2c0] sm:$0xff]  ;;  %v15374_v40 = vcombine.high %v3780_v11, %v3784_v4 }
 0x3fc   :  { %18215 = vst [vmem:[#allocation47_spill] sm:$0xff] %v15314_v63  ;;  %18217 = vst [vmem:[#allocation49_spill] sm:$0xff] %v15322_v9  ;;  %v3776_v60 = vld [vmem:[#allocation4 + $0x2e0] sm:$0xff] }
 0x3fd   :  { %18216 = vst [vmem:[#allocation48_spill] sm:$0xff] %v15316_v0  ;;  %18218 = vst [vmem:[#allocation50_spill] sm:$0xff] %v15324_v10  ;;  %v15362_v20 = vcombine.high %v3772_v57, %v3776_v60  ;;  %v15370_v33 = vcombine.low %v3772_v57, %v3776_v60  ;;  %v15382_v57 = vcombine.low %v3780_v11, %v3784_v4 }
 0x3fe   :  { %18227 = vst [vmem:[#allocation59_spill] sm:$0xff] %v15350_v55  ;;  %18228 = vst [vmem:[#allocation60_spill] sm:$0xff] %v15352_v56 }
 0x3ff   :  { %18231 = vst [vmem:[#allocation63_spill] sm:$0xff] %v15362_v20  ;;  %18233 = vst [vmem:[#allocation65_spill] sm:$0xff] %v15370_v33 }
 0x400   :  { %12504 = vmatmul.mubr.bf16.vlgmr.msra.gmra.mrb[4].mxu0 %v14144_v7  ;;  %18235 = vst [vmem:[#allocation67_spill] sm:$0xff] %v15374_v40  ;;  %18237 = vst [vmem:[#allocation69_spill] sm:$0xff] %v15382_v57 }
 0x401   :  { %12522 = vmatmul.mubr.bf16.vlgmr.msra.gmra.mrb[4].mxu1 %v14144_v7  ;;  %6413 = vmatpush1.bf16.xpose.msra.mxu0 %v15231_v2  ;;  %v3752_v7 = vld [vmem:[#allocation4 + $0x220] sm:$0xff] }
 0x402   :  { %6444 = vmatprep.mubr.bf16.mxu0 %v15235_v27  ;;  %6577 = vmatpush1.bf16.xpose.msra.mxu1 %v15233_v3  ;;  %v15326_v18 = vcombine.high %v3748_v1, %v3752_v7  ;;  %v15334_v25 = vcombine.low %v3748_v1, %v3752_v7  ;;  %v3900_v1 = vld [vmem:[#allocation4 + $0x6c0] sm:$0xff]  ;;  %v3849_v3 = vld [vmem:[#allocation4 + $0x528] sm:$0xff] }
 0x403   :  { %6608 = vmatprep.mubr.bf16.mxu1 %v15235_v27  ;;  %6414 = vmatprep.subr.bf16.mxu0 %v15237_v5  ;;  %v3904_v7 = vld [vmem:[#allocation4 + $0x6e0] sm:$0xff] }
 0x404   :  { %6578 = vmatprep.subr.bf16.mxu1 %v15239_v45  ;;  %18219 = vst [vmem:[#allocation51_spill] sm:$0xff] %v15326_v18  ;;  %18221 = vst [vmem:[#allocation53_spill] sm:$0xff] %v15334_v25  ;;  %v15364_v14 = vcombine.high %v3900_v1, %v3904_v7  ;;  %v15372_v34 = vcombine.low %v3900_v1, %v3904_v7  ;;  %v3841_v45 = vld [vmem:[#allocation4 + $0x4e8] sm:$0xff] }
 0x406   :  { %18232 = vst [vmem:[#allocation64_spill] sm:$0xff] %v15364_v14  ;;  %18234 = vst [vmem:[#allocation66_spill] sm:$0xff] %v15372_v34 }
 0x409   :  { %6415 = vmatpush1.bf16.xpose.msra.mxu0 %v15250_v12 }
 0x40a   :  { %6579 = vmatpush1.bf16.xpose.msra.mxu1 %v15252_v13  ;;  %6416 = vmatprep.subr.bf16.mxu0 %v15254_v15  ;;  %v3713_v13 = vld [vmem:[#allocation4 + $0xe8] sm:$0xff] }
 0x40b   :  { %6580 = vmatprep.subr.bf16.mxu1 %v15256_v16  ;;  %v3709_v16 = vld [vmem:[#allocation4 + $0xc8] sm:$0xff] }
 0x411   :  { %6417 = vmatpush1.bf16.xpose.msra.mxu0 %v15262_v21 }
 0x412   :  { %6581 = vmatpush1.bf16.xpose.msra.mxu1 %v15264_v22  ;;  %6418 = vmatprep.subr.bf16.mxu0 %v15266_v23 }
 0x413   :  { %6582 = vmatprep.subr.bf16.mxu1 %v15268_v17 }
 0x419   :  { %6419 = vmatpush1.bf16.xpose.msra.mxu0 %v15274_v28 }
 0x41a   :  { %6583 = vmatpush1.bf16.xpose.msra.mxu1 %v15276_v24  ;;  %6420 = vmatprep.subr.bf16.mxu0 %v15278_v29 }
 0x41b   :  { %6584 = vmatprep.subr.bf16.mxu1 %v15280_v30 }
 0x421   :  { %6421 = vmatpush1.bf16.xpose.msra.mxu0 %v15286_v35 }
 0x422   :  { %6585 = vmatpush1.bf16.xpose.msra.mxu1 %v15288_v36  ;;  %6422 = vmatprep.subr.bf16.mxu0 %v15290_v37  ;;  %v16913_v37 = vld [vmem:[#allocation7 + $0xe8] ss:$16 sps:$4 sm:$0xff]  }
 0x423   :  { %6586 = vmatprep.subr.bf16.mxu1 %v15292_v39 }
 0x429   :  { %6423 = vmatpush1.bf16.xpose.msra.mxu0 %v15298_v48  ;;  %v16909_v48 = vld [vmem:[#allocation7 + $0xec] ss:$16 sps:$4 sm:$0xff]  }
 0x42a   :  { %6587 = vmatpush1.bf16.xpose.msra.mxu1 %v15300_v51  ;;  %6424 = vmatprep.subr.bf16.mxu0 %v15302_v53  ;;  %v16872_v53 = vld [vmem:[#allocation7 + $0x2c] ss:$16 sps:$4 sm:$0xff]  }
 0x42b   :  { %6588 = vmatprep.subr.bf16.mxu1 %v15304_v54  ;;  %v3817_v54 = vld [vmem:[#allocation4 + $0x428] sm:$0xff] }
 0x431   :  { %6425 = vmatpush1.bf16.xpose.msra.mxu0 %v15310_v61  ;;  %v16870_v61 = vld [vmem:[#allocation7 + $0x8] ss:$16 sps:$4 sm:$0xff]  }
 0x432   :  { %6589 = vmatpush1.bf16.xpose.msra.mxu1 %v15312_v62  ;;  %6426 = vmatprep.subr.bf16.mxu0 %v15314_v63 }
 0x433   :  { %6590 = vmatprep.subr.bf16.mxu1 %v15316_v0  ;;  %v3936_v0 = vld [vmem:[#allocation4 + $0x7e0] sm:$0xff] }
 0x439   :  { %6427 = vmatpush1.bf16.xpose.msra.mxu0 %v15322_v9 }
 0x43a   :  { %6591 = vmatpush1.bf16.xpose.msra.mxu1 %v15324_v10  ;;  %6428 = vmatprep.subr.bf16.mxu0 %v15326_v18  ;;  %v3932_v10 = vld [vmem:[#allocation4 + $0x7c0] sm:$0xff] }
 0x43b   :  { %6592 = vmatprep.subr.bf16.mxu1 %v15328_v19  ;;  %v3928_v19 = vld [vmem:[#allocation4 + $0x7a0] sm:$0xff]  ;;  %v15415_v62 = vcombine.high %v3932_v10, %v3936_v0  ;;  %v15436_v36 = vcombine.low %v3932_v10, %v3936_v0  ;;  %v3697_v0 = vld [vmem:[#allocation4 + $0x68] sm:$0xff] }
 0x43d   :  { %18249 = vst [vmem:[#allocation81_spill] sm:$0xff] %v15415_v62  ;;  %18254 = vst [vmem:[#allocation86_spill] sm:$0xff] %v15436_v36 }
 0x441   :  { %6429 = vmatpush1.bf16.xpose.msra.mxu0 %v15334_v25 }
 0x442   :  { %6593 = vmatpush1.bf16.xpose.msra.mxu1 %v15336_v26  ;;  %6430 = vmatprep.subr.bf16.mxu0 %v15338_v31  ;;  %v3924_v26 = vld [vmem:[#allocation4 + $0x780] sm:$0xff] }
 0x443   :  { %6594 = vmatprep.subr.bf16.mxu1 %v15340_v32  ;;  %v3920_v32 = vld [vmem:[#allocation4 + $0x760] sm:$0xff]  ;;  %v15400_v4 = vcombine.high %v3924_v26, %v3928_v19 }
 0x445   :  { %18244 = vst [vmem:[#allocation76_spill] sm:$0xff] %v15400_v4 }
 0x449   :  { %6431 = vmatpush1.bf16.xpose.msra.mxu0 %v15346_v42 }
 0x44a   :  { %6595 = vmatpush1.bf16.xpose.msra.mxu1 %v15348_v47  ;;  %6432 = vmatprep.subr.bf16.mxu0 %v15350_v55  ;;  %v3916_v47 = vld [vmem:[#allocation4 + $0x740] sm:$0xff] }
 0x44b   :  { %6596 = vmatprep.subr.bf16.mxu1 %v15352_v56  ;;  %v3912_v56 = vld [vmem:[#allocation4 + $0x720] sm:$0xff]  ;;  %v15388_v7 = vcombine.high %v3916_v47, %v3920_v32 }
 0x44c   :  { %v15376_v41 = vcombine.high %v3908_v52, %v3912_v56  ;;  %v15384_v60 = vcombine.low %v3908_v52, %v3912_v56  ;;  %v15396_v52 = vcombine.low %v3916_v47, %v3920_v32  ;;  %v15409_v32 = vsub.s32 0, %v15212_v38 }
 0x44d   :  { %18240 = vst [vmem:[#allocation72_spill] sm:$0xff] %v15388_v7  ;;  %v15411_v47 = vcombine.low %v3924_v26, %v3928_v19  ;;  %v3685_v19 = vld [vmem:[#allocation4 + $0x8] sm:$0xff] }
 0x44e   :  { %18236 = vst [vmem:[#allocation68_spill] sm:$0xff] %v15376_v41  ;;  %18238 = vst [vmem:[#allocation70_spill] sm:$0xff] %v15384_v60  ;;  %v3689_v26 = vld [vmem:[#allocation4 + $0x28] sm:$0xff] }
 0x44f   :  { %18242 = vst [vmem:[#allocation74_spill] sm:$0xff] %v15396_v52  ;;  %18246 = vst [vmem:[#allocation78_spill] sm:$0xff] %v15409_v32  ;;  %v15448_v10 = vcombine.low %v3685_v19, %v3689_v26 }
 0x450   :  { %18247 = vst [vmem:[#allocation79_spill] sm:$0xff] %v15411_v47 }
 0x451   :  { %6433 = vmatpush1.bf16.xpose.msra.mxu0 %v15358_v6  ;;  %18257 = vst [vmem:[#allocation89_spill] sm:$0xff] %v15448_v10 }
 0x452   :  { %6597 = vmatpush1.bf16.xpose.msra.mxu1 %v15360_v8  ;;  %6434 = vmatprep.subr.bf16.mxu0 %v15362_v20  ;;  %v3792_v8 = vld [vmem:[#allocation4 + $0x360] sm:$0xff] }
 0x453   :  { %6598 = vmatprep.subr.bf16.mxu1 %v15364_v14  ;;  %v3788_v14 = vld [vmem:[#allocation4 + $0x340] sm:$0xff] }
 0x454   :  { %v15386_v1 = vcombine.high %v3788_v14, %v3792_v8  ;;  %v15394_v11 = vcombine.low %v3788_v14, %v3792_v8 }
 0x456   :  { %18239 = vst [vmem:[#allocation71_spill] sm:$0xff] %v15386_v1  ;;  %18241 = vst [vmem:[#allocation73_spill] sm:$0xff] %v15394_v11 }
 0x459   :  { %6435 = vmatpush1.bf16.xpose.msra.mxu0 %v15370_v33 }
 0x45a   :  { %6599 = vmatpush1.bf16.xpose.msra.mxu1 %v15372_v34  ;;  %6436 = vmatprep.subr.bf16.mxu0 %v15374_v40  ;;  %v3800_v34 = vld [vmem:[#allocation4 + $0x3a0] sm:$0xff] }
 0x45b   :  { %6600 = vmatprep.subr.bf16.mxu1 %v15376_v41  ;;  %v3796_v41 = vld [vmem:[#allocation4 + $0x380] sm:$0xff] }
 0x45c   :  { %v15398_v56 = vcombine.high %v3796_v41, %v3800_v34  ;;  %v15406_v8 = vcombine.low %v3796_v41, %v3800_v34  ;;  %v3813_v41 = vld [vmem:[#allocation4 + $0x408] sm:$0xff] }
 0x45d   :  { %v15440_v30 = vcombine.high %v3813_v41, %v3817_v54  ;;  %v15452_v22 = vcombine.low %v3813_v41, %v3817_v54  ;;  %v3705_v54 = vld [vmem:[#allocation4 + $0xa8] sm:$0xff] }
 0x45e   :  { %18243 = vst [vmem:[#allocation75_spill] sm:$0xff] %v15398_v56  ;;  %18245 = vst [vmem:[#allocation77_spill] sm:$0xff] %v15406_v8 }
 0x45f   :  { %18256 = vst [vmem:[#allocation88_spill] sm:$0xff] %v15440_v30  ;;  %18258 = vst [vmem:[#allocation90_spill] sm:$0xff] %v15452_v22 }
 0x461   :  { %6437 = vmatpush1.bf16.xpose.msra.mxu0 %v15382_v57  ;;  %v7335_v57 = vld [vmem:[#allocation12 + $0x2] ss:$8 sm:$0xf] }
 0x462   :  { %6601 = vmatpush1.bf16.xpose.msra.mxu1 %v15384_v60  ;;  %6438 = vmatprep.subr.bf16.mxu0 %v15386_v1  ;;  %v3808_v60 = vld [vmem:[#allocation4 + $0x3e0] sm:$0xff]  ;;  %v16863_v40 = vrot.slane %v7335_v57, %v15409_v32  ;;  %v16866_v33 = vrot.slane %v7335_v57, %v15217_v50 }
 0x463   :  { %6602 = vmatprep.subr.bf16.mxu1 %v15388_v7  ;;  %v3804_v7 = vld [vmem:[#allocation4 + $0x3c0] sm:$0xff] }
 0x464   :  { %v15413_v14 = vcombine.high %v3804_v7, %v3808_v60  ;;  %v15432_v51 = vcombine.low %v3804_v7, %v3808_v60  ;;  %v3821_v7 = vld [vmem:[#allocation4 + $0x448] sm:$0xff]  ;;  %v16858_v1 = vld [vmem:[#allocation6 + $0x520] ss:$28 sps:$4 sm:$0xff]  }
 0x465   :  { %18666 = vst [vmem:[#allocation498_spill] sm:$0xff] %v16858_v1 }
 0x466   :  { %18248 = vst [vmem:[#allocation80_spill] sm:$0xff] %v15413_v14  ;;  %18253 = vst [vmem:[#allocation85_spill] sm:$0xff] %v15432_v51 }
 0x469   :  { %6439 = vmatpush1.bf16.xpose.msra.mxu0 %v15394_v11  ;;  %v16854_v11 = vld [vmem:[#allocation6 + $0x6e0] ss:$28 sps:$4 sm:$0xff]  }
 0x46a   :  { %6603 = vmatpush1.bf16.xpose.msra.mxu1 %v15396_v52  ;;  %6440 = vmatprep.subr.bf16.mxu0 %v15398_v56  ;;  %v15418_v52 = vsub.s32 3, %v15212_v38  ;;  %v16852_v56 = vld [vmem:[#allocation6 + $0x4e8] ss:$28 sps:$4 sm:$0xff]   ;;  %18665 = vst [vmem:[#allocation497_spill] sm:$0xff] %v16854_v11 }
 0x46b   :  { %6604 = vmatprep.subr.bf16.mxu1 %v15400_v4  ;;  %v15423_v4 = vrot.slane %v15214_v49, %v15409_v32  ;;  %18664 = vst [vmem:[#allocation496_spill] sm:$0xff] %v16852_v56 }
 0x46c   :  { %18250 = vst [vmem:[#allocation82_spill] sm:$0xff] %v15418_v52  ;;  %v15430_v34 = vrot.slane %v15214_v49, %v15418_v52  ;;  %v16921_v29 = vrot.slane %v7335_v57, %v15418_v52 }
 0x46d   :  { %18251 = vst [vmem:[#allocation83_spill] sm:$0xff] %v15423_v4  ;;  %v12807_v39 = vadd.f32 %v15196_v43, %v15423_v4  ;;  %v3693_v43 = vld [vmem:[#allocation4 + $0x48] sm:$0xff] }
 0x46e   :  { %18252 = vst [vmem:[#allocation84_spill] sm:$0xff] %v15430_v34  ;;  %v3825_v4 = vld [vmem:[#allocation4 + $0x468] sm:$0xff] }
 0x46f   :  { %v3668_v24 = vmax.f32 %v12807_v39, 0.0  ;;  %v15470_v41 = vcombine.low %v3821_v7, %v3825_v4 }
 0x471   :  { %6441 = vmatpush1.bf16.xpose.msra.mxu0 %v15406_v8  ;;  %v15450_v17 = vpack.c.bf16 %v3668_v24, %v3668_v24  ;;  %v3701_v24 = vld [vmem:[#allocation4 + $0x88] sm:$0xff]  ;;  %18262 = vst [vmem:[#allocation94_spill] sm:$0xff] %v15470_v41 }
 0x472   :  { %6605 = vmatpush1.bf16.xpose.msra.mxu1 %v15411_v47  ;;  %6442 = vmatprep.subr.bf16.mxu0 %v15413_v14  ;;  %v15438_v47 = vcombine.high %v3685_v19, %v3689_v26  ;;  %v3833_v19 = vld [vmem:[#allocation4 + $0x4a8] sm:$0xff]  ;;  %v15468_v26 = vcombine.low %v3693_v43, %v3697_v0 }
 0x473   :  { %6606 = vmatprep.subr.bf16.mxu1 %v15415_v62  ;;  %v12810_v62 = vadd.f32 %v15202_v46, %v15430_v34  ;;  %v15454_v46 = vcombine.high %v3693_v43, %v3697_v0  ;;  %v15459_v34 = vcombine.high %v3821_v7, %v3825_v4  ;;  %v15480_v43 = vcombine.low %v3701_v24, %v3705_v54 }
 0x474   :  { %18255 = vst [vmem:[#allocation87_spill] sm:$0xff] %v15438_v47  ;;  %18261 = vst [vmem:[#allocation93_spill] sm:$0xff] %v15468_v26  ;;  %v15484_v0 = vcombine.high %v3709_v16, %v3713_v13 }
 0x475   :  { %v3671_v60 = vmax.f32 %v12810_v62, 0.0  ;;  %18259 = vst [vmem:[#allocation91_spill] sm:$0xff] %v15454_v46  ;;  %18260 = vst [vmem:[#allocation92_spill] sm:$0xff] %v15459_v34  ;;  %v3829_v62 = vld [vmem:[#allocation4 + $0x488] sm:$0xff] }
 0x476   :  { %18265 = vst [vmem:[#allocation97_spill] sm:$0xff] %v15480_v43  ;;  %v15482_v4 = vcombine.low %v3829_v62, %v3833_v19  ;;  %18267 = vst [vmem:[#allocation99_spill] sm:$0xff] %v15484_v0 }
 0x477   :  { %v15456_v39 = vpack.c.bf16 %v3671_v60, %v3671_v60  ;;  %v15472_v60 = vcombine.high %v3701_v24, %v3705_v54  ;;  %v15492_v24 = vcombine.low %v3709_v16, %v3713_v13 }
 0x478   :  { %18266 = vst [vmem:[#allocation98_spill] sm:$0xff] %v15482_v4 }
 0x479   :  { %6443 = vmatpush1.bf16.xpose.msra.mxu0 %v15432_v51  ;;  %18263 = vst [vmem:[#allocation95_spill] sm:$0xff] %v15472_v60  ;;  %18269 = vst [vmem:[#allocation101_spill] sm:$0xff] %v15492_v24 }
 0x47a   :  { %6607 = vmatpush1.bf16.xpose.msra.mxu1 %v15436_v36  ;;  %6453 = vmatprep.subr.bf16.mxu0 %v15438_v47  ;;  %v15474_v36 = vcombine.high %v3829_v62, %v3833_v19 }
 0x47b   :  { %6617 = vmatprep.subr.bf16.mxu1 %v15440_v30  ;;  %v3853_v30 = vld [vmem:[#allocation4 + $0x548] sm:$0xff] }
 0x47c   :  { %18264 = vst [vmem:[#allocation96_spill] sm:$0xff] %v15474_v36 }
 0x480   :  { %6445 = vmatmul.mubr.bf16.vlgmr.msra.gmra.mrb[8].mxu0 %v15450_v17 }
 0x481   :  { %6609 = vmatmul.mubr.bf16.vlgmr.msra.gmra.mrb[8].mxu1 %v15450_v17  ;;  %6454 = vmatpush1.bf16.xpose.msra.mxu0 %v15448_v10 }
 0x482   :  { %6485 = vmatprep.mubr.bf16.mxu0 %v15456_v39  ;;  %6618 = vmatpush1.bf16.xpose.msra.mxu1 %v15452_v22  ;;  %v3845_v22 = vld [vmem:[#allocation4 + $0x508] sm:$0xff] }
 0x483   :  { %6649 = vmatprep.mubr.bf16.mxu1 %v15456_v39  ;;  %6455 = vmatprep.subr.bf16.mxu0 %v15454_v46  ;;  %v15498_v19 = vcombine.high %v3845_v22, %v3849_v3 }
 0x484   :  { %6619 = vmatprep.subr.bf16.mxu1 %v15459_v34  ;;  %v3837_v34 = vld [vmem:[#allocation4 + $0x4c8] sm:$0xff] }
 0x485   :  { %v15486_v7 = vcombine.high %v3837_v34, %v3841_v45  ;;  %v15494_v54 = vcombine.low %v3837_v34, %v3841_v45  ;;  %18272 = vst [vmem:[#allocation104_spill] sm:$0xff] %v15498_v19  ;;  %v15506_v45 = vcombine.low %v3845_v22, %v3849_v3 }
 0x487   :  { %18268 = vst [vmem:[#allocation100_spill] sm:$0xff] %v15486_v7  ;;  %18270 = vst [vmem:[#allocation102_spill] sm:$0xff] %v15494_v54 }
 0x488   :  { %18274 = vst [vmem:[#allocation106_spill] sm:$0xff] %v15506_v45 }
 0x489   :  { %6456 = vmatpush1.bf16.xpose.msra.mxu0 %v15468_v26 }
 0x48a   :  { %6620 = vmatpush1.bf16.xpose.msra.mxu1 %v15470_v41  ;;  %6457 = vmatprep.subr.bf16.mxu0 %v15472_v60  ;;  %v3721_v41 = vld [vmem:[#allocation4 + $0x128] sm:$0xff] }
 0x48b   :  { %6621 = vmatprep.subr.bf16.mxu1 %v15474_v36  ;;  %v3717_v36 = vld [vmem:[#allocation4 + $0x108] sm:$0xff] }
 0x48c   :  { %v15496_v62 = vcombine.high %v3717_v36, %v3721_v41  ;;  %v15504_v13 = vcombine.low %v3717_v36, %v3721_v41 }
 0x48e   :  { %18271 = vst [vmem:[#allocation103_spill] sm:$0xff] %v15496_v62  ;;  %18273 = vst [vmem:[#allocation105_spill] sm:$0xff] %v15504_v13 }
 0x491   :  { %6458 = vmatpush1.bf16.xpose.msra.mxu0 %v15480_v43 }
 0x492   :  { %6622 = vmatpush1.bf16.xpose.msra.mxu1 %v15482_v4  ;;  %6459 = vmatprep.subr.bf16.mxu0 %v15484_v0  ;;  %v3729_v4 = vld [vmem:[#allocation4 + $0x168] sm:$0xff] }
 0x493   :  { %6623 = vmatprep.subr.bf16.mxu1 %v15486_v7  ;;  %v3725_v7 = vld [vmem:[#allocation4 + $0x148] sm:$0xff] }
 0x494   :  { %v3857_v0 = vld [vmem:[#allocation4 + $0x568] sm:$0xff]  ;;  %v15508_v16 = vcombine.high %v3725_v7, %v3729_v4  ;;  %v15516_v36 = vcombine.low %v3725_v7, %v3729_v4 }
 0x495   :  { %v15510_v34 = vcombine.high %v3853_v30, %v3857_v0  ;;  %v15518_v3 = vcombine.low %v3853_v30, %v3857_v0 }
 0x496   :  { %18275 = vst [vmem:[#allocation107_spill] sm:$0xff] %v15508_v16  ;;  %18277 = vst [vmem:[#allocation109_spill] sm:$0xff] %v15516_v36 }
 0x497   :  { %18276 = vst [vmem:[#allocation108_spill] sm:$0xff] %v15510_v34  ;;  %18278 = vst [vmem:[#allocation110_spill] sm:$0xff] %v15518_v3 }
 0x499   :  { %6460 = vmatpush1.bf16.xpose.msra.mxu0 %v15492_v24  ;;  %v3865_v24 = vld [vmem:[#allocation4 + $0x5a8] sm:$0xff] }
 0x49a   :  { %6624 = vmatpush1.bf16.xpose.msra.mxu1 %v15494_v54  ;;  %6461 = vmatprep.subr.bf16.mxu0 %v15496_v62  ;;  %v3737_v54 = vld [vmem:[#allocation4 + $0x1a8] sm:$0xff] }
 0x49b   :  { %6625 = vmatprep.subr.bf16.mxu1 %v15498_v19  ;;  %v3733_v19 = vld [vmem:[#allocation4 + $0x188] sm:$0xff] }
 0x49c   :  { %v3861_v62 = vld [vmem:[#allocation4 + $0x588] sm:$0xff]  ;;  %v15520_v22 = vcombine.high %v3733_v19, %v3737_v54  ;;  %v15528_v4 = vcombine.low %v3733_v19, %v3737_v54 }
 0x49d   :  { %v15522_v41 = vcombine.high %v3861_v62, %v3865_v24  ;;  %v15530_v30 = vcombine.low %v3861_v62, %v3865_v24 }
 0x49e   :  { %18279 = vst [vmem:[#allocation111_spill] sm:$0xff] %v15520_v22  ;;  %18281 = vst [vmem:[#allocation113_spill] sm:$0xff] %v15528_v4 }
 0x49f   :  { %18280 = vst [vmem:[#allocation112_spill] sm:$0xff] %v15522_v41  ;;  %18282 = vst [vmem:[#allocation114_spill] sm:$0xff] %v15530_v30 }
 0x4a1   :  { %6462 = vmatpush1.bf16.xpose.msra.mxu0 %v15504_v13  ;;  %v3873_v13 = vld [vmem:[#allocation4 + $0x5e8] sm:$0xff] }
 0x4a2   :  { %6626 = vmatpush1.bf16.xpose.msra.mxu1 %v15506_v45  ;;  %6463 = vmatprep.subr.bf16.mxu0 %v15508_v16  ;;  %v3745_v45 = vld [vmem:[#allocation4 + $0x1e8] sm:$0xff] }
 0x4a3   :  { %6627 = vmatprep.subr.bf16.mxu1 %v15510_v34  ;;  %v3741_v34 = vld [vmem:[#allocation4 + $0x1c8] sm:$0xff] }
 0x4a4   :  { %v3869_v16 = vld [vmem:[#allocation4 + $0x5c8] sm:$0xff]  ;;  %v15532_v0 = vcombine.high %v3741_v34, %v3745_v45  ;;  %v15540_v54 = vcombine.low %v3741_v34, %v3745_v45 }
 0x4a5   :  { %v15534_v7 = vcombine.high %v3869_v16, %v3873_v13  ;;  %v15542_v24 = vcombine.low %v3869_v16, %v3873_v13 }
 0x4a6   :  { %18283 = vst [vmem:[#allocation115_spill] sm:$0xff] %v15532_v0  ;;  %18285 = vst [vmem:[#allocation117_spill] sm:$0xff] %v15540_v54 }
 0x4a7   :  { %18284 = vst [vmem:[#allocation116_spill] sm:$0xff] %v15534_v7  ;;  %18286 = vst [vmem:[#allocation118_spill] sm:$0xff] %v15542_v24 }
 0x4a9   :  { %6464 = vmatpush1.bf16.xpose.msra.mxu0 %v15516_v36  ;;  %v3881_v36 = vld [vmem:[#allocation4 + $0x628] sm:$0xff] }
 0x4aa   :  { %6628 = vmatpush1.bf16.xpose.msra.mxu1 %v15518_v3  ;;  %6465 = vmatprep.subr.bf16.mxu0 %v15520_v22  ;;  %v3753_v3 = vld [vmem:[#allocation4 + $0x228] sm:$0xff] }
 0x4ab   :  { %6629 = vmatprep.subr.bf16.mxu1 %v15522_v41  ;;  %v3749_v41 = vld [vmem:[#allocation4 + $0x208] sm:$0xff] }
 0x4ac   :  { %v3877_v22 = vld [vmem:[#allocation4 + $0x608] sm:$0xff]  ;;  %v15544_v62 = vcombine.high %v3749_v41, %v3753_v3  ;;  %v15552_v45 = vcombine.low %v3749_v41, %v3753_v3 }
 0x4ad   :  { %v15546_v19 = vcombine.high %v3877_v22, %v3881_v36  ;;  %v15554_v13 = vcombine.low %v3877_v22, %v3881_v36 }
 0x4ae   :  { %18287 = vst [vmem:[#allocation119_spill] sm:$0xff] %v15544_v62  ;;  %18289 = vst [vmem:[#allocation121_spill] sm:$0xff] %v15552_v45 }
 0x4af   :  { %18288 = vst [vmem:[#allocation120_spill] sm:$0xff] %v15546_v19  ;;  %18290 = vst [vmem:[#allocation122_spill] sm:$0xff] %v15554_v13 }
 0x4b1   :  { %6466 = vmatpush1.bf16.xpose.msra.mxu0 %v15528_v4  ;;  %v3889_v4 = vld [vmem:[#allocation4 + $0x668] sm:$0xff] }
 0x4b2   :  { %6630 = vmatpush1.bf16.xpose.msra.mxu1 %v15530_v30  ;;  %6467 = vmatprep.subr.bf16.mxu0 %v15532_v0  ;;  %v3761_v30 = vld [vmem:[#allocation4 + $0x268] sm:$0xff] }
 0x4b3   :  { %6631 = vmatprep.subr.bf16.mxu1 %v15534_v7  ;;  %v3757_v7 = vld [vmem:[#allocation4 + $0x248] sm:$0xff] }
 0x4b4   :  { %v3885_v0 = vld [vmem:[#allocation4 + $0x648] sm:$0xff]  ;;  %v15556_v16 = vcombine.high %v3757_v7, %v3761_v30  ;;  %v15564_v3 = vcombine.low %v3757_v7, %v3761_v30 }
 0x4b5   :  { %v15558_v34 = vcombine.high %v3885_v0, %v3889_v4  ;;  %v15566_v36 = vcombine.low %v3885_v0, %v3889_v4 }
 0x4b6   :  { %18291 = vst [vmem:[#allocation123_spill] sm:$0xff] %v15556_v16  ;;  %18293 = vst [vmem:[#allocation125_spill] sm:$0xff] %v15564_v3 }
 0x4b7   :  { %18292 = vst [vmem:[#allocation124_spill] sm:$0xff] %v15558_v34  ;;  %18294 = vst [vmem:[#allocation126_spill] sm:$0xff] %v15566_v36 }
 0x4b9   :  { %6468 = vmatpush1.bf16.xpose.msra.mxu0 %v15540_v54  ;;  %v3897_v54 = vld [vmem:[#allocation4 + $0x6a8] sm:$0xff] }
 0x4ba   :  { %6632 = vmatpush1.bf16.xpose.msra.mxu1 %v15542_v24  ;;  %6469 = vmatprep.subr.bf16.mxu0 %v15544_v62  ;;  %v3769_v24 = vld [vmem:[#allocation4 + $0x2a8] sm:$0xff] }
 0x4bb   :  { %6633 = vmatprep.subr.bf16.mxu1 %v15546_v19  ;;  %v3765_v19 = vld [vmem:[#allocation4 + $0x288] sm:$0xff] }
 0x4bc   :  { %v3893_v62 = vld [vmem:[#allocation4 + $0x688] sm:$0xff]  ;;  %v15568_v22 = vcombine.high %v3765_v19, %v3769_v24  ;;  %v15576_v30 = vcombine.low %v3765_v19, %v3769_v24 }
 0x4bd   :  { %v15570_v41 = vcombine.high %v3893_v62, %v3897_v54  ;;  %v15578_v4 = vcombine.low %v3893_v62, %v3897_v54  ;;  %v3781_v24 = vld [vmem:[#allocation4 + $0x308] sm:$0xff] }
 0x4be   :  { %18295 = vst [vmem:[#allocation127_spill] sm:$0xff] %v15568_v22  ;;  %18297 = vst [vmem:[#allocation129_spill] sm:$0xff] %v15576_v30  ;;  %v3785_v19 = vld [vmem:[#allocation4 + $0x328] sm:$0xff] }
 0x4bf   :  { %18296 = vst [vmem:[#allocation128_spill] sm:$0xff] %v15570_v41  ;;  %18298 = vst [vmem:[#allocation130_spill] sm:$0xff] %v15578_v4  ;;  %v15600_v46 = vcombine.high %v3781_v24, %v3785_v19 }
 0x4c1   :  { %6470 = vmatpush1.bf16.xpose.msra.mxu0 %v15552_v45  ;;  %v3905_v45 = vld [vmem:[#allocation4 + $0x6e8] sm:$0xff]  ;;  %18303 = vst [vmem:[#allocation135_spill] sm:$0xff] %v15600_v46 }
 0x4c2   :  { %6634 = vmatpush1.bf16.xpose.msra.mxu1 %v15554_v13  ;;  %6471 = vmatprep.subr.bf16.mxu0 %v15556_v16  ;;  %v3777_v13 = vld [vmem:[#allocation4 + $0x2e8] sm:$0xff] }
 0x4c3   :  { %6635 = vmatprep.subr.bf16.mxu1 %v15558_v34  ;;  %v3773_v34 = vld [vmem:[#allocation4 + $0x2c8] sm:$0xff] }
 0x4c4   :  { %v3901_v16 = vld [vmem:[#allocation4 + $0x6c8] sm:$0xff]  ;;  %v15580_v0 = vcombine.high %v3773_v34, %v3777_v13  ;;  %v15596_v60 = vcombine.low %v3773_v34, %v3777_v13 }
 0x4c5   :  { %v15582_v7 = vcombine.high %v3901_v16, %v3905_v45  ;;  %v15598_v26 = vcombine.low %v3901_v16, %v3905_v45  ;;  %v3917_v13 = vld [vmem:[#allocation4 + $0x748] sm:$0xff] }
 0x4c6   :  { %18299 = vst [vmem:[#allocation131_spill] sm:$0xff] %v15580_v0  ;;  %18301 = vst [vmem:[#allocation133_spill] sm:$0xff] %v15596_v60  ;;  %v3921_v34 = vld [vmem:[#allocation4 + $0x768] sm:$0xff] }
 0x4c7   :  { %18300 = vst [vmem:[#allocation132_spill] sm:$0xff] %v15582_v7  ;;  %18302 = vst [vmem:[#allocation134_spill] sm:$0xff] %v15598_v26 }
 0x4c9   :  { %6472 = vmatpush1.bf16.xpose.msra.mxu0 %v15564_v3  ;;  %v3913_v3 = vld [vmem:[#allocation4 + $0x728] sm:$0xff] }
 0x4ca   :  { %6636 = vmatpush1.bf16.xpose.msra.mxu1 %v15566_v36  ;;  %6473 = vmatprep.subr.bf16.mxu0 %v15568_v22  ;;  %v3909_v22 = vld [vmem:[#allocation4 + $0x708] sm:$0xff] }
 0x4cb   :  { %6637 = vmatprep.subr.bf16.mxu1 %v15570_v41  ;;  %v15602_v10 = vcombine.high %v3909_v22, %v3913_v3  ;;  %v15610_v45 = vcombine.low %v3909_v22, %v3913_v3  ;;  %v15622_v3 = vcombine.low %v3917_v13, %v3921_v34 }
 0x4cd   :  { %18304 = vst [vmem:[#allocation136_spill] sm:$0xff] %v15602_v10  ;;  %18306 = vst [vmem:[#allocation138_spill] sm:$0xff] %v15610_v45 }
 0x4ce   :  { %18310 = vst [vmem:[#allocation142_spill] sm:$0xff] %v15622_v3 }
 0x4d1   :  { %6474 = vmatpush1.bf16.xpose.msra.mxu0 %v15576_v30 }
 0x4d2   :  { %6638 = vmatpush1.bf16.xpose.msra.mxu1 %v15578_v4  ;;  %6475 = vmatprep.subr.bf16.mxu0 %v15580_v0 }
 0x4d3   :  { %v15587_v36 = vpop.f32.mrb[4].mxu0  ;;  %6639 = vmatprep.subr.bf16.mxu1 %v15582_v7  ;;  %v3925_v7 = vld [vmem:[#allocation4 + $0x788] sm:$0xff] }
 0x4d4   :  { %v15589_v41 = vpop.f32.mrb[4].mxu1  ;;  %v15592_v54 = vpop.f32.mrb[5].mxu0 }
 0x4d5   :  { %v15594_v62 = vpop.f32.mrb[5].mxu1  ;;  %v3501_v43 = vpop.f32.mrb[6].mxu0 }
 0x4d6   :  { %v3665_v30 = vpop.f32.mrb[6].mxu1  ;;  %v3502_v4 = vpop.f32.mrb[7].mxu0  ;;  %v3789_v43 = vld [vmem:[#allocation4 + $0x348] sm:$0xff] }
 0x4d7   :  { %v3666_v0 = vpop.f32.mrb[7].mxu1  ;;  %v3793_v30 = vld [vmem:[#allocation4 + $0x368] sm:$0xff]  ;;  %v15608_v4 = vcombine.low %v3781_v24, %v3785_v19 }
 0x4d8   :  { %v15612_v16 = vcombine.high %v3789_v43, %v3793_v30  ;;  %v15614_v0 = vcombine.high %v3917_v13, %v3921_v34  ;;  %v15620_v24 = vcombine.low %v3789_v43, %v3793_v30  ;;  %v15635_v30 = vsub.s32 2, %v15212_v38 }
 0x4d9   :  { %6476 = vmatpush1.bf16.xpose.msra.mxu0 %v15596_v60  ;;  %18305 = vst [vmem:[#allocation137_spill] sm:$0xff] %v15608_v4 }
 0x4da   :  { %6640 = vmatpush1.bf16.xpose.msra.mxu1 %v15598_v26  ;;  %6477 = vmatprep.subr.bf16.mxu0 %v15600_v46  ;;  %18307 = vst [vmem:[#allocation139_spill] sm:$0xff] %v15612_v16  ;;  %18308 = vst [vmem:[#allocation140_spill] sm:$0xff] %v15614_v0  ;;  %v3801_v26 = vld [vmem:[#allocation4 + $0x3a8] sm:$0xff]  ;;  %v16918_v35 = vrot.slane %v7335_v57, %v15635_v30  ;;  %v18667_v57 = vmov 0.0  }
 0x4db   :  { %6641 = vmatprep.subr.bf16.mxu1 %v15602_v10  ;;  %v3797_v10 = vld [vmem:[#allocation4 + $0x388] sm:$0xff]  ;;  %18309 = vst [vmem:[#allocation141_spill] sm:$0xff] %v15620_v24  ;;  %18314 = vst [vmem:[#allocation146_spill] sm:$0xff] %v15635_v30 }
 0x4dc   :  { %v3929_v46 = vld [vmem:[#allocation4 + $0x7a8] sm:$0xff]  ;;  %v15624_v22 = vcombine.high %v3797_v10, %v3801_v26  ;;  %v15632_v43 = vcombine.low %v3797_v10, %v3801_v26  ;;  %v3686_v10 = vld [vmem:[#allocation4 + $0x10] sm:$0xff] }
 0x4dd   :  { %v15626_v19 = vcombine.high %v3925_v7, %v3929_v46  ;;  %v15637_v13 = vcombine.low %v3925_v7, %v3929_v46  ;;  %v3690_v46 = vld [vmem:[#allocation4 + $0x30] sm:$0xff] }
 0x4de   :  { %18311 = vst [vmem:[#allocation143_spill] sm:$0xff] %v15624_v22  ;;  %18313 = vst [vmem:[#allocation145_spill] sm:$0xff] %v15632_v43  ;;  %v3814_v7 = vld [vmem:[#allocation4 + $0x410] sm:$0xff] }
 0x4df   :  { %18312 = vst [vmem:[#allocation144_spill] sm:$0xff] %v15626_v19  ;;  %18315 = vst [vmem:[#allocation147_spill] sm:$0xff] %v15637_v13 }
 0x4e1   :  { %6478 = vmatpush1.bf16.xpose.msra.mxu0 %v15608_v4  ;;  %v3937_v4 = vld [vmem:[#allocation4 + $0x7e8] sm:$0xff] }
 0x4e2   :  { %6642 = vmatpush1.bf16.xpose.msra.mxu1 %v15610_v45  ;;  %6479 = vmatprep.subr.bf16.mxu0 %v15612_v16  ;;  %v3809_v45 = vld [vmem:[#allocation4 + $0x3e8] sm:$0xff] }
 0x4e3   :  { %6643 = vmatprep.subr.bf16.mxu1 %v15614_v0  ;;  %v3805_v0 = vld [vmem:[#allocation4 + $0x3c8] sm:$0xff] }
 0x4e4   :  { %v3933_v16 = vld [vmem:[#allocation4 + $0x7c8] sm:$0xff]  ;;  %v15639_v34 = vcombine.high %v3805_v0, %v3809_v45  ;;  %v15658_v60 = vcombine.low %v3805_v0, %v3809_v45  ;;  %v3822_v0 = vld [vmem:[#allocation4 + $0x450] sm:$0xff] }
 0x4e5   :  { %v15662_v59 = vcombine.low %v3933_v16, %v3937_v4 }
 0x4e6   :  { %18316 = vst [vmem:[#allocation148_spill] sm:$0xff] %v15639_v34  ;;  %18321 = vst [vmem:[#allocation153_spill] sm:$0xff] %v15658_v60 }
 0x4e7   :  { %18322 = vst [vmem:[#allocation154_spill] sm:$0xff] %v15662_v59 }
 0x4e9   :  { %6480 = vmatpush1.bf16.xpose.msra.mxu0 %v15620_v24  ;;  %v15641_v24 = vcombine.high %v3933_v16, %v3937_v4  ;;  %v3698_v4 = vld [vmem:[#allocation4 + $0x70] sm:$0xff]  ;;  %v15674_v16 = vcombine.low %v3686_v10, %v3690_v46 }
 0x4ea   :  { %6644 = vmatpush1.bf16.xpose.msra.mxu1 %v15622_v3  ;;  %6481 = vmatprep.subr.bf16.mxu0 %v15624_v22  ;;  %v15644_v3 = vsub.s32 5, %v15212_v38  ;;  %v3818_v22 = vld [vmem:[#allocation4 + $0x430] sm:$0xff] }
 0x4eb   :  { %6645 = vmatprep.subr.bf16.mxu1 %v15626_v19  ;;  %18317 = vst [vmem:[#allocation149_spill] sm:$0xff] %v15641_v24  ;;  %v15649_v19 = vrot.slane %v15214_v49, %v15635_v30  ;;  %18325 = vst [vmem:[#allocation157_spill] sm:$0xff] %v15674_v16  ;;  %v15678_v14 = vcombine.low %v3814_v7, %v3818_v22 }
 0x4ec   :  { %18318 = vst [vmem:[#allocation150_spill] sm:$0xff] %v15644_v3  ;;  %v15656_v26 = vrot.slane %v15214_v49, %v15644_v3 }
 0x4ed   :  { %18319 = vst [vmem:[#allocation151_spill] sm:$0xff] %v15649_v19  ;;  %18326 = vst [vmem:[#allocation158_spill] sm:$0xff] %v15678_v14 }
 0x4ee   :  { %18320 = vst [vmem:[#allocation152_spill] sm:$0xff] %v15656_v26 }
 0x4f1   :  { %6482 = vmatpush1.bf16.xpose.msra.mxu0 %v15632_v43  ;;  %v12809_v43 = vadd.f32 %v15198_v44, %v15649_v19  ;;  %v3694_v44 = vld [vmem:[#allocation4 + $0x50] sm:$0xff] }
 0x4f2   :  { %6646 = vmatpush1.bf16.xpose.msra.mxu1 %v15637_v13  ;;  %6483 = vmatprep.subr.bf16.mxu0 %v15639_v34  ;;  %v15664_v13 = vcombine.high %v3686_v10, %v3690_v46  ;;  %v15666_v34 = vcombine.high %v3814_v7, %v3818_v22  ;;  %v3826_v19 = vld [vmem:[#allocation4 + $0x470] sm:$0xff]  ;;  %v15694_v46 = vcombine.low %v3694_v44, %v3698_v4 }
 0x4f3   :  { %6647 = vmatprep.subr.bf16.mxu1 %v15641_v24  ;;  %v12812_v24 = vadd.f32 %v15592_v54, %v15656_v26  ;;  %v3670_v51 = vmax.f32 %v12809_v43, 0.0  ;;  %v15680_v54 = vcombine.high %v3694_v44, %v3698_v4  ;;  %v15685_v26 = vcombine.high %v3822_v0, %v3826_v19  ;;  %v3830_v22 = vld [vmem:[#allocation4 + $0x490] sm:$0xff] }
 0x4f4   :  { %18323 = vst [vmem:[#allocation155_spill] sm:$0xff] %v15664_v13  ;;  %18324 = vst [vmem:[#allocation156_spill] sm:$0xff] %v15666_v34  ;;  %v3834_v10 = vld [vmem:[#allocation4 + $0x4b0] sm:$0xff]  ;;  %v15696_v7 = vcombine.low %v3822_v0, %v3826_v19 }
 0x4f5   :  { %v3673_v45 = vmax.f32 %v12812_v24, 0.0  ;;  %v15676_v47 = vpack.c.bf16 %v3670_v51, %v3670_v51  ;;  %18327 = vst [vmem:[#allocation159_spill] sm:$0xff] %v15680_v54  ;;  %18328 = vst [vmem:[#allocation160_spill] sm:$0xff] %v15685_v26  ;;  %v3702_v51 = vld [vmem:[#allocation4 + $0x90] sm:$0xff]  ;;  %v15708_v19 = vcombine.low %v3830_v22, %v3834_v10 }
 0x4f6   :  { %v3706_v24 = vld [vmem:[#allocation4 + $0xb0] sm:$0xff]  ;;  %18329 = vst [vmem:[#allocation161_spill] sm:$0xff] %v15694_v46  ;;  %18330 = vst [vmem:[#allocation162_spill] sm:$0xff] %v15696_v7 }
 0x4f7   :  { %v15682_v43 = vpack.c.bf16 %v3673_v45, %v3673_v45  ;;  %v15698_v45 = vcombine.high %v3702_v51, %v3706_v24  ;;  %v15706_v44 = vcombine.low %v3702_v51, %v3706_v24  ;;  %18334 = vst [vmem:[#allocation166_spill] sm:$0xff] %v15708_v19 }
 0x4f9   :  { %6484 = vmatpush1.bf16.xpose.msra.mxu0 %v15658_v60  ;;  %18331 = vst [vmem:[#allocation163_spill] sm:$0xff] %v15698_v45  ;;  %18333 = vst [vmem:[#allocation165_spill] sm:$0xff] %v15706_v44 }
 0x4fa   :  { %6648 = vmatpush1.bf16.xpose.msra.mxu1 %v15662_v59  ;;  %6494 = vmatprep.subr.bf16.mxu0 %v15664_v13 }
 0x4fb   :  { %6658 = vmatprep.subr.bf16.mxu1 %v15666_v34  ;;  %v15700_v34 = vcombine.high %v3830_v22, %v3834_v10 }
 0x4fd   :  { %18332 = vst [vmem:[#allocation164_spill] sm:$0xff] %v15700_v34 }
 0x500   :  { %6486 = vmatmul.mubr.bf16.vlgmr.msra.gmra.mrb[8].mxu0 %v15676_v47 }
 0x501   :  { %6650 = vmatmul.mubr.bf16.vlgmr.msra.gmra.mrb[8].mxu1 %v15676_v47  ;;  %6495 = vmatpush1.bf16.xpose.msra.mxu0 %v15674_v16  ;;  %v3842_v16 = vld [vmem:[#allocation4 + $0x4f0] sm:$0xff] }
 0x502   :  { %6526 = vmatprep.mubr.bf16.mxu0 %v15682_v43  ;;  %6659 = vmatpush1.bf16.xpose.msra.mxu1 %v15678_v14  ;;  %v3710_v14 = vld [vmem:[#allocation4 + $0xd0] sm:$0xff] }
 0x503   :  { %6690 = vmatprep.mubr.bf16.mxu1 %v15682_v43  ;;  %6496 = vmatprep.subr.bf16.mxu0 %v15680_v54  ;;  %v3838_v54 = vld [vmem:[#allocation4 + $0x4d0] sm:$0xff] }
 0x504   :  { %6660 = vmatprep.subr.bf16.mxu1 %v15685_v26  ;;  %v3714_v26 = vld [vmem:[#allocation4 + $0xf0] sm:$0xff]  ;;  %v15712_v0 = vcombine.high %v3838_v54, %v3842_v16  ;;  %v15720_v24 = vcombine.low %v3838_v54, %v3842_v16 }
 0x505   :  { %v15710_v4 = vcombine.high %v3710_v14, %v3714_v26  ;;  %v15718_v51 = vcombine.low %v3710_v14, %v3714_v26 }
 0x506   :  { %18336 = vst [vmem:[#allocation168_spill] sm:$0xff] %v15712_v0  ;;  %18338 = vst [vmem:[#allocation170_spill] sm:$0xff] %v15720_v24 }
 0x507   :  { %18335 = vst [vmem:[#allocation167_spill] sm:$0xff] %v15710_v4  ;;  %18337 = vst [vmem:[#allocation169_spill] sm:$0xff] %v15718_v51 }
 0x509   :  { %6497 = vmatpush1.bf16.xpose.msra.mxu0 %v15694_v46  ;;  %v3850_v46 = vld [vmem:[#allocation4 + $0x530] sm:$0xff] }
 0x50a   :  { %6661 = vmatpush1.bf16.xpose.msra.mxu1 %v15696_v7  ;;  %6498 = vmatprep.subr.bf16.mxu0 %v15698_v45  ;;  %v3722_v7 = vld [vmem:[#allocation4 + $0x130] sm:$0xff] }
 0x50b   :  { %6662 = vmatprep.subr.bf16.mxu1 %v15700_v34  ;;  %v3718_v34 = vld [vmem:[#allocation4 + $0x110] sm:$0xff] }
 0x50c   :  { %v3846_v45 = vld [vmem:[#allocation4 + $0x510] sm:$0xff]  ;;  %v15722_v22 = vcombine.high %v3718_v34, %v3722_v7  ;;  %v15730_v14 = vcombine.low %v3718_v34, %v3722_v7 }
 0x50d   :  { %v15724_v10 = vcombine.high %v3846_v45, %v3850_v46  ;;  %v15732_v26 = vcombine.low %v3846_v45, %v3850_v46 }
 0x50e   :  { %18339 = vst [vmem:[#allocation171_spill] sm:$0xff] %v15722_v22  ;;  %18341 = vst [vmem:[#allocation173_spill] sm:$0xff] %v15730_v14 }
 0x50f   :  { %18340 = vst [vmem:[#allocation172_spill] sm:$0xff] %v15724_v10  ;;  %18342 = vst [vmem:[#allocation174_spill] sm:$0xff] %v15732_v26 }
 0x511   :  { %6499 = vmatpush1.bf16.xpose.msra.mxu0 %v15706_v44  ;;  %v3858_v44 = vld [vmem:[#allocation4 + $0x570] sm:$0xff] }
 0x512   :  { %6663 = vmatpush1.bf16.xpose.msra.mxu1 %v15708_v19  ;;  %6500 = vmatprep.subr.bf16.mxu0 %v15710_v4  ;;  %v3730_v19 = vld [vmem:[#allocation4 + $0x170] sm:$0xff] }
 0x513   :  { %6664 = vmatprep.subr.bf16.mxu1 %v15712_v0  ;;  %v3726_v0 = vld [vmem:[#allocation4 + $0x150] sm:$0xff] }
 0x514   :  { %v3854_v4 = vld [vmem:[#allocation4 + $0x550] sm:$0xff]  ;;  %v15734_v16 = vcombine.high %v3726_v0, %v3730_v19  ;;  %v15742_v34 = vcombine.low %v3726_v0, %v3730_v19 }
 0x515   :  { %v15736_v54 = vcombine.high %v3854_v4, %v3858_v44  ;;  %v15744_v46 = vcombine.low %v3854_v4, %v3858_v44 }
 0x516   :  { %18343 = vst [vmem:[#allocation175_spill] sm:$0xff] %v15734_v16  ;;  %18345 = vst [vmem:[#allocation177_spill] sm:$0xff] %v15742_v34 }
 0x517   :  { %18344 = vst [vmem:[#allocation176_spill] sm:$0xff] %v15736_v54  ;;  %18346 = vst [vmem:[#allocation178_spill] sm:$0xff] %v15744_v46 }
 0x519   :  { %6501 = vmatpush1.bf16.xpose.msra.mxu0 %v15718_v51  ;;  %v3866_v51 = vld [vmem:[#allocation4 + $0x5b0] sm:$0xff] }
 0x51a   :  { %6665 = vmatpush1.bf16.xpose.msra.mxu1 %v15720_v24  ;;  %6502 = vmatprep.subr.bf16.mxu0 %v15722_v22  ;;  %v3738_v24 = vld [vmem:[#allocation4 + $0x1b0] sm:$0xff] }
 0x51b   :  { %6666 = vmatprep.subr.bf16.mxu1 %v15724_v10  ;;  %v3734_v10 = vld [vmem:[#allocation4 + $0x190] sm:$0xff] }
 0x51c   :  { %v3862_v22 = vld [vmem:[#allocation4 + $0x590] sm:$0xff]  ;;  %v15746_v7 = vcombine.high %v3734_v10, %v3738_v24  ;;  %v15754_v19 = vcombine.low %v3734_v10, %v3738_v24 }
 0x51d   :  { %v15748_v45 = vcombine.high %v3862_v22, %v3866_v51  ;;  %v15756_v44 = vcombine.low %v3862_v22, %v3866_v51 }
 0x51e   :  { %18347 = vst [vmem:[#allocation179_spill] sm:$0xff] %v15746_v7  ;;  %18349 = vst [vmem:[#allocation181_spill] sm:$0xff] %v15754_v19 }
 0x51f   :  { %18348 = vst [vmem:[#allocation180_spill] sm:$0xff] %v15748_v45  ;;  %18350 = vst [vmem:[#allocation182_spill] sm:$0xff] %v15756_v44 }
 0x521   :  { %6503 = vmatpush1.bf16.xpose.msra.mxu0 %v15730_v14  ;;  %v3874_v14 = vld [vmem:[#allocation4 + $0x5f0] sm:$0xff] }
 0x522   :  { %6667 = vmatpush1.bf16.xpose.msra.mxu1 %v15732_v26  ;;  %6504 = vmatprep.subr.bf16.mxu0 %v15734_v16  ;;  %v3746_v26 = vld [vmem:[#allocation4 + $0x1f0] sm:$0xff] }
 0x523   :  { %6668 = vmatprep.subr.bf16.mxu1 %v15736_v54  ;;  %v3742_v54 = vld [vmem:[#allocation4 + $0x1d0] sm:$0xff] }
 0x524   :  { %v3870_v16 = vld [vmem:[#allocation4 + $0x5d0] sm:$0xff]  ;;  %v15758_v4 = vcombine.high %v3742_v54, %v3746_v26  ;;  %v15766_v24 = vcombine.low %v3742_v54, %v3746_v26 }
 0x525   :  { %v15760_v0 = vcombine.high %v3870_v16, %v3874_v14  ;;  %v15768_v51 = vcombine.low %v3870_v16, %v3874_v14 }
 0x526   :  { %18351 = vst [vmem:[#allocation183_spill] sm:$0xff] %v15758_v4  ;;  %18353 = vst [vmem:[#allocation185_spill] sm:$0xff] %v15766_v24 }
 0x527   :  { %18352 = vst [vmem:[#allocation184_spill] sm:$0xff] %v15760_v0  ;;  %18354 = vst [vmem:[#allocation186_spill] sm:$0xff] %v15768_v51 }
 0x529   :  { %6505 = vmatpush1.bf16.xpose.msra.mxu0 %v15742_v34  ;;  %v3882_v34 = vld [vmem:[#allocation4 + $0x630] sm:$0xff] }
 0x52a   :  { %6669 = vmatpush1.bf16.xpose.msra.mxu1 %v15744_v46  ;;  %6506 = vmatprep.subr.bf16.mxu0 %v15746_v7  ;;  %v3754_v46 = vld [vmem:[#allocation4 + $0x230] sm:$0xff] }
 0x52b   :  { %6670 = vmatprep.subr.bf16.mxu1 %v15748_v45  ;;  %v3750_v45 = vld [vmem:[#allocation4 + $0x210] sm:$0xff] }
 0x52c   :  { %v3878_v7 = vld [vmem:[#allocation4 + $0x610] sm:$0xff]  ;;  %v15770_v22 = vcombine.high %v3750_v45, %v3754_v46  ;;  %v15778_v26 = vcombine.low %v3750_v45, %v3754_v46 }
 0x52d   :  { %v15772_v10 = vcombine.high %v3878_v7, %v3882_v34  ;;  %v15780_v14 = vcombine.low %v3878_v7, %v3882_v34 }
 0x52e   :  { %18355 = vst [vmem:[#allocation187_spill] sm:$0xff] %v15770_v22  ;;  %18357 = vst [vmem:[#allocation189_spill] sm:$0xff] %v15778_v26 }
 0x52f   :  { %18356 = vst [vmem:[#allocation188_spill] sm:$0xff] %v15772_v10  ;;  %18358 = vst [vmem:[#allocation190_spill] sm:$0xff] %v15780_v14 }
 0x531   :  { %6507 = vmatpush1.bf16.xpose.msra.mxu0 %v15754_v19  ;;  %v3890_v19 = vld [vmem:[#allocation4 + $0x670] sm:$0xff] }
 0x532   :  { %6671 = vmatpush1.bf16.xpose.msra.mxu1 %v15756_v44  ;;  %6508 = vmatprep.subr.bf16.mxu0 %v15758_v4  ;;  %v3762_v44 = vld [vmem:[#allocation4 + $0x270] sm:$0xff] }
 0x533   :  { %6672 = vmatprep.subr.bf16.mxu1 %v15760_v0  ;;  %v3758_v0 = vld [vmem:[#allocation4 + $0x250] sm:$0xff] }
 0x534   :  { %v3886_v4 = vld [vmem:[#allocation4 + $0x650] sm:$0xff]  ;;  %v15782_v16 = vcombine.high %v3758_v0, %v3762_v44  ;;  %v15790_v46 = vcombine.low %v3758_v0, %v3762_v44 }
 0x535   :  { %v15784_v54 = vcombine.high %v3886_v4, %v3890_v19  ;;  %v15792_v34 = vcombine.low %v3886_v4, %v3890_v19 }
 0x536   :  { %18359 = vst [vmem:[#allocation191_spill] sm:$0xff] %v15782_v16  ;;  %18361 = vst [vmem:[#allocation193_spill] sm:$0xff] %v15790_v46 }
 0x537   :  { %18360 = vst [vmem:[#allocation192_spill] sm:$0xff] %v15784_v54  ;;  %18362 = vst [vmem:[#allocation194_spill] sm:$0xff] %v15792_v34 }
 0x539   :  { %6509 = vmatpush1.bf16.xpose.msra.mxu0 %v15766_v24  ;;  %v3898_v24 = vld [vmem:[#allocation4 + $0x6b0] sm:$0xff] }
 0x53a   :  { %6673 = vmatpush1.bf16.xpose.msra.mxu1 %v15768_v51  ;;  %6510 = vmatprep.subr.bf16.mxu0 %v15770_v22  ;;  %v3770_v51 = vld [vmem:[#allocation4 + $0x2b0] sm:$0xff] }
 0x53b   :  { %6674 = vmatprep.subr.bf16.mxu1 %v15772_v10  ;;  %v3766_v10 = vld [vmem:[#allocation4 + $0x290] sm:$0xff] }
 0x53c   :  { %v3894_v22 = vld [vmem:[#allocation4 + $0x690] sm:$0xff]  ;;  %v15794_v7 = vcombine.high %v3766_v10, %v3770_v51  ;;  %v15802_v44 = vcombine.low %v3766_v10, %v3770_v51 }
 0x53d   :  { %v15796_v45 = vcombine.high %v3894_v22, %v3898_v24  ;;  %v15804_v19 = vcombine.low %v3894_v22, %v3898_v24 }
 0x53e   :  { %18363 = vst [vmem:[#allocation195_spill] sm:$0xff] %v15794_v7  ;;  %18365 = vst [vmem:[#allocation197_spill] sm:$0xff] %v15802_v44 }
 0x53f   :  { %18364 = vst [vmem:[#allocation196_spill] sm:$0xff] %v15796_v45  ;;  %18366 = vst [vmem:[#allocation198_spill] sm:$0xff] %v15804_v19 }
 0x541   :  { %6511 = vmatpush1.bf16.xpose.msra.mxu0 %v15778_v26  ;;  %v3906_v26 = vld [vmem:[#allocation4 + $0x6f0] sm:$0xff] }
 0x542   :  { %6675 = vmatpush1.bf16.xpose.msra.mxu1 %v15780_v14  ;;  %6512 = vmatprep.subr.bf16.mxu0 %v15782_v16  ;;  %v3778_v14 = vld [vmem:[#allocation4 + $0x2f0] sm:$0xff] }
 0x543   :  { %6676 = vmatprep.subr.bf16.mxu1 %v15784_v54  ;;  %v3774_v54 = vld [vmem:[#allocation4 + $0x2d0] sm:$0xff] }
 0x544   :  { %v3902_v16 = vld [vmem:[#allocation4 + $0x6d0] sm:$0xff]  ;;  %v15806_v4 = vcombine.high %v3774_v54, %v3778_v14  ;;  %v15814_v51 = vcombine.low %v3774_v54, %v3778_v14 }
 0x545   :  { %v15808_v0 = vcombine.high %v3902_v16, %v3906_v26  ;;  %v15816_v24 = vcombine.low %v3902_v16, %v3906_v26 }
 0x546   :  { %18367 = vst [vmem:[#allocation199_spill] sm:$0xff] %v15806_v4  ;;  %18369 = vst [vmem:[#allocation201_spill] sm:$0xff] %v15814_v51 }
 0x547   :  { %18368 = vst [vmem:[#allocation200_spill] sm:$0xff] %v15808_v0  ;;  %18370 = vst [vmem:[#allocation202_spill] sm:$0xff] %v15816_v24 }
 0x549   :  { %6513 = vmatpush1.bf16.xpose.msra.mxu0 %v15790_v46  ;;  %v3914_v46 = vld [vmem:[#allocation4 + $0x730] sm:$0xff] }
 0x54a   :  { %6677 = vmatpush1.bf16.xpose.msra.mxu1 %v15792_v34  ;;  %6514 = vmatprep.subr.bf16.mxu0 %v15794_v7  ;;  %v3786_v34 = vld [vmem:[#allocation4 + $0x330] sm:$0xff] }
 0x54b   :  { %6678 = vmatprep.subr.bf16.mxu1 %v15796_v45  ;;  %v3782_v45 = vld [vmem:[#allocation4 + $0x310] sm:$0xff] }
 0x54c   :  { %v3910_v7 = vld [vmem:[#allocation4 + $0x710] sm:$0xff]  ;;  %v15818_v22 = vcombine.high %v3782_v45, %v3786_v34  ;;  %v15826_v14 = vcombine.low %v3782_v45, %v3786_v34 }
 0x54d   :  { %v15820_v10 = vcombine.high %v3910_v7, %v3914_v46  ;;  %v15828_v26 = vcombine.low %v3910_v7, %v3914_v46 }
 0x54e   :  { %18371 = vst [vmem:[#allocation203_spill] sm:$0xff] %v15818_v22  ;;  %18373 = vst [vmem:[#allocation205_spill] sm:$0xff] %v15826_v14 }
 0x54f   :  { %18372 = vst [vmem:[#allocation204_spill] sm:$0xff] %v15820_v10  ;;  %18374 = vst [vmem:[#allocation206_spill] sm:$0xff] %v15828_v26 }
 0x551   :  { %6515 = vmatpush1.bf16.xpose.msra.mxu0 %v15802_v44  ;;  %v3922_v44 = vld [vmem:[#allocation4 + $0x770] sm:$0xff] }
 0x552   :  { %6679 = vmatpush1.bf16.xpose.msra.mxu1 %v15804_v19  ;;  %6516 = vmatprep.subr.bf16.mxu0 %v15806_v4  ;;  %v3794_v19 = vld [vmem:[#allocation4 + $0x370] sm:$0xff] }
 0x553   :  { %6680 = vmatprep.subr.bf16.mxu1 %v15808_v0  ;;  %v3790_v0 = vld [vmem:[#allocation4 + $0x350] sm:$0xff] }
 0x554   :  { %v3918_v4 = vld [vmem:[#allocation4 + $0x750] sm:$0xff]  ;;  %v15830_v16 = vcombine.high %v3790_v0, %v3794_v19  ;;  %v15838_v34 = vcombine.low %v3790_v0, %v3794_v19 }
 0x555   :  { %v15832_v54 = vcombine.high %v3918_v4, %v3922_v44  ;;  %v15840_v46 = vcombine.low %v3918_v4, %v3922_v44  ;;  %v15853_v44 = vsub.s32 4, %v15212_v38 }
 0x556   :  { %18375 = vst [vmem:[#allocation207_spill] sm:$0xff] %v15830_v16  ;;  %18377 = vst [vmem:[#allocation209_spill] sm:$0xff] %v15838_v34 }
 0x557   :  { %18376 = vst [vmem:[#allocation208_spill] sm:$0xff] %v15832_v54  ;;  %18378 = vst [vmem:[#allocation210_spill] sm:$0xff] %v15840_v46 }
 0x558   :  { %18382 = vst [vmem:[#allocation214_spill] sm:$0xff] %v15853_v44 }
 0x559   :  { %6517 = vmatpush1.bf16.xpose.msra.mxu0 %v15814_v51  ;;  %v3930_v51 = vld [vmem:[#allocation4 + $0x7b0] sm:$0xff] }
 0x55a   :  { %6681 = vmatpush1.bf16.xpose.msra.mxu1 %v15816_v24  ;;  %6518 = vmatprep.subr.bf16.mxu0 %v15818_v22  ;;  %v3802_v24 = vld [vmem:[#allocation4 + $0x3b0] sm:$0xff] }
 0x55b   :  { %6682 = vmatprep.subr.bf16.mxu1 %v15820_v10  ;;  %v3798_v10 = vld [vmem:[#allocation4 + $0x390] sm:$0xff] }
 0x55c   :  { %v3926_v22 = vld [vmem:[#allocation4 + $0x790] sm:$0xff]  ;;  %v15842_v7 = vcombine.high %v3798_v10, %v3802_v24  ;;  %v15850_v19 = vcombine.low %v3798_v10, %v3802_v24  ;;  %v3691_v24 = vld [vmem:[#allocation4 + $0x38] sm:$0xff] }
 0x55d   :  { %v15844_v45 = vcombine.high %v3926_v22, %v3930_v51  ;;  %v15855_v4 = vcombine.low %v3926_v22, %v3930_v51  ;;  %v3687_v51 = vld [vmem:[#allocation4 + $0x18] sm:$0xff] }
 0x55e   :  { %18379 = vst [vmem:[#allocation211_spill] sm:$0xff] %v15842_v7  ;;  %18381 = vst [vmem:[#allocation213_spill] sm:$0xff] %v15850_v19  ;;  %v3815_v10 = vld [vmem:[#allocation4 + $0x418] sm:$0xff]  ;;  %v15879_v60 = vcombine.high %v3687_v51, %v3691_v24 }
 0x55f   :  { %18380 = vst [vmem:[#allocation212_spill] sm:$0xff] %v15844_v45  ;;  %18383 = vst [vmem:[#allocation215_spill] sm:$0xff] %v15855_v4 }
 0x560   :  { %18390 = vst [vmem:[#allocation222_spill] sm:$0xff] %v15879_v60 }
 0x561   :  { %6519 = vmatpush1.bf16.xpose.msra.mxu0 %v15826_v14  ;;  %v3938_v14 = vld [vmem:[#allocation4 + $0x7f0] sm:$0xff] }
 0x562   :  { %6683 = vmatpush1.bf16.xpose.msra.mxu1 %v15828_v26  ;;  %6520 = vmatprep.subr.bf16.mxu0 %v15830_v16  ;;  %v3810_v26 = vld [vmem:[#allocation4 + $0x3f0] sm:$0xff] }
 0x563   :  { %6684 = vmatprep.subr.bf16.mxu1 %v15832_v54  ;;  %v3806_v54 = vld [vmem:[#allocation4 + $0x3d0] sm:$0xff] }
 0x564   :  { %v3934_v16 = vld [vmem:[#allocation4 + $0x7d0] sm:$0xff]  ;;  %v15857_v0 = vcombine.high %v3806_v54, %v3810_v26  ;;  %v15873_v13 = vcombine.low %v3806_v54, %v3810_v26  ;;  %v3823_v54 = vld [vmem:[#allocation4 + $0x458] sm:$0xff] }
 0x565   :  { %v15877_v59 = vcombine.low %v3934_v16, %v3938_v14 }
 0x566   :  { %18384 = vst [vmem:[#allocation216_spill] sm:$0xff] %v15857_v0  ;;  %18388 = vst [vmem:[#allocation220_spill] sm:$0xff] %v15873_v13 }
 0x567   :  { %18389 = vst [vmem:[#allocation221_spill] sm:$0xff] %v15877_v59 }
 0x569   :  { %6521 = vmatpush1.bf16.xpose.msra.mxu0 %v15838_v34  ;;  %v15859_v34 = vcombine.high %v3934_v16, %v3938_v14  ;;  %v3699_v14 = vld [vmem:[#allocation4 + $0x78] sm:$0xff]  ;;  %v15889_v16 = vcombine.low %v3687_v51, %v3691_v24 }
 0x56a   :  { %6685 = vmatpush1.bf16.xpose.msra.mxu1 %v15840_v46  ;;  %6522 = vmatprep.subr.bf16.mxu0 %v15842_v7  ;;  %v673_v46 = vsub.s32 7, %v15212_v38  ;;  %v3819_v7 = vld [vmem:[#allocation4 + $0x438] sm:$0xff] }
 0x56b   :  { %6686 = vmatprep.subr.bf16.mxu1 %v15844_v45  ;;  %18385 = vst [vmem:[#allocation217_spill] sm:$0xff] %v15859_v34  ;;  %v15865_v45 = vrot.slane %v15214_v49, %v15853_v44  ;;  %18392 = vst [vmem:[#allocation224_spill] sm:$0xff] %v15889_v16  ;;  %v15893_v8 = vcombine.low %v3815_v10, %v3819_v7  ;;  %v3831_v51 = vld [vmem:[#allocation4 + $0x498] sm:$0xff] }
 0x56c   :  { %v15871_v22 = vrot.slane %v15214_v49, %v673_v46  ;;  %v3835_v24 = vld [vmem:[#allocation4 + $0x4b8] sm:$0xff] }
 0x56d   :  { %18386 = vst [vmem:[#allocation218_spill] sm:$0xff] %v15865_v45  ;;  %18393 = vst [vmem:[#allocation225_spill] sm:$0xff] %v15893_v8 }
 0x56e   :  { %18387 = vst [vmem:[#allocation219_spill] sm:$0xff] %v15871_v22 }
 0x571   :  { %6523 = vmatpush1.bf16.xpose.msra.mxu0 %v15850_v19  ;;  %v12811_v19 = vadd.f32 %v15587_v36, %v15865_v45  ;;  %v3695_v36 = vld [vmem:[#allocation4 + $0x58] sm:$0xff] }
 0x572   :  { %6687 = vmatpush1.bf16.xpose.msra.mxu1 %v15855_v4  ;;  %6524 = vmatprep.subr.bf16.mxu0 %v15857_v0  ;;  %v15881_v4 = vcombine.high %v3815_v10, %v3819_v7  ;;  %v3827_v45 = vld [vmem:[#allocation4 + $0x478] sm:$0xff]  ;;  %v15909_v10 = vcombine.low %v3695_v36, %v3699_v14 }
 0x573   :  { %6688 = vmatprep.subr.bf16.mxu1 %v15859_v34  ;;  %v12814_v34 = vadd.f32 %v15594_v62, %v15871_v22  ;;  %v3672_v46 = vmax.f32 %v12811_v19, 0.0  ;;  %v15895_v62 = vcombine.high %v3695_v36, %v3699_v14  ;;  %v15900_v22 = vcombine.high %v3823_v54, %v3827_v45  ;;  %v3707_v7 = vld [vmem:[#allocation4 + $0xb8] sm:$0xff] }
 0x574   :  { %18391 = vst [vmem:[#allocation223_spill] sm:$0xff] %v15881_v4  ;;  %18396 = vst [vmem:[#allocation228_spill] sm:$0xff] %v15909_v10 }
 0x575   :  { %v3675_v26 = vmax.f32 %v12814_v34, 0.0  ;;  %v15891_v0 = vpack.c.bf16 %v3672_v46, %v3672_v46  ;;  %18394 = vst [vmem:[#allocation226_spill] sm:$0xff] %v15895_v62  ;;  %18395 = vst [vmem:[#allocation227_spill] sm:$0xff] %v15900_v22  ;;  %v3703_v34 = vld [vmem:[#allocation4 + $0x98] sm:$0xff]  ;;  %v15911_v46 = vcombine.low %v3823_v54, %v3827_v45  ;;  %v15923_v45 = vcombine.low %v3831_v51, %v3835_v24 }
 0x576   :  { %v15921_v36 = vcombine.low %v3703_v34, %v3707_v7 }
 0x577   :  { %v15897_v19 = vpack.c.bf16 %v3675_v26, %v3675_v26  ;;  %18397 = vst [vmem:[#allocation229_spill] sm:$0xff] %v15911_v46  ;;  %v15913_v26 = vcombine.high %v3703_v34, %v3707_v7  ;;  %18401 = vst [vmem:[#allocation233_spill] sm:$0xff] %v15923_v45 }
 0x578   :  { %18400 = vst [vmem:[#allocation232_spill] sm:$0xff] %v15921_v36 }
 0x579   :  { %6525 = vmatpush1.bf16.xpose.msra.mxu0 %v15873_v13  ;;  %18398 = vst [vmem:[#allocation230_spill] sm:$0xff] %v15913_v26  ;;  %v3843_v13 = vld [vmem:[#allocation4 + $0x4f8] sm:$0xff] }
 0x57a   :  { %6689 = vmatpush1.bf16.xpose.msra.mxu1 %v15877_v59  ;;  %6535 = vmatprep.subr.bf16.mxu0 %v15879_v60  ;;  %v15915_v59 = vcombine.high %v3831_v51, %v3835_v24  ;;  %v4092_v60 = vld [vmem:[#allocation4 + $0xcc0] sm:$0xff] }
 0x57b   :  { %6699 = vmatprep.subr.bf16.mxu1 %v15881_v4  ;;  %v3839_v4 = vld [vmem:[#allocation4 + $0x4d8] sm:$0xff] }
 0x57c   :  { %18399 = vst [vmem:[#allocation231_spill] sm:$0xff] %v15915_v59  ;;  %v15927_v54 = vcombine.high %v3839_v4, %v3843_v13  ;;  %v15935_v7 = vcombine.low %v3839_v4, %v3843_v13 }
 0x57e   :  { %18403 = vst [vmem:[#allocation235_spill] sm:$0xff] %v15927_v54  ;;  %18405 = vst [vmem:[#allocation237_spill] sm:$0xff] %v15935_v7 }
 0x580   :  { %6527 = vmatmul.mubr.bf16.vlgmr.msra.gmra.mrb[8].mxu0 %v15891_v0 }
 0x581   :  { %6691 = vmatmul.mubr.bf16.vlgmr.msra.gmra.mrb[8].mxu1 %v15891_v0  ;;  %6536 = vmatpush1.bf16.xpose.msra.mxu0 %v15889_v16  ;;  %v3968_v16 = vld [vmem:[#allocation4 + $0x8e0] sm:$0xff] }
 0x582   :  { %6567 = vmatprep.mubr.bf16.mxu0 %v15897_v19  ;;  %6700 = vmatpush1.bf16.xpose.msra.mxu1 %v15893_v8  ;;  %v3711_v8 = vld [vmem:[#allocation4 + $0xd8] sm:$0xff] }
 0x583   :  { %6731 = vmatprep.mubr.bf16.mxu1 %v15897_v19  ;;  %6537 = vmatprep.subr.bf16.mxu0 %v15895_v62 }
 0x584   :  { %6701 = vmatprep.subr.bf16.mxu1 %v15900_v22  ;;  %v3715_v22 = vld [vmem:[#allocation4 + $0xf8] sm:$0xff] }
 0x585   :  { %v15925_v14 = vcombine.high %v3711_v8, %v3715_v22  ;;  %v15933_v34 = vcombine.low %v3711_v8, %v3715_v22 }
 0x587   :  { %18402 = vst [vmem:[#allocation234_spill] sm:$0xff] %v15925_v14  ;;  %18404 = vst [vmem:[#allocation236_spill] sm:$0xff] %v15933_v34 }
 0x589   :  { %6538 = vmatpush1.bf16.xpose.msra.mxu0 %v15909_v10  ;;  %v3851_v10 = vld [vmem:[#allocation4 + $0x538] sm:$0xff] }
 0x58a   :  { %6702 = vmatpush1.bf16.xpose.msra.mxu1 %v15911_v46  ;;  %6539 = vmatprep.subr.bf16.mxu0 %v15913_v26  ;;  %v3723_v46 = vld [vmem:[#allocation4 + $0x138] sm:$0xff] }
 0x58b   :  { %6703 = vmatprep.subr.bf16.mxu1 %v15915_v59  ;;  %v3719_v59 = vld [vmem:[#allocation4 + $0x118] sm:$0xff] }
 0x58c   :  { %v3847_v26 = vld [vmem:[#allocation4 + $0x518] sm:$0xff]  ;;  %v15937_v51 = vcombine.high %v3719_v59, %v3723_v46  ;;  %v15945_v8 = vcombine.low %v3719_v59, %v3723_v46 }
 0x58d   :  { %v15939_v24 = vcombine.high %v3847_v26, %v3851_v10  ;;  %v15947_v13 = vcombine.low %v3847_v26, %v3851_v10 }
 0x58e   :  { %18406 = vst [vmem:[#allocation238_spill] sm:$0xff] %v15937_v51  ;;  %18408 = vst [vmem:[#allocation240_spill] sm:$0xff] %v15945_v8 }
 0x58f   :  { %18407 = vst [vmem:[#allocation239_spill] sm:$0xff] %v15939_v24  ;;  %18409 = vst [vmem:[#allocation241_spill] sm:$0xff] %v15947_v13 }
 0x591   :  { %6540 = vmatpush1.bf16.xpose.msra.mxu0 %v15921_v36  ;;  %v3859_v36 = vld [vmem:[#allocation4 + $0x578] sm:$0xff] }
 0x592   :  { %6704 = vmatpush1.bf16.xpose.msra.mxu1 %v15923_v45  ;;  %6541 = vmatprep.subr.bf16.mxu0 %v15925_v14  ;;  %v3731_v45 = vld [vmem:[#allocation4 + $0x178] sm:$0xff] }
 0x593   :  { %6705 = vmatprep.subr.bf16.mxu1 %v15927_v54  ;;  %v3727_v54 = vld [vmem:[#allocation4 + $0x158] sm:$0xff] }
 0x594   :  { %v3855_v14 = vld [vmem:[#allocation4 + $0x558] sm:$0xff]  ;;  %v15949_v4 = vcombine.high %v3727_v54, %v3731_v45  ;;  %v15957_v59 = vcombine.low %v3727_v54, %v3731_v45 }
 0x595   :  { %v15951_v22 = vcombine.high %v3855_v14, %v3859_v36  ;;  %v15959_v10 = vcombine.low %v3855_v14, %v3859_v36 }
 0x596   :  { %18410 = vst [vmem:[#allocation242_spill] sm:$0xff] %v15949_v4  ;;  %18412 = vst [vmem:[#allocation244_spill] sm:$0xff] %v15957_v59 }
 0x597   :  { %18411 = vst [vmem:[#allocation243_spill] sm:$0xff] %v15951_v22  ;;  %18413 = vst [vmem:[#allocation245_spill] sm:$0xff] %v15959_v10 }
 0x599   :  { %6542 = vmatpush1.bf16.xpose.msra.mxu0 %v15933_v34  ;;  %v3867_v34 = vld [vmem:[#allocation4 + $0x5b8] sm:$0xff] }
 0x59a   :  { %6706 = vmatpush1.bf16.xpose.msra.mxu1 %v15935_v7  ;;  %6543 = vmatprep.subr.bf16.mxu0 %v15937_v51  ;;  %v3739_v7 = vld [vmem:[#allocation4 + $0x1b8] sm:$0xff] }
 0x59b   :  { %6707 = vmatprep.subr.bf16.mxu1 %v15939_v24  ;;  %v3735_v24 = vld [vmem:[#allocation4 + $0x198] sm:$0xff] }
 0x59c   :  { %v3863_v51 = vld [vmem:[#allocation4 + $0x598] sm:$0xff]  ;;  %v15961_v46 = vcombine.high %v3735_v24, %v3739_v7  ;;  %v15969_v45 = vcombine.low %v3735_v24, %v3739_v7 }
 0x59d   :  { %v15963_v26 = vcombine.high %v3863_v51, %v3867_v34  ;;  %v15971_v36 = vcombine.low %v3863_v51, %v3867_v34 }
 0x59e   :  { %18414 = vst [vmem:[#allocation246_spill] sm:$0xff] %v15961_v46  ;;  %18416 = vst [vmem:[#allocation248_spill] sm:$0xff] %v15969_v45 }
 0x59f   :  { %18415 = vst [vmem:[#allocation247_spill] sm:$0xff] %v15963_v26  ;;  %18417 = vst [vmem:[#allocation249_spill] sm:$0xff] %v15971_v36 }
 0x5a1   :  { %6544 = vmatpush1.bf16.xpose.msra.mxu0 %v15945_v8  ;;  %v3875_v8 = vld [vmem:[#allocation4 + $0x5f8] sm:$0xff] }
 0x5a2   :  { %6708 = vmatpush1.bf16.xpose.msra.mxu1 %v15947_v13  ;;  %6545 = vmatprep.subr.bf16.mxu0 %v15949_v4  ;;  %v3747_v13 = vld [vmem:[#allocation4 + $0x1f8] sm:$0xff] }
 0x5a3   :  { %6709 = vmatprep.subr.bf16.mxu1 %v15951_v22  ;;  %v3743_v22 = vld [vmem:[#allocation4 + $0x1d8] sm:$0xff] }
 0x5a4   :  { %v3871_v4 = vld [vmem:[#allocation4 + $0x5d8] sm:$0xff]  ;;  %v15973_v14 = vcombine.high %v3743_v22, %v3747_v13  ;;  %v15981_v7 = vcombine.low %v3743_v22, %v3747_v13 }
 0x5a5   :  { %v15975_v54 = vcombine.high %v3871_v4, %v3875_v8  ;;  %v15983_v34 = vcombine.low %v3871_v4, %v3875_v8 }
 0x5a6   :  { %18418 = vst [vmem:[#allocation250_spill] sm:$0xff] %v15973_v14  ;;  %18420 = vst [vmem:[#allocation252_spill] sm:$0xff] %v15981_v7 }
 0x5a7   :  { %18419 = vst [vmem:[#allocation251_spill] sm:$0xff] %v15975_v54  ;;  %18421 = vst [vmem:[#allocation253_spill] sm:$0xff] %v15983_v34 }
 0x5a9   :  { %6546 = vmatpush1.bf16.xpose.msra.mxu0 %v15957_v59  ;;  %v3883_v59 = vld [vmem:[#allocation4 + $0x638] sm:$0xff] }
 0x5aa   :  { %6710 = vmatpush1.bf16.xpose.msra.mxu1 %v15959_v10  ;;  %6547 = vmatprep.subr.bf16.mxu0 %v15961_v46  ;;  %v3755_v10 = vld [vmem:[#allocation4 + $0x238] sm:$0xff] }
 0x5ab   :  { %6711 = vmatprep.subr.bf16.mxu1 %v15963_v26  ;;  %v3751_v26 = vld [vmem:[#allocation4 + $0x218] sm:$0xff] }
 0x5ac   :  { %v3879_v46 = vld [vmem:[#allocation4 + $0x618] sm:$0xff]  ;;  %v15985_v51 = vcombine.high %v3751_v26, %v3755_v10  ;;  %v15993_v13 = vcombine.low %v3751_v26, %v3755_v10 }
 0x5ad   :  { %v15987_v24 = vcombine.high %v3879_v46, %v3883_v59  ;;  %v15995_v8 = vcombine.low %v3879_v46, %v3883_v59 }
 0x5ae   :  { %18422 = vst [vmem:[#allocation254_spill] sm:$0xff] %v15985_v51  ;;  %18424 = vst [vmem:[#allocation256_spill] sm:$0xff] %v15993_v13 }
 0x5af   :  { %18423 = vst [vmem:[#allocation255_spill] sm:$0xff] %v15987_v24  ;;  %18425 = vst [vmem:[#allocation257_spill] sm:$0xff] %v15995_v8 }
 0x5b1   :  { %6548 = vmatpush1.bf16.xpose.msra.mxu0 %v15969_v45  ;;  %v3891_v45 = vld [vmem:[#allocation4 + $0x678] sm:$0xff] }
 0x5b2   :  { %6712 = vmatpush1.bf16.xpose.msra.mxu1 %v15971_v36  ;;  %6549 = vmatprep.subr.bf16.mxu0 %v15973_v14  ;;  %v3763_v36 = vld [vmem:[#allocation4 + $0x278] sm:$0xff] }
 0x5b3   :  { %6713 = vmatprep.subr.bf16.mxu1 %v15975_v54  ;;  %v3759_v54 = vld [vmem:[#allocation4 + $0x258] sm:$0xff] }
 0x5b4   :  { %v3887_v14 = vld [vmem:[#allocation4 + $0x658] sm:$0xff]  ;;  %v15997_v4 = vcombine.high %v3759_v54, %v3763_v36  ;;  %v16005_v10 = vcombine.low %v3759_v54, %v3763_v36 }
 0x5b5   :  { %v15999_v22 = vcombine.high %v3887_v14, %v3891_v45  ;;  %v16007_v59 = vcombine.low %v3887_v14, %v3891_v45 }
 0x5b6   :  { %18426 = vst [vmem:[#allocation258_spill] sm:$0xff] %v15997_v4  ;;  %18428 = vst [vmem:[#allocation260_spill] sm:$0xff] %v16005_v10 }
 0x5b7   :  { %18427 = vst [vmem:[#allocation259_spill] sm:$0xff] %v15999_v22  ;;  %18429 = vst [vmem:[#allocation261_spill] sm:$0xff] %v16007_v59 }
 0x5b9   :  { %6550 = vmatpush1.bf16.xpose.msra.mxu0 %v15981_v7  ;;  %v3899_v7 = vld [vmem:[#allocation4 + $0x6b8] sm:$0xff] }
 0x5ba   :  { %6714 = vmatpush1.bf16.xpose.msra.mxu1 %v15983_v34  ;;  %6551 = vmatprep.subr.bf16.mxu0 %v15985_v51  ;;  %v3771_v34 = vld [vmem:[#allocation4 + $0x2b8] sm:$0xff] }
 0x5bb   :  { %6715 = vmatprep.subr.bf16.mxu1 %v15987_v24  ;;  %v3767_v24 = vld [vmem:[#allocation4 + $0x298] sm:$0xff] }
 0x5bc   :  { %v3895_v51 = vld [vmem:[#allocation4 + $0x698] sm:$0xff]  ;;  %v16009_v46 = vcombine.high %v3767_v24, %v3771_v34  ;;  %v16017_v36 = vcombine.low %v3767_v24, %v3771_v34 }
 0x5bd   :  { %v16011_v26 = vcombine.high %v3895_v51, %v3899_v7  ;;  %v16019_v45 = vcombine.low %v3895_v51, %v3899_v7 }
 0x5be   :  { %18430 = vst [vmem:[#allocation262_spill] sm:$0xff] %v16009_v46  ;;  %18432 = vst [vmem:[#allocation264_spill] sm:$0xff] %v16017_v36 }
 0x5bf   :  { %18431 = vst [vmem:[#allocation263_spill] sm:$0xff] %v16011_v26  ;;  %18433 = vst [vmem:[#allocation265_spill] sm:$0xff] %v16019_v45 }
 0x5c1   :  { %6552 = vmatpush1.bf16.xpose.msra.mxu0 %v15993_v13  ;;  %v3907_v13 = vld [vmem:[#allocation4 + $0x6f8] sm:$0xff] }
 0x5c2   :  { %6716 = vmatpush1.bf16.xpose.msra.mxu1 %v15995_v8  ;;  %6553 = vmatprep.subr.bf16.mxu0 %v15997_v4  ;;  %v3779_v8 = vld [vmem:[#allocation4 + $0x2f8] sm:$0xff] }
 0x5c3   :  { %6717 = vmatprep.subr.bf16.mxu1 %v15999_v22  ;;  %v3775_v22 = vld [vmem:[#allocation4 + $0x2d8] sm:$0xff] }
 0x5c4   :  { %v3903_v4 = vld [vmem:[#allocation4 + $0x6d8] sm:$0xff]  ;;  %v16021_v14 = vcombine.high %v3775_v22, %v3779_v8  ;;  %v16029_v34 = vcombine.low %v3775_v22, %v3779_v8 }
 0x5c5   :  { %v16023_v54 = vcombine.high %v3903_v4, %v3907_v13  ;;  %v16031_v7 = vcombine.low %v3903_v4, %v3907_v13 }
 0x5c6   :  { %18434 = vst [vmem:[#allocation266_spill] sm:$0xff] %v16021_v14  ;;  %18436 = vst [vmem:[#allocation268_spill] sm:$0xff] %v16029_v34 }
 0x5c7   :  { %18435 = vst [vmem:[#allocation267_spill] sm:$0xff] %v16023_v54  ;;  %18437 = vst [vmem:[#allocation269_spill] sm:$0xff] %v16031_v7 }
 0x5c9   :  { %6554 = vmatpush1.bf16.xpose.msra.mxu0 %v16005_v10  ;;  %v3915_v10 = vld [vmem:[#allocation4 + $0x738] sm:$0xff] }
 0x5ca   :  { %6718 = vmatpush1.bf16.xpose.msra.mxu1 %v16007_v59  ;;  %6555 = vmatprep.subr.bf16.mxu0 %v16009_v46  ;;  %v3787_v59 = vld [vmem:[#allocation4 + $0x338] sm:$0xff] }
 0x5cb   :  { %6719 = vmatprep.subr.bf16.mxu1 %v16011_v26  ;;  %v3783_v26 = vld [vmem:[#allocation4 + $0x318] sm:$0xff] }
 0x5cc   :  { %v3911_v46 = vld [vmem:[#allocation4 + $0x718] sm:$0xff]  ;;  %v16033_v51 = vcombine.high %v3783_v26, %v3787_v59  ;;  %v16041_v8 = vcombine.low %v3783_v26, %v3787_v59 }
 0x5cd   :  { %v16035_v24 = vcombine.high %v3911_v46, %v3915_v10  ;;  %v16043_v13 = vcombine.low %v3911_v46, %v3915_v10 }
 0x5ce   :  { %18438 = vst [vmem:[#allocation270_spill] sm:$0xff] %v16033_v51  ;;  %18440 = vst [vmem:[#allocation272_spill] sm:$0xff] %v16041_v8 }
 0x5cf   :  { %18439 = vst [vmem:[#allocation271_spill] sm:$0xff] %v16035_v24  ;;  %18441 = vst [vmem:[#allocation273_spill] sm:$0xff] %v16043_v13 }
 0x5d1   :  { %6556 = vmatpush1.bf16.xpose.msra.mxu0 %v16017_v36  ;;  %v3923_v36 = vld [vmem:[#allocation4 + $0x778] sm:$0xff] }
 0x5d2   :  { %6720 = vmatpush1.bf16.xpose.msra.mxu1 %v16019_v45  ;;  %6557 = vmatprep.subr.bf16.mxu0 %v16021_v14  ;;  %v3795_v45 = vld [vmem:[#allocation4 + $0x378] sm:$0xff] }
 0x5d3   :  { %6721 = vmatprep.subr.bf16.mxu1 %v16023_v54  ;;  %v3791_v54 = vld [vmem:[#allocation4 + $0x358] sm:$0xff] }
 0x5d4   :  { %v3919_v14 = vld [vmem:[#allocation4 + $0x758] sm:$0xff]  ;;  %v16045_v4 = vcombine.high %v3791_v54, %v3795_v45  ;;  %v16053_v59 = vcombine.low %v3791_v54, %v3795_v45 }
 0x5d5   :  { %v16047_v22 = vcombine.high %v3919_v14, %v3923_v36  ;;  %v16055_v10 = vcombine.low %v3919_v14, %v3923_v36  ;;  %v16068_v36 = vsub.s32 6, %v15212_v38  ;;  %v3940_v38 = vld [vmem:[#allocation4 + $0x800] sm:$0xff] }
 0x5d6   :  { %18442 = vst [vmem:[#allocation274_spill] sm:$0xff] %v16045_v4  ;;  %18444 = vst [vmem:[#allocation276_spill] sm:$0xff] %v16053_v59 }
 0x5d7   :  { %18443 = vst [vmem:[#allocation275_spill] sm:$0xff] %v16047_v22  ;;  %18445 = vst [vmem:[#allocation277_spill] sm:$0xff] %v16055_v10 }
 0x5d8   :  { %18449 = vst [vmem:[#allocation281_spill] sm:$0xff] %v16068_v36 }
 0x5d9   :  { %6558 = vmatpush1.bf16.xpose.msra.mxu0 %v16029_v34  ;;  %v3931_v34 = vld [vmem:[#allocation4 + $0x7b8] sm:$0xff] }
 0x5da   :  { %6722 = vmatpush1.bf16.xpose.msra.mxu1 %v16031_v7  ;;  %6559 = vmatprep.subr.bf16.mxu0 %v16033_v51  ;;  %v3803_v7 = vld [vmem:[#allocation4 + $0x3b8] sm:$0xff] }
 0x5db   :  { %6723 = vmatprep.subr.bf16.mxu1 %v16035_v24  ;;  %v3799_v24 = vld [vmem:[#allocation4 + $0x398] sm:$0xff] }
 0x5dc   :  { %v3927_v51 = vld [vmem:[#allocation4 + $0x798] sm:$0xff]  ;;  %v16057_v46 = vcombine.high %v3799_v24, %v3803_v7  ;;  %v16065_v45 = vcombine.low %v3799_v24, %v3803_v7  ;;  %v3944_v7 = vld [vmem:[#allocation4 + $0x820] sm:$0xff] }
 0x5dd   :  { %v16059_v26 = vcombine.high %v3927_v51, %v3931_v34  ;;  %v16070_v14 = vcombine.low %v3927_v51, %v3931_v34  ;;  %v4068_v34 = vld [vmem:[#allocation4 + $0xc00] sm:$0xff] }
 0x5de   :  { %18446 = vst [vmem:[#allocation278_spill] sm:$0xff] %v16057_v46  ;;  %18448 = vst [vmem:[#allocation280_spill] sm:$0xff] %v16065_v45  ;;  %v4072_v51 = vld [vmem:[#allocation4 + $0xc20] sm:$0xff] }
 0x5df   :  { %18447 = vst [vmem:[#allocation279_spill] sm:$0xff] %v16059_v26  ;;  %18450 = vst [vmem:[#allocation282_spill] sm:$0xff] %v16070_v14 }
 0x5e1   :  { %6560 = vmatpush1.bf16.xpose.msra.mxu0 %v16041_v8  ;;  %v3939_v8 = vld [vmem:[#allocation4 + $0x7f8] sm:$0xff] }
 0x5e2   :  { %6724 = vmatpush1.bf16.xpose.msra.mxu1 %v16043_v13  ;;  %6561 = vmatprep.subr.bf16.mxu0 %v16045_v4  ;;  %v3811_v13 = vld [vmem:[#allocation4 + $0x3f8] sm:$0xff] }
 0x5e3   :  { %6725 = vmatprep.subr.bf16.mxu1 %v16047_v22  ;;  %v3807_v22 = vld [vmem:[#allocation4 + $0x3d8] sm:$0xff] }
 0x5e4   :  { %v3935_v4 = vld [vmem:[#allocation4 + $0x7d8] sm:$0xff]  ;;  %v16072_v54 = vcombine.high %v3807_v22, %v3811_v13  ;;  %v16084_v24 = vcombine.low %v3807_v22, %v3811_v13  ;;  %v3948_v13 = vld [vmem:[#allocation4 + $0x840] sm:$0xff] }
 0x5e5   :  { %v3952_v22 = vld [vmem:[#allocation4 + $0x860] sm:$0xff] }
 0x5e6   :  { %18451 = vst [vmem:[#allocation283_spill] sm:$0xff] %v16072_v54  ;;  %18454 = vst [vmem:[#allocation286_spill] sm:$0xff] %v16084_v24 }
 0x5e9   :  { %6562 = vmatpush1.bf16.xpose.msra.mxu0 %v16053_v59  ;;  %v16074_v59 = vcombine.high %v3935_v4, %v3939_v8 }
 0x5ea   :  { %6726 = vmatpush1.bf16.xpose.msra.mxu1 %v16055_v10  ;;  %6563 = vmatprep.subr.bf16.mxu0 %v16057_v46  ;;  %v16090_v46 = vcombine.high %v3940_v38, %v3944_v7 }
 0x5eb   :  { %6727 = vmatprep.subr.bf16.mxu1 %v16059_v26  ;;  %18452 = vst [vmem:[#allocation284_spill] sm:$0xff] %v16074_v59  ;;  %v16079_v26 = vrot.slane %v15214_v49, %v16068_v36  ;;  %v16092_v49 = vcombine.high %v4068_v34, %v4072_v51 }
 0x5ec   :  { %18456 = vst [vmem:[#allocation288_spill] sm:$0xff] %v16090_v46 }
 0x5ed   :  { %18453 = vst [vmem:[#allocation285_spill] sm:$0xff] %v16079_v26  ;;  %v12813_v10 = vadd.f32 %v15589_v41, %v16079_v26  ;;  %18457 = vst [vmem:[#allocation289_spill] sm:$0xff] %v16092_v49  ;;  %v4076_v41 = vld [vmem:[#allocation4 + $0xc40] sm:$0xff]  ;;  %v16102_v26 = vcombine.low %v4068_v34, %v4072_v51  ;;  %v16116_v51 = vcombine.low %v3948_v13, %v3952_v22 }
 0x5ee   :  { %v4088_v34 = vld [vmem:[#allocation4 + $0xca0] sm:$0xff] }
 0x5ef   :  { %18459 = vst [vmem:[#allocation291_spill] sm:$0xff] %v16102_v26  ;;  %18462 = vst [vmem:[#allocation294_spill] sm:$0xff] %v16116_v51 }
 0x5f1   :  { %6564 = vmatpush1.bf16.xpose.msra.mxu0 %v16065_v45  ;;  %v16088_v45 = vcombine.low %v3935_v4, %v3939_v8  ;;  %v4080_v8 = vld [vmem:[#allocation4 + $0xc60] sm:$0xff] }
 0x5f2   :  { %6728 = vmatpush1.bf16.xpose.msra.mxu1 %v16070_v14  ;;  %6565 = vmatprep.subr.bf16.mxu0 %v16072_v54  ;;  %v3674_v14 = vmax.f32 %v12813_v10, 0.0  ;;  %v16104_v54 = vcombine.high %v3948_v13, %v3952_v22  ;;  %v16107_v10 = vcombine.high %v4076_v41, %v4080_v8 }
 0x5f3   :  { %6729 = vmatprep.subr.bf16.mxu1 %v16074_v59  ;;  %18455 = vst [vmem:[#allocation287_spill] sm:$0xff] %v16088_v45  ;;  %v16098_v59 = vcombine.low %v3940_v38, %v3944_v7  ;;  %v3960_v38 = vld [vmem:[#allocation4 + $0x8a0] sm:$0xff] }
 0x5f4   :  { %v16100_v4 = vpack.c.bf16 %v3674_v14, %v3674_v14  ;;  %18460 = vst [vmem:[#allocation292_spill] sm:$0xff] %v16104_v54  ;;  %18461 = vst [vmem:[#allocation293_spill] sm:$0xff] %v16107_v10  ;;  %v3956_v14 = vld [vmem:[#allocation4 + $0x880] sm:$0xff] }
 0x5f5   :  { %18458 = vst [vmem:[#allocation290_spill] sm:$0xff] %v16098_v59  ;;  %v4084_v7 = vld [vmem:[#allocation4 + $0xc80] sm:$0xff]  ;;  %v16128_v13 = vcombine.low %v3956_v14, %v3960_v38 }
 0x5f6   :  { %v16122_v62 = vcombine.high %v4084_v7, %v4088_v34  ;;  %v16130_v22 = vcombine.low %v4084_v7, %v4088_v34 }
 0x5f7   :  { %18466 = vst [vmem:[#allocation298_spill] sm:$0xff] %v16128_v13 }
 0x5f8   :  { %18465 = vst [vmem:[#allocation297_spill] sm:$0xff] %v16122_v62  ;;  %18467 = vst [vmem:[#allocation299_spill] sm:$0xff] %v16130_v22 }
 0x5f9   :  { %6566 = vmatpush1.bf16.xpose.msra.mxu0 %v16084_v24  ;;  %v16120_v24 = vcombine.high %v3956_v14, %v3960_v38 }
 0x5fa   :  { %6730 = vmatpush1.bf16.xpose.msra.mxu1 %v16088_v45  ;;  %6740 = vmatprep.subr.bf16.mxu0 %v16090_v46  ;;  %v16118_v45 = vcombine.low %v4076_v41, %v4080_v8  ;;  %v16830_v46 = vld [vmem:[#allocation6 + $0x600] ss:$28 sps:$4 sm:$0xff]  }
 0x5fb   :  { %6904 = vmatprep.subr.bf16.mxu1 %v16092_v49  ;;  %18464 = vst [vmem:[#allocation296_spill] sm:$0xff] %v16120_v24  ;;  %v4104_v49 = vld [vmem:[#allocation4 + $0xd20] sm:$0xff]  ;;  %18657 = vst [vmem:[#allocation489_spill] sm:$0xff] %v16830_v46 }
 0x5fc   :  { %18463 = vst [vmem:[#allocation295_spill] sm:$0xff] %v16118_v45 }
 0x600   :  { %6568 = vmatmul.mubr.bf16.vlgmr.msra.gmra.mrb[8].mxu0 %v16100_v4 }
 0x601   :  { %6732 = vmatmul.mubr.bf16.vlgmr.msra.gmra.mrb[8].mxu1 %v16100_v4  ;;  %6741 = vmatpush1.bf16.xpose.msra.mxu0 %v16098_v59 }
 0x602   :  { %6772 = vmatprep.mubr.bf16.mxu0 %v15235_v27  ;;  %6905 = vmatpush1.bf16.xpose.msra.mxu1 %v16102_v26  ;;  %v4100_v26 = vld [vmem:[#allocation4 + $0xd00] sm:$0xff] }
 0x603   :  { %6936 = vmatprep.mubr.bf16.mxu1 %v15235_v27  ;;  %6742 = vmatprep.subr.bf16.mxu0 %v16104_v54  ;;  %v3964_v27 = vld [vmem:[#allocation4 + $0x8c0] sm:$0xff]  ;;  %v16146_v34 = vcombine.high %v4100_v26, %v4104_v49 }
 0x604   :  { %6906 = vmatprep.subr.bf16.mxu1 %v16107_v10  ;;  %v4096_v10 = vld [vmem:[#allocation4 + $0xce0] sm:$0xff]  ;;  %v16132_v41 = vcombine.high %v3964_v27, %v3968_v16  ;;  %v16140_v14 = vcombine.low %v3964_v27, %v3968_v16 }
 0x605   :  { %v16134_v8 = vcombine.high %v4092_v60, %v4096_v10  ;;  %v16142_v38 = vcombine.low %v4092_v60, %v4096_v10  ;;  %18473 = vst [vmem:[#allocation305_spill] sm:$0xff] %v16146_v34  ;;  %v16154_v60 = vcombine.low %v4100_v26, %v4104_v49 }
 0x606   :  { %18468 = vst [vmem:[#allocation300_spill] sm:$0xff] %v16132_v41  ;;  %18470 = vst [vmem:[#allocation302_spill] sm:$0xff] %v16140_v14 }
 0x607   :  { %18469 = vst [vmem:[#allocation301_spill] sm:$0xff] %v16134_v8  ;;  %18471 = vst [vmem:[#allocation303_spill] sm:$0xff] %v16142_v38 }
 0x608   :  { %18475 = vst [vmem:[#allocation307_spill] sm:$0xff] %v16154_v60 }
 0x609   :  { %6743 = vmatpush1.bf16.xpose.msra.mxu0 %v16116_v51 }
 0x60a   :  { %6907 = vmatpush1.bf16.xpose.msra.mxu1 %v16118_v45  ;;  %6744 = vmatprep.subr.bf16.mxu0 %v16120_v24  ;;  %v3976_v45 = vld [vmem:[#allocation4 + $0x920] sm:$0xff]  ;;  %v4098_v24 = vld [vmem:[#allocation4 + $0xcf0] sm:$0xff] }
 0x60b   :  { %6908 = vmatprep.subr.bf16.mxu1 %v16122_v62  ;;  %v3972_v62 = vld [vmem:[#allocation4 + $0x900] sm:$0xff] }
 0x60c   :  { %v16144_v7 = vcombine.high %v3972_v62, %v3976_v45  ;;  %v16152_v16 = vcombine.low %v3972_v62, %v3976_v45 }
 0x60e   :  { %18472 = vst [vmem:[#allocation304_spill] sm:$0xff] %v16144_v7  ;;  %18474 = vst [vmem:[#allocation306_spill] sm:$0xff] %v16152_v16 }
 0x611   :  { %6745 = vmatpush1.bf16.xpose.msra.mxu0 %v16128_v13  ;;  %v4112_v13 = vld [vmem:[#allocation4 + $0xd60] sm:$0xff] }
 0x612   :  { %6909 = vmatpush1.bf16.xpose.msra.mxu1 %v16130_v22  ;;  %6746 = vmatprep.subr.bf16.mxu0 %v16132_v41  ;;  %v3984_v22 = vld [vmem:[#allocation4 + $0x960] sm:$0xff] }
 0x613   :  { %6910 = vmatprep.subr.bf16.mxu1 %v16134_v8  ;;  %v3980_v8 = vld [vmem:[#allocation4 + $0x940] sm:$0xff] }
 0x614   :  { %v4108_v41 = vld [vmem:[#allocation4 + $0xd40] sm:$0xff]  ;;  %v16156_v10 = vcombine.high %v3980_v8, %v3984_v22  ;;  %v16164_v62 = vcombine.low %v3980_v8, %v3984_v22 }
 0x615   :  { %v16158_v27 = vcombine.high %v4108_v41, %v4112_v13  ;;  %v16166_v26 = vcombine.low %v4108_v41, %v4112_v13 }
 0x616   :  { %18476 = vst [vmem:[#allocation308_spill] sm:$0xff] %v16156_v10  ;;  %18478 = vst [vmem:[#allocation310_spill] sm:$0xff] %v16164_v62 }
 0x617   :  { %18477 = vst [vmem:[#allocation309_spill] sm:$0xff] %v16158_v27  ;;  %18479 = vst [vmem:[#allocation311_spill] sm:$0xff] %v16166_v26 }
 0x619   :  { %6747 = vmatpush1.bf16.xpose.msra.mxu0 %v16140_v14  ;;  %v4120_v14 = vld [vmem:[#allocation4 + $0xda0] sm:$0xff] }
 0x61a   :  { %6911 = vmatpush1.bf16.xpose.msra.mxu1 %v16142_v38  ;;  %6748 = vmatprep.subr.bf16.mxu0 %v16144_v7  ;;  %v3992_v38 = vld [vmem:[#allocation4 + $0x9a0] sm:$0xff] }
 0x61b   :  { %6912 = vmatprep.subr.bf16.mxu1 %v16146_v34  ;;  %v3988_v34 = vld [vmem:[#allocation4 + $0x980] sm:$0xff] }
 0x61c   :  { %v4116_v7 = vld [vmem:[#allocation4 + $0xd80] sm:$0xff]  ;;  %v16168_v45 = vcombine.high %v3988_v34, %v3992_v38  ;;  %v16176_v22 = vcombine.low %v3988_v34, %v3992_v38 }
 0x61d   :  { %v16170_v49 = vcombine.high %v4116_v7, %v4120_v14  ;;  %v16178_v13 = vcombine.low %v4116_v7, %v4120_v14 }
 0x61e   :  { %18480 = vst [vmem:[#allocation312_spill] sm:$0xff] %v16168_v45  ;;  %18482 = vst [vmem:[#allocation314_spill] sm:$0xff] %v16176_v22 }
 0x61f   :  { %18481 = vst [vmem:[#allocation313_spill] sm:$0xff] %v16170_v49  ;;  %18483 = vst [vmem:[#allocation315_spill] sm:$0xff] %v16178_v13 }
 0x621   :  { %6749 = vmatpush1.bf16.xpose.msra.mxu0 %v16152_v16  ;;  %v4128_v16 = vld [vmem:[#allocation4 + $0xde0] sm:$0xff] }
 0x622   :  { %6913 = vmatpush1.bf16.xpose.msra.mxu1 %v16154_v60  ;;  %6750 = vmatprep.subr.bf16.mxu0 %v16156_v10  ;;  %v4000_v60 = vld [vmem:[#allocation4 + $0x9e0] sm:$0xff] }
 0x623   :  { %6914 = vmatprep.subr.bf16.mxu1 %v16158_v27  ;;  %v3996_v27 = vld [vmem:[#allocation4 + $0x9c0] sm:$0xff] }
 0x624   :  { %v4124_v10 = vld [vmem:[#allocation4 + $0xdc0] sm:$0xff]  ;;  %v16180_v41 = vcombine.high %v3996_v27, %v4000_v60  ;;  %v16188_v38 = vcombine.low %v3996_v27, %v4000_v60 }
 0x625   :  { %v16182_v8 = vcombine.high %v4124_v10, %v4128_v16  ;;  %v16190_v14 = vcombine.low %v4124_v10, %v4128_v16 }
 0x626   :  { %18484 = vst [vmem:[#allocation316_spill] sm:$0xff] %v16180_v41  ;;  %18486 = vst [vmem:[#allocation318_spill] sm:$0xff] %v16188_v38 }
 0x627   :  { %18485 = vst [vmem:[#allocation317_spill] sm:$0xff] %v16182_v8  ;;  %18487 = vst [vmem:[#allocation319_spill] sm:$0xff] %v16190_v14 }
 0x629   :  { %6751 = vmatpush1.bf16.xpose.msra.mxu0 %v16164_v62  ;;  %v4073_v62 = vld [vmem:[#allocation4 + $0xc28] sm:$0xff] }
 0x62a   :  { %6915 = vmatpush1.bf16.xpose.msra.mxu1 %v16166_v26  ;;  %6752 = vmatprep.subr.bf16.mxu0 %v16168_v45  ;;  %v4008_v26 = vld [vmem:[#allocation4 + $0xa20] sm:$0xff]  ;;  %v4069_v45 = vld [vmem:[#allocation4 + $0xc08] sm:$0xff] }
 0x62b   :  { %6916 = vmatprep.subr.bf16.mxu1 %v16170_v49  ;;  %v4004_v49 = vld [vmem:[#allocation4 + $0xa00] sm:$0xff]  ;;  %v16194_v34 = vcombine.high %v4069_v45, %v4073_v62  ;;  %v16202_v16 = vcombine.low %v4069_v45, %v4073_v62  ;;  %v4085_v62 = vld [vmem:[#allocation4 + $0xc88] sm:$0xff] }
 0x62c   :  { %v16192_v7 = vcombine.high %v4004_v49, %v4008_v26  ;;  %v16200_v60 = vcombine.low %v4004_v49, %v4008_v26  ;;  %v4020_v26 = vld [vmem:[#allocation4 + $0xa80] sm:$0xff]  ;;  %v4089_v45 = vld [vmem:[#allocation4 + $0xca8] sm:$0xff] }
 0x62d   :  { %18489 = vst [vmem:[#allocation321_spill] sm:$0xff] %v16194_v34  ;;  %18491 = vst [vmem:[#allocation323_spill] sm:$0xff] %v16202_v16  ;;  %v4024_v49 = vld [vmem:[#allocation4 + $0xaa0] sm:$0xff] }
 0x62e   :  { %18488 = vst [vmem:[#allocation320_spill] sm:$0xff] %v16192_v7  ;;  %18490 = vst [vmem:[#allocation322_spill] sm:$0xff] %v16200_v60 }
 0x631   :  { %6753 = vmatpush1.bf16.xpose.msra.mxu0 %v16176_v22  ;;  %v4081_v22 = vld [vmem:[#allocation4 + $0xc68] sm:$0xff] }
 0x632   :  { %6917 = vmatpush1.bf16.xpose.msra.mxu1 %v16178_v13  ;;  %6754 = vmatprep.subr.bf16.mxu0 %v16180_v41  ;;  %v4016_v13 = vld [vmem:[#allocation4 + $0xa60] sm:$0xff]  ;;  %v4077_v41 = vld [vmem:[#allocation4 + $0xc48] sm:$0xff] }
 0x633   :  { %6918 = vmatprep.subr.bf16.mxu1 %v16182_v8  ;;  %v4012_v8 = vld [vmem:[#allocation4 + $0xa40] sm:$0xff]  ;;  %v16206_v27 = vcombine.high %v4077_v41, %v4081_v22 }
 0x634   :  { %v16204_v10 = vcombine.high %v4012_v8, %v4016_v13 }
 0x635   :  { %18493 = vst [vmem:[#allocation325_spill] sm:$0xff] %v16206_v27 }
 0x636   :  { %18492 = vst [vmem:[#allocation324_spill] sm:$0xff] %v16204_v10 }
 0x639   :  { %6755 = vmatpush1.bf16.xpose.msra.mxu0 %v16188_v38  ;;  %v16220_v38 = vcombine.high %v4085_v62, %v4089_v45 }
 0x63a   :  { %6919 = vmatpush1.bf16.xpose.msra.mxu1 %v16190_v14  ;;  %6756 = vmatprep.subr.bf16.mxu0 %v16192_v7  ;;  %v16214_v14 = vcombine.low %v4012_v8, %v4016_v13  ;;  %v16218_v7 = vcombine.high %v4020_v26, %v4024_v49  ;;  %v16226_v13 = vcombine.low %v4020_v26, %v4024_v49 }
 0x63b   :  { %6944 = vmatprep.subr.bf16.mxu1 %v16194_v34  ;;  %v16216_v34 = vcombine.low %v4077_v41, %v4081_v22  ;;  %18497 = vst [vmem:[#allocation329_spill] sm:$0xff] %v16220_v38  ;;  %v16228_v22 = vcombine.low %v4085_v62, %v4089_v45 }
 0x63c   :  { %18494 = vst [vmem:[#allocation326_spill] sm:$0xff] %v16214_v14  ;;  %18496 = vst [vmem:[#allocation328_spill] sm:$0xff] %v16218_v7 }
 0x63d   :  { %18495 = vst [vmem:[#allocation327_spill] sm:$0xff] %v16216_v34  ;;  %18498 = vst [vmem:[#allocation330_spill] sm:$0xff] %v16226_v13 }
 0x63e   :  { %18499 = vst [vmem:[#allocation331_spill] sm:$0xff] %v16228_v22 }
 0x641   :  { %6937 = vmatmul.mubr.bf16.vlgmr.msra.gmra.mrb[12].mxu1 %v15450_v17  ;;  %6757 = vmatpush1.bf16.xpose.msra.mxu0 %v16200_v60  ;;  %v4097_v60 = vld [vmem:[#allocation4 + $0xce8] sm:$0xff] }
 0x642   :  { %6945 = vmatpush1.bf16.xpose.msra.mxu1 %v16202_v16  ;;  %6976 = vmatprep.mubr.bf16.mxu1 %v15456_v39  ;;  %v4032_v16 = vld [vmem:[#allocation4 + $0xae0] sm:$0xff] }
 0x643   :  { %6758 = vmatprep.subr.bf16.mxu0 %v16204_v10  ;;  %6946 = vmatprep.subr.bf16.mxu1 %v16206_v27  ;;  %v4028_v27 = vld [vmem:[#allocation4 + $0xac0] sm:$0xff]  ;;  %v4093_v10 = vld [vmem:[#allocation4 + $0xcc8] sm:$0xff] }
 0x644   :  { %v16230_v41 = vcombine.high %v4028_v27, %v4032_v16  ;;  %v16232_v8 = vcombine.high %v4093_v10, %v4097_v60  ;;  %v16238_v26 = vcombine.low %v4028_v27, %v4032_v16  ;;  %v16240_v49 = vcombine.low %v4093_v10, %v4097_v60 }
 0x646   :  { %18500 = vst [vmem:[#allocation332_spill] sm:$0xff] %v16230_v41  ;;  %18501 = vst [vmem:[#allocation333_spill] sm:$0xff] %v16232_v8 }
 0x647   :  { %18502 = vst [vmem:[#allocation334_spill] sm:$0xff] %v16238_v26  ;;  %18503 = vst [vmem:[#allocation335_spill] sm:$0xff] %v16240_v49 }
 0x649   :  { %6759 = vmatpush1.bf16.xpose.msra.mxu0 %v16214_v14  ;;  %v4105_v14 = vld [vmem:[#allocation4 + $0xd28] sm:$0xff] }
 0x64a   :  { %6947 = vmatpush1.bf16.xpose.msra.mxu1 %v16216_v34  ;;  %6760 = vmatprep.subr.bf16.mxu0 %v16218_v7  ;;  %v4040_v34 = vld [vmem:[#allocation4 + $0xb20] sm:$0xff]  ;;  %v4101_v7 = vld [vmem:[#allocation4 + $0xd08] sm:$0xff] }
 0x64b   :  { %6948 = vmatprep.subr.bf16.mxu1 %v16220_v38  ;;  %v4036_v38 = vld [vmem:[#allocation4 + $0xb00] sm:$0xff]  ;;  %v16244_v45 = vcombine.high %v4101_v7, %v4105_v14  ;;  %v16252_v60 = vcombine.low %v4101_v7, %v4105_v14 }
 0x64c   :  { %v16242_v62 = vcombine.high %v4036_v38, %v4040_v34  ;;  %v16250_v16 = vcombine.low %v4036_v38, %v4040_v34 }
 0x64d   :  { %18505 = vst [vmem:[#allocation337_spill] sm:$0xff] %v16244_v45  ;;  %18507 = vst [vmem:[#allocation339_spill] sm:$0xff] %v16252_v60 }
 0x64e   :  { %18504 = vst [vmem:[#allocation336_spill] sm:$0xff] %v16242_v62  ;;  %18506 = vst [vmem:[#allocation338_spill] sm:$0xff] %v16250_v16 }
 0x651   :  { %6761 = vmatpush1.bf16.xpose.msra.mxu0 %v16226_v13  ;;  %v4113_v13 = vld [vmem:[#allocation4 + $0xd68] sm:$0xff] }
 0x652   :  { %6949 = vmatpush1.bf16.xpose.msra.mxu1 %v16228_v22  ;;  %6762 = vmatprep.subr.bf16.mxu0 %v16230_v41  ;;  %v4048_v22 = vld [vmem:[#allocation4 + $0xb60] sm:$0xff]  ;;  %v4109_v41 = vld [vmem:[#allocation4 + $0xd48] sm:$0xff] }
 0x653   :  { %6950 = vmatprep.subr.bf16.mxu1 %v16232_v8  ;;  %v4044_v8 = vld [vmem:[#allocation4 + $0xb40] sm:$0xff]  ;;  %v16256_v27 = vcombine.high %v4109_v41, %v4113_v13  ;;  %v16264_v14 = vcombine.low %v4109_v41, %v4113_v13 }
 0x654   :  { %v16254_v10 = vcombine.high %v4044_v8, %v4048_v22  ;;  %v16262_v38 = vcombine.low %v4044_v8, %v4048_v22 }
 0x655   :  { %18509 = vst [vmem:[#allocation341_spill] sm:$0xff] %v16256_v27  ;;  %18511 = vst [vmem:[#allocation343_spill] sm:$0xff] %v16264_v14 }
 0x656   :  { %18508 = vst [vmem:[#allocation340_spill] sm:$0xff] %v16254_v10  ;;  %18510 = vst [vmem:[#allocation342_spill] sm:$0xff] %v16262_v38 }
 0x659   :  { %6763 = vmatpush1.bf16.xpose.msra.mxu0 %v16238_v26  ;;  %v4121_v26 = vld [vmem:[#allocation4 + $0xda8] sm:$0xff] }
 0x65a   :  { %6951 = vmatpush1.bf16.xpose.msra.mxu1 %v16240_v49  ;;  %6764 = vmatprep.subr.bf16.mxu0 %v16242_v62  ;;  %v4056_v49 = vld [vmem:[#allocation4 + $0xba0] sm:$0xff]  ;;  %v4117_v62 = vld [vmem:[#allocation4 + $0xd88] sm:$0xff] }
 0x65b   :  { %6952 = vmatprep.subr.bf16.mxu1 %v16244_v45  ;;  %v4052_v45 = vld [vmem:[#allocation4 + $0xb80] sm:$0xff]  ;;  %v16268_v34 = vcombine.high %v4117_v62, %v4121_v26  ;;  %v16276_v13 = vcombine.low %v4117_v62, %v4121_v26 }
 0x65c   :  { %v16266_v7 = vcombine.high %v4052_v45, %v4056_v49  ;;  %v16274_v22 = vcombine.low %v4052_v45, %v4056_v49 }
 0x65d   :  { %18513 = vst [vmem:[#allocation345_spill] sm:$0xff] %v16268_v34  ;;  %18515 = vst [vmem:[#allocation347_spill] sm:$0xff] %v16276_v13 }
 0x65e   :  { %18512 = vst [vmem:[#allocation344_spill] sm:$0xff] %v16266_v7  ;;  %18514 = vst [vmem:[#allocation346_spill] sm:$0xff] %v16274_v22 }
 0x661   :  { %6765 = vmatpush1.bf16.xpose.msra.mxu0 %v16250_v16  ;;  %v4129_v16 = vld [vmem:[#allocation4 + $0xde8] sm:$0xff] }
 0x662   :  { %6953 = vmatpush1.bf16.xpose.msra.mxu1 %v16252_v60  ;;  %6766 = vmatprep.subr.bf16.mxu0 %v16254_v10  ;;  %v4064_v60 = vld [vmem:[#allocation4 + $0xbe0] sm:$0xff]  ;;  %v4125_v10 = vld [vmem:[#allocation4 + $0xdc8] sm:$0xff] }
 0x663   :  { %6954 = vmatprep.subr.bf16.mxu1 %v16256_v27  ;;  %v4060_v27 = vld [vmem:[#allocation4 + $0xbc0] sm:$0xff]  ;;  %v16280_v8 = vcombine.high %v4125_v10, %v4129_v16  ;;  %v16288_v26 = vcombine.low %v4125_v10, %v4129_v16 }
 0x664   :  { %v16278_v41 = vcombine.high %v4060_v27, %v4064_v60  ;;  %v16286_v49 = vcombine.low %v4060_v27, %v4064_v60  ;;  %v4078_v60 = vld [vmem:[#allocation4 + $0xc50] sm:$0xff] }
 0x665   :  { %18517 = vst [vmem:[#allocation349_spill] sm:$0xff] %v16280_v8  ;;  %18519 = vst [vmem:[#allocation351_spill] sm:$0xff] %v16288_v26  ;;  %v4082_v27 = vld [vmem:[#allocation4 + $0xc70] sm:$0xff] }
 0x666   :  { %18516 = vst [vmem:[#allocation348_spill] sm:$0xff] %v16278_v41  ;;  %18518 = vst [vmem:[#allocation350_spill] sm:$0xff] %v16286_v49 }
 0x669   :  { %6767 = vmatpush1.bf16.xpose.msra.mxu0 %v16262_v38  ;;  %v4074_v38 = vld [vmem:[#allocation4 + $0xc30] sm:$0xff] }
 0x66a   :  { %6955 = vmatpush1.bf16.xpose.msra.mxu1 %v16264_v14  ;;  %6768 = vmatprep.subr.bf16.mxu0 %v16266_v7  ;;  %v3945_v14 = vld [vmem:[#allocation4 + $0x828] sm:$0xff]  ;;  %v4070_v7 = vld [vmem:[#allocation4 + $0xc10] sm:$0xff] }
 0x66b   :  { %6956 = vmatprep.subr.bf16.mxu1 %v16268_v34  ;;  %v3941_v34 = vld [vmem:[#allocation4 + $0x808] sm:$0xff]  ;;  %v16292_v45 = vcombine.high %v4070_v7, %v4074_v38  ;;  %v16300_v16 = vcombine.low %v4070_v7, %v4074_v38  ;;  %v4086_v7 = vld [vmem:[#allocation4 + $0xc90] sm:$0xff] }
 0x66c   :  { %v16290_v62 = vcombine.high %v3941_v34, %v3945_v14  ;;  %v3957_v38 = vld [vmem:[#allocation4 + $0x888] sm:$0xff] }
 0x66d   :  { %18521 = vst [vmem:[#allocation353_spill] sm:$0xff] %v16292_v45  ;;  %18523 = vst [vmem:[#allocation355_spill] sm:$0xff] %v16300_v16 }
 0x66e   :  { %18520 = vst [vmem:[#allocation352_spill] sm:$0xff] %v16290_v62 }
 0x671   :  { %6769 = vmatpush1.bf16.xpose.msra.mxu0 %v16274_v22  ;;  %v16305_v22 = vcombine.high %v4078_v60, %v4082_v27 }
 0x672   :  { %6957 = vmatpush1.bf16.xpose.msra.mxu1 %v16276_v13  ;;  %6770 = vmatprep.subr.bf16.mxu0 %v16278_v41  ;;  %v3953_v13 = vld [vmem:[#allocation4 + $0x868] sm:$0xff]  ;;  %v16298_v41 = vcombine.low %v3941_v34, %v3945_v14 }
 0x673   :  { %6958 = vmatprep.subr.bf16.mxu1 %v16280_v8  ;;  %v3949_v8 = vld [vmem:[#allocation4 + $0x848] sm:$0xff]  ;;  %18525 = vst [vmem:[#allocation357_spill] sm:$0xff] %v16305_v22 }
 0x674   :  { %18522 = vst [vmem:[#allocation354_spill] sm:$0xff] %v16298_v41  ;;  %v16302_v10 = vcombine.high %v3949_v8, %v3953_v13  ;;  %v3961_v14 = vld [vmem:[#allocation4 + $0x8a8] sm:$0xff]  ;;  %v16314_v34 = vcombine.low %v3949_v8, %v3953_v13 }
 0x675   :  { %v16326_v13 = vcombine.low %v3957_v38, %v3961_v14 }
 0x676   :  { %18524 = vst [vmem:[#allocation356_spill] sm:$0xff] %v16302_v10  ;;  %18526 = vst [vmem:[#allocation358_spill] sm:$0xff] %v16314_v34 }
 0x677   :  { %18530 = vst [vmem:[#allocation362_spill] sm:$0xff] %v16326_v13 }
 0x679   :  { %6771 = vmatpush1.bf16.xpose.msra.mxu0 %v16286_v49 }
 0x67a   :  { %6959 = vmatpush1.bf16.xpose.msra.mxu1 %v16288_v26  ;;  %6781 = vmatprep.subr.bf16.mxu0 %v16290_v62  ;;  %v16318_v26 = vcombine.high %v3957_v38, %v3961_v14 }
 0x67b   :  { %6984 = vmatprep.subr.bf16.mxu1 %v16292_v45  ;;  %v16316_v45 = vcombine.low %v4078_v60, %v4082_v27 }
 0x67c   :  { %18528 = vst [vmem:[#allocation360_spill] sm:$0xff] %v16318_v26 }
 0x67d   :  { %18527 = vst [vmem:[#allocation359_spill] sm:$0xff] %v16316_v45 }
 0x680   :  { %6773 = vmatmul.mubr.bf16.vlgmr.msra.gmra.mrb[12].mxu0 %v15450_v17  ;;  %v4090_v17 = vld [vmem:[#allocation4 + $0xcb0] sm:$0xff] }
 0x681   :  { %6977 = vmatmul.mubr.bf16.vlgmr.msra.gmra.mrb[12].mxu1 %v15676_v47  ;;  %6782 = vmatpush1.bf16.xpose.msra.mxu0 %v16298_v41  ;;  %v16320_v49 = vcombine.high %v4086_v7, %v4090_v17  ;;  %v16328_v8 = vcombine.low %v4086_v7, %v4090_v17 }
 0x682   :  { %6813 = vmatprep.mubr.bf16.mxu0 %v15456_v39  ;;  %6985 = vmatpush1.bf16.xpose.msra.mxu1 %v16300_v16  ;;  %v3965_v39 = vld [vmem:[#allocation4 + $0x8c8] sm:$0xff]  ;;  %v4094_v16 = vld [vmem:[#allocation4 + $0xcd0] sm:$0xff] }
 0x683   :  { %7016 = vmatprep.mubr.bf16.mxu1 %v15682_v43  ;;  %6783 = vmatprep.subr.bf16.mxu0 %v16302_v10  ;;  %18529 = vst [vmem:[#allocation361_spill] sm:$0xff] %v16320_v49  ;;  %18531 = vst [vmem:[#allocation363_spill] sm:$0xff] %v16328_v8  ;;  %v16332_v27 = vcombine.high %v4094_v16, %v4098_v24  ;;  %v16340_v14 = vcombine.low %v4094_v16, %v4098_v24 }
 0x684   :  { %6986 = vmatprep.subr.bf16.mxu1 %v16305_v22  ;;  %v3969_v22 = vld [vmem:[#allocation4 + $0x8e8] sm:$0xff] }
 0x685   :  { %v16330_v60 = vcombine.high %v3965_v39, %v3969_v22  ;;  %18533 = vst [vmem:[#allocation365_spill] sm:$0xff] %v16332_v27  ;;  %v16338_v38 = vcombine.low %v3965_v39, %v3969_v22  ;;  %18535 = vst [vmem:[#allocation367_spill] sm:$0xff] %v16340_v14 }
 0x687   :  { %18532 = vst [vmem:[#allocation364_spill] sm:$0xff] %v16330_v60  ;;  %18534 = vst [vmem:[#allocation366_spill] sm:$0xff] %v16338_v38 }
 0x689   :  { %6784 = vmatpush1.bf16.xpose.msra.mxu0 %v16314_v34  ;;  %v4106_v34 = vld [vmem:[#allocation4 + $0xd30] sm:$0xff] }
 0x68a   :  { %6987 = vmatpush1.bf16.xpose.msra.mxu1 %v16316_v45  ;;  %6785 = vmatprep.subr.bf16.mxu0 %v16318_v26  ;;  %v3977_v45 = vld [vmem:[#allocation4 + $0x928] sm:$0xff]  ;;  %v4102_v26 = vld [vmem:[#allocation4 + $0xd10] sm:$0xff] }
 0x68b   :  { %6988 = vmatprep.subr.bf16.mxu1 %v16320_v49  ;;  %v3973_v49 = vld [vmem:[#allocation4 + $0x908] sm:$0xff]  ;;  %v16344_v17 = vcombine.high %v4102_v26, %v4106_v34  ;;  %v16352_v24 = vcombine.low %v4102_v26, %v4106_v34 }
 0x68c   :  { %v16342_v7 = vcombine.high %v3973_v49, %v3977_v45  ;;  %v16350_v22 = vcombine.low %v3973_v49, %v3977_v45 }
 0x68d   :  { %18537 = vst [vmem:[#allocation369_spill] sm:$0xff] %v16344_v17  ;;  %18539 = vst [vmem:[#allocation371_spill] sm:$0xff] %v16352_v24 }
 0x68e   :  { %18536 = vst [vmem:[#allocation368_spill] sm:$0xff] %v16342_v7  ;;  %18538 = vst [vmem:[#allocation370_spill] sm:$0xff] %v16350_v22 }
 0x691   :  { %6786 = vmatpush1.bf16.xpose.msra.mxu0 %v16326_v13  ;;  %v4114_v13 = vld [vmem:[#allocation4 + $0xd70] sm:$0xff] }
 0x692   :  { %6989 = vmatpush1.bf16.xpose.msra.mxu1 %v16328_v8  ;;  %6787 = vmatprep.subr.bf16.mxu0 %v16330_v60  ;;  %v3985_v8 = vld [vmem:[#allocation4 + $0x968] sm:$0xff]  ;;  %v4110_v60 = vld [vmem:[#allocation4 + $0xd50] sm:$0xff] }
 0x693   :  { %6990 = vmatprep.subr.bf16.mxu1 %v16332_v27  ;;  %v3981_v27 = vld [vmem:[#allocation4 + $0x948] sm:$0xff]  ;;  %v16356_v39 = vcombine.high %v4110_v60, %v4114_v13  ;;  %v16364_v26 = vcombine.low %v4110_v60, %v4114_v13 }
 0x694   :  { %v16354_v16 = vcombine.high %v3981_v27, %v3985_v8  ;;  %v16362_v49 = vcombine.low %v3981_v27, %v3985_v8 }
 0x695   :  { %18541 = vst [vmem:[#allocation373_spill] sm:$0xff] %v16356_v39  ;;  %18543 = vst [vmem:[#allocation375_spill] sm:$0xff] %v16364_v26 }
 0x696   :  { %18540 = vst [vmem:[#allocation372_spill] sm:$0xff] %v16354_v16  ;;  %18542 = vst [vmem:[#allocation374_spill] sm:$0xff] %v16362_v49 }
 0x699   :  { %6788 = vmatpush1.bf16.xpose.msra.mxu0 %v16338_v38  ;;  %v4122_v38 = vld [vmem:[#allocation4 + $0xdb0] sm:$0xff] }
 0x69a   :  { %6991 = vmatpush1.bf16.xpose.msra.mxu1 %v16340_v14  ;;  %6789 = vmatprep.subr.bf16.mxu0 %v16342_v7  ;;  %v3993_v14 = vld [vmem:[#allocation4 + $0x9a8] sm:$0xff]  ;;  %v4118_v7 = vld [vmem:[#allocation4 + $0xd90] sm:$0xff] }
 0x69b   :  { %6992 = vmatprep.subr.bf16.mxu1 %v16344_v17  ;;  %v3989_v17 = vld [vmem:[#allocation4 + $0x988] sm:$0xff]  ;;  %v16368_v34 = vcombine.high %v4118_v7, %v4122_v38  ;;  %v16376_v13 = vcombine.low %v4118_v7, %v4122_v38 }
 0x69c   :  { %v16366_v45 = vcombine.high %v3989_v17, %v3993_v14  ;;  %v16374_v8 = vcombine.low %v3989_v17, %v3993_v14 }
 0x69d   :  { %18545 = vst [vmem:[#allocation377_spill] sm:$0xff] %v16368_v34  ;;  %18547 = vst [vmem:[#allocation379_spill] sm:$0xff] %v16376_v13 }
 0x69e   :  { %18544 = vst [vmem:[#allocation376_spill] sm:$0xff] %v16366_v45  ;;  %18546 = vst [vmem:[#allocation378_spill] sm:$0xff] %v16374_v8 }
 0x6a1   :  { %6790 = vmatpush1.bf16.xpose.msra.mxu0 %v16350_v22  ;;  %v4130_v22 = vld [vmem:[#allocation4 + $0xdf0] sm:$0xff] }
 0x6a2   :  { %6993 = vmatpush1.bf16.xpose.msra.mxu1 %v16352_v24  ;;  %6791 = vmatprep.subr.bf16.mxu0 %v16354_v16  ;;  %v4001_v24 = vld [vmem:[#allocation4 + $0x9e8] sm:$0xff]  ;;  %v4126_v16 = vld [vmem:[#allocation4 + $0xdd0] sm:$0xff] }
 0x6a3   :  { %6994 = vmatprep.subr.bf16.mxu1 %v16356_v39  ;;  %v3997_v39 = vld [vmem:[#allocation4 + $0x9c8] sm:$0xff]  ;;  %v16380_v27 = vcombine.high %v4126_v16, %v4130_v22  ;;  %v16388_v38 = vcombine.low %v4126_v16, %v4130_v22 }
 0x6a4   :  { %v16378_v60 = vcombine.high %v3997_v39, %v4001_v24  ;;  %v16386_v14 = vcombine.low %v3997_v39, %v4001_v24 }
 0x6a5   :  { %18549 = vst [vmem:[#allocation381_spill] sm:$0xff] %v16380_v27  ;;  %18551 = vst [vmem:[#allocation383_spill] sm:$0xff] %v16388_v38 }
 0x6a6   :  { %18548 = vst [vmem:[#allocation380_spill] sm:$0xff] %v16378_v60  ;;  %18550 = vst [vmem:[#allocation382_spill] sm:$0xff] %v16386_v14 }
 0x6a9   :  { %6792 = vmatpush1.bf16.xpose.msra.mxu0 %v16362_v49  ;;  %v4075_v49 = vld [vmem:[#allocation4 + $0xc38] sm:$0xff] }
 0x6aa   :  { %6995 = vmatpush1.bf16.xpose.msra.mxu1 %v16364_v26  ;;  %6793 = vmatprep.subr.bf16.mxu0 %v16366_v45  ;;  %v4009_v26 = vld [vmem:[#allocation4 + $0xa28] sm:$0xff]  ;;  %v4071_v45 = vld [vmem:[#allocation4 + $0xc18] sm:$0xff] }
 0x6ab   :  { %6996 = vmatprep.subr.bf16.mxu1 %v16368_v34  ;;  %v4005_v34 = vld [vmem:[#allocation4 + $0xa08] sm:$0xff]  ;;  %v16392_v17 = vcombine.high %v4071_v45, %v4075_v49  ;;  %v16400_v22 = vcombine.low %v4071_v45, %v4075_v49  ;;  %v4087_v49 = vld [vmem:[#allocation4 + $0xc98] sm:$0xff] }
 0x6ac   :  { %v16390_v7 = vcombine.high %v4005_v34, %v4009_v26  ;;  %v16398_v24 = vcombine.low %v4005_v34, %v4009_v26  ;;  %v4021_v26 = vld [vmem:[#allocation4 + $0xa88] sm:$0xff]  ;;  %v4091_v45 = vld [vmem:[#allocation4 + $0xcb8] sm:$0xff] }
 0x6ad   :  { %18553 = vst [vmem:[#allocation385_spill] sm:$0xff] %v16392_v17  ;;  %18555 = vst [vmem:[#allocation387_spill] sm:$0xff] %v16400_v22  ;;  %v4025_v34 = vld [vmem:[#allocation4 + $0xaa8] sm:$0xff] }
 0x6ae   :  { %18552 = vst [vmem:[#allocation384_spill] sm:$0xff] %v16390_v7  ;;  %18554 = vst [vmem:[#allocation386_spill] sm:$0xff] %v16398_v24 }
 0x6b1   :  { %6794 = vmatpush1.bf16.xpose.msra.mxu0 %v16374_v8  ;;  %v4083_v8 = vld [vmem:[#allocation4 + $0xc78] sm:$0xff] }
 0x6b2   :  { %6997 = vmatpush1.bf16.xpose.msra.mxu1 %v16376_v13  ;;  %6795 = vmatprep.subr.bf16.mxu0 %v16378_v60  ;;  %v4017_v13 = vld [vmem:[#allocation4 + $0xa68] sm:$0xff]  ;;  %v4079_v60 = vld [vmem:[#allocation4 + $0xc58] sm:$0xff] }
 0x6b3   :  { %6998 = vmatprep.subr.bf16.mxu1 %v16380_v27  ;;  %v4013_v27 = vld [vmem:[#allocation4 + $0xa48] sm:$0xff]  ;;  %v16404_v39 = vcombine.high %v4079_v60, %v4083_v8 }
 0x6b4   :  { %v16402_v16 = vcombine.high %v4013_v27, %v4017_v13 }
 0x6b5   :  { %18557 = vst [vmem:[#allocation389_spill] sm:$0xff] %v16404_v39 }
 0x6b6   :  { %18556 = vst [vmem:[#allocation388_spill] sm:$0xff] %v16402_v16 }
 0x6b9   :  { %6796 = vmatpush1.bf16.xpose.msra.mxu0 %v16386_v14  ;;  %v16418_v14 = vcombine.high %v4087_v49, %v4091_v45 }
 0x6ba   :  { %6999 = vmatpush1.bf16.xpose.msra.mxu1 %v16388_v38  ;;  %6797 = vmatprep.subr.bf16.mxu0 %v16390_v7  ;;  %v16412_v38 = vcombine.low %v4013_v27, %v4017_v13  ;;  %v16416_v7 = vcombine.high %v4021_v26, %v4025_v34  ;;  %v16424_v13 = vcombine.low %v4021_v26, %v4025_v34 }
 0x6bb   :  { %7024 = vmatprep.subr.bf16.mxu1 %v16392_v17  ;;  %v16414_v17 = vcombine.low %v4079_v60, %v4083_v8  ;;  %18561 = vst [vmem:[#allocation393_spill] sm:$0xff] %v16418_v14  ;;  %v16426_v8 = vcombine.low %v4087_v49, %v4091_v45  ;;  %v4103_v49 = vld [vmem:[#allocation4 + $0xd18] sm:$0xff] }
 0x6bc   :  { %18558 = vst [vmem:[#allocation390_spill] sm:$0xff] %v16412_v38  ;;  %18560 = vst [vmem:[#allocation392_spill] sm:$0xff] %v16416_v7  ;;  %v4107_v45 = vld [vmem:[#allocation4 + $0xd38] sm:$0xff] }
 0x6bd   :  { %18559 = vst [vmem:[#allocation391_spill] sm:$0xff] %v16414_v17  ;;  %18562 = vst [vmem:[#allocation394_spill] sm:$0xff] %v16424_v13 }
 0x6be   :  { %18563 = vst [vmem:[#allocation395_spill] sm:$0xff] %v16426_v8 }
 0x6c1   :  { %7017 = vmatmul.mubr.bf16.vlgmr.msra.gmra.mrb[12].mxu1 %v15891_v0  ;;  %6798 = vmatpush1.bf16.xpose.msra.mxu0 %v16398_v24  ;;  %v4099_v24 = vld [vmem:[#allocation4 + $0xcf8] sm:$0xff] }
 0x6c2   :  { %7025 = vmatpush1.bf16.xpose.msra.mxu1 %v16400_v22  ;;  %7056 = vmatprep.mubr.bf16.mxu1 %v15897_v19  ;;  %v4033_v22 = vld [vmem:[#allocation4 + $0xae8] sm:$0xff] }
 0x6c3   :  { %6799 = vmatprep.subr.bf16.mxu0 %v16402_v16  ;;  %7026 = vmatprep.subr.bf16.mxu1 %v16404_v39  ;;  %v4029_v39 = vld [vmem:[#allocation4 + $0xac8] sm:$0xff]  ;;  %v4095_v16 = vld [vmem:[#allocation4 + $0xcd8] sm:$0xff] }
 0x6c4   :  { %v16428_v60 = vcombine.high %v4029_v39, %v4033_v22  ;;  %v16430_v27 = vcombine.high %v4095_v16, %v4099_v24  ;;  %v16442_v10 = vcombine.low %v4029_v39, %v4033_v22  ;;  %v16444_v54 = vcombine.low %v4095_v16, %v4099_v24  ;;  %v4049_v22 = vld [vmem:[#allocation4 + $0xb68] sm:$0xff]  ;;  %v4111_v39 = vld [vmem:[#allocation4 + $0xd58] sm:$0xff] }
 0x6c5   :  { %v16456_v24 = vcombine.low %v4103_v49, %v4107_v45 }
 0x6c6   :  { %18564 = vst [vmem:[#allocation396_spill] sm:$0xff] %v16428_v60  ;;  %18565 = vst [vmem:[#allocation397_spill] sm:$0xff] %v16430_v27 }
 0x6c7   :  { %18566 = vst [vmem:[#allocation398_spill] sm:$0xff] %v16442_v10  ;;  %18567 = vst [vmem:[#allocation399_spill] sm:$0xff] %v16444_v54 }
 0x6c8   :  { %18571 = vst [vmem:[#allocation403_spill] sm:$0xff] %v16456_v24 }
 0x6c9   :  { %6800 = vmatpush1.bf16.xpose.msra.mxu0 %v16412_v38 }
 0x6ca   :  { %7027 = vmatpush1.bf16.xpose.msra.mxu1 %v16414_v17  ;;  %6801 = vmatprep.subr.bf16.mxu0 %v16416_v7  ;;  %v4041_v7 = vld [vmem:[#allocation4 + $0xb28] sm:$0xff] }
 0x6cb   :  { %7028 = vmatprep.subr.bf16.mxu1 %v16418_v14  ;;  %v4037_v14 = vld [vmem:[#allocation4 + $0xb08] sm:$0xff] }
 0x6d1   :  { %6802 = vmatpush1.bf16.xpose.msra.mxu0 %v16424_v13 }
 0x6d2   :  { %7029 = vmatpush1.bf16.xpose.msra.mxu1 %v16426_v8  ;;  %6803 = vmatprep.subr.bf16.mxu0 %v16428_v60  ;;  %v16446_v60 = vcombine.high %v4037_v14, %v4041_v7 }
 0x6d3   :  { %v16435_v17 = vpop.f32.mrb[8].mxu0  ;;  %7030 = vmatprep.subr.bf16.mxu1 %v16430_v27  ;;  %v16448_v27 = vcombine.high %v4103_v49, %v4107_v45 }
 0x6d4   :  { %v16438_v26 = vpop.f32.mrb[8].mxu1  ;;  %v6571_v34 = vpop.f32.mrb[9].mxu0  ;;  %18568 = vst [vmem:[#allocation400_spill] sm:$0xff] %v16446_v60 }
 0x6d5   :  { %v16440_v38 = vpop.f32.mrb[9].mxu1  ;;  %v6573_v51 = vpop.f32.mrb[10].mxu0  ;;  %18569 = vst [vmem:[#allocation401_spill] sm:$0xff] %v16448_v27 }
 0x6d6   :  { %v6737_v13 = vpop.f32.mrb[10].mxu1  ;;  %v6574_v8 = vpop.f32.mrb[11].mxu0  ;;  %v4045_v51 = vld [vmem:[#allocation4 + $0xb48] sm:$0xff] }
 0x6d7   :  { %v6738_v41 = vpop.f32.mrb[11].mxu1  ;;  %v4115_v13 = vld [vmem:[#allocation4 + $0xd78] sm:$0xff]  ;;  %v16454_v8 = vcombine.low %v4037_v14, %v4041_v7  ;;  %v16458_v16 = vcombine.high %v4045_v51, %v4049_v22  ;;  %v16466_v14 = vcombine.low %v4045_v51, %v4049_v22 }
 0x6d8   :  { %v16460_v41 = vcombine.high %v4111_v39, %v4115_v13  ;;  %v16468_v7 = vcombine.low %v4111_v39, %v4115_v13  ;;  %v4133_v22 = vld [vmem:[#allocation12 + $0x1] ss:$8 sm:$0xf] }
 0x6d9   :  { %6804 = vmatpush1.bf16.xpose.msra.mxu0 %v16442_v10  ;;  %18570 = vst [vmem:[#allocation402_spill] sm:$0xff] %v16454_v8  ;;  %18572 = vst [vmem:[#allocation404_spill] sm:$0xff] %v16458_v16  ;;  %v4123_v10 = vld [vmem:[#allocation4 + $0xdb8] sm:$0xff] }
 0x6da   :  { %7031 = vmatpush1.bf16.xpose.msra.mxu1 %v16444_v54  ;;  %6805 = vmatprep.subr.bf16.mxu0 %v16446_v60  ;;  %18573 = vst [vmem:[#allocation405_spill] sm:$0xff] %v16460_v41  ;;  %v4057_v54 = vld [vmem:[#allocation4 + $0xba8] sm:$0xff]  ;;  %v4119_v60 = vld [vmem:[#allocation4 + $0xd98] sm:$0xff]  ;;  %18574 = vst [vmem:[#allocation406_spill] sm:$0xff] %v16466_v14 }
 0x6db   :  { %7032 = vmatprep.subr.bf16.mxu1 %v16448_v27  ;;  %v4053_v27 = vld [vmem:[#allocation4 + $0xb88] sm:$0xff]  ;;  %18575 = vst [vmem:[#allocation407_spill] sm:$0xff] %v16468_v7  ;;  %v16472_v45 = vcombine.high %v4119_v60, %v4123_v10  ;;  %v16480_v13 = vcombine.low %v4119_v60, %v4123_v10 }
 0x6dc   :  { %v16470_v49 = vcombine.high %v4053_v27, %v4057_v54  ;;  %v16478_v51 = vcombine.low %v4053_v27, %v4057_v54  ;;  %v4134_v39 = vld [vmem:[#allocation12 + $0x1] ss:$8 sm:$0xf0] }
 0x6dd   :  { %18577 = vst [vmem:[#allocation409_spill] sm:$0xff] %v16472_v45  ;;  %18579 = vst [vmem:[#allocation411_spill] sm:$0xff] %v16480_v13  ;;  %v3942_v54 = vld [vmem:[#allocation4 + $0x810] sm:$0xff] }
 0x6de   :  { %18576 = vst [vmem:[#allocation408_spill] sm:$0xff] %v16470_v49  ;;  %18578 = vst [vmem:[#allocation410_spill] sm:$0xff] %v16478_v51  ;;  %v3946_v27 = vld [vmem:[#allocation4 + $0x830] sm:$0xff] }
 0x6e1   :  { %6806 = vmatpush1.bf16.xpose.msra.mxu0 %v16454_v8  ;;  %v4131_v8 = vld [vmem:[#allocation4 + $0xdf8] sm:$0xff] }
 0x6e2   :  { %7033 = vmatpush1.bf16.xpose.msra.mxu1 %v16456_v24  ;;  %6807 = vmatprep.subr.bf16.mxu0 %v16458_v16  ;;  %v4065_v24 = vld [vmem:[#allocation4 + $0xbe8] sm:$0xff]  ;;  %v4127_v16 = vld [vmem:[#allocation4 + $0xdd8] sm:$0xff] }
 0x6e3   :  { %7034 = vmatprep.subr.bf16.mxu1 %v16460_v41  ;;  %v4061_v41 = vld [vmem:[#allocation4 + $0xbc8] sm:$0xff]  ;;  %v16484_v62 = vcombine.high %v4127_v16, %v4131_v8 }
 0x6e4   :  { %v16482_v59 = vcombine.high %v4061_v41, %v4065_v24  ;;  %v16496_v60 = vcombine.low %v4061_v41, %v4065_v24  ;;  %v13732_v24 = vld [vmem:[#allocation6] ss:$28 sps:$4 sm:$0xff]  }
 0x6e5   :  { %18581 = vst [vmem:[#allocation413_spill] sm:$0xff] %v16484_v62 }
 0x6e6   :  { %18580 = vst [vmem:[#allocation412_spill] sm:$0xff] %v16482_v59  ;;  %18583 = vst [vmem:[#allocation415_spill] sm:$0xff] %v16496_v60 }
 0x6e9   :  { %6808 = vmatpush1.bf16.xpose.msra.mxu0 %v16466_v14  ;;  %v16486_v14 = vor.u32 %v4134_v39, %v4133_v22  ;;  %v16500_v22 = vcombine.high %v3942_v54, %v3946_v27  ;;  %v13734_v39 = vld [vmem:[#allocation6 + $0x4] ss:$28 sps:$4 sm:$0xff]  }
 0x6ea   :  { %7035 = vmatpush1.bf16.xpose.msra.mxu1 %v16468_v7  ;;  %6809 = vmatprep.subr.bf16.mxu0 %v16470_v49 }
 0x6eb   :  { %7036 = vmatprep.subr.bf16.mxu1 %v16472_v45  ;;  %v16494_v10 = vrot.slane %v16486_v14, %v15217_v50  ;;  %v16498_v45 = vcombine.low %v4127_v16, %v4131_v8  ;;  %18585 = vst [vmem:[#allocation417_spill] sm:$0xff] %v16500_v22  ;;  %v13737_v16 = vld [vmem:[#allocation6 + $0x3c] ss:$28 sps:$4 sm:$0xff]  }
 0x6ec   :  { %v16878_v50 = vld [vmem:[#allocation7 + $0x4c] ss:$16 sps:$4 sm:$0xff]  }
 0x6ed   :  { %18582 = vst [vmem:[#allocation414_spill] sm:$0xff] %v16494_v10  ;;  %18584 = vst [vmem:[#allocation416_spill] sm:$0xff] %v16498_v45  ;;  %v12816_v7 = vadd.f32 %v6571_v34, %v16494_v10  ;;  %v3958_v34 = vld [vmem:[#allocation4 + $0x890] sm:$0xff] }
 0x6ee   :  { %v16846_v10 = vld [vmem:[#allocation6 + $0x4b0] ss:$28 sps:$4 sm:$0xff]  }
 0x6ef   :  { %18662 = vst [vmem:[#allocation494_spill] sm:$0xff] %v16846_v10 }
 0x6f1   :  { %6810 = vmatpush1.bf16.xpose.msra.mxu0 %v16478_v51  ;;  %v16506_v51 = vcombine.low %v3942_v54, %v3946_v27 }
 0x6f2   :  { %7037 = vmatpush1.bf16.xpose.msra.mxu1 %v16480_v13  ;;  %6811 = vmatprep.subr.bf16.mxu0 %v16482_v59  ;;  %v3954_v13 = vld [vmem:[#allocation4 + $0x870] sm:$0xff]  ;;  %v7065_v59 = vmax.f32 %v12816_v7, 0.0 }
 0x6f3   :  { %7038 = vmatprep.subr.bf16.mxu1 %v16484_v62  ;;  %v3950_v62 = vld [vmem:[#allocation4 + $0x850] sm:$0xff]  ;;  %18586 = vst [vmem:[#allocation418_spill] sm:$0xff] %v16506_v51 }
 0x6f4   :  { %v16508_v8 = vcombine.high %v3950_v62, %v3954_v13  ;;  %v16511_v41 = vpack.c.bf16 %v7065_v59, %v7065_v59  ;;  %v3962_v7 = vld [vmem:[#allocation4 + $0x8b0] sm:$0xff]  ;;  %v16518_v54 = vcombine.low %v3950_v62, %v3954_v13 }
 0x6f5   :  { %v16520_v27 = vcombine.high %v3958_v34, %v3962_v7  ;;  %v13740_v59 = vld [vmem:[#allocation6 + $0x74] ss:$28 sps:$4 sm:$0xff]  }
 0x6f6   :  { %18587 = vst [vmem:[#allocation419_spill] sm:$0xff] %v16508_v8  ;;  %18588 = vst [vmem:[#allocation420_spill] sm:$0xff] %v16518_v54  ;;  %v3974_v62 = vld [vmem:[#allocation4 + $0x910] sm:$0xff] }
 0x6f7   :  { %18589 = vst [vmem:[#allocation421_spill] sm:$0xff] %v16520_v27  ;;  %v3978_v13 = vld [vmem:[#allocation4 + $0x930] sm:$0xff] }
 0x6f9   :  { %6812 = vmatpush1.bf16.xpose.msra.mxu0 %v16496_v60 }
 0x6fa   :  { %7039 = vmatpush1.bf16.xpose.msra.mxu1 %v16498_v45  ;;  %6822 = vmatprep.subr.bf16.mxu0 %v16500_v22  ;;  %v13738_v45 = vld [vmem:[#allocation6 + $0x70] ss:$28 sps:$4 sm:$0xff]   ;;  %v13780_v22 = vld [vmem:[#allocation6 + $0x8] ss:$28 sps:$4 sm:$0xff]  }
 0x6fb   :  { %8509 = vmatprep.subr.bf16.mxu1 %v13734_v39  ;;  %v3970_v39 = vld [vmem:[#allocation4 + $0x8f0] sm:$0xff] }
 0x700   :  { %6814 = vmatmul.mubr.bf16.vlgmr.msra.gmra.mrb[12].mxu0 %v15676_v47  ;;  %v13735_v47 = vld [vmem:[#allocation6 + $0x38] ss:$28 sps:$4 sm:$0xff]  }
 0x701   :  { %7057 = vmatmul.mubr.bf16.vlgmr.msra.gmra.mrb[12].mxu1 %v16100_v4  ;;  %6823 = vmatpush1.bf16.xpose.msra.mxu0 %v16506_v51 }
 0x702   :  { %6854 = vmatprep.mubr.bf16.mxu0 %v15682_v43  ;;  %8510 = vmatpush1.bf16.xpose.msra.mxu1 %v13732_v24  ;;  %v3966_v43 = vld [vmem:[#allocation4 + $0x8d0] sm:$0xff]  ;;  %v16524_v24 = vcombine.low %v3958_v34, %v3962_v7 }
 0x703   :  { %8541 = vmatprep.mubr.bf16.mxu1 %v16511_v41  ;;  %6824 = vmatprep.subr.bf16.mxu0 %v16508_v8  ;;  %v16526_v8 = vcombine.high %v3966_v43, %v3970_v39  ;;  %v3982_v34 = vld [vmem:[#allocation4 + $0x950] sm:$0xff] }
 0x704   :  { %8511 = vmatprep.subr.bf16.mxu1 %v13737_v16  ;;  %18590 = vst [vmem:[#allocation422_spill] sm:$0xff] %v16524_v24  ;;  %v13743_v16 = vld [vmem:[#allocation6 + $0xac] ss:$28 sps:$4 sm:$0xff]   ;;  %v3986_v7 = vld [vmem:[#allocation4 + $0x970] sm:$0xff] }
 0x705   :  { %18591 = vst [vmem:[#allocation423_spill] sm:$0xff] %v16526_v8 }
 0x709   :  { %6825 = vmatpush1.bf16.xpose.msra.mxu0 %v16518_v54  ;;  %v13746_v54 = vld [vmem:[#allocation6 + $0xe4] ss:$28 sps:$4 sm:$0xff]  }
 0x70a   :  { %8512 = vmatpush1.bf16.xpose.msra.mxu1 %v13735_v47  ;;  %6826 = vmatprep.subr.bf16.mxu0 %v16520_v27  ;;  %v16530_v47 = vcombine.low %v3966_v43, %v3970_v39  ;;  %v13741_v27 = vld [vmem:[#allocation6 + $0xa8] ss:$28 sps:$4 sm:$0xff]   ;;  %v3990_v43 = vld [vmem:[#allocation4 + $0x990] sm:$0xff] }
 0x70b   :  { %8513 = vmatprep.subr.bf16.mxu1 %v13740_v59  ;;  %v16532_v59 = vcombine.high %v3974_v62, %v3978_v13  ;;  %v3994_v39 = vld [vmem:[#allocation4 + $0x9b0] sm:$0xff] }
 0x70c   :  { %18592 = vst [vmem:[#allocation424_spill] sm:$0xff] %v16530_v47 }
 0x70d   :  { %18593 = vst [vmem:[#allocation425_spill] sm:$0xff] %v16532_v59 }
 0x711   :  { %6827 = vmatpush1.bf16.xpose.msra.mxu0 %v16524_v24  ;;  %v13749_v24 = vld [vmem:[#allocation6 + $0x11c] ss:$28 sps:$4 sm:$0xff]  }
 0x712   :  { %8514 = vmatpush1.bf16.xpose.msra.mxu1 %v13738_v45  ;;  %6828 = vmatprep.subr.bf16.mxu0 %v16526_v8  ;;  %v16536_v45 = vcombine.low %v3974_v62, %v3978_v13  ;;  %v13744_v8 = vld [vmem:[#allocation6 + $0xe0] ss:$28 sps:$4 sm:$0xff]   ;;  %v3998_v62 = vld [vmem:[#allocation4 + $0x9d0] sm:$0xff] }
 0x713   :  { %8515 = vmatprep.subr.bf16.mxu1 %v13743_v16  ;;  %v16538_v16 = vcombine.high %v3982_v34, %v3986_v7  ;;  %v4002_v13 = vld [vmem:[#allocation4 + $0x9f0] sm:$0xff] }
 0x714   :  { %18594 = vst [vmem:[#allocation426_spill] sm:$0xff] %v16536_v45 }
 0x715   :  { %18595 = vst [vmem:[#allocation427_spill] sm:$0xff] %v16538_v16 }
 0x719   :  { %6829 = vmatpush1.bf16.xpose.msra.mxu0 %v16530_v47  ;;  %v13752_v47 = vld [vmem:[#allocation6 + $0x154] ss:$28 sps:$4 sm:$0xff]  }
 0x71a   :  { %8516 = vmatpush1.bf16.xpose.msra.mxu1 %v13741_v27  ;;  %6830 = vmatprep.subr.bf16.mxu0 %v16532_v59  ;;  %v16542_v27 = vcombine.low %v3982_v34, %v3986_v7  ;;  %v13747_v59 = vld [vmem:[#allocation6 + $0x118] ss:$28 sps:$4 sm:$0xff]  }
 0x71b   :  { %8517 = vmatprep.subr.bf16.mxu1 %v13746_v54  ;;  %v16544_v54 = vcombine.high %v3990_v43, %v3994_v39  ;;  %v4006_v34 = vld [vmem:[#allocation4 + $0xa10] sm:$0xff] }
 0x71c   :  { %18596 = vst [vmem:[#allocation428_spill] sm:$0xff] %v16542_v27  ;;  %v4010_v7 = vld [vmem:[#allocation4 + $0xa30] sm:$0xff] }
 0x71d   :  { %18597 = vst [vmem:[#allocation429_spill] sm:$0xff] %v16544_v54 }
 0x721   :  { %6831 = vmatpush1.bf16.xpose.msra.mxu0 %v16536_v45  ;;  %v13755_v45 = vld [vmem:[#allocation6 + $0x18c] ss:$28 sps:$4 sm:$0xff]  }
 0x722   :  { %8518 = vmatpush1.bf16.xpose.msra.mxu1 %v13744_v8  ;;  %6832 = vmatprep.subr.bf16.mxu0 %v16538_v16  ;;  %v16548_v8 = vcombine.low %v3990_v43, %v3994_v39  ;;  %v13750_v16 = vld [vmem:[#allocation6 + $0x150] ss:$28 sps:$4 sm:$0xff]  }
 0x723   :  { %8519 = vmatprep.subr.bf16.mxu1 %v13749_v24  ;;  %v16550_v24 = vcombine.high %v3998_v62, %v4002_v13  ;;  %v4014_v43 = vld [vmem:[#allocation4 + $0xa50] sm:$0xff] }
 0x724   :  { %18598 = vst [vmem:[#allocation430_spill] sm:$0xff] %v16548_v8  ;;  %v4018_v39 = vld [vmem:[#allocation4 + $0xa70] sm:$0xff] }
 0x725   :  { %18599 = vst [vmem:[#allocation431_spill] sm:$0xff] %v16550_v24 }
 0x729   :  { %6833 = vmatpush1.bf16.xpose.msra.mxu0 %v16542_v27  ;;  %v13758_v27 = vld [vmem:[#allocation6 + $0x1c4] ss:$28 sps:$4 sm:$0xff]  }
 0x72a   :  { %8520 = vmatpush1.bf16.xpose.msra.mxu1 %v13747_v59  ;;  %6834 = vmatprep.subr.bf16.mxu0 %v16544_v54  ;;  %v16554_v59 = vcombine.low %v3998_v62, %v4002_v13  ;;  %v13753_v54 = vld [vmem:[#allocation6 + $0x188] ss:$28 sps:$4 sm:$0xff]   ;;  %v4022_v62 = vld [vmem:[#allocation4 + $0xa90] sm:$0xff] }
 0x72b   :  { %8521 = vmatprep.subr.bf16.mxu1 %v13752_v47  ;;  %v16556_v47 = vcombine.high %v4006_v34, %v4010_v7  ;;  %v4026_v13 = vld [vmem:[#allocation4 + $0xab0] sm:$0xff] }
 0x72c   :  { %18600 = vst [vmem:[#allocation432_spill] sm:$0xff] %v16554_v59 }
 0x72d   :  { %18601 = vst [vmem:[#allocation433_spill] sm:$0xff] %v16556_v47 }
 0x731   :  { %6835 = vmatpush1.bf16.xpose.msra.mxu0 %v16548_v8  ;;  %v13761_v8 = vld [vmem:[#allocation6 + $0x1fc] ss:$28 sps:$4 sm:$0xff]  }
 0x732   :  { %8522 = vmatpush1.bf16.xpose.msra.mxu1 %v13750_v16  ;;  %6836 = vmatprep.subr.bf16.mxu0 %v16550_v24  ;;  %v16560_v16 = vcombine.low %v4006_v34, %v4010_v7  ;;  %v13756_v24 = vld [vmem:[#allocation6 + $0x1c0] ss:$28 sps:$4 sm:$0xff]   ;;  %v4030_v34 = vld [vmem:[#allocation4 + $0xad0] sm:$0xff] }
 0x733   :  { %8523 = vmatprep.subr.bf16.mxu1 %v13755_v45  ;;  %v16562_v45 = vcombine.high %v4014_v43, %v4018_v39  ;;  %v4034_v7 = vld [vmem:[#allocation4 + $0xaf0] sm:$0xff] }
 0x734   :  { %18602 = vst [vmem:[#allocation434_spill] sm:$0xff] %v16560_v16 }
 0x735   :  { %18603 = vst [vmem:[#allocation435_spill] sm:$0xff] %v16562_v45 }
 0x739   :  { %6837 = vmatpush1.bf16.xpose.msra.mxu0 %v16554_v59  ;;  %v13764_v59 = vld [vmem:[#allocation6 + $0x234] ss:$28 sps:$4 sm:$0xff]  }
 0x73a   :  { %8524 = vmatpush1.bf16.xpose.msra.mxu1 %v13753_v54  ;;  %6838 = vmatprep.subr.bf16.mxu0 %v16556_v47  ;;  %v16566_v54 = vcombine.low %v4014_v43, %v4018_v39  ;;  %v13759_v47 = vld [vmem:[#allocation6 + $0x1f8] ss:$28 sps:$4 sm:$0xff]  }
 0x73b   :  { %8525 = vmatprep.subr.bf16.mxu1 %v13758_v27  ;;  %v16568_v27 = vcombine.high %v4022_v62, %v4026_v13  ;;  %v4038_v43 = vld [vmem:[#allocation4 + $0xb10] sm:$0xff] }
 0x73c   :  { %18604 = vst [vmem:[#allocation436_spill] sm:$0xff] %v16566_v54  ;;  %v4042_v39 = vld [vmem:[#allocation4 + $0xb30] sm:$0xff] }
 0x73d   :  { %18605 = vst [vmem:[#allocation437_spill] sm:$0xff] %v16568_v27 }
 0x741   :  { %6839 = vmatpush1.bf16.xpose.msra.mxu0 %v16560_v16  ;;  %v13767_v16 = vld [vmem:[#allocation6 + $0x26c] ss:$28 sps:$4 sm:$0xff]  }
 0x742   :  { %8526 = vmatpush1.bf16.xpose.msra.mxu1 %v13756_v24  ;;  %6840 = vmatprep.subr.bf16.mxu0 %v16562_v45  ;;  %v16572_v24 = vcombine.low %v4022_v62, %v4026_v13  ;;  %v13762_v45 = vld [vmem:[#allocation6 + $0x230] ss:$28 sps:$4 sm:$0xff]  }
 0x743   :  { %8527 = vmatprep.subr.bf16.mxu1 %v13761_v8  ;;  %v16574_v8 = vcombine.high %v4030_v34, %v4034_v7  ;;  %v4046_v62 = vld [vmem:[#allocation4 + $0xb50] sm:$0xff] }
 0x744   :  { %18606 = vst [vmem:[#allocation438_spill] sm:$0xff] %v16572_v24  ;;  %v4050_v13 = vld [vmem:[#allocation4 + $0xb70] sm:$0xff] }
 0x745   :  { %18607 = vst [vmem:[#allocation439_spill] sm:$0xff] %v16574_v8 }
 0x749   :  { %6841 = vmatpush1.bf16.xpose.msra.mxu0 %v16566_v54  ;;  %v13770_v54 = vld [vmem:[#allocation6 + $0x2a4] ss:$28 sps:$4 sm:$0xff]  }
 0x74a   :  { %8528 = vmatpush1.bf16.xpose.msra.mxu1 %v13759_v47  ;;  %6842 = vmatprep.subr.bf16.mxu0 %v16568_v27  ;;  %v16578_v47 = vcombine.low %v4030_v34, %v4034_v7  ;;  %v13765_v27 = vld [vmem:[#allocation6 + $0x268] ss:$28 sps:$4 sm:$0xff]   ;;  %v4054_v34 = vld [vmem:[#allocation4 + $0xb90] sm:$0xff] }
 0x74b   :  { %8529 = vmatprep.subr.bf16.mxu1 %v13764_v59  ;;  %v16580_v59 = vcombine.high %v4038_v43, %v4042_v39  ;;  %v4058_v7 = vld [vmem:[#allocation4 + $0xbb0] sm:$0xff] }
 0x74c   :  { %18608 = vst [vmem:[#allocation440_spill] sm:$0xff] %v16578_v47 }
 0x74d   :  { %18609 = vst [vmem:[#allocation441_spill] sm:$0xff] %v16580_v59 }
 0x751   :  { %6843 = vmatpush1.bf16.xpose.msra.mxu0 %v16572_v24  ;;  %v13773_v24 = vld [vmem:[#allocation6 + $0x2dc] ss:$28 sps:$4 sm:$0xff]  }
 0x752   :  { %8530 = vmatpush1.bf16.xpose.msra.mxu1 %v13762_v45  ;;  %6844 = vmatprep.subr.bf16.mxu0 %v16574_v8  ;;  %v16584_v45 = vcombine.low %v4038_v43, %v4042_v39  ;;  %v13768_v8 = vld [vmem:[#allocation6 + $0x2a0] ss:$28 sps:$4 sm:$0xff]   ;;  %v4062_v43 = vld [vmem:[#allocation4 + $0xbd0] sm:$0xff] }
 0x753   :  { %8531 = vmatprep.subr.bf16.mxu1 %v13767_v16  ;;  %v16586_v16 = vcombine.high %v4046_v62, %v4050_v13  ;;  %v4066_v39 = vld [vmem:[#allocation4 + $0xbf0] sm:$0xff] }
 0x754   :  { %18610 = vst [vmem:[#allocation442_spill] sm:$0xff] %v16584_v45 }
 0x755   :  { %18611 = vst [vmem:[#allocation443_spill] sm:$0xff] %v16586_v16 }
 0x759   :  { %6845 = vmatpush1.bf16.xpose.msra.mxu0 %v16578_v47  ;;  %v13776_v47 = vld [vmem:[#allocation6 + $0x314] ss:$28 sps:$4 sm:$0xff]  }
 0x75a   :  { %8532 = vmatpush1.bf16.xpose.msra.mxu1 %v13765_v27  ;;  %6846 = vmatprep.subr.bf16.mxu0 %v16580_v59  ;;  %v16590_v27 = vcombine.low %v4046_v62, %v4050_v13  ;;  %v13771_v59 = vld [vmem:[#allocation6 + $0x2d8] ss:$28 sps:$4 sm:$0xff]   ;;  %v16604_v62 = vrot.slane %v16486_v14, %v15409_v32  ;;  %v16608_v13 = vrot.slane %v16486_v14, %v15418_v52  ;;  %v16929_v52 = vld [vmem:[#allocation9 + $0x8] sm:$0xff]  }
 0x75b   :  { %8533 = vmatprep.subr.bf16.mxu1 %v13770_v54  ;;  %v16592_v54 = vcombine.high %v4054_v34, %v4058_v7  ;;  %v16907_v32 = vld [vmem:[#allocation7 + $0xc8] ss:$16 sps:$4 sm:$0xff]  }
 0x75c   :  { %18612 = vst [vmem:[#allocation444_spill] sm:$0xff] %v16590_v27  ;;  %18616 = vst [vmem:[#allocation448_spill] sm:$0xff] %v16604_v62 }
 0x75d   :  { %18613 = vst [vmem:[#allocation445_spill] sm:$0xff] %v16592_v54  ;;  %18617 = vst [vmem:[#allocation449_spill] sm:$0xff] %v16608_v13 }
 0x761   :  { %6847 = vmatpush1.bf16.xpose.msra.mxu0 %v16584_v45  ;;  %v13779_v45 = vld [vmem:[#allocation6 + $0x34c] ss:$28 sps:$4 sm:$0xff]  }
 0x762   :  { %8534 = vmatpush1.bf16.xpose.msra.mxu1 %v13768_v8  ;;  %6848 = vmatprep.subr.bf16.mxu0 %v16586_v16  ;;  %v16596_v8 = vcombine.low %v4054_v34, %v4058_v7  ;;  %v13774_v16 = vld [vmem:[#allocation6 + $0x310] ss:$28 sps:$4 sm:$0xff]   ;;  %v16610_v34 = vcombine.low %v4062_v43, %v4066_v39  ;;  %v13777_v7 = vld [vmem:[#allocation6 + $0x348] ss:$28 sps:$4 sm:$0xff]  }
 0x763   :  { %8535 = vmatprep.subr.bf16.mxu1 %v13773_v24  ;;  %v16598_v24 = vcombine.high %v4062_v43, %v4066_v39  ;;  %v3955_v43 = vld [vmem:[#allocation4 + $0x878] sm:$0xff] }
 0x764   :  { %18614 = vst [vmem:[#allocation446_spill] sm:$0xff] %v16596_v8  ;;  %18618 = vst [vmem:[#allocation450_spill] sm:$0xff] %v16610_v34 }
 0x765   :  { %18615 = vst [vmem:[#allocation447_spill] sm:$0xff] %v16598_v24 }
 0x769   :  { %6849 = vmatpush1.bf16.xpose.msra.mxu0 %v16590_v27  ;;  %v3951_v27 = vld [vmem:[#allocation4 + $0x858] sm:$0xff] }
 0x76a   :  { %8536 = vmatpush1.bf16.xpose.msra.mxu1 %v13771_v59  ;;  %6850 = vmatprep.subr.bf16.mxu0 %v16592_v54  ;;  %v3943_v59 = vld [vmem:[#allocation4 + $0x818] sm:$0xff] }
 0x76b   :  { %8537 = vmatprep.subr.bf16.mxu1 %v13776_v47  ;;  %v3947_v47 = vld [vmem:[#allocation4 + $0x838] sm:$0xff] }
 0x76c   :  { %v16612_v54 = vcombine.high %v3943_v59, %v3947_v47  ;;  %v16620_v51 = vcombine.low %v3943_v59, %v3947_v47  ;;  %v16634_v59 = vcombine.low %v3951_v27, %v3955_v43 }
 0x76e   :  { %18619 = vst [vmem:[#allocation451_spill] sm:$0xff] %v16612_v54  ;;  %18620 = vst [vmem:[#allocation452_spill] sm:$0xff] %v16620_v51 }
 0x76f   :  { %18622 = vst [vmem:[#allocation454_spill] sm:$0xff] %v16634_v59 }
 0x771   :  { %6851 = vmatpush1.bf16.xpose.msra.mxu0 %v16596_v8  ;;  %v12818_v8 = vadd.f32 %v16440_v38, %v16608_v13  ;;  %v13785_v38 = vld [vmem:[#allocation6 + $0x44] ss:$28 sps:$4 sm:$0xff]   ;;  %v16842_v13 = vld [vmem:[#allocation6 + $0x670] ss:$28 sps:$4 sm:$0xff]  }
 0x772   :  { %8538 = vmatpush1.bf16.xpose.msra.mxu1 %v13774_v16  ;;  %6852 = vmatprep.subr.bf16.mxu0 %v16598_v24  ;;  %v12815_v16 = vadd.f32 %v16435_v17, %v16604_v62  ;;  %v13782_v24 = vld [vmem:[#allocation6 + $0xc] ss:$28 sps:$4 sm:$0xff]   ;;  %v16624_v17 = vcombine.high %v3951_v27, %v3955_v43  ;;  %v3975_v27 = vld [vmem:[#allocation4 + $0x918] sm:$0xff]  ;;  %18661 = vst [vmem:[#allocation493_spill] sm:$0xff] %v16842_v13 }
 0x773   :  { %8539 = vmatprep.subr.bf16.mxu1 %v13779_v45  ;;  %v7067_v39 = vmax.f32 %v12818_v8, 0.0  ;;  %v3959_v8 = vld [vmem:[#allocation4 + $0x898] sm:$0xff]  ;;  %v16848_v62 = vld [vmem:[#allocation6 + $0x6a8] ss:$28 sps:$4 sm:$0xff]  }
 0x774   :  { %v7064_v45 = vmax.f32 %v12815_v16, 0.0  ;;  %18621 = vst [vmem:[#allocation453_spill] sm:$0xff] %v16624_v17  ;;  %v3979_v43 = vld [vmem:[#allocation4 + $0x938] sm:$0xff]  ;;  %18663 = vst [vmem:[#allocation495_spill] sm:$0xff] %v16848_v62 }
 0x775   :  { %v16627_v49 = vpack.c.bf16 %v7067_v39, %v7067_v39 }
 0x776   :  { %v16622_v60 = vpack.c.bf16 %v7064_v45, %v7064_v45  ;;  %v13786_v45 = vld [vmem:[#allocation6 + $0x78] ss:$28 sps:$4 sm:$0xff]  }
 0x779   :  { %6853 = vmatpush1.bf16.xpose.msra.mxu0 %v16610_v34  ;;  %v13789_v34 = vld [vmem:[#allocation6 + $0xb0] ss:$28 sps:$4 sm:$0xff]  }
 0x77a   :  { %8540 = vmatpush1.bf16.xpose.msra.mxu1 %v13777_v7  ;;  %6863 = vmatprep.subr.bf16.mxu0 %v16612_v54  ;;  %v13788_v7 = vld [vmem:[#allocation6 + $0x7c] ss:$28 sps:$4 sm:$0xff]  }
 0x77b   :  { %8550 = vmatprep.subr.bf16.mxu1 %v13782_v24  ;;  %v3963_v24 = vld [vmem:[#allocation4 + $0x8b8] sm:$0xff] }
 0x77c   :  { %v16636_v47 = vcombine.high %v3959_v8, %v3963_v24  ;;  %v16640_v16 = vcombine.low %v3959_v8, %v3963_v24  ;;  %v3983_v8 = vld [vmem:[#allocation4 + $0x958] sm:$0xff] }
 0x77d   :  { %v3987_v24 = vld [vmem:[#allocation4 + $0x978] sm:$0xff] }
 0x77e   :  { %18623 = vst [vmem:[#allocation455_spill] sm:$0xff] %v16636_v47  ;;  %18624 = vst [vmem:[#allocation456_spill] sm:$0xff] %v16640_v16  ;;  %v14035_v54 = vld [vmem:[#allocation6 + $0x6dc] ss:$28 sps:$4 sm:$0xff]  }
 0x780   :  { %6855 = vmatmul.mubr.bf16.vlgmr.msra.gmra.mrb[12].mxu0 %v15891_v0  ;;  %v13783_v0 = vld [vmem:[#allocation6 + $0x40] ss:$28 sps:$4 sm:$0xff]  }
 0x781   :  { %8542 = vmatmul.mubr.bf16.vlgmr.msra.gmra.mrb[16].mxu1 %v16622_v60  ;;  %6864 = vmatpush1.bf16.xpose.msra.mxu0 %v16620_v51  ;;  %v14032_v51 = vld [vmem:[#allocation6 + $0x6a4] ss:$28 sps:$4 sm:$0xff]  }
 0x782   :  { %6895 = vmatprep.mubr.bf16.mxu0 %v15897_v19  ;;  %8551 = vmatpush1.bf16.xpose.msra.mxu1 %v13780_v22  ;;  %v3967_v19 = vld [vmem:[#allocation4 + $0x8d8] sm:$0xff] }
 0x783   :  { %8582 = vmatprep.mubr.bf16.mxu1 %v16627_v49  ;;  %6865 = vmatprep.subr.bf16.mxu0 %v16624_v17  ;;  %v3971_v22 = vld [vmem:[#allocation4 + $0x8f8] sm:$0xff]  ;;  %v13818_v17 = vld [vmem:[#allocation6 + $0x2ac] ss:$28 sps:$4 sm:$0xff]  }
 0x784   :  { %8552 = vmatprep.subr.bf16.mxu1 %v13785_v38  ;;  %v16642_v39 = vcombine.high %v3967_v19, %v3971_v22  ;;  %v13791_v38 = vld [vmem:[#allocation6 + $0xb4] ss:$28 sps:$4 sm:$0xff]  }
 0x786   :  { %18625 = vst [vmem:[#allocation457_spill] sm:$0xff] %v16642_v39 }
 0x789   :  { %6866 = vmatpush1.bf16.xpose.msra.mxu0 %v16634_v59 }
 0x78a   :  { %8553 = vmatpush1.bf16.xpose.msra.mxu1 %v13783_v0  ;;  %6867 = vmatprep.subr.bf16.mxu0 %v16636_v47  ;;  %v16646_v0 = vcombine.low %v3967_v19, %v3971_v22  ;;  %v13794_v47 = vld [vmem:[#allocation6 + $0xec] ss:$28 sps:$4 sm:$0xff]   ;;  %v3991_v19 = vld [vmem:[#allocation4 + $0x998] sm:$0xff] }
 0x78b   :  { %8554 = vmatprep.subr.bf16.mxu1 %v13788_v7  ;;  %v16648_v7 = vcombine.high %v3975_v27, %v3979_v43  ;;  %v3995_v22 = vld [vmem:[#allocation4 + $0x9b8] sm:$0xff] }
 0x78c   :  { %18626 = vst [vmem:[#allocation458_spill] sm:$0xff] %v16646_v0 }
 0x78d   :  { %18627 = vst [vmem:[#allocation459_spill] sm:$0xff] %v16648_v7 }
 0x791   :  { %6868 = vmatpush1.bf16.xpose.msra.mxu0 %v16640_v16  ;;  %v13797_v16 = vld [vmem:[#allocation6 + $0x124] ss:$28 sps:$4 sm:$0xff]  }
 0x792   :  { %8555 = vmatpush1.bf16.xpose.msra.mxu1 %v13786_v45  ;;  %6869 = vmatprep.subr.bf16.mxu0 %v16642_v39  ;;  %v16652_v45 = vcombine.low %v3975_v27, %v3979_v43  ;;  %v13792_v39 = vld [vmem:[#allocation6 + $0xe8] ss:$28 sps:$4 sm:$0xff]   ;;  %v3999_v27 = vld [vmem:[#allocation4 + $0x9d8] sm:$0xff] }
 0x793   :  { %8556 = vmatprep.subr.bf16.mxu1 %v13791_v38  ;;  %v16654_v38 = vcombine.high %v3983_v8, %v3987_v24  ;;  %v4003_v43 = vld [vmem:[#allocation4 + $0x9f8] sm:$0xff] }
 0x794   :  { %18628 = vst [vmem:[#allocation460_spill] sm:$0xff] %v16652_v45 }
 0x795   :  { %18629 = vst [vmem:[#allocation461_spill] sm:$0xff] %v16654_v38 }
 0x799   :  { %6870 = vmatpush1.bf16.xpose.msra.mxu0 %v16646_v0  ;;  %v13800_v0 = vld [vmem:[#allocation6 + $0x15c] ss:$28 sps:$4 sm:$0xff]  }
 0x79a   :  { %8557 = vmatpush1.bf16.xpose.msra.mxu1 %v13789_v34  ;;  %6871 = vmatprep.subr.bf16.mxu0 %v16648_v7  ;;  %v16658_v34 = vcombine.low %v3983_v8, %v3987_v24  ;;  %v13795_v7 = vld [vmem:[#allocation6 + $0x120] ss:$28 sps:$4 sm:$0xff]  }
 0x79b   :  { %8558 = vmatprep.subr.bf16.mxu1 %v13794_v47  ;;  %v16660_v47 = vcombine.high %v3991_v19, %v3995_v22  ;;  %v4007_v8 = vld [vmem:[#allocation4 + $0xa18] sm:$0xff] }
 0x79c   :  { %18630 = vst [vmem:[#allocation462_spill] sm:$0xff] %v16658_v34  ;;  %v4011_v24 = vld [vmem:[#allocation4 + $0xa38] sm:$0xff] }
 0x79d   :  { %18631 = vst [vmem:[#allocation463_spill] sm:$0xff] %v16660_v47 }
 0x7a1   :  { %6872 = vmatpush1.bf16.xpose.msra.mxu0 %v16652_v45  ;;  %v13803_v45 = vld [vmem:[#allocation6 + $0x194] ss:$28 sps:$4 sm:$0xff]  }
 0x7a2   :  { %8559 = vmatpush1.bf16.xpose.msra.mxu1 %v13792_v39  ;;  %6873 = vmatprep.subr.bf16.mxu0 %v16654_v38  ;;  %v16664_v39 = vcombine.low %v3991_v19, %v3995_v22  ;;  %v13798_v38 = vld [vmem:[#allocation6 + $0x158] ss:$28 sps:$4 sm:$0xff]  }
 0x7a3   :  { %8560 = vmatprep.subr.bf16.mxu1 %v13797_v16  ;;  %v16666_v16 = vcombine.high %v3999_v27, %v4003_v43  ;;  %v4015_v19 = vld [vmem:[#allocation4 + $0xa58] sm:$0xff] }
 0x7a4   :  { %18632 = vst [vmem:[#allocation464_spill] sm:$0xff] %v16664_v39  ;;  %v4019_v22 = vld [vmem:[#allocation4 + $0xa78] sm:$0xff] }
 0x7a5   :  { %18633 = vst [vmem:[#allocation465_spill] sm:$0xff] %v16666_v16 }
 0x7a9   :  { %6874 = vmatpush1.bf16.xpose.msra.mxu0 %v16658_v34  ;;  %v13806_v34 = vld [vmem:[#allocation6 + $0x1cc] ss:$28 sps:$4 sm:$0xff]  }
 0x7aa   :  { %8561 = vmatpush1.bf16.xpose.msra.mxu1 %v13795_v7  ;;  %6875 = vmatprep.subr.bf16.mxu0 %v16660_v47  ;;  %v16670_v7 = vcombine.low %v3999_v27, %v4003_v43  ;;  %v13801_v47 = vld [vmem:[#allocation6 + $0x190] ss:$28 sps:$4 sm:$0xff]   ;;  %v4023_v27 = vld [vmem:[#allocation4 + $0xa98] sm:$0xff] }
 0x7ab   :  { %8562 = vmatprep.subr.bf16.mxu1 %v13800_v0  ;;  %v16672_v0 = vcombine.high %v4007_v8, %v4011_v24  ;;  %v4027_v43 = vld [vmem:[#allocation4 + $0xab8] sm:$0xff] }
 0x7ac   :  { %18634 = vst [vmem:[#allocation466_spill] sm:$0xff] %v16670_v7 }
 0x7ad   :  { %18635 = vst [vmem:[#allocation467_spill] sm:$0xff] %v16672_v0 }
 0x7b1   :  { %6876 = vmatpush1.bf16.xpose.msra.mxu0 %v16664_v39  ;;  %v13809_v39 = vld [vmem:[#allocation6 + $0x204] ss:$28 sps:$4 sm:$0xff]  }
 0x7b2   :  { %8563 = vmatpush1.bf16.xpose.msra.mxu1 %v13798_v38  ;;  %6877 = vmatprep.subr.bf16.mxu0 %v16666_v16  ;;  %v16676_v38 = vcombine.low %v4007_v8, %v4011_v24  ;;  %v13804_v16 = vld [vmem:[#allocation6 + $0x1c8] ss:$28 sps:$4 sm:$0xff]   ;;  %v4031_v8 = vld [vmem:[#allocation4 + $0xad8] sm:$0xff] }
 0x7b3   :  { %8564 = vmatprep.subr.bf16.mxu1 %v13803_v45  ;;  %v16678_v45 = vcombine.high %v4015_v19, %v4019_v22  ;;  %v4035_v24 = vld [vmem:[#allocation4 + $0xaf8] sm:$0xff] }
 0x7b4   :  { %18636 = vst [vmem:[#allocation468_spill] sm:$0xff] %v16676_v38 }
 0x7b5   :  { %18637 = vst [vmem:[#allocation469_spill] sm:$0xff] %v16678_v45 }
 0x7b9   :  { %6878 = vmatpush1.bf16.xpose.msra.mxu0 %v16670_v7  ;;  %v13812_v7 = vld [vmem:[#allocation6 + $0x23c] ss:$28 sps:$4 sm:$0xff]  }
 0x7ba   :  { %8565 = vmatpush1.bf16.xpose.msra.mxu1 %v13801_v47  ;;  %6879 = vmatprep.subr.bf16.mxu0 %v16672_v0  ;;  %v16682_v47 = vcombine.low %v4015_v19, %v4019_v22  ;;  %v13807_v0 = vld [vmem:[#allocation6 + $0x200] ss:$28 sps:$4 sm:$0xff]  }
 0x7bb   :  { %8566 = vmatprep.subr.bf16.mxu1 %v13806_v34  ;;  %v16684_v34 = vcombine.high %v4023_v27, %v4027_v43  ;;  %v4039_v19 = vld [vmem:[#allocation4 + $0xb18] sm:$0xff] }
 0x7bc   :  { %18638 = vst [vmem:[#allocation470_spill] sm:$0xff] %v16682_v47  ;;  %v4043_v22 = vld [vmem:[#allocation4 + $0xb38] sm:$0xff] }
 0x7bd   :  { %18639 = vst [vmem:[#allocation471_spill] sm:$0xff] %v16684_v34 }
 0x7c1   :  { %6880 = vmatpush1.bf16.xpose.msra.mxu0 %v16676_v38  ;;  %v13815_v38 = vld [vmem:[#allocation6 + $0x274] ss:$28 sps:$4 sm:$0xff]  }
 0x7c2   :  { %8567 = vmatpush1.bf16.xpose.msra.mxu1 %v13804_v16  ;;  %6881 = vmatprep.subr.bf16.mxu0 %v16678_v45  ;;  %v16688_v16 = vcombine.low %v4023_v27, %v4027_v43  ;;  %v13810_v45 = vld [vmem:[#allocation6 + $0x238] ss:$28 sps:$4 sm:$0xff]   ;;  %v13813_v27 = vld [vmem:[#allocation6 + $0x270] ss:$28 sps:$4 sm:$0xff]   ;;  %v16698_v43 = vcombine.high %v4039_v19, %v4043_v22 }
 0x7c3   :  { %8568 = vmatprep.subr.bf16.mxu1 %v13809_v39  ;;  %v16690_v39 = vcombine.high %v4031_v8, %v4035_v24 }
 0x7c4   :  { %18640 = vst [vmem:[#allocation472_spill] sm:$0xff] %v16688_v16  ;;  %18643 = vst [vmem:[#allocation475_spill] sm:$0xff] %v16698_v43 }
 0x7c5   :  { %18641 = vst [vmem:[#allocation473_spill] sm:$0xff] %v16690_v39 }
 0x7c9   :  { %6882 = vmatpush1.bf16.xpose.msra.mxu0 %v16682_v47 }
 0x7ca   :  { %8569 = vmatpush1.bf16.xpose.msra.mxu1 %v13807_v0  ;;  %6883 = vmatprep.subr.bf16.mxu0 %v16684_v34 }
 0x7cb   :  { %8570 = vmatprep.subr.bf16.mxu1 %v13812_v7  ;;  %v16696_v7 = vcombine.low %v4031_v8, %v4035_v24  ;;  %v13821_v8 = vld [vmem:[#allocation6 + $0x2e4] ss:$28 sps:$4 sm:$0xff]  }
 0x7cd   :  { %18642 = vst [vmem:[#allocation474_spill] sm:$0xff] %v16696_v7 }
 0x7d1   :  { %6884 = vmatpush1.bf16.xpose.msra.mxu0 %v16688_v16  ;;  %v13816_v16 = vld [vmem:[#allocation6 + $0x2a8] ss:$28 sps:$4 sm:$0xff]  }
 0x7d2   :  { %8571 = vmatpush1.bf16.xpose.msra.mxu1 %v13810_v45  ;;  %6885 = vmatprep.subr.bf16.mxu0 %v16690_v39  ;;  %v4051_v45 = vld [vmem:[#allocation4 + $0xb78] sm:$0xff]  ;;  %v16702_v39 = vcombine.low %v4039_v19, %v4043_v22 }
 0x7d3   :  { %8572 = vmatprep.subr.bf16.mxu1 %v13815_v38  ;;  %v4047_v38 = vld [vmem:[#allocation4 + $0xb58] sm:$0xff] }
 0x7d4   :  { %v16694_v0 = vpop.f32.mrb[12].mxu1  ;;  %18644 = vst [vmem:[#allocation476_spill] sm:$0xff] %v16702_v39  ;;  %v16708_v24 = vcombine.low %v4047_v38, %v4051_v45  ;;  %v4063_v19 = vld [vmem:[#allocation4 + $0xbd8] sm:$0xff] }
 0x7d5   :  { %v7060_v34 = vpop.f32.mrb[13].mxu1  ;;  %v4067_v22 = vld [vmem:[#allocation4 + $0xbf8] sm:$0xff] }
 0x7d6   :  { %v7061_v47 = vpop.f32.mrb[14].mxu1  ;;  %v16704_v34 = vcombine.high %v4047_v38, %v4051_v45  ;;  %18646 = vst [vmem:[#allocation478_spill] sm:$0xff] %v16708_v24  ;;  %v16722_v38 = vrot.slane %v16486_v14, %v15635_v30  ;;  %v16724_v45 = vcombine.low %v4063_v19, %v4067_v22  ;;  %v14112_v30 = vld [vmem:[#allocation10 + $0x20] sm:$0xff]  }
 0x7d7   :  { %v7062_v59 = vpop.f32.mrb[15].mxu1  ;;  %v4059_v47 = vld [vmem:[#allocation4 + $0xbb8] sm:$0xff] }
 0x7d8   :  { %18645 = vst [vmem:[#allocation477_spill] sm:$0xff] %v16704_v34  ;;  %v4055_v59 = vld [vmem:[#allocation4 + $0xb98] sm:$0xff]  ;;  %18650 = vst [vmem:[#allocation482_spill] sm:$0xff] %v16722_v38 }
 0x7d9   :  { %6886 = vmatpush1.bf16.xpose.msra.mxu0 %v16696_v7  ;;  %18651 = vst [vmem:[#allocation483_spill] sm:$0xff] %v16724_v45  ;;  %v16799_v7 = vld [vmem:[#allocation7 + $0xc0] ss:$16 sps:$4 sm:$0xff]  }
 0x7da   :  { %8573 = vmatpush1.bf16.xpose.msra.mxu1 %v13813_v27  ;;  %6887 = vmatprep.subr.bf16.mxu0 %v16698_v43  ;;  %v13819_v27 = vld [vmem:[#allocation6 + $0x2e0] ss:$28 sps:$4 sm:$0xff]  }
 0x7db   :  { %8574 = vmatprep.subr.bf16.mxu1 %v13818_v17  ;;  %v16710_v17 = vcombine.high %v4055_v59, %v4059_v47  ;;  %v13824_v43 = vld [vmem:[#allocation6 + $0x31c] ss:$28 sps:$4 sm:$0xff]  }
 0x7dd   :  { %18647 = vst [vmem:[#allocation479_spill] sm:$0xff] %v16710_v17 }
 0x7e1   :  { %6888 = vmatpush1.bf16.xpose.msra.mxu0 %v16702_v39  ;;  %v13827_v39 = vld [vmem:[#allocation6 + $0x354] ss:$28 sps:$4 sm:$0xff]  }
 0x7e2   :  { %8575 = vmatpush1.bf16.xpose.msra.mxu1 %v13816_v16  ;;  %6889 = vmatprep.subr.bf16.mxu0 %v16704_v34  ;;  %v16714_v16 = vcombine.low %v4055_v59, %v4059_v47  ;;  %v13822_v34 = vld [vmem:[#allocation6 + $0x318] ss:$28 sps:$4 sm:$0xff]   ;;  %v12817_v59 = vadd.f32 %v16438_v26, %v16722_v38 }
 0x7e3   :  { %8576 = vmatprep.subr.bf16.mxu1 %v13821_v8  ;;  %v16716_v8 = vcombine.high %v4063_v19, %v4067_v22  ;;  %v13866_v47 = vld [vmem:[#allocation6 + $0x14] ss:$28 sps:$4 sm:$0xff]   ;;  %v13870_v22 = vld [vmem:[#allocation6 + $0x48] ss:$28 sps:$4 sm:$0xff]  }
 0x7e4   :  { %18648 = vst [vmem:[#allocation480_spill] sm:$0xff] %v16714_v16  ;;  %v13831_v26 = vld [vmem:[#allocation6 + $0x3b8] ss:$28 sps:$4 sm:$0xff]  }
 0x7e5   :  { %18649 = vst [vmem:[#allocation481_spill] sm:$0xff] %v16716_v8  ;;  %v13836_v19 = vld [vmem:[#allocation6 + $0x3f4] ss:$28 sps:$4 sm:$0xff]  }
 0x7e6   :  { %v16840_v38 = vld [vmem:[#allocation6 + $0x478] ss:$28 sps:$4 sm:$0xff]  }
 0x7e7   :  { %18660 = vst [vmem:[#allocation492_spill] sm:$0xff] %v16840_v38 }
 0x7e9   :  { %6890 = vmatpush1.bf16.xpose.msra.mxu0 %v16708_v24  ;;  %v13864_v24 = vld [vmem:[#allocation6 + $0x10] ss:$28 sps:$4 sm:$0xff]  }
 0x7ea   :  { %8577 = vmatpush1.bf16.xpose.msra.mxu1 %v13819_v27  ;;  %6891 = vmatprep.subr.bf16.mxu0 %v16710_v17  ;;  %v13830_v27 = vld [vmem:[#allocation6 + $0x384] ss:$28 sps:$4 sm:$0xff]  }
 0x7eb   :  { %8578 = vmatprep.subr.bf16.mxu1 %v13824_v43  ;;  %v13825_v43 = vld [vmem:[#allocation6 + $0x350] ss:$28 sps:$4 sm:$0xff]  }
 0x7f1   :  { %6892 = vmatpush1.bf16.xpose.msra.mxu0 %v16714_v16  ;;  %v13833_v16 = vld [vmem:[#allocation6 + $0x3bc] ss:$28 sps:$4 sm:$0xff]  }
 0x7f2   :  { %8579 = vmatpush1.bf16.xpose.msra.mxu1 %v13822_v34  ;;  %6893 = vmatprep.subr.bf16.mxu0 %v16716_v8  ;;  %v7066_v34 = vmax.f32 %v12817_v59, 0.0  ;;  %v13828_v8 = vld [vmem:[#allocation6 + $0x380] ss:$28 sps:$4 sm:$0xff]   ;;  %v13839_v59 = vld [vmem:[#allocation6 + $0x42c] ss:$28 sps:$4 sm:$0xff]  }
 0x7f3   :  { %8580 = vmatprep.subr.bf16.mxu1 %v13827_v39  ;;  %v13872_v39 = vld [vmem:[#allocation6 + $0x4c] ss:$28 sps:$4 sm:$0xff]  }
 0x7f4   :  { %v16729_v17 = vpack.c.bf16 %v7066_v34, %v7066_v34  ;;  %v13840_v34 = vld [vmem:[#allocation6 + $0x460] ss:$28 sps:$4 sm:$0xff]  }
 0x7f9   :  { %6894 = vmatpush1.bf16.xpose.msra.mxu0 %v16724_v45  ;;  %v14024_v45 = vld [vmem:[#allocation6 + $0x630] ss:$28 sps:$4 sm:$0xff]  }
 0x7fa   :  { %8581 = vmatpush1.bf16.xpose.msra.mxu1 %v13825_v43  ;;  %8673 = vmatprep.subr.bf16.mxu0 %v13830_v27  ;;  %v13878_v43 = vld [vmem:[#allocation6 + $0x84] ss:$28 sps:$4 sm:$0xff]   ;;  %v13834_v27 = vld [vmem:[#allocation6 + $0x3f0] ss:$28 sps:$4 sm:$0xff]  }
 0x7fb   :  { %8591 = vmatprep.subr.bf16.mxu1 %v13866_v47  ;;  %v13884_v47 = vld [vmem:[#allocation6 + $0xbc] ss:$28 sps:$4 sm:$0xff]  }
 0x800   :  { %6896 = vmatmul.mubr.bf16.vlgmr.msra.gmra.mrb[12].mxu0 %v16100_v4  ;;  %v13876_v4 = vld [vmem:[#allocation6 + $0x80] ss:$28 sps:$4 sm:$0xff]  }
 0x801   :  { %8583 = vmatmul.mubr.bf16.vlgmr.msra.gmra.mrb[16].mxu1 %v16729_v17  ;;  %8674 = vmatpush1.bf16.xpose.msra.mxu0 %v13828_v8  ;;  %v13890_v8 = vld [vmem:[#allocation6 + $0xf4] ss:$28 sps:$4 sm:$0xff]  }
 0x802   :  { %8705 = vmatprep.mubr.bf16.mxu0 %v16511_v41  ;;  %8675 = vmatprep.subr.bf16.mxu0 %v13833_v16  ;;  %v13837_v41 = vld [vmem:[#allocation6 + $0x428] ss:$28 sps:$4 sm:$0xff]  }
 0x803   :  { %8592 = vmatpush1.bf16.xpose.msra.mxu1 %v13864_v24  ;;  %v13842_v16 = vld [vmem:[#allocation6 + $0x464] ss:$28 sps:$4 sm:$0xff]   ;;  %v13882_v24 = vld [vmem:[#allocation6 + $0xb8] ss:$28 sps:$4 sm:$0xff]  }
 0x804   :  { %8593 = vmatprep.subr.bf16.mxu1 %v13872_v39  ;;  %v13845_v39 = vld [vmem:[#allocation6 + $0x49c] ss:$28 sps:$4 sm:$0xff]  }
 0x809   :  { %8676 = vmatpush1.bf16.xpose.msra.mxu0 %v13831_v26  ;;  %v13888_v26 = vld [vmem:[#allocation6 + $0xf0] ss:$28 sps:$4 sm:$0xff]  }
 0x80a   :  { %8677 = vmatprep.subr.bf16.mxu0 %v13836_v19  ;;  %v13896_v19 = vld [vmem:[#allocation6 + $0x12c] ss:$28 sps:$4 sm:$0xff]  }
 0x80b   :  { %8594 = vmatpush1.bf16.xpose.msra.mxu1 %v13870_v22  ;;  %v13843_v22 = vld [vmem:[#allocation6 + $0x498] ss:$28 sps:$4 sm:$0xff]  }
 0x80c   :  { %8595 = vmatprep.subr.bf16.mxu1 %v13878_v43  ;;  %v13848_v43 = vld [vmem:[#allocation6 + $0x4d4] ss:$28 sps:$4 sm:$0xff]  }
 0x811   :  { %8678 = vmatpush1.bf16.xpose.msra.mxu0 %v13834_v27  ;;  %v13894_v27 = vld [vmem:[#allocation6 + $0x128] ss:$28 sps:$4 sm:$0xff]  }
 0x812   :  { %8679 = vmatprep.subr.bf16.mxu0 %v13839_v59  ;;  %v13902_v59 = vld [vmem:[#allocation6 + $0x164] ss:$28 sps:$4 sm:$0xff]  }
 0x813   :  { %8596 = vmatpush1.bf16.xpose.msra.mxu1 %v13876_v4  ;;  %v13846_v4 = vld [vmem:[#allocation6 + $0x4d0] ss:$28 sps:$4 sm:$0xff]  }
 0x814   :  { %8597 = vmatprep.subr.bf16.mxu1 %v13884_v47  ;;  %v13851_v47 = vld [vmem:[#allocation6 + $0x50c] ss:$28 sps:$4 sm:$0xff]  }
 0x819   :  { %8680 = vmatpush1.bf16.xpose.msra.mxu0 %v13837_v41  ;;  %v13900_v41 = vld [vmem:[#allocation6 + $0x160] ss:$28 sps:$4 sm:$0xff]  }
 0x81a   :  { %8681 = vmatprep.subr.bf16.mxu0 %v13842_v16  ;;  %v13908_v16 = vld [vmem:[#allocation6 + $0x19c] ss:$28 sps:$4 sm:$0xff]  }
 0x81b   :  { %8598 = vmatpush1.bf16.xpose.msra.mxu1 %v13882_v24  ;;  %v13849_v24 = vld [vmem:[#allocation6 + $0x508] ss:$28 sps:$4 sm:$0xff]  }
 0x81c   :  { %8599 = vmatprep.subr.bf16.mxu1 %v13890_v8  ;;  %v13854_v8 = vld [vmem:[#allocation6 + $0x544] ss:$28 sps:$4 sm:$0xff]  }
 0x821   :  { %8682 = vmatpush1.bf16.xpose.msra.mxu0 %v13840_v34  ;;  %v13906_v34 = vld [vmem:[#allocation6 + $0x198] ss:$28 sps:$4 sm:$0xff]  }
 0x822   :  { %8683 = vmatprep.subr.bf16.mxu0 %v13845_v39  ;;  %v13914_v39 = vld [vmem:[#allocation6 + $0x1d4] ss:$28 sps:$4 sm:$0xff]  }
 0x823   :  { %8600 = vmatpush1.bf16.xpose.msra.mxu1 %v13888_v26  ;;  %v13852_v26 = vld [vmem:[#allocation6 + $0x540] ss:$28 sps:$4 sm:$0xff]  }
 0x824   :  { %8601 = vmatprep.subr.bf16.mxu1 %v13896_v19  ;;  %v13857_v19 = vld [vmem:[#allocation6 + $0x57c] ss:$28 sps:$4 sm:$0xff]  }
 0x829   :  { %8684 = vmatpush1.bf16.xpose.msra.mxu0 %v13843_v22  ;;  %v13912_v22 = vld [vmem:[#allocation6 + $0x1d0] ss:$28 sps:$4 sm:$0xff]  }
 0x82a   :  { %8685 = vmatprep.subr.bf16.mxu0 %v13848_v43  ;;  %v13920_v43 = vld [vmem:[#allocation6 + $0x20c] ss:$28 sps:$4 sm:$0xff]  }
 0x82b   :  { %8602 = vmatpush1.bf16.xpose.msra.mxu1 %v13894_v27  ;;  %v13855_v27 = vld [vmem:[#allocation6 + $0x578] ss:$28 sps:$4 sm:$0xff]  }
 0x82c   :  { %8603 = vmatprep.subr.bf16.mxu1 %v13902_v59  ;;  %v13860_v59 = vld [vmem:[#allocation6 + $0x5b4] ss:$28 sps:$4 sm:$0xff]  }
 0x831   :  { %8686 = vmatpush1.bf16.xpose.msra.mxu0 %v13846_v4  ;;  %v13918_v4 = vld [vmem:[#allocation6 + $0x208] ss:$28 sps:$4 sm:$0xff]  }
 0x832   :  { %8687 = vmatprep.subr.bf16.mxu0 %v13851_v47  ;;  %v13926_v47 = vld [vmem:[#allocation6 + $0x244] ss:$28 sps:$4 sm:$0xff]  }
 0x833   :  { %8604 = vmatpush1.bf16.xpose.msra.mxu1 %v13900_v41  ;;  %v13858_v41 = vld [vmem:[#allocation6 + $0x5b0] ss:$28 sps:$4 sm:$0xff]  }
 0x834   :  { %8605 = vmatprep.subr.bf16.mxu1 %v13908_v16  ;;  %v13863_v16 = vld [vmem:[#allocation6 + $0x5ec] ss:$28 sps:$4 sm:$0xff]  }
 0x839   :  { %8688 = vmatpush1.bf16.xpose.msra.mxu0 %v13849_v24  ;;  %v13924_v24 = vld [vmem:[#allocation6 + $0x240] ss:$28 sps:$4 sm:$0xff]  }
 0x83a   :  { %8689 = vmatprep.subr.bf16.mxu0 %v13854_v8  ;;  %v13932_v8 = vld [vmem:[#allocation6 + $0x27c] ss:$28 sps:$4 sm:$0xff]  }
 0x83b   :  { %8606 = vmatpush1.bf16.xpose.msra.mxu1 %v13906_v34  ;;  %v13861_v34 = vld [vmem:[#allocation6 + $0x5e8] ss:$28 sps:$4 sm:$0xff]  }
 0x83c   :  { %8607 = vmatprep.subr.bf16.mxu1 %v13914_v39  ;;  %v13869_v39 = vld [vmem:[#allocation6 + $0x624] ss:$28 sps:$4 sm:$0xff]  }
 0x841   :  { %8690 = vmatpush1.bf16.xpose.msra.mxu0 %v13852_v26  ;;  %v13930_v26 = vld [vmem:[#allocation6 + $0x278] ss:$28 sps:$4 sm:$0xff]  }
 0x842   :  { %8691 = vmatprep.subr.bf16.mxu0 %v13857_v19  ;;  %v13938_v19 = vld [vmem:[#allocation6 + $0x2b4] ss:$28 sps:$4 sm:$0xff]  }
 0x843   :  { %8608 = vmatpush1.bf16.xpose.msra.mxu1 %v13912_v22  ;;  %v13867_v22 = vld [vmem:[#allocation6 + $0x620] ss:$28 sps:$4 sm:$0xff]  }
 0x844   :  { %8609 = vmatprep.subr.bf16.mxu1 %v13920_v43  ;;  %v13875_v43 = vld [vmem:[#allocation6 + $0x65c] ss:$28 sps:$4 sm:$0xff]  }
 0x849   :  { %8692 = vmatpush1.bf16.xpose.msra.mxu0 %v13855_v27  ;;  %v13936_v27 = vld [vmem:[#allocation6 + $0x2b0] ss:$28 sps:$4 sm:$0xff]  }
 0x84a   :  { %8693 = vmatprep.subr.bf16.mxu0 %v13860_v59  ;;  %v13944_v59 = vld [vmem:[#allocation6 + $0x2ec] ss:$28 sps:$4 sm:$0xff]  }
 0x84b   :  { %8610 = vmatpush1.bf16.xpose.msra.mxu1 %v13918_v4  ;;  %v13873_v4 = vld [vmem:[#allocation6 + $0x658] ss:$28 sps:$4 sm:$0xff]  }
 0x84c   :  { %8611 = vmatprep.subr.bf16.mxu1 %v13926_v47  ;;  %v13881_v47 = vld [vmem:[#allocation6 + $0x694] ss:$28 sps:$4 sm:$0xff]  }
 0x851   :  { %8694 = vmatpush1.bf16.xpose.msra.mxu0 %v13858_v41  ;;  %v13942_v41 = vld [vmem:[#allocation6 + $0x2e8] ss:$28 sps:$4 sm:$0xff]  }
 0x852   :  { %8695 = vmatprep.subr.bf16.mxu0 %v13863_v16  ;;  %v13950_v16 = vld [vmem:[#allocation6 + $0x324] ss:$28 sps:$4 sm:$0xff]  }
 0x853   :  { %8612 = vmatpush1.bf16.xpose.msra.mxu1 %v13924_v24  ;;  %v13879_v24 = vld [vmem:[#allocation6 + $0x690] ss:$28 sps:$4 sm:$0xff]  }
 0x854   :  { %8613 = vmatprep.subr.bf16.mxu1 %v13932_v8  ;;  %v13887_v8 = vld [vmem:[#allocation6 + $0x6cc] ss:$28 sps:$4 sm:$0xff]  }
 0x859   :  { %8696 = vmatpush1.bf16.xpose.msra.mxu0 %v13861_v34  ;;  %v13948_v34 = vld [vmem:[#allocation6 + $0x320] ss:$28 sps:$4 sm:$0xff]  }
 0x85a   :  { %8697 = vmatprep.subr.bf16.mxu0 %v13869_v39  ;;  %v13956_v39 = vld [vmem:[#allocation6 + $0x35c] ss:$28 sps:$4 sm:$0xff]  }
 0x85b   :  { %8614 = vmatpush1.bf16.xpose.msra.mxu1 %v13930_v26  ;;  %v13885_v26 = vld [vmem:[#allocation6 + $0x6c8] ss:$28 sps:$4 sm:$0xff]  }
 0x85c   :  { %8615 = vmatprep.subr.bf16.mxu1 %v13938_v19  ;;  %v13893_v19 = vld [vmem:[#allocation6 + $0x38c] ss:$28 sps:$4 sm:$0xff]  }
 0x861   :  { %8698 = vmatpush1.bf16.xpose.msra.mxu0 %v13867_v22  ;;  %v13954_v22 = vld [vmem:[#allocation6 + $0x358] ss:$28 sps:$4 sm:$0xff]  }
 0x862   :  { %8699 = vmatprep.subr.bf16.mxu0 %v13875_v43  ;;  %v13960_v43 = vld [vmem:[#allocation6 + $0x1d8] ss:$28 sps:$4 sm:$0xff]  }
 0x863   :  { %8616 = vmatpush1.bf16.xpose.msra.mxu1 %v13936_v27  ;;  %v13891_v27 = vld [vmem:[#allocation6 + $0x388] ss:$28 sps:$4 sm:$0xff]  }
 0x864   :  { %8617 = vmatprep.subr.bf16.mxu1 %v13944_v59  ;;  %v13899_v59 = vld [vmem:[#allocation6 + $0x3c4] ss:$28 sps:$4 sm:$0xff]  }
 0x869   :  { %8700 = vmatpush1.bf16.xpose.msra.mxu0 %v13873_v4  ;;  %v13897_v4 = vld [vmem:[#allocation6 + $0x3c0] ss:$28 sps:$4 sm:$0xff]  }
 0x86a   :  { %8701 = vmatprep.subr.bf16.mxu0 %v13881_v47  ;;  %v13905_v47 = vld [vmem:[#allocation6 + $0x3fc] ss:$28 sps:$4 sm:$0xff]  }
 0x86b   :  { %8618 = vmatpush1.bf16.xpose.msra.mxu1 %v13942_v41  ;;  %v13903_v41 = vld [vmem:[#allocation6 + $0x3f8] ss:$28 sps:$4 sm:$0xff]  }
 0x86c   :  { %8619 = vmatprep.subr.bf16.mxu1 %v13950_v16  ;;  %v13911_v16 = vld [vmem:[#allocation6 + $0x434] ss:$28 sps:$4 sm:$0xff]  }
 0x871   :  { %8702 = vmatpush1.bf16.xpose.msra.mxu0 %v13879_v24  ;;  %v13909_v24 = vld [vmem:[#allocation6 + $0x430] ss:$28 sps:$4 sm:$0xff]  }
 0x872   :  { %8703 = vmatprep.subr.bf16.mxu0 %v13887_v8  ;;  %v13917_v8 = vld [vmem:[#allocation6 + $0x46c] ss:$28 sps:$4 sm:$0xff]  }
 0x873   :  { %8620 = vmatpush1.bf16.xpose.msra.mxu1 %v13948_v34  ;;  %v13915_v34 = vld [vmem:[#allocation6 + $0x468] ss:$28 sps:$4 sm:$0xff]  }
 0x874   :  { %8621 = vmatprep.subr.bf16.mxu1 %v13956_v39  ;;  %v13923_v39 = vld [vmem:[#allocation6 + $0x4a4] ss:$28 sps:$4 sm:$0xff]  }
 0x879   :  { %8704 = vmatpush1.bf16.xpose.msra.mxu0 %v13885_v26  ;;  %v13929_v26 = vld [vmem:[#allocation6 + $0x4dc] ss:$28 sps:$4 sm:$0xff]  }
 0x87a   :  { %8714 = vmatprep.subr.bf16.mxu0 %v13893_v19  ;;  %v13935_v19 = vld [vmem:[#allocation6 + $0x514] ss:$28 sps:$4 sm:$0xff]  }
 0x87b   :  { %8622 = vmatpush1.bf16.xpose.msra.mxu1 %v13954_v22  ;;  %v13933_v22 = vld [vmem:[#allocation6 + $0x510] ss:$28 sps:$4 sm:$0xff]  }
 0x87c   :  { %12523 = vmatprep.subr.bf16.mxu1 %v13960_v43  ;;  %v13941_v43 = vld [vmem:[#allocation6 + $0x54c] ss:$28 sps:$4 sm:$0xff]  }
 0x880   :  { %8706 = vmatmul.mubr.bf16.vlgmr.msra.gmra.mrb[16].mxu0 %v16622_v60  ;;  %v13921_v60 = vld [vmem:[#allocation6 + $0x4a0] ss:$28 sps:$4 sm:$0xff]  }
 0x881   :  { %8715 = vmatpush1.bf16.xpose.msra.mxu0 %v13891_v27  ;;  %8746 = vmatprep.mubr.bf16.mxu0 %v16627_v49  ;;  %v13927_v49 = vld [vmem:[#allocation6 + $0x4d8] ss:$28 sps:$4 sm:$0xff]   ;;  %v13939_v27 = vld [vmem:[#allocation6 + $0x548] ss:$28 sps:$4 sm:$0xff]  }
 0x882   :  { %8716 = vmatprep.subr.bf16.mxu0 %v13899_v59  ;;  %v13947_v59 = vld [vmem:[#allocation6 + $0x584] ss:$28 sps:$4 sm:$0xff]  }
 0x889   :  { %8717 = vmatpush1.bf16.xpose.msra.mxu0 %v13897_v4  ;;  %v13945_v4 = vld [vmem:[#allocation6 + $0x580] ss:$28 sps:$4 sm:$0xff]  }
 0x88a   :  { %8718 = vmatprep.subr.bf16.mxu0 %v13905_v47  ;;  %v13953_v47 = vld [vmem:[#allocation6 + $0x5bc] ss:$28 sps:$4 sm:$0xff]  }
 0x891   :  { %8719 = vmatpush1.bf16.xpose.msra.mxu0 %v13903_v41  ;;  %v13951_v41 = vld [vmem:[#allocation6 + $0x5b8] ss:$28 sps:$4 sm:$0xff]  }
 0x892   :  { %8720 = vmatprep.subr.bf16.mxu0 %v13911_v16  ;;  %v13959_v16 = vld [vmem:[#allocation6 + $0x5f4] ss:$28 sps:$4 sm:$0xff]  }
 0x899   :  { %8721 = vmatpush1.bf16.xpose.msra.mxu0 %v13909_v24  ;;  %v16738_v24 = vrot.slane %v16486_v14, %v16068_v36  ;;  %v16793_v36 = vld [vmem:[#allocation7 + $0xa0] ss:$16 sps:$4 sm:$0xff]  }
 0x89a   :  { %8722 = vmatprep.subr.bf16.mxu0 %v13917_v8  ;;  %v16742_v8 = vrot.slane %v16486_v14, %v15853_v44 }
 0x89b   :  { %18652 = vst [vmem:[#allocation484_spill] sm:$0xff] %v16738_v24 }
 0x89c   :  { %18653 = vst [vmem:[#allocation485_spill] sm:$0xff] %v16742_v8 }
 0x8a1   :  { %8723 = vmatpush1.bf16.xpose.msra.mxu0 %v13915_v34  ;;  %v16746_v34 = vrot.slane %v16486_v14, %v15644_v3  ;;  %v13961_v14 = vld [vmem:[#allocation6 + $0x18] ss:$28 sps:$4 sm:$0xff]  }
 0x8a2   :  { %8724 = vmatprep.subr.bf16.mxu0 %v13923_v39  ;;  %v12821_v39 = vadd.f32 %v16694_v0, %v16738_v24  ;;  %v13965_v0 = vld [vmem:[#allocation6 + $0x210] ss:$28 sps:$4 sm:$0xff]   ;;  %v16836_v24 = vld [vmem:[#allocation6 + $0x638] ss:$28 sps:$4 sm:$0xff]  }
 0x8a3   :  { %18654 = vst [vmem:[#allocation486_spill] sm:$0xff] %v16746_v34  ;;  %18659 = vst [vmem:[#allocation491_spill] sm:$0xff] %v16836_v24 }
 0x8a9   :  { %8725 = vmatpush1.bf16.xpose.msra.mxu0 %v13921_v60 }
 0x8aa   :  { %8726 = vmatprep.subr.bf16.mxu0 %v13929_v26 }
 0x8b1   :  { %8727 = vmatpush1.bf16.xpose.msra.mxu0 %v13927_v49 }
 0x8b2   :  { %8728 = vmatprep.subr.bf16.mxu0 %v13935_v19 }
 0x8b9   :  { %8729 = vmatpush1.bf16.xpose.msra.mxu0 %v13933_v22 }
 0x8ba   :  { %8730 = vmatprep.subr.bf16.mxu0 %v13941_v43  ;;  %v13957_v43 = vld [vmem:[#allocation6 + $0x5f0] ss:$28 sps:$4 sm:$0xff]  }
 0x8c1   :  { %8731 = vmatpush1.bf16.xpose.msra.mxu0 %v13939_v27 }
 0x8c2   :  { %8732 = vmatprep.subr.bf16.mxu0 %v13947_v59 }
 0x8c9   :  { %8733 = vmatpush1.bf16.xpose.msra.mxu0 %v13945_v4  ;;  %v13964_v4 = vld [vmem:[#allocation6 + $0x62c] ss:$28 sps:$4 sm:$0xff]  }
 0x8ca   :  { %8734 = vmatprep.subr.bf16.mxu0 %v13953_v47  ;;  %v7070_v47 = vmax.f32 %v12821_v39, 0.0  ;;  %v13966_v39 = vld [vmem:[#allocation6 + $0x50] ss:$28 sps:$4 sm:$0xff]  }
 0x8cc   :  { %v16754_v3 = vpack.c.bf16 %v7070_v47, %v7070_v47  ;;  %v13976_v47 = vld [vmem:[#allocation6 + $0xc0] ss:$28 sps:$4 sm:$0xff]  }
 0x8d1   :  { %8735 = vmatpush1.bf16.xpose.msra.mxu0 %v13951_v41 }
 0x8d2   :  { %8736 = vmatprep.subr.bf16.mxu0 %v13959_v16 }
 0x8d3   :  { %v6897_v60 = vpop.f32.mrb[12].mxu0 }
 0x8d4   :  { %v12819_v26 = vadd.f32 %v6897_v60, %v16742_v8  ;;  %v6899_v49 = vpop.f32.mrb[13].mxu0  ;;  %v13962_v60 = vld [vmem:[#allocation6 + $0x628] ss:$28 sps:$4 sm:$0xff]   ;;  %v16810_v8 = vld [vmem:[#allocation7 + $0xc] ss:$16 sps:$4 sm:$0xff]  }
 0x8d5   :  { %v12820_v19 = vadd.f32 %v6899_v49, %v16746_v34  ;;  %v6901_v22 = vpop.f32.mrb[14].mxu0  ;;  %v13970_v49 = vld [vmem:[#allocation6 + $0x248] ss:$28 sps:$4 sm:$0xff]  }
 0x8d6   :  { %v7068_v27 = vmax.f32 %v12819_v26, 0.0  ;;  %v6902_v59 = vpop.f32.mrb[15].mxu0  ;;  %v13969_v26 = vld [vmem:[#allocation6 + $0x664] ss:$28 sps:$4 sm:$0xff]   ;;  %v13974_v22 = vld [vmem:[#allocation6 + $0x69c] ss:$28 sps:$4 sm:$0xff]  }
 0x8d7   :  { %v7069_v41 = vmax.f32 %v12820_v19, 0.0  ;;  %v13967_v19 = vld [vmem:[#allocation6 + $0x660] ss:$28 sps:$4 sm:$0xff]   ;;  %v13972_v59 = vld [vmem:[#allocation6 + $0x698] ss:$28 sps:$4 sm:$0xff]  }
 0x8d8   :  { %v16752_v16 = vpack.c.bf16 %v7068_v27, %v7068_v27  ;;  %v13975_v27 = vld [vmem:[#allocation6 + $0x280] ss:$28 sps:$4 sm:$0xff]   ;;  %v16802_v34 = vld [vmem:[#allocation7 + $0xe4] ss:$16 sps:$4 sm:$0xff]  }
 0x8d9   :  { %v7076_v44 = vpack.c.bf16 %v7069_v41, %v7069_v41  ;;  %8737 = vmatpush1.bf16.xpose.msra.mxu0 %v13957_v43  ;;  %v13971_v43 = vld [vmem:[#allocation6 + $0x88] ss:$28 sps:$4 sm:$0xff]   ;;  %v13980_v41 = vld [vmem:[#allocation6 + $0x2b8] ss:$28 sps:$4 sm:$0xff]  }
 0x8da   :  { %8738 = vmatprep.subr.bf16.mxu0 %v13964_v4  ;;  %v13979_v4 = vld [vmem:[#allocation6 + $0x6d4] ss:$28 sps:$4 sm:$0xff]  }
 0x8db   :  { %8623 = vmatprep.mubr.bf16.mxu1 %v7076_v44 }
 0x8dc   :  { %8624 = vmatmul.mubr.bf16.vlgmr.msra.gmra.mrb[16].mxu1 %v16752_v16 }
 0x8dd   :  { %12524 = vmatpush3.bf16.xpose.msra.mxu1 %v13961_v14  ;;  %12539 = vmatprep.mubr.bf16.mxu1 %v16754_v3  ;;  %v13977_v14 = vld [vmem:[#allocation6 + $0x6d0] ss:$28 sps:$4 sm:$0xff]  }
 0x8de   :  { %12525 = vmatprep.subr.bf16.mxu1 %v13965_v0  ;;  %v13984_v0 = vld [vmem:[#allocation6 + $0x394] ss:$28 sps:$4 sm:$0xff]  }
 0x8e1   :  { %8739 = vmatpush1.bf16.xpose.msra.mxu0 %v13962_v60  ;;  %v13981_v60 = vld [vmem:[#allocation6 + $0xf8] ss:$28 sps:$4 sm:$0xff]  }
 0x8e2   :  { %8740 = vmatprep.subr.bf16.mxu0 %v13969_v26  ;;  %v13985_v26 = vld [vmem:[#allocation6 + $0x2f0] ss:$28 sps:$4 sm:$0xff]  }
 0x8e5   :  { %12526 = vmatpush3.bf16.xpose.msra.mxu1 %v13966_v39  ;;  %v13982_v39 = vld [vmem:[#allocation6 + $0x390] ss:$28 sps:$4 sm:$0xff]  }
 0x8e6   :  { %12527 = vmatprep.subr.bf16.mxu1 %v13970_v49  ;;  %v13989_v49 = vld [vmem:[#allocation6 + $0x3cc] ss:$28 sps:$4 sm:$0xff]  }
 0x8e9   :  { %8741 = vmatpush1.bf16.xpose.msra.mxu0 %v13967_v19  ;;  %v13986_v19 = vld [vmem:[#allocation6 + $0x130] ss:$28 sps:$4 sm:$0xff]  }
 0x8ea   :  { %8742 = vmatprep.subr.bf16.mxu0 %v13974_v22  ;;  %v13990_v22 = vld [vmem:[#allocation6 + $0x328] ss:$28 sps:$4 sm:$0xff]  }
 0x8ed   :  { %12528 = vmatpush3.bf16.xpose.msra.mxu1 %v13971_v43  ;;  %v13987_v43 = vld [vmem:[#allocation6 + $0x3c8] ss:$28 sps:$4 sm:$0xff]  }
 0x8ee   :  { %12529 = vmatprep.subr.bf16.mxu1 %v13975_v27  ;;  %v13994_v27 = vld [vmem:[#allocation6 + $0x404] ss:$28 sps:$4 sm:$0xff]  }
 0x8f1   :  { %8743 = vmatpush1.bf16.xpose.msra.mxu0 %v13972_v59  ;;  %v13991_v59 = vld [vmem:[#allocation6 + $0x168] ss:$28 sps:$4 sm:$0xff]  }
 0x8f2   :  { %8744 = vmatprep.subr.bf16.mxu0 %v13979_v4  ;;  %v13995_v4 = vld [vmem:[#allocation6 + $0x360] ss:$28 sps:$4 sm:$0xff]  }
 0x8f5   :  { %12530 = vmatpush3.bf16.xpose.msra.mxu1 %v13976_v47  ;;  %v13992_v47 = vld [vmem:[#allocation6 + $0x400] ss:$28 sps:$4 sm:$0xff]  }
 0x8f6   :  { %12531 = vmatprep.subr.bf16.mxu1 %v13980_v41  ;;  %v13999_v41 = vld [vmem:[#allocation6 + $0x43c] ss:$28 sps:$4 sm:$0xff]  }
 0x8f9   :  { %8745 = vmatpush1.bf16.xpose.msra.mxu0 %v13977_v14  ;;  %v13996_v14 = vld [vmem:[#allocation6 + $0x1a0] ss:$28 sps:$4 sm:$0xff]  }
 0x8fa   :  { %8755 = vmatprep.subr.bf16.mxu0 %v13984_v0  ;;  %v14000_v0 = vld [vmem:[#allocation6 + $0x470] ss:$28 sps:$4 sm:$0xff]  }
 0x8fd   :  { %12532 = vmatpush3.bf16.xpose.msra.mxu1 %v13981_v60  ;;  %v14005_v60 = vld [vmem:[#allocation6 + $0x4ac] ss:$28 sps:$4 sm:$0xff]  }
 0x8fe   :  { %12533 = vmatprep.subr.bf16.mxu1 %v13985_v26  ;;  %v14003_v26 = vld [vmem:[#allocation6 + $0x4a8] ss:$28 sps:$4 sm:$0xff]  }
 0x900   :  { %8747 = vmatmul.mubr.bf16.vlgmr.msra.gmra.mrb[16].mxu0 %v16729_v17  ;;  %v14002_v17 = vld [vmem:[#allocation6 + $0x474] ss:$28 sps:$4 sm:$0xff]  }
 0x901   :  { %8756 = vmatpush1.bf16.xpose.msra.mxu0 %v13982_v39  ;;  %8787 = vmatprep.mubr.bf16.mxu0 %v7076_v44  ;;  %v13997_v44 = vld [vmem:[#allocation6 + $0x438] ss:$28 sps:$4 sm:$0xff]   ;;  %v14008_v39 = vld [vmem:[#allocation6 + $0x4e4] ss:$28 sps:$4 sm:$0xff]  }
 0x902   :  { %8757 = vmatprep.subr.bf16.mxu0 %v13989_v49  ;;  %v14006_v49 = vld [vmem:[#allocation6 + $0x4e0] ss:$28 sps:$4 sm:$0xff]  }
 0x905   :  { %12534 = vmatpush3.bf16.xpose.msra.mxu1 %v13986_v19  ;;  %v14011_v19 = vld [vmem:[#allocation6 + $0x51c] ss:$28 sps:$4 sm:$0xff]  }
 0x906   :  { %12535 = vmatprep.subr.bf16.mxu1 %v13990_v22  ;;  %v16760_v22 = vld [vmem:[#allocation7] ss:$16 sps:$4 sm:$0xff]  }
 0x909   :  { %8758 = vmatpush1.bf16.xpose.msra.mxu0 %v13987_v43  ;;  %v16762_v43 = vld [vmem:[#allocation7 + $0x4] ss:$16 sps:$4 sm:$0xff]  }
 0x90a   :  { %8759 = vmatprep.subr.bf16.mxu0 %v13994_v27  ;;  %v14009_v27 = vld [vmem:[#allocation6 + $0x518] ss:$28 sps:$4 sm:$0xff]  }
 0x90d   :  { %12536 = vmatpush3.bf16.xpose.msra.mxu1 %v13991_v59  ;;  %v14014_v59 = vld [vmem:[#allocation6 + $0x554] ss:$28 sps:$4 sm:$0xff]  }
 0x90e   :  { %12537 = vmatprep.subr.bf16.mxu1 %v13995_v4  ;;  %v16766_v4 = vld [vmem:[#allocation7 + $0x20] ss:$16 sps:$4 sm:$0xff]  }
 0x911   :  { %8760 = vmatpush1.bf16.xpose.msra.mxu0 %v13992_v47  ;;  %v16768_v47 = vld [vmem:[#allocation7 + $0x24] ss:$16 sps:$4 sm:$0xff]  }
 0x912   :  { %8761 = vmatprep.subr.bf16.mxu0 %v13999_v41  ;;  %v14012_v41 = vld [vmem:[#allocation6 + $0x550] ss:$28 sps:$4 sm:$0xff]  }
 0x915   :  { %12538 = vmatpush3.bf16.xpose.msra.mxu1 %v13996_v14  ;;  %v14017_v14 = vld [vmem:[#allocation6 + $0x58c] ss:$28 sps:$4 sm:$0xff]  }
 0x916   :  { %9038 = vmatprep.subr.bf16.mxu1 %v16762_v43 }
 0x919   :  { %8762 = vmatpush1.bf16.xpose.msra.mxu0 %v13997_v44  ;;  %v16772_v44 = vld [vmem:[#allocation7 + $0x40] ss:$16 sps:$4 sm:$0xff]  }
 0x91a   :  { %8763 = vmatprep.subr.bf16.mxu0 %v14002_v17  ;;  %v16774_v17 = vld [vmem:[#allocation7 + $0x44] ss:$16 sps:$4 sm:$0xff]  }
 0x91c   :  { %12540 = vmatmul.mubr.bf16.vlgmr.msra.gmra.mrb[16].mxu1 %v16754_v3 }
 0x91d   :  { %9039 = vmatpush1.bf16.xpose.msra.mxu1 %v16760_v22 }
 0x91e   :  { %9040 = vmatprep.subr.bf16.mxu1 %v16768_v47 }
 0x921   :  { %8764 = vmatpush1.bf16.xpose.msra.mxu0 %v14000_v0  ;;  %v16776_v0 = vld [vmem:[#allocation7 + $0x64] ss:$16 sps:$4 sm:$0xff]  }
 0x922   :  { %8765 = vmatprep.subr.bf16.mxu0 %v14005_v60  ;;  %v14015_v60 = vld [vmem:[#allocation6 + $0x588] ss:$28 sps:$4 sm:$0xff]  }
 0x925   :  { %9041 = vmatpush1.bf16.xpose.msra.mxu1 %v16766_v4 }
 0x926   :  { %9042 = vmatprep.subr.bf16.mxu1 %v16774_v17 }
 0x929   :  { %8766 = vmatpush1.bf16.xpose.msra.mxu0 %v14003_v26  ;;  %v14020_v26 = vld [vmem:[#allocation6 + $0x5c4] ss:$28 sps:$4 sm:$0xff]  }
 0x92a   :  { %8767 = vmatprep.subr.bf16.mxu0 %v14008_v39  ;;  %v16781_v39 = vld [vmem:[#allocation7 + $0x60] ss:$16 sps:$4 sm:$0xff]  }
 0x92d   :  { %9043 = vmatpush1.bf16.xpose.msra.mxu1 %v16772_v44 }
 0x92e   :  { %9044 = vmatprep.subr.bf16.mxu1 %v16776_v0 }
 0x931   :  { %8768 = vmatpush1.bf16.xpose.msra.mxu0 %v14006_v49  ;;  %v16783_v49 = vld [vmem:[#allocation7 + $0x84] ss:$16 sps:$4 sm:$0xff]  }
 0x932   :  { %8769 = vmatprep.subr.bf16.mxu0 %v14011_v19  ;;  %v14018_v19 = vld [vmem:[#allocation6 + $0x5c0] ss:$28 sps:$4 sm:$0xff]  }
 0x935   :  { %9045 = vmatpush1.bf16.xpose.msra.mxu1 %v16781_v39 }
 0x936   :  { %9046 = vmatprep.subr.bf16.mxu1 %v16783_v49 }
 0x939   :  { %8770 = vmatpush1.bf16.xpose.msra.mxu0 %v14009_v27  ;;  %v14023_v27 = vld [vmem:[#allocation6 + $0x5fc] ss:$28 sps:$4 sm:$0xff]  }
 0x93a   :  { %8771 = vmatprep.subr.bf16.mxu0 %v14014_v59  ;;  %v16787_v59 = vld [vmem:[#allocation7 + $0x80] ss:$16 sps:$4 sm:$0xff]  }
 0x93d   :  { %9047 = vmatpush1.bf16.xpose.msra.mxu1 %v16787_v59 }
 0x941   :  { %8772 = vmatpush1.bf16.xpose.msra.mxu0 %v14012_v41  ;;  %v16789_v41 = vld [vmem:[#allocation7 + $0xa4] ss:$16 sps:$4 sm:$0xff]  }
 0x942   :  { %8773 = vmatprep.subr.bf16.mxu0 %v14017_v14  ;;  %v14021_v14 = vld [vmem:[#allocation6 + $0x5f8] ss:$28 sps:$4 sm:$0xff]   ;;  %9048 = vmatprep.subr.bf16.mxu1 %v16789_v41 }
 0x945   :  { %9049 = vmatpush1.bf16.xpose.msra.mxu1 %v16793_v36 }
 0x949   :  { %8774 = vmatpush1.bf16.xpose.msra.mxu0 %v14015_v60  ;;  %v14026_v60 = vld [vmem:[#allocation6 + $0x634] ss:$28 sps:$4 sm:$0xff]  }
 0x94a   :  { %8775 = vmatprep.subr.bf16.mxu0 %v14020_v26  ;;  %v16795_v26 = vld [vmem:[#allocation7 + $0xc4] ss:$16 sps:$4 sm:$0xff]  }
 0x94b   :  { %9050 = vmatprep.subr.bf16.mxu1 %v16795_v26 }
 0x94d   :  { %9051 = vmatpush1.bf16.xpose.msra.mxu1 %v16799_v7 }
 0x94e   :  { %9052 = vmatprep.subr.bf16.mxu1 %v16802_v34 }
 0x951   :  { %8776 = vmatpush1.bf16.xpose.msra.mxu0 %v14018_v19  ;;  %v14029_v19 = vld [vmem:[#allocation6 + $0x66c] ss:$28 sps:$4 sm:$0xff]  }
 0x952   :  { %8777 = vmatprep.subr.bf16.mxu0 %v14023_v27  ;;  %v14027_v27 = vld [vmem:[#allocation6 + $0x668] ss:$28 sps:$4 sm:$0xff]  }
 0x959   :  { %8778 = vmatpush1.bf16.xpose.msra.mxu0 %v14021_v14  ;;  %v14030_v14 = vld [vmem:[#allocation6 + $0x6a0] ss:$28 sps:$4 sm:$0xff]  }
 0x95a   :  { %8779 = vmatprep.subr.bf16.mxu0 %v14026_v60  ;;  %v16804_v60 = vld [vmem:[#allocation7 + $0xe0] ss:$16 sps:$4 sm:$0xff]  }
 0x95b   :  { %9053 = vmatpush1.bf16.xpose.msra.mxu1 %v16804_v60 }
 0x95c   :  { %9078 = vmatprep.subr.bf16.mxu1 %v16810_v8 }
 0x961   :  { %8780 = vmatpush1.bf16.xpose.msra.mxu0 %v14024_v45  ;;  %v14033_v45 = vld [vmem:[#allocation6 + $0x6d8] ss:$28 sps:$4 sm:$0xff]  }
 0x962   :  { %8781 = vmatprep.subr.bf16.mxu0 %v14029_v19  ;;  %v16808_v19 = vld [vmem:[#allocation6 + $0x558] ss:$28 sps:$4 sm:$0xff]  }
 0x969   :  { %8782 = vmatpush1.bf16.xpose.msra.mxu0 %v14027_v27  ;;  %v16816_v27 = vld [vmem:[#allocation6 + $0x590] ss:$28 sps:$4 sm:$0xff]  }
 0x96a   :  { %8783 = vmatprep.subr.bf16.mxu0 %v14032_v51  ;;  %v16814_v51 = vld [vmem:[#allocation6 + $0x398] ss:$28 sps:$4 sm:$0xff]  }
 0x971   :  { %8784 = vmatpush1.bf16.xpose.msra.mxu0 %v14030_v14  ;;  %v16824_v14 = vld [vmem:[#allocation6 + $0x5c8] ss:$28 sps:$4 sm:$0xff]  }
 0x972   :  { %8785 = vmatprep.subr.bf16.mxu0 %v14035_v54  ;;  %v16822_v54 = vld [vmem:[#allocation6 + $0x3d0] ss:$28 sps:$4 sm:$0xff]   ;;  %18655 = vst [vmem:[#allocation487_spill] sm:$0xff] %v16824_v14 }
 0x979   :  { %8786 = vmatpush1.bf16.xpose.msra.mxu0 %v14033_v45  ;;  %v16828_v45 = vld [vmem:[#allocation6 + $0x408] ss:$28 sps:$4 sm:$0xff]  }
 0x97a   :  { %12541 = vmatprep.subr.bf16.mxu0 %v16808_v19  ;;  %18656 = vst [vmem:[#allocation488_spill] sm:$0xff] %v16828_v45 }
 0x980   :  { %8788 = vmatmul.mubr.bf16.vlgmr.msra.gmra.mrb[16].mxu0 %v16752_v16  ;;  %v16834_v16 = vld [vmem:[#allocation6 + $0x440] ss:$28 sps:$4 sm:$0xff]  }
 0x981   :  { %12542 = vmatpush3.bf16.xpose.msra.mxu0 %v16814_v51  ;;  %12557 = vmatprep.mubr.bf16.mxu0 %v16754_v3  ;;  %18658 = vst [vmem:[#allocation490_spill] sm:$0xff] %v16834_v16 }
 0x982   :  { %12543 = vmatprep.subr.bf16.mxu0 %v16816_v27 }
 0x989   :  { %12544 = vmatpush3.bf16.xpose.msra.mxu0 %v16822_v54 }
 0x98a   :  { %12545 = vmatprep.subr.bf16.mxu0 %v16824_v14 }
 0x991   :  { %12546 = vmatpush3.bf16.xpose.msra.mxu0 %v16828_v45 }
 0x992   :  { %12547 = vmatprep.subr.bf16.mxu0 %v16830_v46 }
 0x999   :  { %12548 = vmatpush3.bf16.xpose.msra.mxu0 %v16834_v16 }
 0x99a   :  { %12549 = vmatprep.subr.bf16.mxu0 %v16836_v24 }
 0x9a1   :  { %12550 = vmatpush3.bf16.xpose.msra.mxu0 %v16840_v38 }
 0x9a2   :  { %12551 = vmatprep.subr.bf16.mxu0 %v16842_v13 }
 0x9a9   :  { %12552 = vmatpush3.bf16.xpose.msra.mxu0 %v16846_v10  ;;  %v16968_v10 = vld [vmem:[#allocation12 + $0x3] ss:$0 sm:$0xff] }
 0x9aa   :  { %12553 = vmatprep.subr.bf16.mxu0 %v16848_v62  ;;  %v14114_v62 = vld [vmem:[#allocation10 + $0x30] sm:$0xff]  }
 0x9b1   :  { %12554 = vmatpush3.bf16.xpose.msra.mxu0 %v16852_v56  ;;  %v14113_v56 = vld [vmem:[#allocation10 + $0x28] sm:$0xff]  }
 0x9b2   :  { %12555 = vmatprep.subr.bf16.mxu0 %v16854_v11  ;;  %v16925_v11 = vld [vmem:[#allocation9] sm:$0xff]  }
 0x9b9   :  { %12556 = vmatpush3.bf16.xpose.msra.mxu0 %v16858_v1 }
 0x9c0   :  { %12558 = vmatmul.mubr.bf16.vlgmr.msra.gmra.mrb[16].mxu0 %v16754_v3 }
 0x9c1   :  { %12783 = vmatprep.mubr.msk.bf16.mxu0 %vm14979_vm0, %v18667_v57 }
 0x9ef   :  { %v8666_v20 = vpop.f32.mrb[16].mxu1 }
 0x9f0   :  { %v12822_v6 = vadd.f32 %v8666_v20, %v16863_v40  ;;  %v8668_v55 = vpop.f32.mrb[17].mxu1  ;;  %v16876_v20 = vld [vmem:[#allocation7 + $0x28] ss:$16 sps:$4 sm:$0xff]  }
 0x9f1   :  { %v12823_v42 = vadd.f32 %v8668_v55, %v16866_v33  ;;  %v8670_v31 = vpop.f32.mrb[18].mxu1  ;;  %v16900_v55 = vld [vmem:[#allocation7 + $0xa8] ss:$16 sps:$4 sm:$0xff]  }
 0x9f2   :  { %v8837_v25 = vmax.f32 %v12822_v6, 0.0  ;;  %v8671_v18 = vpop.f32.mrb[19].mxu1  ;;  %v16894_v31 = vld [vmem:[#allocation7 + $0x88] ss:$16 sps:$4 sm:$0xff]   ;;  %v18171_v6 = vmov 0.0  }
 0x9f3   :  { %v8838_v9 = vmax.f32 %v12823_v42, 0.0  ;;  %v16884_v18 = vld [vmem:[#allocation7 + $0x6c] ss:$16 sps:$4 sm:$0xff]   ;;  %12767 = vmatprep.subr.bf16.mxu0 %v18171_v6 }
 0x9f4   :  { %v8841_v3 = vpack.c.bf16 %v8837_v25, %v8837_v25  ;;  %v16890_v25 = vld [vmem:[#allocation7 + $0x8c] ss:$16 sps:$4 sm:$0xff]  }
 0x9f5   :  { %v8842_v63 = vpack.c.bf16 %v8838_v9, %v8838_v9  ;;  %v16882_v9 = vld [vmem:[#allocation7 + $0x48] ss:$16 sps:$4 sm:$0xff]   ;;  %v16896_v42 = vld [vmem:[#allocation7 + $0xac] ss:$16 sps:$4 sm:$0xff]  }
 0x9f7   :  { %9070 = vmatprep.mubr.bf16.mxu1 %v8842_v63  ;;  %v16888_v63 = vld [vmem:[#allocation7 + $0x68] ss:$16 sps:$4 sm:$0xff]  }
 0x9f8   :  { %9071 = vmatmul.mubr.bf16.vlgmr.msra.gmra.mrb[20].mxu1 %v8841_v3  ;;  %v16903_v3 = vld [vmem:[#allocation7 + $0xcc] ss:$16 sps:$4 sm:$0xff]  }
 0x9f9   :  { %9079 = vmatpush1.bf16.xpose.msra.mxu1 %v16870_v61 }
 0x9fa   :  { %9080 = vmatprep.subr.bf16.mxu1 %v16872_v53 }
 0xa01   :  { %9081 = vmatpush1.bf16.xpose.msra.mxu1 %v16876_v20 }
 0xa02   :  { %9082 = vmatprep.subr.bf16.mxu1 %v16878_v50 }
 0xa09   :  { %9083 = vmatpush1.bf16.xpose.msra.mxu1 %v16882_v9 }
 0xa0a   :  { %9084 = vmatprep.subr.bf16.mxu1 %v16884_v18 }
 0xa11   :  { %9085 = vmatpush1.bf16.xpose.msra.mxu1 %v16888_v63 }
 0xa12   :  { %9086 = vmatprep.subr.bf16.mxu1 %v16890_v25 }
 0xa19   :  { %9087 = vmatpush1.bf16.xpose.msra.mxu1 %v16894_v31 }
 0xa1a   :  { %9088 = vmatprep.subr.bf16.mxu1 %v16896_v42 }
 0xa21   :  { %9089 = vmatpush1.bf16.xpose.msra.mxu1 %v16900_v55 }
 0xa22   :  { %9090 = vmatprep.subr.bf16.mxu1 %v16903_v3 }
 0xa29   :  { %9091 = vmatpush1.bf16.xpose.msra.mxu1 %v16907_v32 }
 0xa2a   :  { %9092 = vmatprep.subr.bf16.mxu1 %v16909_v48 }
 0xa31   :  { %9093 = vmatpush1.bf16.xpose.msra.mxu1 %v16913_v37 }
 0xa32   :  { %12727 = vmatprep.subr.bf16.mxu1 %v18171_v6 }
 0xa93   :  { %v8830_v28 = vpop.f32.mrb[16].mxu0 }
 0xa94   :  { %v12824_v23 = vadd.f32 %v8830_v28, %v16918_v35  ;;  %v8832_v21 = vpop.f32.mrb[17].mxu0  ;;  %v14109_v28 = vld [vmem:[#allocation10 + $0x8] sm:$0xff]  }
 0xa95   :  { %v12825_v15 = vadd.f32 %v8832_v21, %v16921_v29  ;;  %v8834_v12 = vpop.f32.mrb[18].mxu0  ;;  %v16953_v21 = vld [vmem:[#allocation9 + $0x38] sm:$0xff]  }
 0xa96   :  { %v8839_v5 = vmax.f32 %v12824_v23, 0.0  ;;  %v8835_v2 = vpop.f32.mrb[19].mxu0  ;;  %v16933_v12 = vld [vmem:[#allocation9 + $0x10] sm:$0xff]   ;;  %v14108_v23 = vld [vmem:[#allocation10] sm:$0xff]  }
 0xa97   :  { %v8840_v58 = vmax.f32 %v12825_v15, 0.0  ;;  %v16941_v2 = vld [vmem:[#allocation9 + $0x20] sm:$0xff]   ;;  %v16949_v15 = vld [vmem:[#allocation9 + $0x30] sm:$0xff]   ;;  %12768 = vmatpush3.bf16.msra.mxu0 %v14108_v23 }
 0xa98   :  { %v8843_v6 = vpack.c.bf16 %v8839_v5, %v8839_v5  ;;  %v16945_v5 = vld [vmem:[#allocation9 + $0x28] sm:$0xff]   ;;  %12769 = vmatprep.subr.bf16.mxu0 %v18667_v57 }
 0xa99   :  { %v8844_v1 = vpack.c.bf16 %v8840_v58, %v8840_v58  ;;  %v16937_v58 = vld [vmem:[#allocation9 + $0x18] sm:$0xff]  }
 0xa9b   :  { %9110 = vmatprep.mubr.bf16.mxu1 %v8844_v1  ;;  %12770 = vmatpush3.bf16.msra.mxu0 %v14109_v28  ;;  %v14110_v1 = vld [vmem:[#allocation10 + $0x10] sm:$0xff]  }
 0xa9c   :  { %9111 = vmatmul.mubr.bf16.vlgmr.msra.gmra.mrb[20].mxu1 %v8843_v6  ;;  %12771 = vmatprep.subr.bf16.mxu0 %v18667_v57  ;;  %v14111_v6 = vld [vmem:[#allocation10 + $0x18] sm:$0xff]  }
 0xa9d   :  { %12728 = vmatpush3.bf16.xpose.msra.mxu1 %v16925_v11  ;;  %12743 = vmatprep.mubr.msk.bf16.mxu1 %vm14979_vm0, %v18667_v57 }
 0xa9e   :  { %12729 = vmatprep.subr.bf16.mxu1 %v18667_v57 }
 0xa9f   :  { %12772 = vmatpush3.bf16.msra.mxu0 %v14110_v1 }
 0xaa0   :  { %12773 = vmatprep.subr.bf16.mxu0 %v18667_v57 }
 0xaa3   :  { %12774 = vmatpush3.bf16.msra.mxu0 %v14111_v6 }
 0xaa4   :  { %12775 = vmatprep.subr.bf16.mxu0 %v18667_v57 }
 0xaa5   :  { %12730 = vmatpush3.bf16.xpose.msra.mxu1 %v16929_v52 }
 0xaa6   :  { %12731 = vmatprep.subr.bf16.mxu1 %v18667_v57 }
 0xaa7   :  { %12776 = vmatpush3.bf16.msra.mxu0 %v14112_v30 }
 0xaa8   :  { %12777 = vmatprep.subr.bf16.mxu0 %v18667_v57 }
 0xaab   :  { %12778 = vmatpush3.bf16.msra.mxu0 %v14113_v56 }
 0xaac   :  { %12779 = vmatprep.subr.bf16.mxu0 %v18667_v57 }
 0xaad   :  { %12732 = vmatpush3.bf16.xpose.msra.mxu1 %v16933_v12 }
 0xaae   :  { %12733 = vmatprep.subr.bf16.mxu1 %v18667_v57 }
 0xaaf   :  { %12780 = vmatpush3.bf16.msra.mxu0 %v14114_v62 }
 0xab0   :  { %12781 = vmatprep.subr.bf16.mxu0 %v18667_v57 }
 0xab5   :  { %12734 = vmatpush3.bf16.xpose.msra.mxu1 %v16937_v58 }
 0xab6   :  { %12735 = vmatprep.subr.bf16.mxu1 %v18667_v57 }
 0xabd   :  { %12736 = vmatpush3.bf16.xpose.msra.mxu1 %v16941_v2 }
 0xabe   :  { %12737 = vmatprep.subr.bf16.mxu1 %v18667_v57 }
 0xac5   :  { %12738 = vmatpush3.bf16.xpose.msra.mxu1 %v16945_v5 }
 0xac6   :  { %12739 = vmatprep.subr.bf16.mxu1 %v18667_v57 }
 0xacd   :  { %12740 = vmatpush3.bf16.xpose.msra.mxu1 %v16949_v15 }
 0xace   :  { %12741 = vmatprep.subr.bf16.mxu1 %v18667_v57 }
 0xad5   :  { %12742 = vmatpush3.bf16.xpose.msra.mxu1 %v16953_v21 }
 0xad6   :  { %12747 = vmatprep.subr.bf16.mxu1 %v18667_v57 }
 0xb6f   :  { %v9112_v13 = vpop.f32.mrb[20].mxu1 }
 0xb70   :  { %v12826_v38 = vadd.f32 %v9112_v13, %v16968_v10  ;;  %v9114_v24 = vpop.f32.mrb[21].mxu1  ;;  %v9136_v13 = vld [vmem:[#allocation12 + $0x4] ss:$0 sm:$0xff] }
 0xb71   :  { %v9115_v16 = vpop.f32.mrb[22].mxu1 }
 0xb72   :  { %v9118_v46 = vmax.f32 %v12826_v38, 0.0  ;;  %v9116_v45 = vpop.f32.mrb[23].mxu1 }
 0xb74   :  { %v9119_v14 = vpack.c.bf16 %v9118_v46, %v9118_v46  ;;  %v14115_v46 = vld [vmem:[#allocation10 + $0x38] sm:$0xff]  }
 0xb75   :  { %12782 = vmatpush3.bf16.msra.mxu0 %v14115_v46 }
 0xb76   :  { %12744 = vmatmul.mubr.bf16.vlgmr.msra.gmra.mrb[24].mxu1 %v9119_v14  ;;  %12787 = vmatprep.subr.bf16.mxu0 %v18667_v57 }
 0xb77   :  { %12748 = vmatpush3.bf16.xpose.msra.mxu1 %v14108_v23  ;;  %12763 = vmatprep.mubr.msk.bf16.mxu1 %vm14979_vm0, %v18667_v57  ;;  %v14165_v23 = vld [vmem:[#allocation6 + $0x11c] ss:$28 sps:$4 sm:$0xff]  }
 0xb78   :  { %12749 = vmatprep.subr.bf16.mxu1 %v18667_v57 }
 0xb7f   :  { %12750 = vmatpush3.bf16.xpose.msra.mxu1 %v14109_v28  ;;  %v14166_v28 = vld [vmem:[#allocation6 + $0x124] ss:$28 sps:$4 sm:$0xff]  }
 0xb80   :  { %12751 = vmatprep.subr.bf16.mxu1 %v18667_v57 }
 0xb87   :  { %12752 = vmatpush3.bf16.xpose.msra.mxu1 %v14110_v1  ;;  %v14167_v1 = vld [vmem:[#allocation6 + $0x118] ss:$28 sps:$4 sm:$0xff]  }
 0xb88   :  { %12753 = vmatprep.subr.bf16.mxu1 %v18667_v57 }
 0xb8f   :  { %12754 = vmatpush3.bf16.xpose.msra.mxu1 %v14111_v6  ;;  %v14168_v6 = vld [vmem:[#allocation6 + $0x120] ss:$28 sps:$4 sm:$0xff]  }
 0xb90   :  { %12755 = vmatprep.subr.bf16.mxu1 %v18667_v57 }
 0xb97   :  { %12756 = vmatpush3.bf16.xpose.msra.mxu1 %v14112_v30 }
 0xb98   :  { %12757 = vmatprep.subr.bf16.mxu1 %v18667_v57 }
 0xb9f   :  { %12758 = vmatpush3.bf16.xpose.msra.mxu1 %v14113_v56 }
 0xba0   :  { %12759 = vmatprep.subr.bf16.mxu1 %v18667_v57 }
 0xba7   :  { %12760 = vmatpush3.bf16.xpose.msra.mxu1 %v14114_v62 }
 0xba8   :  { %12761 = vmatprep.subr.bf16.mxu1 %v18667_v57 }
 0xbaf   :  { %12762 = vmatpush3.bf16.xpose.msra.mxu1 %v14115_v46  ;;  %v14169_v46 = vld [vmem:[#allocation6 + $0x154] ss:$28 sps:$4 sm:$0xff]  }
 0xbb0   :  { %9459 = vmatprep.subr.bf16.mxu1 %v16810_v8 }
 0xc49   :  { %v9219_v38 = vpop.f32.mrb[24].mxu1 }
 0xc4a   :  { %v9220_v24 = vadd.f32 %v9219_v38, %v9136_v13  ;;  %v12745_v14 = vpop.f32.mrb[25].mxu1  ;;  %v14171_v38 = vld [vmem:[#allocation6 + $0x150] ss:$28 sps:$4 sm:$0xff]  }
 0xc4b   :  { %v9222_v30 = vpop.f32.mrb[26].mxu1  ;;  %v14173_v14 = vld [vmem:[#allocation6 + $0x18c] ss:$28 sps:$4 sm:$0xff]  }
 0xc4c   :  { %v9225_v45 = vmax.f32 %v9220_v24, 0.0  ;;  %v12746_v16 = vpop.f32.mrb[27].mxu1  ;;  %v14172_v24 = vld [vmem:[#allocation6 + $0x158] ss:$28 sps:$4 sm:$0xff]  }
 0xc4d   :  { %v14174_v30 = vld [vmem:[#allocation6 + $0x194] ss:$28 sps:$4 sm:$0xff]  }
 0xc4e   :  { %v9226_v56 = vpack.c.bf16 %v9225_v45, %v9225_v45  ;;  %v14175_v45 = vld [vmem:[#allocation6 + $0x188] ss:$28 sps:$4 sm:$0xff]   ;;  %v14176_v16 = vld [vmem:[#allocation6 + $0x190] ss:$28 sps:$4 sm:$0xff]  }
 0xc50   :  { %12764 = vmatmul.mubr.bf16.vlgmr.msra.gmra.mrb[28].mxu1 %v9226_v56  ;;  %v14177_v56 = vld [vmem:[#allocation6 + $0x1c4] ss:$28 sps:$4 sm:$0xff]  }
 0xc51   :  { %9460 = vmatpush1.bf16.msra.mxu1 %v16870_v61 }
 0xc52   :  { %9461 = vmatprep.subr.bf16.mxu1 %v16872_v53  ;;  %v9243_v53 = vld [vmem:[#allocation12 + $0x5] ss:$0 sm:$0xff] }
 0xc55   :  { %9462 = vmatpush1.bf16.msra.mxu1 %v16876_v20 }
 0xc56   :  { %9463 = vmatprep.subr.bf16.mxu1 %v16878_v50  ;;  %v14145_v50 = vld [vmem:[#allocation6 + $0xc] ss:$28 sps:$4 sm:$0xff]  }
 0xc59   :  { %9464 = vmatpush1.bf16.msra.mxu1 %v16882_v9 }
 0xc5a   :  { %9465 = vmatprep.subr.bf16.mxu1 %v16884_v18 }
 0xc5d   :  { %9466 = vmatpush1.bf16.msra.mxu1 %v16888_v63 }
 0xc5e   :  { %9467 = vmatprep.subr.bf16.mxu1 %v16890_v25 }
 0xc61   :  { %9468 = vmatpush1.bf16.msra.mxu1 %v16894_v31 }
 0xc62   :  { %9469 = vmatprep.subr.bf16.mxu1 %v16896_v42  ;;  %v14155_v42 = vld [vmem:[#allocation6 + $0x70] ss:$28 sps:$4 sm:$0xff]  }
 0xc65   :  { %9470 = vmatpush1.bf16.msra.mxu1 %v16900_v55  ;;  %v14156_v55 = vld [vmem:[#allocation6 + $0x78] ss:$28 sps:$4 sm:$0xff]  }
 0xc66   :  { %9471 = vmatprep.subr.bf16.mxu1 %v16903_v3  ;;  %v14157_v3 = vld [vmem:[#allocation6 + $0xac] ss:$28 sps:$4 sm:$0xff]  }
 0xc69   :  { %9472 = vmatpush1.bf16.msra.mxu1 %v16907_v32 }
 0xc6a   :  { %9473 = vmatprep.subr.bf16.mxu1 %v16909_v48 }
 0xc6d   :  { %9474 = vmatpush1.bf16.msra.mxu1 %v16913_v37 }
 0xc6e   :  { %9590 = vmatprep.subr.bf16.mxu1 %v14145_v50  ;;  %v14178_v50 = vld [vmem:[#allocation6 + $0x1cc] ss:$28 sps:$4 sm:$0xff]  }
 0xd23   :  { %v9326_v61 = vpop.f32.mrb[28].mxu1 }
 0xd24   :  { %v9327_v62 = vadd.f32 %v9326_v61, %v9243_v53  ;;  %v12765_v8 = vpop.f32.mrb[29].mxu1  ;;  %v14179_v53 = vld [vmem:[#allocation6 + $0x1c0] ss:$28 sps:$4 sm:$0xff]   ;;  %v14180_v61 = vld [vmem:[#allocation6 + $0x1c8] ss:$28 sps:$4 sm:$0xff]  }
 0xd25   :  { %v9329_v20 = vpop.f32.mrb[30].mxu1  ;;  %v14182_v8 = vld [vmem:[#allocation6 + $0x204] ss:$28 sps:$4 sm:$0xff]  }
 0xd26   :  { %v9332_v9 = vmax.f32 %v9327_v62, 0.0  ;;  %v12766_v18 = vpop.f32.mrb[31].mxu1  ;;  %v14181_v62 = vld [vmem:[#allocation6 + $0x1fc] ss:$28 sps:$4 sm:$0xff]  }
 0xd27   :  { %v14183_v20 = vld [vmem:[#allocation6 + $0x1f8] ss:$28 sps:$4 sm:$0xff]  }
 0xd28   :  { %v9333_v63 = vpack.c.bf16 %v9332_v9, %v9332_v9  ;;  %v14184_v9 = vld [vmem:[#allocation6 + $0x200] ss:$28 sps:$4 sm:$0xff]   ;;  %v14185_v18 = vld [vmem:[#allocation6 + $0x234] ss:$28 sps:$4 sm:$0xff]  }
 0xd2a   :  { %12784 = vmatmul.mubr.bf16.vlgmr.msra.gmra.mrb[20].mxu0 %v9333_v63  ;;  %v14186_v63 = vld [vmem:[#allocation6 + $0x23c] ss:$28 sps:$4 sm:$0xff]  }
 0xd2b   :  { %12788 = vmatpush3.bf16.msra.mxu0 %v16925_v11  ;;  %12803 = vmatprep.mubr.msk.bf16.mxu0 %vm14979_vm0, %v18667_v57 }
 0xd2c   :  { %12789 = vmatprep.subr.bf16.mxu0 %v18667_v57 }
 0xd2f   :  { %12790 = vmatpush3.bf16.msra.mxu0 %v16929_v52 }
 0xd30   :  { %12791 = vmatprep.subr.bf16.mxu0 %v18667_v57 }
 0xd33   :  { %12792 = vmatpush3.bf16.msra.mxu0 %v16933_v12  ;;  %v14159_v12 = vld [vmem:[#allocation6 + $0xa8] ss:$28 sps:$4 sm:$0xff]  }
 0xd34   :  { %12793 = vmatprep.subr.bf16.mxu0 %v18667_v57 }
 0xd37   :  { %12794 = vmatpush3.bf16.msra.mxu0 %v16937_v58  ;;  %v14160_v58 = vld [vmem:[#allocation6 + $0xb0] ss:$28 sps:$4 sm:$0xff]  }
 0xd38   :  { %12795 = vmatprep.subr.bf16.mxu0 %v18667_v57 }
 0xd3b   :  { %12796 = vmatpush3.bf16.msra.mxu0 %v16941_v2  ;;  %v14161_v2 = vld [vmem:[#allocation6 + $0xe4] ss:$28 sps:$4 sm:$0xff]  }
 0xd3c   :  { %12797 = vmatprep.subr.bf16.mxu0 %v18667_v57 }
 0xd3f   :  { %12798 = vmatpush3.bf16.msra.mxu0 %v16945_v5  ;;  %v14162_v5 = vld [vmem:[#allocation6 + $0xec] ss:$28 sps:$4 sm:$0xff]  }
 0xd40   :  { %12799 = vmatprep.subr.bf16.mxu0 %v18667_v57 }
 0xd43   :  { %12800 = vmatpush3.bf16.msra.mxu0 %v16949_v15  ;;  %v14163_v15 = vld [vmem:[#allocation6 + $0xe0] ss:$28 sps:$4 sm:$0xff]  }
 0xd44   :  { %12801 = vmatprep.subr.bf16.mxu0 %v18667_v57  ;;  %v14158_v57 = vld [vmem:[#allocation6 + $0xb4] ss:$28 sps:$4 sm:$0xff]  }
 0xd47   :  { %12802 = vmatpush3.bf16.msra.mxu0 %v16953_v21  ;;  %v14164_v21 = vld [vmem:[#allocation6 + $0xe8] ss:$28 sps:$4 sm:$0xff]  }
 0xd48   :  { %9418 = vmatprep.subr.bf16.mxu0 %v16762_v43  ;;  %v14980_v43 = vmov 0  }
 0xd49   :  { %9491 = vmatprep.mubr.bf16.mxu1 %v14980_v43 }
 0xdfd   :  { %v9368_v37 = vpop.f32.mrb[20].mxu0 }
 0xdfe   :  { %v9369_v48 = vadd.f32 %v9368_v37, %v9136_v13  ;;  %v12785_v11 = vpop.f32.mrb[21].mxu0  ;;  %v14170_v13 = vld [vmem:[#allocation6 + $0x15c] ss:$28 sps:$4 sm:$0xff]   ;;  %v14187_v37 = vld [vmem:[#allocation6 + $0x230] ss:$28 sps:$4 sm:$0xff]  }
 0xdff   :  { %v9371_v52 = vpop.f32.mrb[22].mxu0  ;;  %v14189_v11 = vld [vmem:[#allocation6 + $0x26c] ss:$28 sps:$4 sm:$0xff]  }
 0xe00   :  { %v9374_v32 = vmax.f32 %v9369_v48, 0.0  ;;  %v12786_v25 = vpop.f32.mrb[23].mxu0  ;;  %v14188_v48 = vld [vmem:[#allocation6 + $0x238] ss:$28 sps:$4 sm:$0xff]  }
 0xe01   :  { %v14190_v52 = vld [vmem:[#allocation6 + $0x274] ss:$28 sps:$4 sm:$0xff]  }
 0xe02   :  { %v9375_v31 = vpack.c.bf16 %v9374_v32, %v9374_v32  ;;  %v14191_v32 = vld [vmem:[#allocation6 + $0x268] ss:$28 sps:$4 sm:$0xff]   ;;  %v14192_v25 = vld [vmem:[#allocation6 + $0x270] ss:$28 sps:$4 sm:$0xff]  }
 0xe04   :  { %12804 = vmatmul.mubr.bf16.vlgmr.msra.gmra.mrb[24].mxu0 %v9375_v31  ;;  %v14193_v31 = vld [vmem:[#allocation6 + $0x2a4] ss:$28 sps:$4 sm:$0xff]  }
 0xe05   :  { %9419 = vmatpush1.bf16.msra.mxu0 %v16760_v22  ;;  %v14146_v22 = vld [vmem:[#allocation6 + $0x4] ss:$28 sps:$4 sm:$0xff]   ;;  %9450 = vmatprep.mubr.bf16.mxu0 %v14980_v43 }
 0xe06   :  { %9420 = vmatprep.subr.bf16.mxu0 %v16768_v47 }
 0xe09   :  { %9421 = vmatpush1.bf16.msra.mxu0 %v16766_v4 }
 0xe0a   :  { %9422 = vmatprep.subr.bf16.mxu0 %v16774_v17 }
 0xe0d   :  { %9423 = vmatpush1.bf16.msra.mxu0 %v16772_v44 }
 0xe0e   :  { %9424 = vmatprep.subr.bf16.mxu0 %v16776_v0 }
 0xe11   :  { %9425 = vmatpush1.bf16.msra.mxu0 %v16781_v39 }
 0xe12   :  { %9426 = vmatprep.subr.bf16.mxu0 %v16783_v49  ;;  %v14149_v49 = vld [vmem:[#allocation6 + $0x3c] ss:$28 sps:$4 sm:$0xff]  }
 0xe15   :  { %9427 = vmatpush1.bf16.msra.mxu0 %v16787_v59  ;;  %v14150_v59 = vld [vmem:[#allocation6 + $0x44] ss:$28 sps:$4 sm:$0xff]  }
 0xe16   :  { %9428 = vmatprep.subr.bf16.mxu0 %v16789_v41  ;;  %v14151_v41 = vld [vmem:[#allocation6 + $0x38] ss:$28 sps:$4 sm:$0xff]  }
 0xe19   :  { %9429 = vmatpush1.bf16.msra.mxu0 %v16793_v36 }
 0xe1a   :  { %9430 = vmatprep.subr.bf16.mxu0 %v16795_v26  ;;  %v14152_v26 = vld [vmem:[#allocation6 + $0x40] ss:$28 sps:$4 sm:$0xff]  }
 0xe1d   :  { %9431 = vmatpush1.bf16.msra.mxu0 %v16799_v7  ;;  %v14147_v7 = vld [vmem:[#allocation6] ss:$28 sps:$4 sm:$0xff]  }
 0xe1e   :  { %9432 = vmatprep.subr.bf16.mxu0 %v16802_v34  ;;  %v14148_v34 = vld [vmem:[#allocation6 + $0x8] ss:$28 sps:$4 sm:$0xff]  }
 0xe21   :  { %9433 = vmatpush1.bf16.msra.mxu0 %v16804_v60  ;;  %v14154_v60 = vld [vmem:[#allocation6 + $0x7c] ss:$28 sps:$4 sm:$0xff]  }
 0xe22   :  { %9508 = vmatprep.subr.bf16.mxu0 %v14146_v22  ;;  %v14194_v22 = vld [vmem:[#allocation6 + $0x2ac] ss:$28 sps:$4 sm:$0xff]  }
 0xed7   :  { %v9410_v4 = vpop.f32.mrb[24].mxu0 }
 0xed8   :  { %v9411_v47 = vadd.f32 %v9410_v4, %v16968_v10  ;;  %v12805_v44 = vpop.f32.mrb[25].mxu0  ;;  %v14153_v10 = vld [vmem:[#allocation6 + $0x74] ss:$28 sps:$4 sm:$0xff]   ;;  %v14195_v4 = vld [vmem:[#allocation6 + $0x2a0] ss:$28 sps:$4 sm:$0xff]  }
 0xed9   :  { %v9413_v36 = vpop.f32.mrb[26].mxu0  ;;  %v14197_v44 = vld [vmem:[#allocation6 + $0x2dc] ss:$28 sps:$4 sm:$0xff]  }
 0xeda   :  { %v9416_v17 = vmax.f32 %v9411_v47, 0.0  ;;  %v12806_v0 = vpop.f32.mrb[27].mxu0  ;;  %v14196_v47 = vld [vmem:[#allocation6 + $0x2a8] ss:$28 sps:$4 sm:$0xff]  }
 0xedb   :  { %v14198_v36 = vld [vmem:[#allocation6 + $0x2e4] ss:$28 sps:$4 sm:$0xff]  }
 0xedc   :  { %v9417_v39 = vpack.c.bf16 %v9416_v17, %v9416_v17  ;;  %v14199_v17 = vld [vmem:[#allocation6 + $0x2d8] ss:$28 sps:$4 sm:$0xff]   ;;  %v14200_v0 = vld [vmem:[#allocation6 + $0x2e0] ss:$28 sps:$4 sm:$0xff]  }
 0xede   :  { %9451 = vmatmul.mubr.bf16.vlgmr.msra.gmra.mrb[28].mxu0 %v9417_v39  ;;  %9492 = vmatmul.mubr.bf16.vlgmr.msra.gmra.mrb[32].mxu1 %v9417_v39  ;;  %v14201_v39 = vld [vmem:[#allocation6 + $0x314] ss:$28 sps:$4 sm:$0xff]  }
 0xedf   :  { %9509 = vmatpush1.bf16.msra.mxu0 %v14147_v7  ;;  %9591 = vmatpush1.bf16.msra.mxu1 %v14148_v34  ;;  %v14202_v7 = vld [vmem:[#allocation6 + $0x31c] ss:$28 sps:$4 sm:$0xff]   ;;  %v14203_v34 = vld [vmem:[#allocation6 + $0x310] ss:$28 sps:$4 sm:$0xff]  }
 0xee0   :  { %9510 = vmatprep.subr.bf16.mxu0 %v14149_v49  ;;  %9592 = vmatprep.subr.bf16.mxu1 %v14150_v59  ;;  %v14204_v49 = vld [vmem:[#allocation6 + $0x318] ss:$28 sps:$4 sm:$0xff]   ;;  %v14205_v59 = vld [vmem:[#allocation6 + $0x34c] ss:$28 sps:$4 sm:$0xff]  }
 0xee3   :  { %9511 = vmatpush1.bf16.msra.mxu0 %v14151_v41  ;;  %9593 = vmatpush1.bf16.msra.mxu1 %v14152_v26  ;;  %v14206_v41 = vld [vmem:[#allocation6 + $0x354] ss:$28 sps:$4 sm:$0xff]   ;;  %v14207_v26 = vld [vmem:[#allocation6 + $0x348] ss:$28 sps:$4 sm:$0xff]  }
 0xee4   :  { %9512 = vmatprep.subr.bf16.mxu0 %v14153_v10  ;;  %9594 = vmatprep.subr.bf16.mxu1 %v14154_v60  ;;  %v14208_v10 = vld [vmem:[#allocation6 + $0x350] ss:$28 sps:$4 sm:$0xff]   ;;  %v14209_v60 = vld [vmem:[#allocation6 + $0x384] ss:$28 sps:$4 sm:$0xff]  }
 0xee7   :  { %9513 = vmatpush1.bf16.msra.mxu0 %v14155_v42  ;;  %9595 = vmatpush1.bf16.msra.mxu1 %v14156_v55  ;;  %v14210_v42 = vld [vmem:[#allocation6 + $0x38c] ss:$28 sps:$4 sm:$0xff]  }
 0xee8   :  { %9514 = vmatprep.subr.bf16.mxu0 %v14157_v3  ;;  %9596 = vmatprep.subr.bf16.mxu1 %v14158_v57 }
 0xeeb   :  { %9515 = vmatpush1.bf16.msra.mxu0 %v14159_v12  ;;  %9597 = vmatpush1.bf16.msra.mxu1 %v14160_v58 }
 0xeec   :  { %9516 = vmatprep.subr.bf16.mxu0 %v14161_v2  ;;  %9598 = vmatprep.subr.bf16.mxu1 %v14162_v5 }
 0xeef   :  { %9517 = vmatpush1.bf16.msra.mxu0 %v14163_v15  ;;  %9599 = vmatpush1.bf16.msra.mxu1 %v14164_v21 }
 0xef0   :  { %9518 = vmatprep.subr.bf16.mxu0 %v14165_v23  ;;  %9600 = vmatprep.subr.bf16.mxu1 %v14166_v28 }
 0xef3   :  { %9519 = vmatpush1.bf16.msra.mxu0 %v14167_v1  ;;  %9601 = vmatpush1.bf16.msra.mxu1 %v14168_v6 }
 0xef4   :  { %9520 = vmatprep.subr.bf16.mxu0 %v14169_v46  ;;  %9602 = vmatprep.subr.bf16.mxu1 %v14170_v13 }
 0xef7   :  { %9521 = vmatpush1.bf16.msra.mxu0 %v14171_v38  ;;  %9603 = vmatpush1.bf16.msra.mxu1 %v14172_v24  ;;  %v14213_v24 = vld [vmem:[#allocation6 + $0x3bc] ss:$28 sps:$4 sm:$0xff]  }
 0xef8   :  { %9522 = vmatprep.subr.bf16.mxu0 %v14173_v14  ;;  %9604 = vmatprep.subr.bf16.mxu1 %v14174_v30  ;;  %v14214_v14 = vld [vmem:[#allocation6 + $0x3c4] ss:$28 sps:$4 sm:$0xff]   ;;  %v14215_v30 = vld [vmem:[#allocation6 + $0x3b8] ss:$28 sps:$4 sm:$0xff]  }
 0xefb   :  { %9523 = vmatpush1.bf16.msra.mxu0 %v14175_v45  ;;  %9605 = vmatpush1.bf16.msra.mxu1 %v14176_v16  ;;  %v14216_v45 = vld [vmem:[#allocation6 + $0x3c0] ss:$28 sps:$4 sm:$0xff]   ;;  %v14217_v16 = vld [vmem:[#allocation6 + $0x3f4] ss:$28 sps:$4 sm:$0xff]  }
 0xefc   :  { %9524 = vmatprep.subr.bf16.mxu0 %v14177_v56  ;;  %9606 = vmatprep.subr.bf16.mxu1 %v14178_v50  ;;  %v14218_v56 = vld [vmem:[#allocation6 + $0x3fc] ss:$28 sps:$4 sm:$0xff]   ;;  %v14219_v50 = vld [vmem:[#allocation6 + $0x3f0] ss:$28 sps:$4 sm:$0xff]  }
 0xeff   :  { %9525 = vmatpush1.bf16.msra.mxu0 %v14179_v53  ;;  %9607 = vmatpush1.bf16.msra.mxu1 %v14180_v61  ;;  %v14220_v53 = vld [vmem:[#allocation6 + $0x3f8] ss:$28 sps:$4 sm:$0xff]   ;;  %v14221_v61 = vld [vmem:[#allocation6 + $0x42c] ss:$28 sps:$4 sm:$0xff]  }
 0xf00   :  { %9526 = vmatprep.subr.bf16.mxu0 %v14181_v62  ;;  %9608 = vmatprep.subr.bf16.mxu1 %v14182_v8  ;;  %v14222_v62 = vld [vmem:[#allocation6 + $0x434] ss:$28 sps:$4 sm:$0xff]   ;;  %v14223_v8 = vld [vmem:[#allocation6 + $0x428] ss:$28 sps:$4 sm:$0xff]  }
 0xf03   :  { %9527 = vmatpush1.bf16.msra.mxu0 %v14183_v20  ;;  %9609 = vmatpush1.bf16.msra.mxu1 %v14184_v9  ;;  %v14224_v20 = vld [vmem:[#allocation6 + $0x430] ss:$28 sps:$4 sm:$0xff]   ;;  %v14225_v9 = vld [vmem:[#allocation6 + $0x464] ss:$28 sps:$4 sm:$0xff]  }
 0xf04   :  { %9528 = vmatprep.subr.bf16.mxu0 %v14185_v18  ;;  %9610 = vmatprep.subr.bf16.mxu1 %v14186_v63  ;;  %v14226_v18 = vld [vmem:[#allocation6 + $0x46c] ss:$28 sps:$4 sm:$0xff]   ;;  %v14227_v63 = vld [vmem:[#allocation6 + $0x460] ss:$28 sps:$4 sm:$0xff]  }
 0xf07   :  { %9529 = vmatpush1.bf16.msra.mxu0 %v14187_v37  ;;  %9611 = vmatpush1.bf16.msra.mxu1 %v14188_v48  ;;  %v14228_v37 = vld [vmem:[#allocation6 + $0x468] ss:$28 sps:$4 sm:$0xff]   ;;  %v14229_v48 = vld [vmem:[#allocation6 + $0x49c] ss:$28 sps:$4 sm:$0xff]  }
 0xf08   :  { %9530 = vmatprep.subr.bf16.mxu0 %v14189_v11  ;;  %9612 = vmatprep.subr.bf16.mxu1 %v14190_v52  ;;  %v14230_v11 = vld [vmem:[#allocation6 + $0x4a4] ss:$28 sps:$4 sm:$0xff]   ;;  %v14231_v52 = vld [vmem:[#allocation6 + $0x498] ss:$28 sps:$4 sm:$0xff]  }
 0xf0b   :  { %9531 = vmatpush1.bf16.msra.mxu0 %v14191_v32  ;;  %9613 = vmatpush1.bf16.msra.mxu1 %v14192_v25  ;;  %v14232_v32 = vld [vmem:[#allocation6 + $0x4a0] ss:$28 sps:$4 sm:$0xff]   ;;  %v14233_v25 = vld [vmem:[#allocation6 + $0x4d4] ss:$28 sps:$4 sm:$0xff]  }
 0xf0c   :  { %9532 = vmatprep.subr.bf16.mxu0 %v14193_v31  ;;  %9614 = vmatprep.subr.bf16.mxu1 %v14194_v22  ;;  %v14234_v31 = vld [vmem:[#allocation6 + $0x4dc] ss:$28 sps:$4 sm:$0xff]   ;;  %v14235_v22 = vld [vmem:[#allocation6 + $0x4d0] ss:$28 sps:$4 sm:$0xff]  }
 0xf0f   :  { %9533 = vmatpush1.bf16.msra.mxu0 %v14195_v4  ;;  %9615 = vmatpush1.bf16.msra.mxu1 %v14196_v47  ;;  %v14236_v4 = vld [vmem:[#allocation6 + $0x4d8] ss:$28 sps:$4 sm:$0xff]   ;;  %v14237_v47 = vld [vmem:[#allocation6 + $0x50c] ss:$28 sps:$4 sm:$0xff]  }
 0xf10   :  { %9534 = vmatprep.subr.bf16.mxu0 %v14197_v44  ;;  %9616 = vmatprep.subr.bf16.mxu1 %v14198_v36  ;;  %v14238_v44 = vld [vmem:[#allocation6 + $0x514] ss:$28 sps:$4 sm:$0xff]   ;;  %v14239_v36 = vld [vmem:[#allocation6 + $0x508] ss:$28 sps:$4 sm:$0xff]  }
 0xf13   :  { %9535 = vmatpush1.bf16.msra.mxu0 %v14199_v17  ;;  %9617 = vmatpush1.bf16.msra.mxu1 %v14200_v0  ;;  %v14240_v17 = vld [vmem:[#allocation6 + $0x510] ss:$28 sps:$4 sm:$0xff]   ;;  %v14241_v0 = vld [vmem:[#allocation6 + $0x544] ss:$28 sps:$4 sm:$0xff]  }
 0xf14   :  { %9536 = vmatprep.subr.bf16.mxu0 %v14201_v39  ;;  %9618 = vmatprep.subr.bf16.mxu1 %v14202_v7  ;;  %v14242_v39 = vld [vmem:[#allocation6 + $0x54c] ss:$28 sps:$4 sm:$0xff]   ;;  %v14243_v7 = vld [vmem:[#allocation6 + $0x540] ss:$28 sps:$4 sm:$0xff]  }
 0xf17   :  { %9537 = vmatpush1.bf16.msra.mxu0 %v14203_v34  ;;  %9619 = vmatpush1.bf16.msra.mxu1 %v14204_v49  ;;  %v14244_v34 = vld [vmem:[#allocation6 + $0x548] ss:$28 sps:$4 sm:$0xff]   ;;  %v14245_v49 = vld [vmem:[#allocation6 + $0x57c] ss:$28 sps:$4 sm:$0xff]  }
 0xf18   :  { %9538 = vmatprep.subr.bf16.mxu0 %v14205_v59  ;;  %9620 = vmatprep.subr.bf16.mxu1 %v14206_v41  ;;  %v14246_v59 = vld [vmem:[#allocation6 + $0x584] ss:$28 sps:$4 sm:$0xff]   ;;  %v14247_v41 = vld [vmem:[#allocation6 + $0x578] ss:$28 sps:$4 sm:$0xff]  }
 0xf1b   :  { %9539 = vmatpush1.bf16.msra.mxu0 %v14207_v26  ;;  %9621 = vmatpush1.bf16.msra.mxu1 %v14208_v10  ;;  %v14248_v26 = vld [vmem:[#allocation6 + $0x580] ss:$28 sps:$4 sm:$0xff]   ;;  %v14249_v10 = vld [vmem:[#allocation6 + $0x5b4] ss:$28 sps:$4 sm:$0xff]  }
 0xf1c   :  { %9549 = vmatprep.subr.bf16.mxu0 %v14209_v60  ;;  %9631 = vmatprep.subr.bf16.mxu1 %v14210_v42  ;;  %v14250_v60 = vld [vmem:[#allocation6 + $0x5bc] ss:$28 sps:$4 sm:$0xff]   ;;  %v14251_v42 = vld [vmem:[#allocation6 + $0x5b0] ss:$28 sps:$4 sm:$0xff]  }
 0xfb1   :  { %v9452_v55 = vpop.f32.mrb[28].mxu0  ;;  %v17033_v3 = vpop.f32.mrb[32].mxu1 }
 0xfb2   :  { %v9453_v57 = vadd.f32 %v9452_v55, %v16863_v40  ;;  %v9454_v12 = vpop.f32.mrb[29].mxu0  ;;  %v9495_v58 = vpop.f32.mrb[33].mxu1  ;;  %v14252_v55 = vld [vmem:[#allocation6 + $0x5b8] ss:$28 sps:$4 sm:$0xff]  }
 0xfb3   :  { %v9455_v2 = vadd.f32 %v9454_v12, %v16866_v33  ;;  %v9496_v5 = vadd.f32 %v9495_v58, %v16921_v29  ;;  %v9456_v15 = vpop.f32.mrb[30].mxu0  ;;  %v9497_v21 = vpop.f32.mrb[34].mxu1  ;;  %v14211_v29 = vld [vmem:[#allocation6 + $0x380] ss:$28 sps:$4 sm:$0xff]   ;;  %v14212_v33 = vld [vmem:[#allocation6 + $0x388] ss:$28 sps:$4 sm:$0xff]  }
 0xfb4   :  { %v9500_v23 = vmax.f32 %v9453_v57, 0.0  ;;  %v9457_v28 = vpop.f32.mrb[31].mxu0  ;;  %v9498_v1 = vpop.f32.mrb[35].mxu1  ;;  %v14253_v57 = vld [vmem:[#allocation6 + $0x5ec] ss:$28 sps:$4 sm:$0xff]  }
 0xfb5   :  { %v9501_v6 = vmax.f32 %v9455_v2, 0.0  ;;  %v9503_v46 = vmax.f32 %v9496_v5, 0.0  ;;  %v14254_v12 = vld [vmem:[#allocation6 + $0x5f4] ss:$28 sps:$4 sm:$0xff]   ;;  %v14255_v58 = vld [vmem:[#allocation6 + $0x5e8] ss:$28 sps:$4 sm:$0xff]  }
 0xfb6   :  { %v17040_v38 = vpack.c.bf16 %v9500_v23, %v9500_v23  ;;  %v14256_v2 = vld [vmem:[#allocation6 + $0x5f0] ss:$28 sps:$4 sm:$0xff]   ;;  %v14257_v5 = vld [vmem:[#allocation6 + $0x624] ss:$28 sps:$4 sm:$0xff]   ;;  %v14261_v28 = vld [vmem:[#allocation6 + $0x65c] ss:$28 sps:$4 sm:$0xff]  }
 0xfb7   :  { %v17038_v13 = vpack.c.bf16 %v9501_v6, %v9501_v6  ;;  %v17044_v40 = vpack.c.bf16 %v9503_v46, %v9503_v46  ;;  %v14258_v15 = vld [vmem:[#allocation6 + $0x62c] ss:$28 sps:$4 sm:$0xff]   ;;  %v14259_v21 = vld [vmem:[#allocation6 + $0x620] ss:$28 sps:$4 sm:$0xff]   ;;  %v14263_v6 = vld [vmem:[#allocation6 + $0x658] ss:$28 sps:$4 sm:$0xff]  }
 0xfb8   :  { %v14260_v23 = vld [vmem:[#allocation6 + $0x628] ss:$28 sps:$4 sm:$0xff]   ;;  %v14264_v46 = vld [vmem:[#allocation6 + $0x660] ss:$28 sps:$4 sm:$0xff]  }
 0xfb9   :  { %9540 = vmatprep.mubr.bf16.mxu0 %v17038_v13  ;;  %9622 = vmatprep.mubr.bf16.mxu1 %v17038_v13  ;;  %v14262_v1 = vld [vmem:[#allocation6 + $0x664] ss:$28 sps:$4 sm:$0xff]  }
 0xfba   :  { %9541 = vmatmul.mubr.bf16.vlgmr.msra.gmra.mrb[32].mxu0 %v17040_v38  ;;  %9623 = vmatmul.mubr.bf16.vlgmr.msra.gmra.mrb[36].mxu1 %v17040_v38 }
 0xfbb   :  { %9550 = vmatpush1.bf16.msra.mxu0 %v14211_v29  ;;  %9632 = vmatpush1.bf16.msra.mxu1 %v14212_v33  ;;  %v9494_v29 = vadd.f32 %v17033_v3, %v16918_v35  ;;  %v14265_v33 = vld [vmem:[#allocation6 + $0x694] ss:$28 sps:$4 sm:$0xff]  }
 0xfbc   :  { %9581 = vmatprep.mubr.bf16.mxu0 %v17044_v40  ;;  %9663 = vmatprep.mubr.bf16.mxu1 %v17044_v40  ;;  %v14273_v35 = vld [vmem:[#allocation6 + $0x14] ss:$28 sps:$4 sm:$0xff]  }
 0xfbd   :  { %9551 = vmatprep.subr.bf16.mxu0 %v14213_v24  ;;  %9633 = vmatprep.subr.bf16.mxu1 %v14214_v14  ;;  %v14266_v24 = vld [vmem:[#allocation6 + $0x69c] ss:$28 sps:$4 sm:$0xff]   ;;  %v14267_v14 = vld [vmem:[#allocation6 + $0x690] ss:$28 sps:$4 sm:$0xff]  }
 0xfbe   :  { %v14274_v3 = vld [vmem:[#allocation6 + $0x1d8] ss:$28 sps:$4 sm:$0xff]  }
 0xfbf   :  { %9552 = vmatpush1.bf16.msra.mxu0 %v14215_v30  ;;  %9634 = vmatpush1.bf16.msra.mxu1 %v14216_v45  ;;  %v14268_v30 = vld [vmem:[#allocation6 + $0x698] ss:$28 sps:$4 sm:$0xff]   ;;  %v9502_v45 = vmax.f32 %v9494_v29, 0.0  ;;  %v14316_v29 = vld [vmem:[#allocation6 + $0x2e8] ss:$28 sps:$4 sm:$0xff]  }
 0xfc0   :  { %9553 = vmatprep.subr.bf16.mxu0 %v14217_v16  ;;  %9635 = vmatprep.subr.bf16.mxu1 %v14218_v56  ;;  %v14269_v16 = vld [vmem:[#allocation6 + $0x6cc] ss:$28 sps:$4 sm:$0xff]   ;;  %v14270_v56 = vld [vmem:[#allocation6 + $0x6d4] ss:$28 sps:$4 sm:$0xff]  }
 0xfc3   :  { %9554 = vmatpush1.bf16.msra.mxu0 %v14219_v50  ;;  %9636 = vmatpush1.bf16.msra.mxu1 %v14220_v53  ;;  %v14271_v50 = vld [vmem:[#allocation6 + $0x6c8] ss:$28 sps:$4 sm:$0xff]   ;;  %v14272_v53 = vld [vmem:[#allocation6 + $0x6d0] ss:$28 sps:$4 sm:$0xff]  }
 0xfc4   :  { %9555 = vmatprep.subr.bf16.mxu0 %v14221_v61  ;;  %9637 = vmatprep.subr.bf16.mxu1 %v14222_v62  ;;  %v17052_v61 = vpack.c.bf16 %v9502_v45, %v9502_v45  ;;  %v14275_v62 = vld [vmem:[#allocation6 + $0x10] ss:$28 sps:$4 sm:$0xff]   ;;  %v18677_v45 = vld [vmem:[#allocation496_spill] sm:$0xff] }
 0xfc7   :  { %9556 = vmatpush1.bf16.msra.mxu0 %v14223_v8  ;;  %9638 = vmatpush1.bf16.msra.mxu1 %v14224_v20  ;;  %v14276_v8 = vld [vmem:[#allocation6 + $0x18] ss:$28 sps:$4 sm:$0xff]   ;;  %v14277_v20 = vld [vmem:[#allocation6 + $0x4c] ss:$28 sps:$4 sm:$0xff]  }
 0xfc8   :  { %9557 = vmatprep.subr.bf16.mxu0 %v14225_v9  ;;  %9639 = vmatprep.subr.bf16.mxu1 %v14226_v18  ;;  %v14278_v9 = vld [vmem:[#allocation6 + $0x210] ss:$28 sps:$4 sm:$0xff]   ;;  %v14279_v18 = vld [vmem:[#allocation6 + $0x48] ss:$28 sps:$4 sm:$0xff]  }
 0xfcb   :  { %9558 = vmatpush1.bf16.msra.mxu0 %v14227_v63  ;;  %9640 = vmatpush1.bf16.msra.mxu1 %v14228_v37  ;;  %v14280_v63 = vld [vmem:[#allocation6 + $0x50] ss:$28 sps:$4 sm:$0xff]   ;;  %v14281_v37 = vld [vmem:[#allocation6 + $0x84] ss:$28 sps:$4 sm:$0xff]  }
 0xfcc   :  { %9559 = vmatprep.subr.bf16.mxu0 %v14229_v48  ;;  %9641 = vmatprep.subr.bf16.mxu1 %v14230_v11  ;;  %v14282_v48 = vld [vmem:[#allocation6 + $0x248] ss:$28 sps:$4 sm:$0xff]   ;;  %v14283_v11 = vld [vmem:[#allocation6 + $0x80] ss:$28 sps:$4 sm:$0xff]  }
 0xfcf   :  { %9560 = vmatpush1.bf16.msra.mxu0 %v14231_v52  ;;  %9642 = vmatpush1.bf16.msra.mxu1 %v14232_v32  ;;  %v14284_v52 = vld [vmem:[#allocation6 + $0x88] ss:$28 sps:$4 sm:$0xff]   ;;  %v14285_v32 = vld [vmem:[#allocation6 + $0xbc] ss:$28 sps:$4 sm:$0xff]  }
 0xfd0   :  { %9561 = vmatprep.subr.bf16.mxu0 %v14233_v25  ;;  %9643 = vmatprep.subr.bf16.mxu1 %v14234_v31  ;;  %v14286_v25 = vld [vmem:[#allocation6 + $0x280] ss:$28 sps:$4 sm:$0xff]  }
 0xfd1   :  { %v14288_v31 = vld [vmem:[#allocation6 + $0xc0] ss:$28 sps:$4 sm:$0xff]  }
 0xfd3   :  { %9562 = vmatpush1.bf16.msra.mxu0 %v14235_v22  ;;  %9644 = vmatpush1.bf16.msra.mxu1 %v14236_v4  ;;  %v14289_v22 = vld [vmem:[#allocation6 + $0xf4] ss:$28 sps:$4 sm:$0xff]  }
 0xfd4   :  { %9563 = vmatprep.subr.bf16.mxu0 %v14237_v47  ;;  %9645 = vmatprep.subr.bf16.mxu1 %v14238_v44  ;;  %v14290_v4 = vld [vmem:[#allocation6 + $0x2b8] ss:$28 sps:$4 sm:$0xff]   ;;  %v14291_v47 = vld [vmem:[#allocation6 + $0xf0] ss:$28 sps:$4 sm:$0xff]  }
 0xfd5   :  { %v14292_v44 = vld [vmem:[#allocation6 + $0xf8] ss:$28 sps:$4 sm:$0xff]  }
 0xfd7   :  { %9564 = vmatpush1.bf16.msra.mxu0 %v14239_v36  ;;  %9646 = vmatpush1.bf16.msra.mxu1 %v14240_v17  ;;  %v14293_v36 = vld [vmem:[#allocation6 + $0x12c] ss:$28 sps:$4 sm:$0xff]  }
 0xfd8   :  { %9565 = vmatprep.subr.bf16.mxu0 %v14241_v0  ;;  %9647 = vmatprep.subr.bf16.mxu1 %v14242_v39  ;;  %v14294_v17 = vld [vmem:[#allocation6 + $0x2f0] ss:$28 sps:$4 sm:$0xff]   ;;  %v14295_v0 = vld [vmem:[#allocation6 + $0x128] ss:$28 sps:$4 sm:$0xff]  }
 0xfd9   :  { %v14296_v39 = vld [vmem:[#allocation6 + $0x130] ss:$28 sps:$4 sm:$0xff]  }
 0xfdb   :  { %9566 = vmatpush1.bf16.msra.mxu0 %v14243_v7  ;;  %9648 = vmatpush1.bf16.msra.mxu1 %v14244_v34  ;;  %v14297_v7 = vld [vmem:[#allocation6 + $0x164] ss:$28 sps:$4 sm:$0xff]  }
 0xfdc   :  { %9567 = vmatprep.subr.bf16.mxu0 %v14245_v49  ;;  %9649 = vmatprep.subr.bf16.mxu1 %v14246_v59  ;;  %v14298_v34 = vld [vmem:[#allocation6 + $0x328] ss:$28 sps:$4 sm:$0xff]   ;;  %v14299_v49 = vld [vmem:[#allocation6 + $0x160] ss:$28 sps:$4 sm:$0xff]  }
 0xfdd   :  { %v14300_v59 = vld [vmem:[#allocation6 + $0x168] ss:$28 sps:$4 sm:$0xff]  }
 0xfdf   :  { %9568 = vmatpush1.bf16.msra.mxu0 %v14247_v41  ;;  %9650 = vmatpush1.bf16.msra.mxu1 %v14248_v26  ;;  %v14301_v41 = vld [vmem:[#allocation6 + $0x19c] ss:$28 sps:$4 sm:$0xff]  }
 0xfe0   :  { %9569 = vmatprep.subr.bf16.mxu0 %v14249_v10  ;;  %9651 = vmatprep.subr.bf16.mxu1 %v14250_v60  ;;  %v14302_v26 = vld [vmem:[#allocation6 + $0x360] ss:$28 sps:$4 sm:$0xff]   ;;  %v14303_v10 = vld [vmem:[#allocation6 + $0x198] ss:$28 sps:$4 sm:$0xff]  }
 0xfe1   :  { %v14304_v60 = vld [vmem:[#allocation6 + $0x1a0] ss:$28 sps:$4 sm:$0xff]  }
 0xfe3   :  { %9570 = vmatpush1.bf16.msra.mxu0 %v14251_v42  ;;  %9652 = vmatpush1.bf16.msra.mxu1 %v14252_v55  ;;  %v14305_v42 = vld [vmem:[#allocation6 + $0x1d4] ss:$28 sps:$4 sm:$0xff]  }
 0xfe4   :  { %9571 = vmatprep.subr.bf16.mxu0 %v14253_v57  ;;  %9653 = vmatprep.subr.bf16.mxu1 %v14254_v12  ;;  %v14306_v55 = vld [vmem:[#allocation6 + $0x1d0] ss:$28 sps:$4 sm:$0xff]   ;;  %v14308_v12 = vld [vmem:[#allocation6 + $0x208] ss:$28 sps:$4 sm:$0xff]  }
 0xfe5   :  { %v14307_v57 = vld [vmem:[#allocation6 + $0x20c] ss:$28 sps:$4 sm:$0xff]  }
 0xfe7   :  { %9572 = vmatpush1.bf16.msra.mxu0 %v14255_v58  ;;  %9654 = vmatpush1.bf16.msra.mxu1 %v14256_v2  ;;  %v14309_v58 = vld [vmem:[#allocation6 + $0x244] ss:$28 sps:$4 sm:$0xff]   ;;  %v18668_v2 = vld [vmem:[#allocation487_spill] sm:$0xff] }
 0xfe8   :  { %9573 = vmatprep.subr.bf16.mxu0 %v14257_v5  ;;  %9655 = vmatprep.subr.bf16.mxu1 %v14258_v15  ;;  %v18669_v5 = vld [vmem:[#allocation488_spill] sm:$0xff] }
 0xfe9   :  { %v14311_v15 = vld [vmem:[#allocation6 + $0x27c] ss:$28 sps:$4 sm:$0xff]  }
 0xfeb   :  { %9574 = vmatpush1.bf16.msra.mxu0 %v14259_v21  ;;  %9656 = vmatpush1.bf16.msra.mxu1 %v14260_v23  ;;  %v14312_v21 = vld [vmem:[#allocation6 + $0x278] ss:$28 sps:$4 sm:$0xff]   ;;  %v18671_v23 = vld [vmem:[#allocation490_spill] sm:$0xff] }
 0xfec   :  { %9575 = vmatprep.subr.bf16.mxu0 %v14261_v28  ;;  %9657 = vmatprep.subr.bf16.mxu1 %v14262_v1  ;;  %v18672_v28 = vld [vmem:[#allocation491_spill] sm:$0xff]  ;;  %v18673_v1 = vld [vmem:[#allocation492_spill] sm:$0xff] }
 0xfef   :  { %9576 = vmatpush1.bf16.msra.mxu0 %v14263_v6  ;;  %9658 = vmatpush1.bf16.msra.mxu1 %v14264_v46  ;;  %v14315_v6 = vld [vmem:[#allocation6 + $0x2ec] ss:$28 sps:$4 sm:$0xff]   ;;  %v18674_v46 = vld [vmem:[#allocation493_spill] sm:$0xff] }
 0xff0   :  { %9577 = vmatprep.subr.bf16.mxu0 %v14265_v33  ;;  %9659 = vmatprep.subr.bf16.mxu1 %v14266_v24  ;;  %v18675_v33 = vld [vmem:[#allocation494_spill] sm:$0xff]  ;;  %v14317_v24 = vld [vmem:[#allocation6 + $0x324] ss:$28 sps:$4 sm:$0xff]  }
 0xff3   :  { %9578 = vmatpush1.bf16.msra.mxu0 %v14267_v14  ;;  %9660 = vmatpush1.bf16.msra.mxu1 %v14268_v30  ;;  %v18676_v14 = vld [vmem:[#allocation495_spill] sm:$0xff]  ;;  %v14318_v30 = vld [vmem:[#allocation6 + $0x320] ss:$28 sps:$4 sm:$0xff]  }
 0xff4   :  { %9579 = vmatprep.subr.bf16.mxu0 %v14269_v16  ;;  %9661 = vmatprep.subr.bf16.mxu1 %v14270_v56  ;;  %v14319_v16 = vld [vmem:[#allocation6 + $0x35c] ss:$28 sps:$4 sm:$0xff]   ;;  %v18678_v56 = vld [vmem:[#allocation497_spill] sm:$0xff] }
 0xff7   :  { %9580 = vmatpush1.bf16.msra.mxu0 %v14271_v50  ;;  %9662 = vmatpush1.bf16.msra.mxu1 %v14272_v53  ;;  %v14320_v50 = vld [vmem:[#allocation6 + $0x358] ss:$28 sps:$4 sm:$0xff]   ;;  %v18679_v53 = vld [vmem:[#allocation498_spill] sm:$0xff] }
 0xff8   :  { %9672 = vmatprep.subr.bf16.mxu0 %v14273_v35  ;;  %12595 = vmatprep.subr.bf16.mxu1 %v14274_v3  ;;  %v14321_v35 = vld [vmem:[#allocation6 + $0x394] ss:$28 sps:$4 sm:$0xff]  }
 0xff9   :  { %v18680_v3 = vld [vmem:[#allocation19_spill] sm:$0xff] }
 0xffa   :  { %9582 = vmatmul.mubr.bf16.vlgmr.msra.gmra.mrb[32].mxu0 %v17052_v61  ;;  %9664 = vmatmul.mubr.bf16.vlgmr.msra.gmra.mrb[36].mxu1 %v17052_v61 }
 0xffb   :  { %9673 = vmatpush1.bf16.msra.mxu0 %v14275_v62  ;;  %9704 = vmatprep.mubr.bf16.mxu0 %v17038_v13  ;;  %v14322_v62 = vld [vmem:[#allocation6 + $0x390] ss:$28 sps:$4 sm:$0xff]  }
 0xffc   :  { %12596 = vmatpush3.bf16.msra.mxu1 %v14276_v8  ;;  %9786 = vmatprep.mubr.bf16.mxu1 %v17038_v13  ;;  %v14287_v13 = vld [vmem:[#allocation6 + $0xb8] ss:$28 sps:$4 sm:$0xff]   ;;  %v14323_v8 = vld [vmem:[#allocation6 + $0x3cc] ss:$28 sps:$4 sm:$0xff]  }
 0xffd   :  { %9674 = vmatprep.subr.bf16.mxu0 %v14277_v20  ;;  %12597 = vmatprep.subr.bf16.mxu1 %v14278_v9  ;;  %v18681_v20 = vld [vmem:[#allocation21_spill] sm:$0xff]  ;;  %v18682_v9 = vld [vmem:[#allocation23_spill] sm:$0xff] }
 0xfff   :  { %9675 = vmatpush1.bf16.msra.mxu0 %v14279_v18  ;;  %v14324_v18 = vld [vmem:[#allocation6 + $0x3c8] ss:$28 sps:$4 sm:$0xff]  }
0x1000   :  { %12598 = vmatpush3.bf16.msra.mxu1 %v14280_v63  ;;  %9676 = vmatprep.subr.bf16.mxu0 %v14281_v37  ;;  %v14325_v63 = vld [vmem:[#allocation6 + $0x404] ss:$28 sps:$4 sm:$0xff]  }
0x1001   :  { %12599 = vmatprep.subr.bf16.mxu1 %v14282_v48  ;;  %v18683_v37 = vld [vmem:[#allocation25_spill] sm:$0xff]  ;;  %v18684_v48 = vld [vmem:[#allocation27_spill] sm:$0xff] }
0x1003   :  { %9677 = vmatpush1.bf16.msra.mxu0 %v14283_v11  ;;  %v14327_v11 = vld [vmem:[#allocation6 + $0x43c] ss:$28 sps:$4 sm:$0xff]  }
0x1004   :  { %12600 = vmatpush3.bf16.msra.mxu1 %v14284_v52  ;;  %9678 = vmatprep.subr.bf16.mxu0 %v14285_v32  ;;  %v18685_v52 = vld [vmem:[#allocation29_spill] sm:$0xff]  ;;  %v14328_v32 = vld [vmem:[#allocation6 + $0x438] ss:$28 sps:$4 sm:$0xff]  }
0x1005   :  { %12601 = vmatprep.subr.bf16.mxu1 %v14286_v25  ;;  %v14329_v25 = vld [vmem:[#allocation6 + $0x474] ss:$28 sps:$4 sm:$0xff]  }
0x1007   :  { %9679 = vmatpush1.bf16.msra.mxu0 %v14287_v13  ;;  %v18687_v13 = vld [vmem:[#allocation33_spill] sm:$0xff] }
0x1008   :  { %12602 = vmatpush3.bf16.msra.mxu1 %v14288_v31  ;;  %9680 = vmatprep.subr.bf16.mxu0 %v14289_v22  ;;  %v18688_v31 = vld [vmem:[#allocation35_spill] sm:$0xff] }
0x1009   :  { %12603 = vmatprep.subr.bf16.mxu1 %v14290_v4  ;;  %v14330_v22 = vld [vmem:[#allocation6 + $0x470] ss:$28 sps:$4 sm:$0xff]  }
0x100a   :  { %v14331_v4 = vld [vmem:[#allocation6 + $0x4ac] ss:$28 sps:$4 sm:$0xff]  }
0x100b   :  { %9681 = vmatpush1.bf16.msra.mxu0 %v14291_v47  ;;  %v18689_v47 = vld [vmem:[#allocation37_spill] sm:$0xff] }
0x100c   :  { %12604 = vmatpush3.bf16.msra.mxu1 %v14292_v44  ;;  %9682 = vmatprep.subr.bf16.mxu0 %v14293_v36  ;;  %v18690_v44 = vld [vmem:[#allocation39_spill] sm:$0xff]  ;;  %v14332_v36 = vld [vmem:[#allocation6 + $0x4a8] ss:$28 sps:$4 sm:$0xff]  }
0x100d   :  { %12605 = vmatprep.subr.bf16.mxu1 %v14294_v17  ;;  %v14333_v17 = vld [vmem:[#allocation6 + $0x4e4] ss:$28 sps:$4 sm:$0xff]  }
0x100f   :  { %9683 = vmatpush1.bf16.msra.mxu0 %v14295_v0  ;;  %v18691_v0 = vld [vmem:[#allocation41_spill] sm:$0xff] }
0x1010   :  { %12606 = vmatpush3.bf16.msra.mxu1 %v14296_v39  ;;  %9684 = vmatprep.subr.bf16.mxu0 %v14297_v7  ;;  %v18692_v39 = vld [vmem:[#allocation43_spill] sm:$0xff]  ;;  %v14334_v7 = vld [vmem:[#allocation6 + $0x4e0] ss:$28 sps:$4 sm:$0xff]  }
0x1011   :  { %12607 = vmatprep.subr.bf16.mxu1 %v14298_v34  ;;  %v14335_v34 = vld [vmem:[#allocation6 + $0x51c] ss:$28 sps:$4 sm:$0xff]  }
0x1013   :  { %9685 = vmatpush1.bf16.msra.mxu0 %v14299_v49  ;;  %v18693_v49 = vld [vmem:[#allocation45_spill] sm:$0xff] }
0x1014   :  { %12608 = vmatpush3.bf16.msra.mxu1 %v14300_v59  ;;  %9686 = vmatprep.subr.bf16.mxu0 %v14301_v41  ;;  %v18694_v59 = vld [vmem:[#allocation47_spill] sm:$0xff] }
0x1015   :  { %12609 = vmatprep.subr.bf16.mxu1 %v14302_v26  ;;  %v14336_v41 = vld [vmem:[#allocation6 + $0x518] ss:$28 sps:$4 sm:$0xff]  }
0x1016   :  { %v14337_v26 = vld [vmem:[#allocation6 + $0x554] ss:$28 sps:$4 sm:$0xff]  }
0x1017   :  { %9687 = vmatpush1.bf16.msra.mxu0 %v14303_v10  ;;  %v18695_v10 = vld [vmem:[#allocation49_spill] sm:$0xff] }
0x1018   :  { %12610 = vmatpush3.bf16.msra.mxu1 %v14304_v60  ;;  %9688 = vmatprep.subr.bf16.mxu0 %v14305_v42  ;;  %v18696_v60 = vld [vmem:[#allocation51_spill] sm:$0xff] }
0x1019   :  { %12617 = vmatprep.subr.bf16.mxu1 %v16808_v19  ;;  %v14310_v19 = vld [vmem:[#allocation6 + $0x240] ss:$28 sps:$4 sm:$0xff]   ;;  %v14338_v42 = vld [vmem:[#allocation6 + $0x550] ss:$28 sps:$4 sm:$0xff]  }
0x101b   :  { %9787 = vmatmul.mubr.bf16.vlgmr.msra.gmra.mrb[40].mxu1 %v17040_v38  ;;  %9689 = vmatpush1.bf16.msra.mxu0 %v14306_v55  ;;  %v14339_v55 = vld [vmem:[#allocation6 + $0x58c] ss:$28 sps:$4 sm:$0xff]  }
0x101c   :  { %12618 = vmatpush3.bf16.msra.mxu1 %v16814_v51  ;;  %9826 = vmatprep.mubr.bf16.mxu1 %v17044_v40  ;;  %v18670_v51 = vld [vmem:[#allocation489_spill] sm:$0xff] }
0x101d   :  { %9690 = vmatprep.subr.bf16.mxu0 %v14307_v57  ;;  %12619 = vmatprep.subr.bf16.mxu1 %v16816_v27  ;;  %v14313_v27 = vld [vmem:[#allocation6 + $0x2b4] ss:$28 sps:$4 sm:$0xff]   ;;  %v18697_v57 = vld [vmem:[#allocation53_spill] sm:$0xff] }
0x101f   :  { %9691 = vmatpush1.bf16.msra.mxu0 %v14308_v12  ;;  %v18698_v12 = vld [vmem:[#allocation55_spill] sm:$0xff] }
0x1020   :  { %12620 = vmatpush3.bf16.msra.mxu1 %v16822_v54  ;;  %9692 = vmatprep.subr.bf16.mxu0 %v14309_v58  ;;  %v14314_v54 = vld [vmem:[#allocation6 + $0x2b0] ss:$28 sps:$4 sm:$0xff]   ;;  %v14340_v58 = vld [vmem:[#allocation6 + $0x588] ss:$28 sps:$4 sm:$0xff]  }
0x1021   :  { %12621 = vmatprep.subr.bf16.mxu1 %v18668_v2  ;;  %v14341_v2 = vld [vmem:[#allocation6 + $0x5c4] ss:$28 sps:$4 sm:$0xff]  }
0x1023   :  { %9693 = vmatpush1.bf16.msra.mxu0 %v14310_v19  ;;  %v18699_v19 = vld [vmem:[#allocation57_spill] sm:$0xff] }
0x1024   :  { %12622 = vmatpush3.bf16.msra.mxu1 %v18669_v5  ;;  %9694 = vmatprep.subr.bf16.mxu0 %v14311_v15  ;;  %v18700_v5 = vld [vmem:[#allocation59_spill] sm:$0xff]  ;;  %v14342_v15 = vld [vmem:[#allocation6 + $0x5c0] ss:$28 sps:$4 sm:$0xff]  }
0x1025   :  { %12623 = vmatprep.subr.bf16.mxu1 %v18670_v51  ;;  %v14343_v51 = vld [vmem:[#allocation6 + $0x5fc] ss:$28 sps:$4 sm:$0xff]  }
0x1027   :  { %9695 = vmatpush1.bf16.msra.mxu0 %v14312_v21  ;;  %v18701_v21 = vld [vmem:[#allocation61_spill] sm:$0xff] }
0x1028   :  { %12624 = vmatpush3.bf16.msra.mxu1 %v18671_v23  ;;  %9696 = vmatprep.subr.bf16.mxu0 %v14313_v27  ;;  %v18702_v23 = vld [vmem:[#allocation63_spill] sm:$0xff] }
0x1029   :  { %12625 = vmatprep.subr.bf16.mxu1 %v18672_v28  ;;  %v14344_v27 = vld [vmem:[#allocation6 + $0x5f8] ss:$28 sps:$4 sm:$0xff]  }
0x102a   :  { %v14345_v28 = vld [vmem:[#allocation6 + $0x634] ss:$28 sps:$4 sm:$0xff]  }
0x102b   :  { %9697 = vmatpush1.bf16.msra.mxu0 %v14314_v54  ;;  %v18703_v54 = vld [vmem:[#allocation65_spill] sm:$0xff] }
0x102c   :  { %12626 = vmatpush3.bf16.msra.mxu1 %v18673_v1  ;;  %9698 = vmatprep.subr.bf16.mxu0 %v14315_v6  ;;  %v18704_v1 = vld [vmem:[#allocation67_spill] sm:$0xff] }
0x102d   :  { %12627 = vmatprep.subr.bf16.mxu1 %v18674_v46  ;;  %v14346_v6 = vld [vmem:[#allocation6 + $0x630] ss:$28 sps:$4 sm:$0xff]  }
0x102e   :  { %v14347_v46 = vld [vmem:[#allocation6 + $0x66c] ss:$28 sps:$4 sm:$0xff]  }
0x102f   :  { %9699 = vmatpush1.bf16.msra.mxu0 %v14316_v29  ;;  %v18705_v29 = vld [vmem:[#allocation69_spill] sm:$0xff] }
0x1030   :  { %12628 = vmatpush3.bf16.msra.mxu1 %v18675_v33  ;;  %9700 = vmatprep.subr.bf16.mxu0 %v14317_v24  ;;  %v18706_v33 = vld [vmem:[#allocation71_spill] sm:$0xff]  ;;  %v14348_v24 = vld [vmem:[#allocation6 + $0x668] ss:$28 sps:$4 sm:$0xff]  }
0x1031   :  { %12629 = vmatprep.subr.bf16.mxu1 %v18676_v14  ;;  %v14349_v14 = vld [vmem:[#allocation6 + $0x6a4] ss:$28 sps:$4 sm:$0xff]  }
0x1033   :  { %9701 = vmatpush1.bf16.msra.mxu0 %v14318_v30  ;;  %v18707_v30 = vld [vmem:[#allocation73_spill] sm:$0xff] }
0x1034   :  { %12630 = vmatpush3.bf16.msra.mxu1 %v18677_v45  ;;  %9702 = vmatprep.subr.bf16.mxu0 %v14319_v16  ;;  %v18708_v45 = vld [vmem:[#allocation75_spill] sm:$0xff]  ;;  %v14350_v16 = vld [vmem:[#allocation6 + $0x6a0] ss:$28 sps:$4 sm:$0xff]  }
0x1035   :  { %12631 = vmatprep.subr.bf16.mxu1 %v18678_v56  ;;  %v14351_v56 = vld [vmem:[#allocation6 + $0x6dc] ss:$28 sps:$4 sm:$0xff]  }
0x1037   :  { %9703 = vmatpush1.bf16.msra.mxu0 %v14320_v50  ;;  %v18709_v50 = vld [vmem:[#allocation77_spill] sm:$0xff] }
0x1038   :  { %12632 = vmatpush3.bf16.msra.mxu1 %v18679_v53  ;;  %9713 = vmatprep.subr.bf16.mxu0 %v14321_v35  ;;  %v18710_v53 = vld [vmem:[#allocation80_spill] sm:$0xff] }
0x1039   :  { %9848 = vmatprep.subr.bf16.mxu1 %v18680_v3  ;;  %v14352_v35 = vld [vmem:[#allocation6 + $0x6d8] ss:$28 sps:$4 sm:$0xff]  }
0x103a   :  { %9705 = vmatmul.mubr.bf16.vlgmr.msra.gmra.mrb[36].mxu0 %v17040_v38  ;;  %v14326_v38 = vld [vmem:[#allocation6 + $0x400] ss:$28 sps:$4 sm:$0xff]   ;;  %v18711_v3 = vld [vmem:[#allocation87_spill] sm:$0xff] }
0x103b   :  { %9827 = vmatmul.mubr.bf16.vlgmr.msra.gmra.mrb[44].mxu1 %v17052_v61  ;;  %9714 = vmatpush1.bf16.msra.mxu0 %v14322_v62  ;;  %v18712_v62 = vld [vmem:[#allocation85_spill] sm:$0xff] }
0x103c   :  { %9745 = vmatprep.mubr.bf16.mxu0 %v17044_v40  ;;  %9715 = vmatprep.subr.bf16.mxu0 %v14323_v8  ;;  %v18686_v40 = vld [vmem:[#allocation31_spill] sm:$0xff]  ;;  %v18713_v8 = vld [vmem:[#allocation20_spill] sm:$0xff] }
0x103d   :  { %9849 = vmatpush1.bf16.msra.mxu1 %v18681_v20  ;;  %v18714_v20 = vld [vmem:[#allocation89_spill] sm:$0xff] }
0x103e   :  { %9850 = vmatprep.subr.bf16.mxu1 %v18682_v9  ;;  %v18715_v9 = vld [vmem:[#allocation91_spill] sm:$0xff] }
0x103f   :  { %9716 = vmatpush1.bf16.msra.mxu0 %v14324_v18  ;;  %v18716_v18 = vld [vmem:[#allocation93_spill] sm:$0xff] }
0x1040   :  { %9717 = vmatprep.subr.bf16.mxu0 %v14325_v63  ;;  %v18717_v63 = vld [vmem:[#allocation95_spill] sm:$0xff] }
0x1041   :  { %9851 = vmatpush1.bf16.msra.mxu1 %v18683_v37  ;;  %v18718_v37 = vld [vmem:[#allocation97_spill] sm:$0xff] }
0x1042   :  { %9852 = vmatprep.subr.bf16.mxu1 %v18684_v48  ;;  %v18719_v48 = vld [vmem:[#allocation99_spill] sm:$0xff] }
0x1043   :  { %9718 = vmatpush1.bf16.msra.mxu0 %v14326_v38  ;;  %v18720_v38 = vld [vmem:[#allocation101_spill] sm:$0xff] }
0x1044   :  { %9719 = vmatprep.subr.bf16.mxu0 %v14327_v11  ;;  %v18721_v11 = vld [vmem:[#allocation103_spill] sm:$0xff] }
0x1045   :  { %9853 = vmatpush1.bf16.msra.mxu1 %v18685_v52  ;;  %v18722_v52 = vld [vmem:[#allocation105_spill] sm:$0xff] }
0x1046   :  { %9854 = vmatprep.subr.bf16.mxu1 %v18686_v40  ;;  %v18724_v40 = vld [vmem:[#allocation109_spill] sm:$0xff] }
0x1047   :  { %9720 = vmatpush1.bf16.msra.mxu0 %v14328_v32  ;;  %v18725_v32 = vld [vmem:[#allocation111_spill] sm:$0xff] }
0x1048   :  { %9721 = vmatprep.subr.bf16.mxu0 %v14329_v25  ;;  %v18726_v25 = vld [vmem:[#allocation113_spill] sm:$0xff] }
0x1049   :  { %9855 = vmatpush1.bf16.msra.mxu1 %v18687_v13  ;;  %v18727_v13 = vld [vmem:[#allocation115_spill] sm:$0xff] }
0x104a   :  { %9856 = vmatprep.subr.bf16.mxu1 %v18688_v31  ;;  %v18728_v31 = vld [vmem:[#allocation117_spill] sm:$0xff] }
0x104b   :  { %9722 = vmatpush1.bf16.msra.mxu0 %v14330_v22  ;;  %v18729_v22 = vld [vmem:[#allocation119_spill] sm:$0xff] }
0x104c   :  { %9723 = vmatprep.subr.bf16.mxu0 %v14331_v4  ;;  %v18730_v4 = vld [vmem:[#allocation121_spill] sm:$0xff] }
0x104d   :  { %9857 = vmatpush1.bf16.msra.mxu1 %v18689_v47  ;;  %v18731_v47 = vld [vmem:[#allocation123_spill] sm:$0xff] }
0x104e   :  { %9858 = vmatprep.subr.bf16.mxu1 %v18690_v44  ;;  %v18732_v44 = vld [vmem:[#allocation125_spill] sm:$0xff] }
0x104f   :  { %9724 = vmatpush1.bf16.msra.mxu0 %v14332_v36  ;;  %v18733_v36 = vld [vmem:[#allocation127_spill] sm:$0xff] }
0x1050   :  { %9725 = vmatprep.subr.bf16.mxu0 %v14333_v17  ;;  %v18734_v17 = vld [vmem:[#allocation129_spill] sm:$0xff] }
0x1051   :  { %9859 = vmatpush1.bf16.msra.mxu1 %v18691_v0  ;;  %v18735_v0 = vld [vmem:[#allocation131_spill] sm:$0xff] }
0x1052   :  { %9860 = vmatprep.subr.bf16.mxu1 %v18692_v39  ;;  %v18736_v39 = vld [vmem:[#allocation133_spill] sm:$0xff] }
0x1053   :  { %9726 = vmatpush1.bf16.msra.mxu0 %v14334_v7  ;;  %v18737_v7 = vld [vmem:[#allocation135_spill] sm:$0xff] }
0x1054   :  { %9727 = vmatprep.subr.bf16.mxu0 %v14335_v34  ;;  %v18738_v34 = vld [vmem:[#allocation137_spill] sm:$0xff] }
0x1055   :  { %9861 = vmatpush1.bf16.msra.mxu1 %v18693_v49  ;;  %v18739_v49 = vld [vmem:[#allocation139_spill] sm:$0xff] }
0x1056   :  { %9862 = vmatprep.subr.bf16.mxu1 %v18694_v59  ;;  %v18740_v59 = vld [vmem:[#allocation141_spill] sm:$0xff] }
0x1057   :  { %9728 = vmatpush1.bf16.msra.mxu0 %v14336_v41  ;;  %v18741_v41 = vld [vmem:[#allocation143_spill] sm:$0xff] }
0x1058   :  { %9729 = vmatprep.subr.bf16.mxu0 %v14337_v26  ;;  %v18742_v26 = vld [vmem:[#allocation145_spill] sm:$0xff] }
0x1059   :  { %9863 = vmatpush1.bf16.msra.mxu1 %v18695_v10  ;;  %v18743_v10 = vld [vmem:[#allocation148_spill] sm:$0xff] }
0x105a   :  { %9864 = vmatprep.subr.bf16.mxu1 %v18696_v60  ;;  %v18744_v60 = vld [vmem:[#allocation153_spill] sm:$0xff] }
0x105b   :  { %9730 = vmatpush1.bf16.msra.mxu0 %v14338_v42  ;;  %v18745_v42 = vld [vmem:[#allocation88_spill] sm:$0xff] }
0x105c   :  { %9731 = vmatprep.subr.bf16.mxu0 %v14339_v55 }
0x105d   :  { %9865 = vmatpush1.bf16.msra.mxu1 %v18697_v57 }
0x105e   :  { %9866 = vmatprep.subr.bf16.mxu1 %v18698_v12  ;;  %v18746_v12 = vld [vmem:[#allocation448_spill] sm:$0xff] }
0x105f   :  { %9732 = vmatpush1.bf16.msra.mxu0 %v14340_v58 }
0x1060   :  { %9733 = vmatprep.subr.bf16.mxu0 %v14341_v2 }
0x1061   :  { %9867 = vmatpush1.bf16.msra.mxu1 %v18699_v19 }
0x1062   :  { %9868 = vmatprep.subr.bf16.mxu1 %v18700_v5  ;;  %v18747_v5 = vld [vmem:[#allocation414_spill] sm:$0xff] }
0x1063   :  { %9734 = vmatpush1.bf16.msra.mxu0 %v14342_v15 }
0x1064   :  { %9735 = vmatprep.subr.bf16.mxu0 %v14343_v51  ;;  %v18748_v51 = vld [vmem:[#allocation449_spill] sm:$0xff] }
0x1065   :  { %9869 = vmatpush1.bf16.msra.mxu1 %v18701_v21 }
0x1066   :  { %9870 = vmatprep.subr.bf16.mxu1 %v18702_v23 }
0x1067   :  { %9736 = vmatpush1.bf16.msra.mxu0 %v14344_v27 }
0x1068   :  { %9737 = vmatprep.subr.bf16.mxu0 %v14345_v28 }
0x1069   :  { %9871 = vmatpush1.bf16.msra.mxu1 %v18703_v54 }
0x106a   :  { %9872 = vmatprep.subr.bf16.mxu1 %v18704_v1 }
0x106b   :  { %9738 = vmatpush1.bf16.msra.mxu0 %v14346_v6 }
0x106c   :  { %9739 = vmatprep.subr.bf16.mxu0 %v14347_v46 }
0x106d   :  { %9873 = vmatpush1.bf16.msra.mxu1 %v18705_v29 }
0x106e   :  { %9874 = vmatprep.subr.bf16.mxu1 %v18706_v33 }
0x106f   :  { %9740 = vmatpush1.bf16.msra.mxu0 %v14348_v24 }
0x1070   :  { %9741 = vmatprep.subr.bf16.mxu0 %v14349_v14  ;;  %v18749_v14 = vld [vmem:[#allocation22_spill] sm:$0xff] }
0x1071   :  { %9875 = vmatpush1.bf16.msra.mxu1 %v18707_v30  ;;  %v18750_v30 = vld [vmem:[#allocation90_spill] sm:$0xff] }
0x1072   :  { %9876 = vmatprep.subr.bf16.mxu1 %v18708_v45  ;;  %v18751_v45 = vld [vmem:[#allocation24_spill] sm:$0xff] }
0x1073   :  { %9742 = vmatpush1.bf16.msra.mxu0 %v14350_v16  ;;  %v18752_v16 = vld [vmem:[#allocation92_spill] sm:$0xff] }
0x1074   :  { %9743 = vmatprep.subr.bf16.mxu0 %v14351_v56  ;;  %v18753_v56 = vld [vmem:[#allocation26_spill] sm:$0xff] }
0x1075   :  { %9877 = vmatpush1.bf16.msra.mxu1 %v18709_v50  ;;  %v18754_v50 = vld [vmem:[#allocation94_spill] sm:$0xff] }
0x1076   :  { %9878 = vmatprep.subr.bf16.mxu1 %v18710_v53  ;;  %v18755_v53 = vld [vmem:[#allocation28_spill] sm:$0xff] }
0x1077   :  { %9744 = vmatpush1.bf16.msra.mxu0 %v14352_v35  ;;  %v18756_v35 = vld [vmem:[#allocation96_spill] sm:$0xff] }
0x1078   :  { %10012 = vmatprep.subr.bf16.mxu0 %v18711_v3  ;;  %v18757_v3 = vld [vmem:[#allocation30_spill] sm:$0xff] }
0x1079   :  { %9879 = vmatpush1.bf16.msra.mxu1 %v18712_v62  ;;  %v18758_v62 = vld [vmem:[#allocation98_spill] sm:$0xff] }
0x107a   :  { %9746 = vmatmul.mubr.bf16.vlgmr.msra.gmra.mrb[36].mxu0 %v17052_v61  ;;  %9889 = vmatprep.subr.bf16.mxu1 %v18713_v8  ;;  %v18723_v61 = vld [vmem:[#allocation107_spill] sm:$0xff]  ;;  %v18759_v8 = vld [vmem:[#allocation32_spill] sm:$0xff] }
0x107b   :  { %10013 = vmatpush1.bf16.msra.mxu0 %v18714_v20  ;;  %v18760_v20 = vld [vmem:[#allocation100_spill] sm:$0xff] }
0x107c   :  { %10014 = vmatprep.subr.bf16.mxu0 %v18715_v9  ;;  %v18761_v9 = vld [vmem:[#allocation34_spill] sm:$0xff] }
0x107f   :  { %10015 = vmatpush1.bf16.msra.mxu0 %v18716_v18  ;;  %v18762_v18 = vld [vmem:[#allocation102_spill] sm:$0xff] }
0x1080   :  { %10016 = vmatprep.subr.bf16.mxu0 %v18717_v63  ;;  %v18763_v63 = vld [vmem:[#allocation36_spill] sm:$0xff] }
0x1083   :  { %10017 = vmatpush1.bf16.msra.mxu0 %v18718_v37  ;;  %v18764_v37 = vld [vmem:[#allocation104_spill] sm:$0xff] }
0x1084   :  { %10018 = vmatprep.subr.bf16.mxu0 %v18719_v48  ;;  %v18765_v48 = vld [vmem:[#allocation38_spill] sm:$0xff] }
0x1087   :  { %10019 = vmatpush1.bf16.msra.mxu0 %v18720_v38  ;;  %v18766_v38 = vld [vmem:[#allocation106_spill] sm:$0xff] }
0x1088   :  { %10020 = vmatprep.subr.bf16.mxu0 %v18721_v11  ;;  %v18767_v11 = vld [vmem:[#allocation40_spill] sm:$0xff] }
0x108b   :  { %10021 = vmatpush1.bf16.msra.mxu0 %v18722_v52  ;;  %v18768_v52 = vld [vmem:[#allocation108_spill] sm:$0xff] }
0x108c   :  { %10022 = vmatprep.subr.bf16.mxu0 %v18723_v61  ;;  %v18769_v61 = vld [vmem:[#allocation42_spill] sm:$0xff] }
0x108f   :  { %10023 = vmatpush1.bf16.msra.mxu0 %v18724_v40  ;;  %v18770_v40 = vld [vmem:[#allocation110_spill] sm:$0xff] }
0x1090   :  { %10024 = vmatprep.subr.bf16.mxu0 %v18725_v32  ;;  %v18771_v32 = vld [vmem:[#allocation44_spill] sm:$0xff] }
0x1093   :  { %10025 = vmatpush1.bf16.msra.mxu0 %v18726_v25  ;;  %v18772_v25 = vld [vmem:[#allocation112_spill] sm:$0xff] }
0x1094   :  { %10026 = vmatprep.subr.bf16.mxu0 %v18727_v13 }
0x1097   :  { %10027 = vmatpush1.bf16.msra.mxu0 %v18728_v31 }
0x1098   :  { %10028 = vmatprep.subr.bf16.mxu0 %v18729_v22  ;;  %v18773_v22 = vld [vmem:[#allocation46_spill] sm:$0xff] }
0x109b   :  { %10029 = vmatpush1.bf16.msra.mxu0 %v18730_v4  ;;  %v18774_v4 = vld [vmem:[#allocation114_spill] sm:$0xff] }
0x109c   :  { %10030 = vmatprep.subr.bf16.mxu0 %v18731_v47 }
0x109f   :  { %10031 = vmatpush1.bf16.msra.mxu0 %v18732_v44 }
0x10a0   :  { %10032 = vmatprep.subr.bf16.mxu0 %v18733_v36  ;;  %v18775_v36 = vld [vmem:[#allocation48_spill] sm:$0xff] }
0x10a3   :  { %10033 = vmatpush1.bf16.msra.mxu0 %v18734_v17  ;;  %v18776_v17 = vld [vmem:[#allocation116_spill] sm:$0xff] }
0x10a4   :  { %10034 = vmatprep.subr.bf16.mxu0 %v18735_v0 }
0x10a7   :  { %10035 = vmatpush1.bf16.msra.mxu0 %v18736_v39  ;;  %v18777_v39 = vld [vmem:[#allocation50_spill] sm:$0xff] }
0x10a8   :  { %10036 = vmatprep.subr.bf16.mxu0 %v18737_v7  ;;  %v18778_v7 = vld [vmem:[#allocation118_spill] sm:$0xff] }
0x10ab   :  { %10037 = vmatpush1.bf16.msra.mxu0 %v18738_v34  ;;  %v18779_v34 = vld [vmem:[#allocation52_spill] sm:$0xff] }
0x10ac   :  { %10038 = vmatprep.subr.bf16.mxu0 %v18739_v49  ;;  %v18780_v49 = vld [vmem:[#allocation120_spill] sm:$0xff] }
0x10af   :  { %10039 = vmatpush1.bf16.msra.mxu0 %v18740_v59  ;;  %v18781_v59 = vld [vmem:[#allocation54_spill] sm:$0xff] }
0x10b0   :  { %10040 = vmatprep.subr.bf16.mxu0 %v18741_v41  ;;  %v18782_v41 = vld [vmem:[#allocation122_spill] sm:$0xff] }
0x10b3   :  { %10041 = vmatpush1.bf16.msra.mxu0 %v18742_v26  ;;  %v18783_v26 = vld [vmem:[#allocation56_spill] sm:$0xff] }
0x10b4   :  { %10042 = vmatprep.subr.bf16.mxu0 %v18743_v10  ;;  %v18784_v10 = vld [vmem:[#allocation124_spill] sm:$0xff] }
0x10b7   :  { %10043 = vmatpush1.bf16.msra.mxu0 %v18744_v60  ;;  %v18785_v60 = vld [vmem:[#allocation58_spill] sm:$0xff] }
0x10b8   :  { %10053 = vmatprep.subr.bf16.mxu0 %v18745_v42  ;;  %v18786_v42 = vld [vmem:[#allocation126_spill] sm:$0xff] }
0x10cd   :  { %v9583_v55 = vpop.f32.mrb[32].mxu0  ;;  %v17146_v57 = vpop.f32.mrb[36].mxu1 }
0x10ce   :  { %v12827_v58 = vadd.f32 %v9583_v55, %v18746_v12  ;;  %v9585_v2 = vpop.f32.mrb[33].mxu0  ;;  %v9667_v19 = vpop.f32.mrb[37].mxu1  ;;  %v18787_v55 = vld [vmem:[#allocation60_spill] sm:$0xff] }
0x10cf   :  { %v12828_v15 = vadd.f32 %v9585_v2, %v18747_v5  ;;  %v12830_v21 = vadd.f32 %v9667_v19, %v18748_v51  ;;  %v9587_v23 = vpop.f32.mrb[34].mxu0  ;;  %v9669_v27 = vpop.f32.mrb[38].mxu1  ;;  %v18788_v12 = vld [vmem:[#allocation128_spill] sm:$0xff]  ;;  %v18790_v2 = vld [vmem:[#allocation130_spill] sm:$0xff] }
0x10d0   :  { %v9834_v28 = vmax.f32 %v12827_v58, 0.0  ;;  %v9588_v54 = vpop.f32.mrb[35].mxu0  ;;  %v9670_v1 = vpop.f32.mrb[39].mxu1  ;;  %v18789_v58 = vld [vmem:[#allocation62_spill] sm:$0xff]  ;;  %v18791_v19 = vld [vmem:[#allocation64_spill] sm:$0xff] }
0x10d1   :  { %v9835_v6 = vmax.f32 %v12828_v15, 0.0  ;;  %v9837_v46 = vmax.f32 %v12830_v21, 0.0  ;;  %v18792_v5 = vld [vmem:[#allocation132_spill] sm:$0xff]  ;;  %v18793_v15 = vld [vmem:[#allocation66_spill] sm:$0xff] }
0x10d2   :  { %v17153_v33 = vpack.c.bf16 %v9834_v28, %v9834_v28  ;;  %v18794_v51 = vld [vmem:[#allocation134_spill] sm:$0xff]  ;;  %v18795_v21 = vld [vmem:[#allocation68_spill] sm:$0xff] }
0x10d3   :  { %v17151_v29 = vpack.c.bf16 %v9835_v6, %v9835_v6  ;;  %v17157_v24 = vpack.c.bf16 %v9837_v46, %v9837_v46  ;;  %v18796_v23 = vld [vmem:[#allocation136_spill] sm:$0xff]  ;;  %v18797_v27 = vld [vmem:[#allocation70_spill] sm:$0xff] }
0x10d4   :  { %v18798_v28 = vld [vmem:[#allocation138_spill] sm:$0xff]  ;;  %v18799_v54 = vld [vmem:[#allocation72_spill] sm:$0xff] }
0x10d5   :  { %9880 = vmatprep.mubr.bf16.mxu1 %v17151_v29  ;;  %10044 = vmatprep.mubr.bf16.mxu0 %v17151_v29  ;;  %v18800_v1 = vld [vmem:[#allocation140_spill] sm:$0xff]  ;;  %v18801_v6 = vld [vmem:[#allocation74_spill] sm:$0xff] }
0x10d6   :  { %9881 = vmatmul.mubr.bf16.vlgmr.msra.gmra.mrb[48].mxu1 %v17153_v33  ;;  %10045 = vmatmul.mubr.bf16.vlgmr.msra.gmra.mrb[40].mxu0 %v17153_v33  ;;  %v18802_v46 = vld [vmem:[#allocation142_spill] sm:$0xff] }
0x10d7   :  { %9890 = vmatpush1.bf16.msra.mxu1 %v18749_v14  ;;  %10054 = vmatpush1.bf16.msra.mxu0 %v18750_v30  ;;  %v18803_v14 = vld [vmem:[#allocation482_spill] sm:$0xff] }
0x10d8   :  { %9921 = vmatprep.mubr.bf16.mxu1 %v17157_v24  ;;  %10085 = vmatprep.mubr.bf16.mxu0 %v17157_v24  ;;  %v12829_v30 = vadd.f32 %v17146_v57, %v18803_v14  ;;  %v18853_v14 = vld [vmem:[#allocation328_spill] sm:$0xff] }
0x10d9   :  { %9891 = vmatprep.subr.bf16.mxu1 %v18751_v45  ;;  %10055 = vmatprep.subr.bf16.mxu0 %v18752_v16  ;;  %v18804_v45 = vld [vmem:[#allocation76_spill] sm:$0xff] }
0x10da   :  { %v18805_v16 = vld [vmem:[#allocation144_spill] sm:$0xff] }
0x10db   :  { %9892 = vmatpush1.bf16.msra.mxu1 %v18753_v56  ;;  %10056 = vmatpush1.bf16.msra.mxu0 %v18754_v50 }
0x10dc   :  { %9893 = vmatprep.subr.bf16.mxu1 %v18755_v53  ;;  %10057 = vmatprep.subr.bf16.mxu0 %v18756_v35  ;;  %v18806_v53 = vld [vmem:[#allocation79_spill] sm:$0xff] }
0x10dd   :  { %v18807_v35 = vld [vmem:[#allocation147_spill] sm:$0xff] }
0x10df   :  { %9894 = vmatpush1.bf16.msra.mxu1 %v18757_v3  ;;  %10058 = vmatpush1.bf16.msra.mxu0 %v18758_v62  ;;  %v9836_v3 = vmax.f32 %v12829_v30, 0.0  ;;  %v18808_v62 = vld [vmem:[#allocation484_spill] sm:$0xff] }
0x10e0   :  { %9895 = vmatprep.subr.bf16.mxu1 %v18759_v8  ;;  %10059 = vmatprep.subr.bf16.mxu0 %v18760_v20  ;;  %v18854_v30 = vld [vmem:[#allocation392_spill] sm:$0xff] }
0x10e3   :  { %9896 = vmatpush1.bf16.msra.mxu1 %v18761_v9  ;;  %10060 = vmatpush1.bf16.msra.mxu0 %v18762_v18  ;;  %v18809_v18 = vld [vmem:[#allocation81_spill] sm:$0xff] }
0x10e4   :  { %9897 = vmatprep.subr.bf16.mxu1 %v18763_v63  ;;  %10061 = vmatprep.subr.bf16.mxu0 %v18764_v37  ;;  %v18810_v63 = vld [vmem:[#allocation149_spill] sm:$0xff] }
0x10e7   :  { %9898 = vmatpush1.bf16.msra.mxu1 %v18765_v48  ;;  %10062 = vmatpush1.bf16.msra.mxu0 %v18766_v38  ;;  %v18811_v48 = vld [vmem:[#allocation86_spill] sm:$0xff] }
0x10e8   :  { %9899 = vmatprep.subr.bf16.mxu1 %v18767_v11  ;;  %10063 = vmatprep.subr.bf16.mxu0 %v18768_v52  ;;  %v18812_v38 = vld [vmem:[#allocation154_spill] sm:$0xff]  ;;  %v17230_v11 = vpack.c.bf16 %v9836_v3, %v9836_v3  ;;  %v18813_v52 = vld [vmem:[#allocation288_spill] sm:$0xff] }
0x10e9   :  { %v18861_v3 = vld [vmem:[#allocation336_spill] sm:$0xff] }
0x10eb   :  { %9900 = vmatpush1.bf16.msra.mxu1 %v18769_v61  ;;  %10064 = vmatpush1.bf16.msra.mxu0 %v18770_v40  ;;  %v18814_v61 = vld [vmem:[#allocation352_spill] sm:$0xff]  ;;  %v18815_v40 = vld [vmem:[#allocation290_spill] sm:$0xff] }
0x10ec   :  { %9901 = vmatprep.subr.bf16.mxu1 %v18771_v32  ;;  %10065 = vmatprep.subr.bf16.mxu0 %v18772_v25  ;;  %v18816_v32 = vld [vmem:[#allocation354_spill] sm:$0xff]  ;;  %v18817_v25 = vld [vmem:[#allocation292_spill] sm:$0xff] }
0x10ee   :  { %v12611_v13 = vpop.f32.mrb[40].mxu1 }
0x10ef   :  { %v12612_v31 = vpop.f32.mrb[41].mxu1  ;;  %9902 = vmatpush1.bf16.msra.mxu1 %v18773_v22  ;;  %10066 = vmatpush1.bf16.msra.mxu0 %v18774_v4  ;;  %v18820_v22 = vld [vmem:[#allocation358_spill] sm:$0xff]  ;;  %v18821_v4 = vld [vmem:[#allocation296_spill] sm:$0xff] }
0x10f0   :  { %v12613_v47 = vadd.f32 %v12612_v31, %v12611_v13  ;;  %v12614_v44 = vpop.f32.mrb[42].mxu1  ;;  %9903 = vmatprep.subr.bf16.mxu1 %v18775_v36  ;;  %10067 = vmatprep.subr.bf16.mxu0 %v18776_v17  ;;  %v18818_v13 = vld [vmem:[#allocation356_spill] sm:$0xff]  ;;  %v18819_v31 = vld [vmem:[#allocation294_spill] sm:$0xff] }
0x10f1   :  { %v12615_v0 = vpop.f32.mrb[43].mxu1  ;;  %v18823_v44 = vld [vmem:[#allocation298_spill] sm:$0xff]  ;;  %v18825_v17 = vld [vmem:[#allocation300_spill] sm:$0xff] }
0x10f2   :  { %v9789_v8 = vadd.f32 %v12613_v47, %v18808_v62  ;;  %v18822_v47 = vld [vmem:[#allocation360_spill] sm:$0xff]  ;;  %v18824_v36 = vld [vmem:[#allocation362_spill] sm:$0xff] }
0x10f3   :  { %9904 = vmatpush1.bf16.msra.mxu1 %v18777_v39  ;;  %10068 = vmatpush1.bf16.msra.mxu0 %v18778_v7  ;;  %v18826_v0 = vld [vmem:[#allocation364_spill] sm:$0xff]  ;;  %v18827_v39 = vld [vmem:[#allocation302_spill] sm:$0xff] }
0x10f4   :  { %9905 = vmatprep.subr.bf16.mxu1 %v18779_v34  ;;  %10069 = vmatprep.subr.bf16.mxu0 %v18780_v49  ;;  %v18828_v7 = vld [vmem:[#allocation366_spill] sm:$0xff]  ;;  %v18829_v34 = vld [vmem:[#allocation304_spill] sm:$0xff] }
0x10f5   :  { %v18830_v49 = vld [vmem:[#allocation368_spill] sm:$0xff] }
0x10f6   :  { %v18862_v62 = vld [vmem:[#allocation400_spill] sm:$0xff] }
0x10f7   :  { %9906 = vmatpush1.bf16.msra.mxu1 %v18781_v59  ;;  %10070 = vmatpush1.bf16.msra.mxu0 %v18782_v41  ;;  %v18831_v59 = vld [vmem:[#allocation306_spill] sm:$0xff] }
0x10f8   :  { %9907 = vmatprep.subr.bf16.mxu1 %v18783_v26  ;;  %10071 = vmatprep.subr.bf16.mxu0 %v18784_v10  ;;  %v18832_v41 = vld [vmem:[#allocation370_spill] sm:$0xff]  ;;  %v18833_v26 = vld [vmem:[#allocation308_spill] sm:$0xff] }
0x10f9   :  { %v18834_v10 = vld [vmem:[#allocation372_spill] sm:$0xff] }
0x10fb   :  { %9908 = vmatpush1.bf16.msra.mxu1 %v18785_v60  ;;  %10072 = vmatpush1.bf16.msra.mxu0 %v18786_v42  ;;  %v18835_v60 = vld [vmem:[#allocation310_spill] sm:$0xff] }
0x10fc   :  { %9909 = vmatprep.subr.bf16.mxu1 %v18787_v55  ;;  %10073 = vmatprep.subr.bf16.mxu0 %v18788_v12  ;;  %v18836_v42 = vld [vmem:[#allocation374_spill] sm:$0xff]  ;;  %v18837_v55 = vld [vmem:[#allocation312_spill] sm:$0xff] }
0x10fd   :  { %v18838_v12 = vld [vmem:[#allocation376_spill] sm:$0xff] }
0x10ff   :  { %9910 = vmatpush1.bf16.msra.mxu1 %v18789_v58  ;;  %10074 = vmatpush1.bf16.msra.mxu0 %v18790_v2  ;;  %v18839_v58 = vld [vmem:[#allocation314_spill] sm:$0xff] }
0x1100   :  { %9911 = vmatprep.subr.bf16.mxu1 %v18791_v19  ;;  %10075 = vmatprep.subr.bf16.mxu0 %v18792_v5  ;;  %v18840_v2 = vld [vmem:[#allocation378_spill] sm:$0xff]  ;;  %v18841_v19 = vld [vmem:[#allocation316_spill] sm:$0xff] }
0x1101   :  { %v18842_v5 = vld [vmem:[#allocation380_spill] sm:$0xff] }
0x1103   :  { %9912 = vmatpush1.bf16.msra.mxu1 %v18793_v15  ;;  %10076 = vmatpush1.bf16.msra.mxu0 %v18794_v51  ;;  %v18843_v15 = vld [vmem:[#allocation318_spill] sm:$0xff] }
0x1104   :  { %9913 = vmatprep.subr.bf16.mxu1 %v18795_v21  ;;  %10077 = vmatprep.subr.bf16.mxu0 %v18796_v23  ;;  %v18844_v51 = vld [vmem:[#allocation382_spill] sm:$0xff]  ;;  %v18845_v21 = vld [vmem:[#allocation320_spill] sm:$0xff] }
0x1105   :  { %v18846_v23 = vld [vmem:[#allocation384_spill] sm:$0xff] }
0x1107   :  { %9914 = vmatpush1.bf16.msra.mxu1 %v18797_v27  ;;  %10078 = vmatpush1.bf16.msra.mxu0 %v18798_v28  ;;  %v18847_v27 = vld [vmem:[#allocation322_spill] sm:$0xff] }
0x1108   :  { %9915 = vmatprep.subr.bf16.mxu1 %v18799_v54  ;;  %10079 = vmatprep.subr.bf16.mxu0 %v18800_v1  ;;  %v18848_v28 = vld [vmem:[#allocation386_spill] sm:$0xff]  ;;  %v18849_v54 = vld [vmem:[#allocation324_spill] sm:$0xff] }
0x1109   :  { %v18850_v1 = vld [vmem:[#allocation388_spill] sm:$0xff] }
0x110b   :  { %9916 = vmatpush1.bf16.msra.mxu1 %v18801_v6  ;;  %10080 = vmatpush1.bf16.msra.mxu0 %v18802_v46  ;;  %v18851_v6 = vld [vmem:[#allocation326_spill] sm:$0xff] }
0x110c   :  { %9917 = vmatprep.subr.bf16.mxu1 %v18804_v45  ;;  %10081 = vmatprep.subr.bf16.mxu0 %v18805_v16  ;;  %v18852_v46 = vld [vmem:[#allocation390_spill] sm:$0xff] }
0x110d   :  { %v18855_v45 = vld [vmem:[#allocation330_spill] sm:$0xff] }
0x110e   :  { %v12633_v56 = vpop.f32.mrb[44].mxu1  ;;  %v18856_v16 = vld [vmem:[#allocation394_spill] sm:$0xff] }
0x110f   :  { %v12634_v50 = vpop.f32.mrb[45].mxu1  ;;  %9918 = vmatpush1.bf16.msra.mxu1 %v18806_v53  ;;  %10082 = vmatpush1.bf16.msra.mxu0 %v18807_v35  ;;  %v18859_v53 = vld [vmem:[#allocation334_spill] sm:$0xff] }
0x1110   :  { %v12635_v20 = vadd.f32 %v12634_v50, %v12633_v56  ;;  %v12636_v9 = vpop.f32.mrb[46].mxu1  ;;  %9919 = vmatprep.subr.bf16.mxu1 %v18809_v18  ;;  %10083 = vmatprep.subr.bf16.mxu0 %v18810_v63  ;;  %v18857_v56 = vld [vmem:[#allocation332_spill] sm:$0xff]  ;;  %v18860_v35 = vld [vmem:[#allocation398_spill] sm:$0xff] }
0x1111   :  { %v12637_v57 = vpop.f32.mrb[47].mxu1  ;;  %v18858_v50 = vld [vmem:[#allocation396_spill] sm:$0xff]  ;;  %v18867_v63 = vld [vmem:[#allocation342_spill] sm:$0xff] }
0x1112   :  { %v17226_v37 = vadd.f32 %v12635_v20, %v9789_v8  ;;  %v18863_v8 = vld [vmem:[#allocation338_spill] sm:$0xff]  ;;  %v18865_v9 = vld [vmem:[#allocation340_spill] sm:$0xff] }
0x1113   :  { %9920 = vmatpush1.bf16.msra.mxu1 %v18811_v48  ;;  %10084 = vmatpush1.bf16.msra.mxu0 %v18812_v38  ;;  %v18864_v20 = vld [vmem:[#allocation402_spill] sm:$0xff]  ;;  %v18866_v18 = vld [vmem:[#allocation404_spill] sm:$0xff] }
0x1114   :  { %9930 = vmatprep.subr.bf16.mxu1 %v18813_v52  ;;  %10094 = vmatprep.subr.bf16.mxu0 %v18814_v61  ;;  %v18868_v57 = vld [vmem:[#allocation406_spill] sm:$0xff]  ;;  %v18869_v48 = vld [vmem:[#allocation344_spill] sm:$0xff]  ;;  %v18871_v61 = vld [vmem:[#allocation485_spill] sm:$0xff] }
0x1115   :  { %v18870_v38 = vld [vmem:[#allocation408_spill] sm:$0xff] }
0x1116   :  { %9922 = vmatmul.mubr.bf16.vlgmr.msra.gmra.mrb[48].mxu1 %v17230_v11  ;;  %10086 = vmatmul.mubr.bf16.vlgmr.msra.gmra.mrb[40].mxu0 %v17230_v11 }
0x1117   :  { %9931 = vmatpush1.bf16.msra.mxu1 %v18815_v40  ;;  %10095 = vmatpush1.bf16.msra.mxu0 %v18816_v32 }
0x1118   :  { %9932 = vmatprep.subr.bf16.mxu1 %v18817_v25  ;;  %10096 = vmatprep.subr.bf16.mxu0 %v18818_v13  ;;  %v18872_v25 = vld [vmem:[#allocation486_spill] sm:$0xff] }
0x111b   :  { %9933 = vmatpush1.bf16.msra.mxu1 %v18819_v31  ;;  %10097 = vmatpush1.bf16.msra.mxu0 %v18820_v22  ;;  %v18873_v31 = vld [vmem:[#allocation346_spill] sm:$0xff] }
0x111c   :  { %9934 = vmatprep.subr.bf16.mxu1 %v18821_v4  ;;  %10098 = vmatprep.subr.bf16.mxu0 %v18822_v47  ;;  %v18874_v22 = vld [vmem:[#allocation410_spill] sm:$0xff] }
0x111f   :  { %9935 = vmatpush1.bf16.msra.mxu1 %v18823_v44  ;;  %10099 = vmatpush1.bf16.msra.mxu0 %v18824_v36  ;;  %v18875_v36 = vld [vmem:[#allocation348_spill] sm:$0xff] }
0x1120   :  { %9936 = vmatprep.subr.bf16.mxu1 %v18825_v17  ;;  %10100 = vmatprep.subr.bf16.mxu0 %v18826_v0  ;;  %v18876_v17 = vld [vmem:[#allocation412_spill] sm:$0xff] }
0x1123   :  { %9937 = vmatpush1.bf16.msra.mxu1 %v18827_v39  ;;  %10101 = vmatpush1.bf16.msra.mxu0 %v18828_v7  ;;  %v18877_v7 = vld [vmem:[#allocation350_spill] sm:$0xff] }
0x1124   :  { %9938 = vmatprep.subr.bf16.mxu1 %v18829_v34  ;;  %10102 = vmatprep.subr.bf16.mxu0 %v18830_v49  ;;  %v18878_v34 = vld [vmem:[#allocation415_spill] sm:$0xff] }
0x1127   :  { %9939 = vmatpush1.bf16.msra.mxu1 %v18831_v59  ;;  %10103 = vmatpush1.bf16.msra.mxu0 %v18832_v41  ;;  %v18879_v59 = vld [vmem:[#allocation289_spill] sm:$0xff] }
0x1128   :  { %9940 = vmatprep.subr.bf16.mxu1 %v18833_v26  ;;  %10104 = vmatprep.subr.bf16.mxu0 %v18834_v10  ;;  %v18880_v41 = vld [vmem:[#allocation321_spill] sm:$0xff]  ;;  %v18881_v26 = vld [vmem:[#allocation291_spill] sm:$0xff] }
0x1129   :  { %v18882_v10 = vld [vmem:[#allocation323_spill] sm:$0xff] }
0x112b   :  { %9941 = vmatpush1.bf16.msra.mxu1 %v18835_v60  ;;  %10105 = vmatpush1.bf16.msra.mxu0 %v18836_v42  ;;  %v18883_v60 = vld [vmem:[#allocation293_spill] sm:$0xff] }
0x112c   :  { %9942 = vmatprep.subr.bf16.mxu1 %v18837_v55  ;;  %10106 = vmatprep.subr.bf16.mxu0 %v18838_v12  ;;  %v18884_v42 = vld [vmem:[#allocation325_spill] sm:$0xff]  ;;  %v18885_v55 = vld [vmem:[#allocation295_spill] sm:$0xff] }
0x112d   :  { %v18886_v12 = vld [vmem:[#allocation327_spill] sm:$0xff] }
0x112f   :  { %9943 = vmatpush1.bf16.msra.mxu1 %v18839_v58  ;;  %10107 = vmatpush1.bf16.msra.mxu0 %v18840_v2  ;;  %v18887_v58 = vld [vmem:[#allocation297_spill] sm:$0xff] }
0x1130   :  { %9944 = vmatprep.subr.bf16.mxu1 %v18841_v19  ;;  %10108 = vmatprep.subr.bf16.mxu0 %v18842_v5  ;;  %v18888_v2 = vld [vmem:[#allocation329_spill] sm:$0xff]  ;;  %v18889_v19 = vld [vmem:[#allocation299_spill] sm:$0xff] }
0x1131   :  { %v18890_v5 = vld [vmem:[#allocation331_spill] sm:$0xff] }
0x1133   :  { %9945 = vmatpush1.bf16.msra.mxu1 %v18843_v15  ;;  %10109 = vmatpush1.bf16.msra.mxu0 %v18844_v51  ;;  %v18891_v15 = vld [vmem:[#allocation301_spill] sm:$0xff] }
0x1134   :  { %9946 = vmatprep.subr.bf16.mxu1 %v18845_v21  ;;  %10110 = vmatprep.subr.bf16.mxu0 %v18846_v23  ;;  %v18892_v51 = vld [vmem:[#allocation333_spill] sm:$0xff]  ;;  %v18893_v21 = vld [vmem:[#allocation303_spill] sm:$0xff] }
0x1135   :  { %v18894_v23 = vld [vmem:[#allocation335_spill] sm:$0xff] }
0x1137   :  { %9947 = vmatpush1.bf16.msra.mxu1 %v18847_v27  ;;  %10111 = vmatpush1.bf16.msra.mxu0 %v18848_v28  ;;  %v18895_v27 = vld [vmem:[#allocation305_spill] sm:$0xff] }
0x1138   :  { %9948 = vmatprep.subr.bf16.mxu1 %v18849_v54  ;;  %10112 = vmatprep.subr.bf16.mxu0 %v18850_v1  ;;  %v18896_v28 = vld [vmem:[#allocation337_spill] sm:$0xff]  ;;  %v18897_v54 = vld [vmem:[#allocation307_spill] sm:$0xff] }
0x1139   :  { %v18898_v1 = vld [vmem:[#allocation339_spill] sm:$0xff] }
0x113b   :  { %9949 = vmatpush1.bf16.msra.mxu1 %v18851_v6  ;;  %10113 = vmatpush1.bf16.msra.mxu0 %v18852_v46  ;;  %v18899_v6 = vld [vmem:[#allocation309_spill] sm:$0xff] }
0x113c   :  { %9950 = vmatprep.subr.bf16.mxu1 %v18853_v14  ;;  %10114 = vmatprep.subr.bf16.mxu0 %v18854_v30  ;;  %v18900_v46 = vld [vmem:[#allocation341_spill] sm:$0xff]  ;;  %v18901_v14 = vld [vmem:[#allocation311_spill] sm:$0xff] }
0x113d   :  { %v18902_v30 = vld [vmem:[#allocation343_spill] sm:$0xff] }
0x113f   :  { %9951 = vmatpush1.bf16.msra.mxu1 %v18855_v45  ;;  %10115 = vmatpush1.bf16.msra.mxu0 %v18856_v16  ;;  %v18903_v45 = vld [vmem:[#allocation313_spill] sm:$0xff] }
0x1140   :  { %9952 = vmatprep.subr.bf16.mxu1 %v18857_v56  ;;  %10116 = vmatprep.subr.bf16.mxu0 %v18858_v50  ;;  %v18904_v16 = vld [vmem:[#allocation345_spill] sm:$0xff]  ;;  %v18905_v56 = vld [vmem:[#allocation315_spill] sm:$0xff] }
0x1141   :  { %v18906_v50 = vld [vmem:[#allocation347_spill] sm:$0xff] }
0x1143   :  { %9953 = vmatpush1.bf16.msra.mxu1 %v18859_v53  ;;  %10117 = vmatpush1.bf16.msra.mxu0 %v18860_v35  ;;  %v9840_v53 = vmax.f32 %v17226_v37, 0.0  ;;  %v18907_v35 = vld [vmem:[#allocation317_spill] sm:$0xff]  ;;  %v18914_v37 = vld [vmem:[#allocation224_spill] sm:$0xff] }
0x1144   :  { %9954 = vmatprep.subr.bf16.mxu1 %v18861_v3  ;;  %10118 = vmatprep.subr.bf16.mxu0 %v18862_v62  ;;  %v18908_v3 = vld [vmem:[#allocation349_spill] sm:$0xff]  ;;  %v18909_v62 = vld [vmem:[#allocation319_spill] sm:$0xff] }
0x1147   :  { %9955 = vmatpush1.bf16.msra.mxu1 %v18863_v8  ;;  %10119 = vmatpush1.bf16.msra.mxu0 %v18864_v20  ;;  %v18910_v8 = vld [vmem:[#allocation351_spill] sm:$0xff]  ;;  %v17343_v20 = vpack.c.bf16 %v9840_v53, %v9840_v53 }
0x1148   :  { %9956 = vmatprep.subr.bf16.mxu1 %v18865_v9  ;;  %10120 = vmatprep.subr.bf16.mxu0 %v18866_v18  ;;  %v18911_v9 = vld [vmem:[#allocation155_spill] sm:$0xff]  ;;  %v18912_v18 = vld [vmem:[#allocation222_spill] sm:$0xff] }
0x1149   :  { %v18963_v53 = vld [vmem:[#allocation207_spill] sm:$0xff] }
0x114b   :  { %9957 = vmatpush1.bf16.msra.mxu1 %v18867_v63  ;;  %10121 = vmatpush1.bf16.msra.mxu0 %v18868_v57  ;;  %v18913_v63 = vld [vmem:[#allocation157_spill] sm:$0xff]  ;;  %v18915_v57 = vld [vmem:[#allocation159_spill] sm:$0xff] }
0x114c   :  { %9958 = vmatprep.subr.bf16.mxu1 %v18869_v48  ;;  %10122 = vmatprep.subr.bf16.mxu0 %v18870_v38  ;;  %v18916_v48 = vld [vmem:[#allocation226_spill] sm:$0xff]  ;;  %v18917_v38 = vld [vmem:[#allocation161_spill] sm:$0xff] }
0x114d   :  { %v9747_v52 = vpop.f32.mrb[36].mxu0 }
0x114e   :  { %v12831_v40 = vadd.f32 %v9747_v52, %v18871_v61  ;;  %v9749_v32 = vpop.f32.mrb[37].mxu0  ;;  %v18918_v52 = vld [vmem:[#allocation228_spill] sm:$0xff]  ;;  %v18919_v61 = vld [vmem:[#allocation163_spill] sm:$0xff] }
0x114f   :  { %v12832_v13 = vadd.f32 %v9749_v32, %v18872_v25  ;;  %9959 = vmatpush1.bf16.msra.mxu1 %v18873_v31  ;;  %10123 = vmatpush1.bf16.msra.mxu0 %v18874_v22  ;;  %v9751_v4 = vpop.f32.mrb[38].mxu0  ;;  %v18921_v32 = vld [vmem:[#allocation165_spill] sm:$0xff]  ;;  %v18922_v25 = vld [vmem:[#allocation232_spill] sm:$0xff]  ;;  %v18924_v31 = vld [vmem:[#allocation234_spill] sm:$0xff] }
0x1150   :  { %v9838_v47 = vmax.f32 %v12831_v40, 0.0  ;;  %v9752_v44 = vpop.f32.mrb[39].mxu0  ;;  %9960 = vmatprep.subr.bf16.mxu1 %v18875_v36  ;;  %10124 = vmatprep.subr.bf16.mxu0 %v18876_v17  ;;  %v18920_v40 = vld [vmem:[#allocation230_spill] sm:$0xff]  ;;  %v18926_v22 = vld [vmem:[#allocation236_spill] sm:$0xff]  ;;  %v18927_v4 = vld [vmem:[#allocation171_spill] sm:$0xff] }
0x1151   :  { %v9839_v0 = vmax.f32 %v12832_v13, 0.0  ;;  %v18923_v13 = vld [vmem:[#allocation167_spill] sm:$0xff]  ;;  %v18929_v44 = vld [vmem:[#allocation173_spill] sm:$0xff]  ;;  %v18930_v36 = vld [vmem:[#allocation240_spill] sm:$0xff] }
0x1152   :  { %v17302_v49 = vpack.c.bf16 %v9838_v47, %v9838_v47  ;;  %v18928_v47 = vld [vmem:[#allocation238_spill] sm:$0xff]  ;;  %v18931_v17 = vld [vmem:[#allocation175_spill] sm:$0xff] }
0x1153   :  { %v17298_v39 = vpack.c.bf16 %v9839_v0, %v9839_v0  ;;  %9961 = vmatpush1.bf16.msra.mxu1 %v18877_v7  ;;  %10125 = vmatpush1.bf16.msra.mxu0 %v18878_v34  ;;  %v18932_v0 = vld [vmem:[#allocation242_spill] sm:$0xff]  ;;  %v18933_v7 = vld [vmem:[#allocation177_spill] sm:$0xff]  ;;  %v18934_v34 = vld [vmem:[#allocation244_spill] sm:$0xff] }
0x1154   :  { %9971 = vmatprep.subr.bf16.mxu1 %v18879_v59  ;;  %10135 = vmatprep.subr.bf16.mxu0 %v18880_v41  ;;  %v18935_v59 = vld [vmem:[#allocation179_spill] sm:$0xff]  ;;  %v18936_v41 = vld [vmem:[#allocation246_spill] sm:$0xff] }
0x1155   :  { %9962 = vmatprep.mubr.bf16.mxu1 %v17298_v39  ;;  %10126 = vmatprep.mubr.bf16.mxu0 %v17298_v39 }
0x1156   :  { %9963 = vmatmul.mubr.bf16.vlgmr.msra.gmra.mrb[48].mxu1 %v17302_v49  ;;  %10127 = vmatmul.mubr.bf16.vlgmr.msra.gmra.mrb[40].mxu0 %v17302_v49 }
0x1157   :  { %9972 = vmatpush1.bf16.msra.mxu1 %v18881_v26  ;;  %10136 = vmatpush1.bf16.msra.mxu0 %v18882_v10  ;;  %v18937_v26 = vld [vmem:[#allocation181_spill] sm:$0xff]  ;;  %v18938_v10 = vld [vmem:[#allocation248_spill] sm:$0xff] }
0x1158   :  { %9973 = vmatprep.subr.bf16.mxu1 %v18883_v60  ;;  %10137 = vmatprep.subr.bf16.mxu0 %v18884_v42  ;;  %v18939_v60 = vld [vmem:[#allocation183_spill] sm:$0xff]  ;;  %v18940_v42 = vld [vmem:[#allocation250_spill] sm:$0xff] }
0x1159   :  { %10003 = vmatprep.mubr.bf16.mxu1 %v14980_v43  ;;  %10167 = vmatprep.mubr.bf16.mxu0 %v14980_v43 }
0x115b   :  { %9974 = vmatpush1.bf16.msra.mxu1 %v18885_v55  ;;  %10138 = vmatpush1.bf16.msra.mxu0 %v18886_v12  ;;  %v18941_v55 = vld [vmem:[#allocation185_spill] sm:$0xff]  ;;  %v18942_v12 = vld [vmem:[#allocation252_spill] sm:$0xff] }
0x115c   :  { %9975 = vmatprep.subr.bf16.mxu1 %v18887_v58  ;;  %10139 = vmatprep.subr.bf16.mxu0 %v18888_v2  ;;  %v18943_v58 = vld [vmem:[#allocation187_spill] sm:$0xff]  ;;  %v18944_v2 = vld [vmem:[#allocation254_spill] sm:$0xff] }
0x115f   :  { %9976 = vmatpush1.bf16.msra.mxu1 %v18889_v19  ;;  %10140 = vmatpush1.bf16.msra.mxu0 %v18890_v5  ;;  %v18945_v19 = vld [vmem:[#allocation189_spill] sm:$0xff]  ;;  %v18946_v5 = vld [vmem:[#allocation256_spill] sm:$0xff] }
0x1160   :  { %9977 = vmatprep.subr.bf16.mxu1 %v18891_v15  ;;  %10141 = vmatprep.subr.bf16.mxu0 %v18892_v51  ;;  %v18947_v15 = vld [vmem:[#allocation191_spill] sm:$0xff]  ;;  %v18948_v51 = vld [vmem:[#allocation258_spill] sm:$0xff] }
0x1163   :  { %9978 = vmatpush1.bf16.msra.mxu1 %v18893_v21  ;;  %10142 = vmatpush1.bf16.msra.mxu0 %v18894_v23  ;;  %v18949_v21 = vld [vmem:[#allocation193_spill] sm:$0xff]  ;;  %v18950_v23 = vld [vmem:[#allocation260_spill] sm:$0xff] }
0x1164   :  { %9979 = vmatprep.subr.bf16.mxu1 %v18895_v27  ;;  %10143 = vmatprep.subr.bf16.mxu0 %v18896_v28  ;;  %v18951_v27 = vld [vmem:[#allocation195_spill] sm:$0xff]  ;;  %v18952_v28 = vld [vmem:[#allocation262_spill] sm:$0xff] }
0x1167   :  { %9980 = vmatpush1.bf16.msra.mxu1 %v18897_v54  ;;  %10144 = vmatpush1.bf16.msra.mxu0 %v18898_v1  ;;  %v18953_v54 = vld [vmem:[#allocation197_spill] sm:$0xff]  ;;  %v18954_v1 = vld [vmem:[#allocation264_spill] sm:$0xff] }
0x1168   :  { %9981 = vmatprep.subr.bf16.mxu1 %v18899_v6  ;;  %10145 = vmatprep.subr.bf16.mxu0 %v18900_v46  ;;  %v18955_v6 = vld [vmem:[#allocation199_spill] sm:$0xff]  ;;  %v18956_v46 = vld [vmem:[#allocation266_spill] sm:$0xff] }
0x116b   :  { %9982 = vmatpush1.bf16.msra.mxu1 %v18901_v14  ;;  %10146 = vmatpush1.bf16.msra.mxu0 %v18902_v30  ;;  %v18957_v14 = vld [vmem:[#allocation201_spill] sm:$0xff]  ;;  %v18958_v30 = vld [vmem:[#allocation268_spill] sm:$0xff] }
0x116c   :  { %9983 = vmatprep.subr.bf16.mxu1 %v18903_v45  ;;  %10147 = vmatprep.subr.bf16.mxu0 %v18904_v16  ;;  %v18959_v45 = vld [vmem:[#allocation203_spill] sm:$0xff]  ;;  %v18960_v16 = vld [vmem:[#allocation270_spill] sm:$0xff] }
0x116f   :  { %9984 = vmatpush1.bf16.msra.mxu1 %v18905_v56  ;;  %10148 = vmatpush1.bf16.msra.mxu0 %v18906_v50  ;;  %v18961_v56 = vld [vmem:[#allocation205_spill] sm:$0xff]  ;;  %v18962_v50 = vld [vmem:[#allocation272_spill] sm:$0xff] }
0x1170   :  { %9985 = vmatprep.subr.bf16.mxu1 %v18907_v35  ;;  %10149 = vmatprep.subr.bf16.mxu0 %v18908_v3  ;;  %v18964_v35 = vld [vmem:[#allocation274_spill] sm:$0xff]  ;;  %v18965_v3 = vld [vmem:[#allocation209_spill] sm:$0xff] }
0x1173   :  { %9986 = vmatpush1.bf16.msra.mxu1 %v18909_v62  ;;  %10150 = vmatpush1.bf16.msra.mxu0 %v18910_v8  ;;  %v18966_v62 = vld [vmem:[#allocation276_spill] sm:$0xff]  ;;  %v18967_v8 = vld [vmem:[#allocation211_spill] sm:$0xff] }
0x1174   :  { %10176 = vmatprep.subr.bf16.mxu1 %v18911_v9  ;;  %10340 = vmatprep.subr.bf16.mxu0 %v18912_v18  ;;  %v18968_v9 = vld [vmem:[#allocation278_spill] sm:$0xff]  ;;  %v18969_v18 = vld [vmem:[#allocation213_spill] sm:$0xff] }
0x1176   :  { %10004 = vmatmul.mubr.bf16.vlgmr.msra.gmra.mrb[48].mxu1 %v17343_v20  ;;  %10168 = vmatmul.mubr.bf16.vlgmr.msra.gmra.mrb[40].mxu0 %v17343_v20 }
0x1177   :  { %10177 = vmatpush1.bf16.msra.mxu1 %v18913_v63  ;;  %10208 = vmatprep.mubr.bf16.mxu1 %v17151_v29  ;;  %v18970_v63 = vld [vmem:[#allocation280_spill] sm:$0xff] }
0x1178   :  { %10341 = vmatpush1.bf16.msra.mxu0 %v18914_v37  ;;  %10372 = vmatprep.mubr.bf16.mxu0 %v17151_v29  ;;  %v18925_v29 = vld [vmem:[#allocation169_spill] sm:$0xff]  ;;  %v18971_v37 = vld [vmem:[#allocation216_spill] sm:$0xff] }
0x1179   :  { %10178 = vmatprep.subr.bf16.mxu1 %v18915_v57  ;;  %10342 = vmatprep.subr.bf16.mxu0 %v18916_v48  ;;  %v18972_v57 = vld [vmem:[#allocation283_spill] sm:$0xff]  ;;  %v18973_v48 = vld [vmem:[#allocation220_spill] sm:$0xff] }
0x117b   :  { %10179 = vmatpush1.bf16.msra.mxu1 %v18917_v38  ;;  %v18974_v38 = vld [vmem:[#allocation286_spill] sm:$0xff] }
0x117c   :  { %10343 = vmatpush1.bf16.msra.mxu0 %v18918_v52  ;;  %10180 = vmatprep.subr.bf16.mxu1 %v18919_v61  ;;  %v18975_v52 = vld [vmem:[#allocation156_spill] sm:$0xff]  ;;  %v18976_v61 = vld [vmem:[#allocation223_spill] sm:$0xff] }
0x117d   :  { %10344 = vmatprep.subr.bf16.mxu0 %v18920_v40  ;;  %v18977_v40 = vld [vmem:[#allocation158_spill] sm:$0xff] }
0x117f   :  { %10181 = vmatpush1.bf16.msra.mxu1 %v18921_v32  ;;  %v18978_v32 = vld [vmem:[#allocation225_spill] sm:$0xff] }
0x1180   :  { %10345 = vmatpush1.bf16.msra.mxu0 %v18922_v25  ;;  %10182 = vmatprep.subr.bf16.mxu1 %v18923_v13  ;;  %v18979_v25 = vld [vmem:[#allocation160_spill] sm:$0xff]  ;;  %v18980_v13 = vld [vmem:[#allocation227_spill] sm:$0xff] }
0x1181   :  { %10346 = vmatprep.subr.bf16.mxu0 %v18924_v31  ;;  %v18981_v31 = vld [vmem:[#allocation162_spill] sm:$0xff] }
0x1183   :  { %10183 = vmatpush1.bf16.msra.mxu1 %v18925_v29  ;;  %v18982_v29 = vld [vmem:[#allocation229_spill] sm:$0xff] }
0x1184   :  { %10347 = vmatpush1.bf16.msra.mxu0 %v18926_v22  ;;  %10184 = vmatprep.subr.bf16.mxu1 %v18927_v4  ;;  %v18983_v22 = vld [vmem:[#allocation164_spill] sm:$0xff]  ;;  %v18984_v4 = vld [vmem:[#allocation231_spill] sm:$0xff] }
0x1185   :  { %10348 = vmatprep.subr.bf16.mxu0 %v18928_v47  ;;  %v18986_v47 = vld [vmem:[#allocation233_spill] sm:$0xff] }
0x1187   :  { %10185 = vmatpush1.bf16.msra.mxu1 %v18929_v44  ;;  %v18987_v44 = vld [vmem:[#allocation168_spill] sm:$0xff] }
0x1188   :  { %10349 = vmatpush1.bf16.msra.mxu0 %v18930_v36  ;;  %10186 = vmatprep.subr.bf16.mxu1 %v18931_v17  ;;  %v18988_v36 = vld [vmem:[#allocation235_spill] sm:$0xff]  ;;  %v18990_v17 = vld [vmem:[#allocation237_spill] sm:$0xff] }
0x1189   :  { %10350 = vmatprep.subr.bf16.mxu0 %v18932_v0  ;;  %v18991_v0 = vld [vmem:[#allocation172_spill] sm:$0xff] }
0x118b   :  { %10187 = vmatpush1.bf16.msra.mxu1 %v18933_v7  ;;  %v18992_v7 = vld [vmem:[#allocation239_spill] sm:$0xff] }
0x118c   :  { %10351 = vmatpush1.bf16.msra.mxu0 %v18934_v34  ;;  %10188 = vmatprep.subr.bf16.mxu1 %v18935_v59  ;;  %v18993_v34 = vld [vmem:[#allocation174_spill] sm:$0xff]  ;;  %v18994_v59 = vld [vmem:[#allocation241_spill] sm:$0xff] }
0x118d   :  { %10352 = vmatprep.subr.bf16.mxu0 %v18936_v41  ;;  %v18995_v41 = vld [vmem:[#allocation176_spill] sm:$0xff] }
0x118f   :  { %10189 = vmatpush1.bf16.msra.mxu1 %v18937_v26  ;;  %v18996_v26 = vld [vmem:[#allocation243_spill] sm:$0xff] }
0x1190   :  { %10353 = vmatpush1.bf16.msra.mxu0 %v18938_v10  ;;  %10190 = vmatprep.subr.bf16.mxu1 %v18939_v60  ;;  %v18997_v10 = vld [vmem:[#allocation178_spill] sm:$0xff]  ;;  %v18998_v60 = vld [vmem:[#allocation245_spill] sm:$0xff] }
0x1191   :  { %10354 = vmatprep.subr.bf16.mxu0 %v18940_v42  ;;  %v18999_v42 = vld [vmem:[#allocation180_spill] sm:$0xff] }
0x1193   :  { %10191 = vmatpush1.bf16.msra.mxu1 %v18941_v55  ;;  %v19000_v55 = vld [vmem:[#allocation247_spill] sm:$0xff] }
0x1194   :  { %10355 = vmatpush1.bf16.msra.mxu0 %v18942_v12  ;;  %10192 = vmatprep.subr.bf16.mxu1 %v18943_v58  ;;  %v19001_v12 = vld [vmem:[#allocation182_spill] sm:$0xff]  ;;  %v19002_v58 = vld [vmem:[#allocation249_spill] sm:$0xff] }
0x1195   :  { %10356 = vmatprep.subr.bf16.mxu0 %v18944_v2  ;;  %v19003_v2 = vld [vmem:[#allocation184_spill] sm:$0xff] }
0x1197   :  { %10193 = vmatpush1.bf16.msra.mxu1 %v18945_v19  ;;  %v19004_v19 = vld [vmem:[#allocation251_spill] sm:$0xff] }
0x1198   :  { %10357 = vmatpush1.bf16.msra.mxu0 %v18946_v5  ;;  %10194 = vmatprep.subr.bf16.mxu1 %v18947_v15  ;;  %v19005_v5 = vld [vmem:[#allocation186_spill] sm:$0xff]  ;;  %v19006_v15 = vld [vmem:[#allocation253_spill] sm:$0xff] }
0x1199   :  { %10358 = vmatprep.subr.bf16.mxu0 %v18948_v51  ;;  %v19007_v51 = vld [vmem:[#allocation188_spill] sm:$0xff] }
0x119b   :  { %10195 = vmatpush1.bf16.msra.mxu1 %v18949_v21  ;;  %v19008_v21 = vld [vmem:[#allocation255_spill] sm:$0xff] }
0x119c   :  { %10359 = vmatpush1.bf16.msra.mxu0 %v18950_v23  ;;  %10196 = vmatprep.subr.bf16.mxu1 %v18951_v27  ;;  %v19009_v23 = vld [vmem:[#allocation190_spill] sm:$0xff]  ;;  %v19010_v27 = vld [vmem:[#allocation257_spill] sm:$0xff] }
0x119d   :  { %10360 = vmatprep.subr.bf16.mxu0 %v18952_v28  ;;  %v19011_v28 = vld [vmem:[#allocation192_spill] sm:$0xff] }
0x119f   :  { %10197 = vmatpush1.bf16.msra.mxu1 %v18953_v54  ;;  %v19012_v54 = vld [vmem:[#allocation259_spill] sm:$0xff] }
0x11a0   :  { %10361 = vmatpush1.bf16.msra.mxu0 %v18954_v1  ;;  %10198 = vmatprep.subr.bf16.mxu1 %v18955_v6  ;;  %v19013_v1 = vld [vmem:[#allocation194_spill] sm:$0xff]  ;;  %v19014_v6 = vld [vmem:[#allocation261_spill] sm:$0xff] }
0x11a1   :  { %10362 = vmatprep.subr.bf16.mxu0 %v18956_v46  ;;  %v19015_v46 = vld [vmem:[#allocation196_spill] sm:$0xff] }
0x11a3   :  { %10199 = vmatpush1.bf16.msra.mxu1 %v18957_v14  ;;  %v19016_v14 = vld [vmem:[#allocation263_spill] sm:$0xff] }
0x11a4   :  { %10363 = vmatpush1.bf16.msra.mxu0 %v18958_v30  ;;  %10200 = vmatprep.subr.bf16.mxu1 %v18959_v45  ;;  %v19017_v30 = vld [vmem:[#allocation198_spill] sm:$0xff]  ;;  %v19018_v45 = vld [vmem:[#allocation265_spill] sm:$0xff] }
0x11a5   :  { %10364 = vmatprep.subr.bf16.mxu0 %v18960_v16  ;;  %v19019_v16 = vld [vmem:[#allocation200_spill] sm:$0xff] }
0x11a7   :  { %10201 = vmatpush1.bf16.msra.mxu1 %v18961_v56  ;;  %v19020_v56 = vld [vmem:[#allocation267_spill] sm:$0xff] }
0x11a8   :  { %10365 = vmatpush1.bf16.msra.mxu0 %v18962_v50  ;;  %10202 = vmatprep.subr.bf16.mxu1 %v18963_v53  ;;  %v19021_v50 = vld [vmem:[#allocation202_spill] sm:$0xff]  ;;  %v19022_v53 = vld [vmem:[#allocation269_spill] sm:$0xff] }
0x11a9   :  { %10366 = vmatprep.subr.bf16.mxu0 %v18964_v35  ;;  %v19023_v35 = vld [vmem:[#allocation204_spill] sm:$0xff] }
0x11ab   :  { %10203 = vmatpush1.bf16.msra.mxu1 %v18965_v3  ;;  %v19024_v3 = vld [vmem:[#allocation271_spill] sm:$0xff] }
0x11ac   :  { %10367 = vmatpush1.bf16.msra.mxu0 %v18966_v62  ;;  %10204 = vmatprep.subr.bf16.mxu1 %v18967_v8  ;;  %v19025_v62 = vld [vmem:[#allocation206_spill] sm:$0xff]  ;;  %v19026_v8 = vld [vmem:[#allocation273_spill] sm:$0xff] }
0x11ad   :  { %10368 = vmatprep.subr.bf16.mxu0 %v18968_v9  ;;  %v19027_v9 = vld [vmem:[#allocation208_spill] sm:$0xff] }
0x11af   :  { %10205 = vmatpush1.bf16.msra.mxu1 %v18969_v18  ;;  %v19028_v18 = vld [vmem:[#allocation275_spill] sm:$0xff] }
0x11b0   :  { %10369 = vmatpush1.bf16.msra.mxu0 %v18970_v63  ;;  %10206 = vmatprep.subr.bf16.mxu1 %v18971_v37  ;;  %v19029_v63 = vld [vmem:[#allocation210_spill] sm:$0xff]  ;;  %v19030_v37 = vld [vmem:[#allocation277_spill] sm:$0xff] }
0x11b1   :  { %10370 = vmatprep.subr.bf16.mxu0 %v18972_v57  ;;  %v19031_v57 = vld [vmem:[#allocation212_spill] sm:$0xff] }
0x11b3   :  { %10207 = vmatpush1.bf16.msra.mxu1 %v18973_v48  ;;  %v19032_v48 = vld [vmem:[#allocation279_spill] sm:$0xff] }
0x11b4   :  { %10371 = vmatpush1.bf16.msra.mxu0 %v18974_v38  ;;  %10217 = vmatprep.subr.bf16.mxu1 %v18975_v52  ;;  %v19033_v38 = vld [vmem:[#allocation215_spill] sm:$0xff]  ;;  %v19034_v52 = vld [vmem:[#allocation282_spill] sm:$0xff] }
0x11b5   :  { %10381 = vmatprep.subr.bf16.mxu0 %v18976_v61  ;;  %v19035_v61 = vld [vmem:[#allocation217_spill] sm:$0xff] }
0x11b6   :  { %10209 = vmatmul.mubr.bf16.vlgmr.msra.gmra.mrb[52].mxu1 %v17153_v33 }
0x11b7   :  { %10373 = vmatmul.mubr.bf16.vlgmr.msra.gmra.mrb[44].mxu0 %v17153_v33  ;;  %10218 = vmatpush1.bf16.msra.mxu1 %v18977_v40  ;;  %v18985_v33 = vld [vmem:[#allocation166_spill] sm:$0xff]  ;;  %v19036_v40 = vld [vmem:[#allocation284_spill] sm:$0xff] }
0x11b8   :  { %10249 = vmatprep.mubr.bf16.mxu1 %v17157_v24  ;;  %10382 = vmatpush1.bf16.msra.mxu0 %v18978_v32  ;;  %v19037_v32 = vld [vmem:[#allocation221_spill] sm:$0xff] }
0x11b9   :  { %10413 = vmatprep.mubr.bf16.mxu0 %v17157_v24  ;;  %10219 = vmatprep.subr.bf16.mxu1 %v18979_v25  ;;  %v18989_v24 = vld [vmem:[#allocation170_spill] sm:$0xff]  ;;  %v19038_v25 = vld [vmem:[#allocation287_spill] sm:$0xff] }
0x11ba   :  { %10383 = vmatprep.subr.bf16.mxu0 %v18980_v13  ;;  %v19039_v13 = vld [vmem:[#allocation417_spill] sm:$0xff] }
0x11bb   :  { %10220 = vmatpush1.bf16.msra.mxu1 %v18981_v31  ;;  %v19040_v31 = vld [vmem:[#allocation451_spill] sm:$0xff] }
0x11bc   :  { %10384 = vmatpush1.bf16.msra.mxu0 %v18982_v29  ;;  %10221 = vmatprep.subr.bf16.mxu1 %v18983_v22  ;;  %v19041_v29 = vld [vmem:[#allocation418_spill] sm:$0xff]  ;;  %v19042_v22 = vld [vmem:[#allocation452_spill] sm:$0xff] }
0x11bd   :  { %10385 = vmatprep.subr.bf16.mxu0 %v18984_v4  ;;  %v19043_v4 = vld [vmem:[#allocation419_spill] sm:$0xff] }
0x11bf   :  { %10222 = vmatpush1.bf16.msra.mxu1 %v18985_v33  ;;  %v19044_v33 = vld [vmem:[#allocation453_spill] sm:$0xff] }
0x11c0   :  { %10386 = vmatpush1.bf16.msra.mxu0 %v18986_v47  ;;  %10223 = vmatprep.subr.bf16.mxu1 %v18987_v44  ;;  %v19045_v47 = vld [vmem:[#allocation420_spill] sm:$0xff]  ;;  %v19046_v44 = vld [vmem:[#allocation454_spill] sm:$0xff] }
0x11c1   :  { %10387 = vmatprep.subr.bf16.mxu0 %v18988_v36  ;;  %v19047_v36 = vld [vmem:[#allocation421_spill] sm:$0xff] }
0x11c3   :  { %10224 = vmatpush1.bf16.msra.mxu1 %v18989_v24  ;;  %v19048_v24 = vld [vmem:[#allocation455_spill] sm:$0xff] }
0x11c4   :  { %10388 = vmatpush1.bf16.msra.mxu0 %v18990_v17  ;;  %10225 = vmatprep.subr.bf16.mxu1 %v18991_v0  ;;  %v19050_v17 = vld [vmem:[#allocation456_spill] sm:$0xff]  ;;  %v19051_v0 = vld [vmem:[#allocation423_spill] sm:$0xff] }
0x11c5   :  { %10389 = vmatprep.subr.bf16.mxu0 %v18992_v7  ;;  %v19052_v7 = vld [vmem:[#allocation457_spill] sm:$0xff] }
0x11c7   :  { %10226 = vmatpush1.bf16.msra.mxu1 %v18993_v34  ;;  %v19054_v34 = vld [vmem:[#allocation458_spill] sm:$0xff] }
0x11c8   :  { %10390 = vmatpush1.bf16.msra.mxu0 %v18994_v59  ;;  %10227 = vmatprep.subr.bf16.mxu1 %v18995_v41  ;;  %v19055_v59 = vld [vmem:[#allocation425_spill] sm:$0xff]  ;;  %v19056_v41 = vld [vmem:[#allocation459_spill] sm:$0xff] }
0x11c9   :  { %10391 = vmatprep.subr.bf16.mxu0 %v18996_v26  ;;  %v19057_v26 = vld [vmem:[#allocation426_spill] sm:$0xff] }
0x11cb   :  { %10228 = vmatpush1.bf16.msra.mxu1 %v18997_v10  ;;  %v19058_v10 = vld [vmem:[#allocation460_spill] sm:$0xff] }
0x11cc   :  { %10392 = vmatpush1.bf16.msra.mxu0 %v18998_v60  ;;  %10229 = vmatprep.subr.bf16.mxu1 %v18999_v42  ;;  %v19059_v60 = vld [vmem:[#allocation427_spill] sm:$0xff]  ;;  %v19060_v42 = vld [vmem:[#allocation461_spill] sm:$0xff] }
0x11cd   :  { %10393 = vmatprep.subr.bf16.mxu0 %v19000_v55  ;;  %v19061_v55 = vld [vmem:[#allocation428_spill] sm:$0xff] }
0x11cf   :  { %10230 = vmatpush1.bf16.msra.mxu1 %v19001_v12  ;;  %v19062_v12 = vld [vmem:[#allocation462_spill] sm:$0xff] }
0x11d0   :  { %10394 = vmatpush1.bf16.msra.mxu0 %v19002_v58  ;;  %10231 = vmatprep.subr.bf16.mxu1 %v19003_v2  ;;  %v19063_v58 = vld [vmem:[#allocation429_spill] sm:$0xff]  ;;  %v19064_v2 = vld [vmem:[#allocation463_spill] sm:$0xff] }
0x11d1   :  { %10395 = vmatprep.subr.bf16.mxu0 %v19004_v19  ;;  %v19065_v19 = vld [vmem:[#allocation430_spill] sm:$0xff] }
0x11d3   :  { %10232 = vmatpush1.bf16.msra.mxu1 %v19005_v5  ;;  %v19066_v5 = vld [vmem:[#allocation464_spill] sm:$0xff] }
0x11d4   :  { %10396 = vmatpush1.bf16.msra.mxu0 %v19006_v15  ;;  %10233 = vmatprep.subr.bf16.mxu1 %v19007_v51  ;;  %v19067_v15 = vld [vmem:[#allocation431_spill] sm:$0xff]  ;;  %v19068_v51 = vld [vmem:[#allocation465_spill] sm:$0xff] }
0x11d5   :  { %10397 = vmatprep.subr.bf16.mxu0 %v19008_v21  ;;  %v19069_v21 = vld [vmem:[#allocation432_spill] sm:$0xff] }
0x11d7   :  { %10234 = vmatpush1.bf16.msra.mxu1 %v19009_v23  ;;  %v19070_v23 = vld [vmem:[#allocation466_spill] sm:$0xff] }
0x11d8   :  { %10398 = vmatpush1.bf16.msra.mxu0 %v19010_v27  ;;  %10235 = vmatprep.subr.bf16.mxu1 %v19011_v28  ;;  %v19071_v27 = vld [vmem:[#allocation433_spill] sm:$0xff]  ;;  %v19072_v28 = vld [vmem:[#allocation467_spill] sm:$0xff] }
0x11d9   :  { %10399 = vmatprep.subr.bf16.mxu0 %v19012_v54  ;;  %v19073_v54 = vld [vmem:[#allocation434_spill] sm:$0xff] }
0x11db   :  { %10236 = vmatpush1.bf16.msra.mxu1 %v19013_v1  ;;  %v19074_v1 = vld [vmem:[#allocation468_spill] sm:$0xff] }
0x11dc   :  { %10400 = vmatpush1.bf16.msra.mxu0 %v19014_v6  ;;  %10237 = vmatprep.subr.bf16.mxu1 %v19015_v46  ;;  %v19075_v6 = vld [vmem:[#allocation435_spill] sm:$0xff]  ;;  %v19076_v46 = vld [vmem:[#allocation469_spill] sm:$0xff] }
0x11dd   :  { %10401 = vmatprep.subr.bf16.mxu0 %v19016_v14  ;;  %v19077_v14 = vld [vmem:[#allocation436_spill] sm:$0xff] }
0x11df   :  { %10238 = vmatpush1.bf16.msra.mxu1 %v19017_v30  ;;  %v19078_v30 = vld [vmem:[#allocation470_spill] sm:$0xff] }
0x11e0   :  { %10402 = vmatpush1.bf16.msra.mxu0 %v19018_v45  ;;  %10239 = vmatprep.subr.bf16.mxu1 %v19019_v16  ;;  %v19079_v45 = vld [vmem:[#allocation437_spill] sm:$0xff]  ;;  %v19080_v16 = vld [vmem:[#allocation471_spill] sm:$0xff] }
0x11e1   :  { %10403 = vmatprep.subr.bf16.mxu0 %v19020_v56  ;;  %v19081_v56 = vld [vmem:[#allocation438_spill] sm:$0xff] }
0x11e3   :  { %10240 = vmatpush1.bf16.msra.mxu1 %v19021_v50  ;;  %v19082_v50 = vld [vmem:[#allocation472_spill] sm:$0xff] }
0x11e4   :  { %10404 = vmatpush1.bf16.msra.mxu0 %v19022_v53  ;;  %10241 = vmatprep.subr.bf16.mxu1 %v19023_v35  ;;  %v19083_v53 = vld [vmem:[#allocation439_spill] sm:$0xff]  ;;  %v19084_v35 = vld [vmem:[#allocation473_spill] sm:$0xff] }
0x11e5   :  { %10405 = vmatprep.subr.bf16.mxu0 %v19024_v3  ;;  %v19085_v3 = vld [vmem:[#allocation440_spill] sm:$0xff] }
0x11e7   :  { %10242 = vmatpush1.bf16.msra.mxu1 %v19025_v62  ;;  %v19086_v62 = vld [vmem:[#allocation474_spill] sm:$0xff] }
0x11e8   :  { %10406 = vmatpush1.bf16.msra.mxu0 %v19026_v8  ;;  %10243 = vmatprep.subr.bf16.mxu1 %v19027_v9  ;;  %v19087_v8 = vld [vmem:[#allocation441_spill] sm:$0xff]  ;;  %v19088_v9 = vld [vmem:[#allocation475_spill] sm:$0xff] }
0x11e9   :  { %10407 = vmatprep.subr.bf16.mxu0 %v19028_v18  ;;  %v19089_v18 = vld [vmem:[#allocation442_spill] sm:$0xff] }
0x11eb   :  { %10244 = vmatpush1.bf16.msra.mxu1 %v19029_v63  ;;  %v19090_v63 = vld [vmem:[#allocation476_spill] sm:$0xff] }
0x11ec   :  { %10408 = vmatpush1.bf16.msra.mxu0 %v19030_v37  ;;  %10245 = vmatprep.subr.bf16.mxu1 %v19031_v57  ;;  %v19091_v37 = vld [vmem:[#allocation443_spill] sm:$0xff]  ;;  %v19092_v57 = vld [vmem:[#allocation477_spill] sm:$0xff] }
0x11ed   :  { %10409 = vmatprep.subr.bf16.mxu0 %v19032_v48  ;;  %v19093_v48 = vld [vmem:[#allocation444_spill] sm:$0xff] }
0x11ef   :  { %10246 = vmatpush1.bf16.msra.mxu1 %v19033_v38  ;;  %v19094_v38 = vld [vmem:[#allocation478_spill] sm:$0xff] }
0x11f0   :  { %10410 = vmatpush1.bf16.msra.mxu0 %v19034_v52  ;;  %10247 = vmatprep.subr.bf16.mxu1 %v19035_v61  ;;  %v19095_v52 = vld [vmem:[#allocation445_spill] sm:$0xff]  ;;  %v19096_v61 = vld [vmem:[#allocation479_spill] sm:$0xff] }
0x11f1   :  { %10411 = vmatprep.subr.bf16.mxu0 %v19036_v40  ;;  %v19097_v40 = vld [vmem:[#allocation446_spill] sm:$0xff] }
0x11f3   :  { %10248 = vmatpush1.bf16.msra.mxu1 %v19037_v32  ;;  %v19098_v32 = vld [vmem:[#allocation480_spill] sm:$0xff] }
0x11f4   :  { %10412 = vmatpush1.bf16.msra.mxu0 %v19038_v25  ;;  %10258 = vmatprep.subr.bf16.mxu1 %v19039_v13  ;;  %v19099_v25 = vld [vmem:[#allocation447_spill] sm:$0xff]  ;;  %v19100_v13 = vld [vmem:[#allocation481_spill] sm:$0xff] }
0x11f5   :  { %10422 = vmatprep.subr.bf16.mxu0 %v19040_v31  ;;  %v19101_v31 = vld [vmem:[#allocation450_spill] sm:$0xff] }
0x11f6   :  { %10250 = vmatmul.mubr.bf16.vlgmr.msra.gmra.mrb[52].mxu1 %v17230_v11 }
0x11f7   :  { %10414 = vmatmul.mubr.bf16.vlgmr.msra.gmra.mrb[44].mxu0 %v17230_v11  ;;  %10259 = vmatpush1.bf16.msra.mxu1 %v19041_v29  ;;  %v19049_v11 = vld [vmem:[#allocation422_spill] sm:$0xff]  ;;  %v19102_v29 = vld [vmem:[#allocation483_spill] sm:$0xff] }
0x11f8   :  { %10290 = vmatprep.mubr.bf16.mxu1 %v17298_v39  ;;  %10423 = vmatpush1.bf16.msra.mxu0 %v19042_v22  ;;  %v19103_v22 = vld [vmem:[#allocation353_spill] sm:$0xff] }
0x11f9   :  { %10454 = vmatprep.mubr.bf16.mxu0 %v17298_v39  ;;  %10260 = vmatprep.subr.bf16.mxu1 %v19043_v4  ;;  %v19053_v39 = vld [vmem:[#allocation424_spill] sm:$0xff]  ;;  %v19104_v4 = vld [vmem:[#allocation385_spill] sm:$0xff] }
0x11fa   :  { %10424 = vmatprep.subr.bf16.mxu0 %v19044_v33  ;;  %v19105_v33 = vld [vmem:[#allocation355_spill] sm:$0xff] }
0x11fb   :  { %10261 = vmatpush1.bf16.msra.mxu1 %v19045_v47  ;;  %v19106_v47 = vld [vmem:[#allocation387_spill] sm:$0xff] }
0x11fc   :  { %10425 = vmatpush1.bf16.msra.mxu0 %v19046_v44  ;;  %10262 = vmatprep.subr.bf16.mxu1 %v19047_v36  ;;  %v19107_v44 = vld [vmem:[#allocation357_spill] sm:$0xff] }
0x11fd   :  { %10426 = vmatprep.subr.bf16.mxu0 %v19048_v24  ;;  %v19108_v36 = vld [vmem:[#allocation389_spill] sm:$0xff]  ;;  %v19109_v24 = vld [vmem:[#allocation359_spill] sm:$0xff] }
0x11ff   :  { %10263 = vmatpush1.bf16.msra.mxu1 %v19049_v11  ;;  %v19110_v11 = vld [vmem:[#allocation391_spill] sm:$0xff] }
0x1200   :  { %10427 = vmatpush1.bf16.msra.mxu0 %v19050_v17  ;;  %10264 = vmatprep.subr.bf16.mxu1 %v19051_v0  ;;  %v19111_v17 = vld [vmem:[#allocation361_spill] sm:$0xff] }
0x1201   :  { %10428 = vmatprep.subr.bf16.mxu0 %v19052_v7  ;;  %v19112_v0 = vld [vmem:[#allocation393_spill] sm:$0xff]  ;;  %v19114_v7 = vld [vmem:[#allocation395_spill] sm:$0xff] }
0x1203   :  { %10265 = vmatpush1.bf16.msra.mxu1 %v19053_v39  ;;  %v19115_v39 = vld [vmem:[#allocation365_spill] sm:$0xff] }
0x1204   :  { %10429 = vmatpush1.bf16.msra.mxu0 %v19054_v34  ;;  %10266 = vmatprep.subr.bf16.mxu1 %v19055_v59  ;;  %v19116_v34 = vld [vmem:[#allocation397_spill] sm:$0xff]  ;;  %v19117_v59 = vld [vmem:[#allocation367_spill] sm:$0xff] }
0x1205   :  { %10430 = vmatprep.subr.bf16.mxu0 %v19056_v41  ;;  %v19118_v41 = vld [vmem:[#allocation399_spill] sm:$0xff] }
0x1207   :  { %10267 = vmatpush1.bf16.msra.mxu1 %v19057_v26  ;;  %v19120_v26 = vld [vmem:[#allocation401_spill] sm:$0xff] }
0x1208   :  { %10431 = vmatpush1.bf16.msra.mxu0 %v19058_v10  ;;  %10268 = vmatprep.subr.bf16.mxu1 %v19059_v60  ;;  %v19121_v10 = vld [vmem:[#allocation371_spill] sm:$0xff] }
0x1209   :  { %10432 = vmatprep.subr.bf16.mxu0 %v19060_v42  ;;  %v19122_v60 = vld [vmem:[#allocation403_spill] sm:$0xff]  ;;  %v19123_v42 = vld [vmem:[#allocation373_spill] sm:$0xff] }
0x120b   :  { %10269 = vmatpush1.bf16.msra.mxu1 %v19061_v55 }
0x120c   :  { %10433 = vmatpush1.bf16.msra.mxu0 %v19062_v12  ;;  %10270 = vmatprep.subr.bf16.mxu1 %v19063_v58  ;;  %v19124_v58 = vld [vmem:[#allocation405_spill] sm:$0xff] }
0x120d   :  { %10434 = vmatprep.subr.bf16.mxu0 %v19064_v2 }
0x120f   :  { %10271 = vmatpush1.bf16.msra.mxu1 %v19065_v19 }
0x1210   :  { %10435 = vmatpush1.bf16.msra.mxu0 %v19066_v5  ;;  %10272 = vmatprep.subr.bf16.mxu1 %v19067_v15 }
0x1211   :  { %10436 = vmatprep.subr.bf16.mxu0 %v19068_v51  ;;  %v19125_v51 = vld [vmem:[#allocation375_spill] sm:$0xff] }
0x1213   :  { %10273 = vmatpush1.bf16.msra.mxu1 %v19069_v21  ;;  %v19126_v21 = vld [vmem:[#allocation407_spill] sm:$0xff] }
0x1214   :  { %10437 = vmatpush1.bf16.msra.mxu0 %v19070_v23  ;;  %10274 = vmatprep.subr.bf16.mxu1 %v19071_v27 }
0x1215   :  { %10438 = vmatprep.subr.bf16.mxu0 %v19072_v28  ;;  %v19127_v28 = vld [vmem:[#allocation377_spill] sm:$0xff] }
0x1217   :  { %10275 = vmatpush1.bf16.msra.mxu1 %v19073_v54  ;;  %v19128_v54 = vld [vmem:[#allocation409_spill] sm:$0xff] }
0x1218   :  { %10439 = vmatpush1.bf16.msra.mxu0 %v19074_v1  ;;  %10276 = vmatprep.subr.bf16.mxu1 %v19075_v6  ;;  %v19129_v1 = vld [vmem:[#allocation18_spill] sm:$0xff] }
0x1219   :  { %10440 = vmatprep.subr.bf16.mxu0 %v19076_v46  ;;  %v19130_v46 = vld [vmem:[#allocation379_spill] sm:$0xff] }
0x121b   :  { %10277 = vmatpush1.bf16.msra.mxu1 %v19077_v14  ;;  %v19131_v14 = vld [vmem:[#allocation411_spill] sm:$0xff] }
0x121c   :  { %10441 = vmatpush1.bf16.msra.mxu0 %v19078_v30  ;;  %10278 = vmatprep.subr.bf16.mxu1 %v19079_v45  ;;  %v19132_v30 = vld [vmem:[#allocation381_spill] sm:$0xff] }
0x121d   :  { %10442 = vmatprep.subr.bf16.mxu0 %v19080_v16  ;;  %v19133_v45 = vld [vmem:[#allocation413_spill] sm:$0xff] }
0x121f   :  { %10279 = vmatpush1.bf16.msra.mxu1 %v19081_v56  ;;  %v19134_v56 = vld [vmem:[#allocation383_spill] sm:$0xff] }
0x1220   :  { %10443 = vmatpush1.bf16.msra.mxu0 %v19082_v50  ;;  %10280 = vmatprep.subr.bf16.mxu1 %v19083_v53  ;;  %v19135_v50 = vld [vmem:[#allocation416_spill] sm:$0xff]  ;;  %v14353_v53 = vld [vmem:[#allocation2 + $0x4] ss:$28 sps:$4 sm:$0xff]  }
0x1221   :  { %10444 = vmatprep.subr.bf16.mxu0 %v19084_v35  ;;  %v14354_v35 = vld [vmem:[#allocation2 + $0xc] ss:$28 sps:$4 sm:$0xff]  }
0x1223   :  { %10281 = vmatpush1.bf16.msra.mxu1 %v19085_v3 }
0x1224   :  { %10445 = vmatpush1.bf16.msra.mxu0 %v19086_v62  ;;  %10282 = vmatprep.subr.bf16.mxu1 %v19087_v8  ;;  %v14355_v62 = vld [vmem:[#allocation2] ss:$28 sps:$4 sm:$0xff]   ;;  %v14356_v8 = vld [vmem:[#allocation2 + $0x8] ss:$28 sps:$4 sm:$0xff]  }
0x1225   :  { %10446 = vmatprep.subr.bf16.mxu0 %v19088_v9  ;;  %v14357_v9 = vld [vmem:[#allocation2 + $0x3c] ss:$28 sps:$4 sm:$0xff]  }
0x1227   :  { %10283 = vmatpush1.bf16.msra.mxu1 %v19089_v18  ;;  %v14358_v18 = vld [vmem:[#allocation2 + $0x44] ss:$28 sps:$4 sm:$0xff]  }
0x1228   :  { %10447 = vmatpush1.bf16.msra.mxu0 %v19090_v63  ;;  %10284 = vmatprep.subr.bf16.mxu1 %v19091_v37  ;;  %v14359_v63 = vld [vmem:[#allocation2 + $0x38] ss:$28 sps:$4 sm:$0xff]   ;;  %v14360_v37 = vld [vmem:[#allocation2 + $0x40] ss:$28 sps:$4 sm:$0xff]  }
0x1229   :  { %10448 = vmatprep.subr.bf16.mxu0 %v19092_v57  ;;  %v14361_v57 = vld [vmem:[#allocation2 + $0x74] ss:$28 sps:$4 sm:$0xff]  }
0x122b   :  { %10285 = vmatpush1.bf16.msra.mxu1 %v19093_v48  ;;  %v14362_v48 = vld [vmem:[#allocation2 + $0x7c] ss:$28 sps:$4 sm:$0xff]  }
0x122c   :  { %10449 = vmatpush1.bf16.msra.mxu0 %v19094_v38  ;;  %10286 = vmatprep.subr.bf16.mxu1 %v19095_v52  ;;  %v14364_v38 = vld [vmem:[#allocation2 + $0x78] ss:$28 sps:$4 sm:$0xff]   ;;  %v14365_v52 = vld [vmem:[#allocation2 + $0xac] ss:$28 sps:$4 sm:$0xff]  }
0x122d   :  { %10450 = vmatprep.subr.bf16.mxu0 %v19096_v61  ;;  %v14366_v61 = vld [vmem:[#allocation2 + $0xb4] ss:$28 sps:$4 sm:$0xff]  }
0x122f   :  { %10287 = vmatpush1.bf16.msra.mxu1 %v19097_v40  ;;  %v14367_v40 = vld [vmem:[#allocation2 + $0xa8] ss:$28 sps:$4 sm:$0xff]  }
0x1230   :  { %10451 = vmatpush1.bf16.msra.mxu0 %v19098_v32  ;;  %10288 = vmatprep.subr.bf16.mxu1 %v19099_v25  ;;  %v14368_v32 = vld [vmem:[#allocation2 + $0xb0] ss:$28 sps:$4 sm:$0xff]   ;;  %v14369_v25 = vld [vmem:[#allocation2 + $0xe4] ss:$28 sps:$4 sm:$0xff]  }
0x1231   :  { %10452 = vmatprep.subr.bf16.mxu0 %v19100_v13  ;;  %v14370_v13 = vld [vmem:[#allocation2 + $0xec] ss:$28 sps:$4 sm:$0xff]  }
0x1233   :  { %10289 = vmatpush1.bf16.msra.mxu1 %v19101_v31  ;;  %v14371_v31 = vld [vmem:[#allocation2 + $0xe0] ss:$28 sps:$4 sm:$0xff]  }
0x1234   :  { %10453 = vmatpush1.bf16.msra.mxu0 %v19102_v29  ;;  %10299 = vmatprep.subr.bf16.mxu1 %v19103_v22  ;;  %v14372_v29 = vld [vmem:[#allocation2 + $0xe8] ss:$28 sps:$4 sm:$0xff]   ;;  %v14373_v22 = vld [vmem:[#allocation2 + $0x11c] ss:$28 sps:$4 sm:$0xff]  }
0x1235   :  { %10463 = vmatprep.subr.bf16.mxu0 %v19104_v4  ;;  %v14374_v4 = vld [vmem:[#allocation2 + $0x124] ss:$28 sps:$4 sm:$0xff]  }
0x1236   :  { %10291 = vmatmul.mubr.bf16.vlgmr.msra.gmra.mrb[52].mxu1 %v17302_v49 }
0x1237   :  { %10455 = vmatmul.mubr.bf16.vlgmr.msra.gmra.mrb[44].mxu0 %v17302_v49  ;;  %10300 = vmatpush1.bf16.msra.mxu1 %v19105_v33  ;;  %v19113_v49 = vld [vmem:[#allocation363_spill] sm:$0xff] }
0x1238   :  { %10464 = vmatpush1.bf16.msra.mxu0 %v19106_v47  ;;  %10301 = vmatprep.subr.bf16.mxu1 %v19107_v44  ;;  %v14375_v33 = vld [vmem:[#allocation2 + $0x118] ss:$28 sps:$4 sm:$0xff]   ;;  %v14376_v47 = vld [vmem:[#allocation2 + $0x120] ss:$28 sps:$4 sm:$0xff]  }
0x1239   :  { %10465 = vmatprep.subr.bf16.mxu0 %v19108_v36  ;;  %10331 = vmatprep.mubr.bf16.mxu1 %v14980_v43  ;;  %v14377_v44 = vld [vmem:[#allocation2 + $0x154] ss:$28 sps:$4 sm:$0xff]   ;;  %v14378_v36 = vld [vmem:[#allocation2 + $0x15c] ss:$28 sps:$4 sm:$0xff]  }
0x123a   :  { %10495 = vmatprep.mubr.bf16.mxu0 %v14980_v43  ;;  %v19119_v43 = vld [vmem:[#allocation369_spill] sm:$0xff] }
0x123b   :  { %10302 = vmatpush1.bf16.msra.mxu1 %v19109_v24  ;;  %v14379_v24 = vld [vmem:[#allocation2 + $0x150] ss:$28 sps:$4 sm:$0xff]  }
0x123c   :  { %10466 = vmatpush1.bf16.msra.mxu0 %v19110_v11  ;;  %10303 = vmatprep.subr.bf16.mxu1 %v19111_v17  ;;  %v14380_v11 = vld [vmem:[#allocation2 + $0x158] ss:$28 sps:$4 sm:$0xff]   ;;  %v14381_v17 = vld [vmem:[#allocation2 + $0x18c] ss:$28 sps:$4 sm:$0xff]  }
0x123d   :  { %10467 = vmatprep.subr.bf16.mxu0 %v19112_v0  ;;  %v14382_v0 = vld [vmem:[#allocation2 + $0x194] ss:$28 sps:$4 sm:$0xff]  }
0x123f   :  { %10304 = vmatpush1.bf16.msra.mxu1 %v19113_v49  ;;  %v14383_v49 = vld [vmem:[#allocation2 + $0x188] ss:$28 sps:$4 sm:$0xff]  }
0x1240   :  { %10468 = vmatpush1.bf16.msra.mxu0 %v19114_v7  ;;  %10305 = vmatprep.subr.bf16.mxu1 %v19115_v39  ;;  %v14384_v7 = vld [vmem:[#allocation2 + $0x190] ss:$28 sps:$4 sm:$0xff]   ;;  %v14385_v39 = vld [vmem:[#allocation2 + $0x1c4] ss:$28 sps:$4 sm:$0xff]  }
0x1241   :  { %10469 = vmatprep.subr.bf16.mxu0 %v19116_v34  ;;  %v14386_v34 = vld [vmem:[#allocation2 + $0x1cc] ss:$28 sps:$4 sm:$0xff]  }
0x1243   :  { %10306 = vmatpush1.bf16.msra.mxu1 %v19117_v59  ;;  %v14387_v59 = vld [vmem:[#allocation2 + $0x1c0] ss:$28 sps:$4 sm:$0xff]  }
0x1244   :  { %10470 = vmatpush1.bf16.msra.mxu0 %v19118_v41  ;;  %10307 = vmatprep.subr.bf16.mxu1 %v19119_v43  ;;  %v14388_v41 = vld [vmem:[#allocation2 + $0x1c8] ss:$28 sps:$4 sm:$0xff]   ;;  %v14389_v43 = vld [vmem:[#allocation2 + $0x1fc] ss:$28 sps:$4 sm:$0xff]  }
0x1245   :  { %10471 = vmatprep.subr.bf16.mxu0 %v19120_v26  ;;  %v14390_v26 = vld [vmem:[#allocation2 + $0x204] ss:$28 sps:$4 sm:$0xff]  }
0x1247   :  { %10308 = vmatpush1.bf16.msra.mxu1 %v19121_v10  ;;  %v14391_v10 = vld [vmem:[#allocation2 + $0x1f8] ss:$28 sps:$4 sm:$0xff]  }
0x1248   :  { %10472 = vmatpush1.bf16.msra.mxu0 %v19122_v60  ;;  %10309 = vmatprep.subr.bf16.mxu1 %v19123_v42  ;;  %v14392_v60 = vld [vmem:[#allocation2 + $0x200] ss:$28 sps:$4 sm:$0xff]   ;;  %v14393_v42 = vld [vmem:[#allocation2 + $0x234] ss:$28 sps:$4 sm:$0xff]  }
0x1249   :  { %v17574_v55 = vpop.f32.mrb[48].mxu1  ;;  %v17576_v12 = vpop.f32.mrb[40].mxu0  ;;  %10473 = vmatprep.subr.bf16.mxu0 %v19124_v58  ;;  %v14394_v58 = vld [vmem:[#allocation2 + $0x23c] ss:$28 sps:$4 sm:$0xff]  }
0x124a   :  { %v10007_v2 = vpop.f32.mrb[49].mxu1  ;;  %v17579_v19 = vpop.f32.mrb[41].mxu0 }
0x124b   :  { %v10009_v5 = vpop.f32.mrb[50].mxu1  ;;  %v10173_v15 = vpop.f32.mrb[42].mxu0  ;;  %10310 = vmatpush1.bf16.msra.mxu1 %v19125_v51  ;;  %v12834_v6 = vadd.f32 %v10007_v2, %v19129_v1  ;;  %v14395_v2 = vld [vmem:[#allocation2 + $0x230] ss:$28 sps:$4 sm:$0xff]   ;;  %v14404_v1 = vld [vmem:[#allocation2 + $0x2a8] ss:$28 sps:$4 sm:$0xff]  }
0x124c   :  { %10474 = vmatpush1.bf16.msra.mxu0 %v19126_v21  ;;  %v10010_v23 = vpop.f32.mrb[51].mxu1  ;;  %v10174_v27 = vpop.f32.mrb[43].mxu0  ;;  %10311 = vmatprep.subr.bf16.mxu1 %v19127_v28  ;;  %v14396_v5 = vld [vmem:[#allocation2 + $0x238] ss:$28 sps:$4 sm:$0xff]   ;;  %v14397_v15 = vld [vmem:[#allocation2 + $0x26c] ss:$28 sps:$4 sm:$0xff]  }
0x124d   :  { %10475 = vmatprep.subr.bf16.mxu0 %v19128_v54  ;;  %v10505_v16 = vmax.f32 %v12834_v6, 0.0  ;;  %v14398_v51 = vld [vmem:[#allocation2 + $0x274] ss:$28 sps:$4 sm:$0xff]   ;;  %v14399_v21 = vld [vmem:[#allocation2 + $0x268] ss:$28 sps:$4 sm:$0xff]  }
0x124e   :  { %v14400_v23 = vld [vmem:[#allocation2 + $0x270] ss:$28 sps:$4 sm:$0xff]   ;;  %v14401_v27 = vld [vmem:[#allocation2 + $0x2a4] ss:$28 sps:$4 sm:$0xff]   ;;  %v14405_v6 = vld [vmem:[#allocation2 + $0x2dc] ss:$28 sps:$4 sm:$0xff]  }
0x124f   :  { %10312 = vmatpush1.bf16.msra.mxu1 %v19130_v46  ;;  %v17592_v3 = vpack.c.bf16 %v10505_v16, %v10505_v16  ;;  %v14402_v28 = vld [vmem:[#allocation2 + $0x2ac] ss:$28 sps:$4 sm:$0xff]   ;;  %v14403_v54 = vld [vmem:[#allocation2 + $0x2a0] ss:$28 sps:$4 sm:$0xff]  }
0x1250   :  { %10476 = vmatpush1.bf16.msra.mxu0 %v19131_v14  ;;  %10313 = vmatprep.subr.bf16.mxu1 %v19132_v30  ;;  %v14406_v46 = vld [vmem:[#allocation2 + $0x2e4] ss:$28 sps:$4 sm:$0xff]   ;;  %v14407_v14 = vld [vmem:[#allocation2 + $0x2d8] ss:$28 sps:$4 sm:$0xff]  }
0x1251   :  { %10477 = vmatprep.subr.bf16.mxu0 %v19133_v45  ;;  %v19136_v30 = vld [vmem:[#allocation83_spill] sm:$0xff]  ;;  %v14408_v16 = vld [vmem:[#allocation2 + $0x2e0] ss:$28 sps:$4 sm:$0xff]  }
0x1252   :  { %v12833_v45 = vadd.f32 %v17574_v55, %v19136_v30  ;;  %v14415_v55 = vld [vmem:[#allocation2 + $0x348] ss:$28 sps:$4 sm:$0xff]   ;;  %v14462_v30 = vld [vmem:[#allocation2 + $0x5f4] ss:$28 sps:$4 sm:$0xff]  }
0x1253   :  { %10314 = vmatpush1.bf16.msra.mxu1 %v19134_v56  ;;  %v14409_v56 = vld [vmem:[#allocation2 + $0x314] ss:$28 sps:$4 sm:$0xff]  }
0x1254   :  { %10478 = vmatpush1.bf16.msra.mxu0 %v19135_v50  ;;  %10560 = vmatprep.subr.bf16.mxu1 %v14353_v53  ;;  %v14410_v50 = vld [vmem:[#allocation2 + $0x31c] ss:$28 sps:$4 sm:$0xff]  }
0x1255   :  { %10724 = vmatprep.subr.bf16.mxu0 %v14354_v35  ;;  %v19137_v53 = vld [vmem:[#allocation84_spill] sm:$0xff] }
0x1256   :  { %10332 = vmatmul.mubr.bf16.vlgmr.msra.gmra.mrb[52].mxu1 %v17343_v20  ;;  %v12836_v35 = vadd.f32 %v17579_v19, %v19137_v53  ;;  %v14467_v53 = vld [vmem:[#allocation2 + $0x620] ss:$28 sps:$4 sm:$0xff]  }
0x1257   :  { %10496 = vmatmul.mubr.bf16.vlgmr.msra.gmra.mrb[44].mxu0 %v17343_v20  ;;  %10561 = vmatpush1.bf16.msra.mxu1 %v14355_v62  ;;  %v14363_v20 = vld [vmem:[#allocation2 + $0x70] ss:$28 sps:$4 sm:$0xff]  }
0x1258   :  { %10592 = vmatprep.mubr.bf16.mxu1 %v17592_v3  ;;  %10725 = vmatpush1.bf16.msra.mxu0 %v14356_v8  ;;  %v14411_v62 = vld [vmem:[#allocation2 + $0x310] ss:$28 sps:$4 sm:$0xff]   ;;  %v10504_v8 = vmax.f32 %v12833_v45, 0.0  ;;  %v14463_v45 = vld [vmem:[#allocation2 + $0x5e8] ss:$28 sps:$4 sm:$0xff]  }
0x1259   :  { %10756 = vmatprep.mubr.bf16.mxu0 %v17592_v3  ;;  %10562 = vmatprep.subr.bf16.mxu1 %v14357_v9  ;;  %v14412_v9 = vld [vmem:[#allocation2 + $0x318] ss:$28 sps:$4 sm:$0xff]  }
0x125a   :  { %10726 = vmatprep.subr.bf16.mxu0 %v14358_v18  ;;  %v14413_v18 = vld [vmem:[#allocation2 + $0x34c] ss:$28 sps:$4 sm:$0xff]  }
0x125b   :  { %10563 = vmatpush1.bf16.msra.mxu1 %v14359_v63  ;;  %v14414_v63 = vld [vmem:[#allocation2 + $0x354] ss:$28 sps:$4 sm:$0xff]  }
0x125c   :  { %10727 = vmatpush1.bf16.msra.mxu0 %v14360_v37  ;;  %10564 = vmatprep.subr.bf16.mxu1 %v14361_v57  ;;  %v10507_v37 = vmax.f32 %v12836_v35, 0.0  ;;  %v17602_v57 = vpack.c.bf16 %v10504_v8, %v10504_v8  ;;  %v14468_v35 = vld [vmem:[#allocation2 + $0x628] ss:$28 sps:$4 sm:$0xff]  }
0x125d   :  { %10728 = vmatprep.subr.bf16.mxu0 %v14362_v48  ;;  %v14416_v48 = vld [vmem:[#allocation2 + $0x350] ss:$28 sps:$4 sm:$0xff]   ;;  %v14470_v8 = vld [vmem:[#allocation2 + $0x664] ss:$28 sps:$4 sm:$0xff]  }
0x125e   :  { %v17604_v19 = vpack.c.bf16 %v10507_v37, %v10507_v37  ;;  %v14472_v37 = vld [vmem:[#allocation2 + $0x660] ss:$28 sps:$4 sm:$0xff]  }
0x125f   :  { %10565 = vmatpush1.bf16.msra.mxu1 %v14363_v20  ;;  %v14417_v20 = vld [vmem:[#allocation2 + $0x384] ss:$28 sps:$4 sm:$0xff]  }
0x1260   :  { %10729 = vmatpush1.bf16.msra.mxu0 %v14364_v38  ;;  %10566 = vmatprep.subr.bf16.mxu1 %v14365_v52  ;;  %v14418_v38 = vld [vmem:[#allocation2 + $0x38c] ss:$28 sps:$4 sm:$0xff]   ;;  %v14419_v52 = vld [vmem:[#allocation2 + $0x380] ss:$28 sps:$4 sm:$0xff]  }
0x1261   :  { %10730 = vmatprep.subr.bf16.mxu0 %v14366_v61  ;;  %v14420_v61 = vld [vmem:[#allocation2 + $0x388] ss:$28 sps:$4 sm:$0xff]  }
0x1263   :  { %10567 = vmatpush1.bf16.msra.mxu1 %v14367_v40  ;;  %v14421_v40 = vld [vmem:[#allocation2 + $0x3bc] ss:$28 sps:$4 sm:$0xff]  }
0x1264   :  { %10731 = vmatpush1.bf16.msra.mxu0 %v14368_v32  ;;  %10568 = vmatprep.subr.bf16.mxu1 %v14369_v25  ;;  %v14422_v32 = vld [vmem:[#allocation2 + $0x3c4] ss:$28 sps:$4 sm:$0xff]   ;;  %v14423_v25 = vld [vmem:[#allocation2 + $0x3b8] ss:$28 sps:$4 sm:$0xff]  }
0x1265   :  { %10732 = vmatprep.subr.bf16.mxu0 %v14370_v13  ;;  %v14424_v13 = vld [vmem:[#allocation2 + $0x3c0] ss:$28 sps:$4 sm:$0xff]  }
0x1267   :  { %10569 = vmatpush1.bf16.msra.mxu1 %v14371_v31  ;;  %v14425_v31 = vld [vmem:[#allocation2 + $0x3f4] ss:$28 sps:$4 sm:$0xff]  }
0x1268   :  { %10733 = vmatpush1.bf16.msra.mxu0 %v14372_v29  ;;  %10570 = vmatprep.subr.bf16.mxu1 %v14373_v22  ;;  %v14426_v29 = vld [vmem:[#allocation2 + $0x3fc] ss:$28 sps:$4 sm:$0xff]   ;;  %v14427_v22 = vld [vmem:[#allocation2 + $0x3f0] ss:$28 sps:$4 sm:$0xff]  }
0x1269   :  { %10734 = vmatprep.subr.bf16.mxu0 %v14374_v4  ;;  %v14428_v4 = vld [vmem:[#allocation2 + $0x3f8] ss:$28 sps:$4 sm:$0xff]  }
0x126b   :  { %10571 = vmatpush1.bf16.msra.mxu1 %v14375_v33  ;;  %v14429_v33 = vld [vmem:[#allocation2 + $0x42c] ss:$28 sps:$4 sm:$0xff]  }
0x126c   :  { %10735 = vmatpush1.bf16.msra.mxu0 %v14376_v47  ;;  %10572 = vmatprep.subr.bf16.mxu1 %v14377_v44  ;;  %v14430_v47 = vld [vmem:[#allocation2 + $0x434] ss:$28 sps:$4 sm:$0xff]   ;;  %v14431_v44 = vld [vmem:[#allocation2 + $0x428] ss:$28 sps:$4 sm:$0xff]  }
0x126d   :  { %10736 = vmatprep.subr.bf16.mxu0 %v14378_v36  ;;  %v14432_v36 = vld [vmem:[#allocation2 + $0x430] ss:$28 sps:$4 sm:$0xff]  }
0x126f   :  { %10573 = vmatpush1.bf16.msra.mxu1 %v14379_v24  ;;  %v14433_v24 = vld [vmem:[#allocation2 + $0x464] ss:$28 sps:$4 sm:$0xff]  }
0x1270   :  { %10737 = vmatpush1.bf16.msra.mxu0 %v14380_v11  ;;  %10574 = vmatprep.subr.bf16.mxu1 %v14381_v17  ;;  %v14434_v11 = vld [vmem:[#allocation2 + $0x46c] ss:$28 sps:$4 sm:$0xff]   ;;  %v14435_v17 = vld [vmem:[#allocation2 + $0x460] ss:$28 sps:$4 sm:$0xff]  }
0x1271   :  { %10738 = vmatprep.subr.bf16.mxu0 %v14382_v0  ;;  %v14436_v0 = vld [vmem:[#allocation2 + $0x468] ss:$28 sps:$4 sm:$0xff]  }
0x1273   :  { %10575 = vmatpush1.bf16.msra.mxu1 %v14383_v49  ;;  %v14437_v49 = vld [vmem:[#allocation2 + $0x49c] ss:$28 sps:$4 sm:$0xff]  }
0x1274   :  { %10739 = vmatpush1.bf16.msra.mxu0 %v14384_v7  ;;  %10576 = vmatprep.subr.bf16.mxu1 %v14385_v39  ;;  %v14438_v7 = vld [vmem:[#allocation2 + $0x4a4] ss:$28 sps:$4 sm:$0xff]   ;;  %v14439_v39 = vld [vmem:[#allocation2 + $0x498] ss:$28 sps:$4 sm:$0xff]  }
0x1275   :  { %10740 = vmatprep.subr.bf16.mxu0 %v14386_v34  ;;  %v14440_v34 = vld [vmem:[#allocation2 + $0x4a0] ss:$28 sps:$4 sm:$0xff]  }
0x1277   :  { %10577 = vmatpush1.bf16.msra.mxu1 %v14387_v59  ;;  %v14441_v59 = vld [vmem:[#allocation2 + $0x4d4] ss:$28 sps:$4 sm:$0xff]  }
0x1278   :  { %10741 = vmatpush1.bf16.msra.mxu0 %v14388_v41  ;;  %10578 = vmatprep.subr.bf16.mxu1 %v14389_v43  ;;  %v14442_v41 = vld [vmem:[#allocation2 + $0x4dc] ss:$28 sps:$4 sm:$0xff]   ;;  %v14443_v43 = vld [vmem:[#allocation2 + $0x4d0] ss:$28 sps:$4 sm:$0xff]  }
0x1279   :  { %10742 = vmatprep.subr.bf16.mxu0 %v14390_v26  ;;  %v14444_v26 = vld [vmem:[#allocation2 + $0x4d8] ss:$28 sps:$4 sm:$0xff]  }
0x127b   :  { %10579 = vmatpush1.bf16.msra.mxu1 %v14391_v10  ;;  %v14445_v10 = vld [vmem:[#allocation2 + $0x50c] ss:$28 sps:$4 sm:$0xff]  }
0x127c   :  { %10743 = vmatpush1.bf16.msra.mxu0 %v14392_v60  ;;  %10580 = vmatprep.subr.bf16.mxu1 %v14393_v42  ;;  %v14446_v60 = vld [vmem:[#allocation2 + $0x514] ss:$28 sps:$4 sm:$0xff]   ;;  %v14447_v42 = vld [vmem:[#allocation2 + $0x508] ss:$28 sps:$4 sm:$0xff]  }
0x127d   :  { %10744 = vmatprep.subr.bf16.mxu0 %v14394_v58  ;;  %v14448_v58 = vld [vmem:[#allocation2 + $0x510] ss:$28 sps:$4 sm:$0xff]  }
0x127f   :  { %10581 = vmatpush1.bf16.msra.mxu1 %v14395_v2  ;;  %v14449_v2 = vld [vmem:[#allocation2 + $0x544] ss:$28 sps:$4 sm:$0xff]  }
0x1280   :  { %10745 = vmatpush1.bf16.msra.mxu0 %v14396_v5  ;;  %10582 = vmatprep.subr.bf16.mxu1 %v14397_v15  ;;  %v14450_v5 = vld [vmem:[#allocation2 + $0x54c] ss:$28 sps:$4 sm:$0xff]   ;;  %v14451_v15 = vld [vmem:[#allocation2 + $0x540] ss:$28 sps:$4 sm:$0xff]  }
0x1281   :  { %10746 = vmatprep.subr.bf16.mxu0 %v14398_v51  ;;  %v14452_v51 = vld [vmem:[#allocation2 + $0x548] ss:$28 sps:$4 sm:$0xff]  }
0x1283   :  { %10583 = vmatpush1.bf16.msra.mxu1 %v14399_v21  ;;  %v14453_v21 = vld [vmem:[#allocation2 + $0x57c] ss:$28 sps:$4 sm:$0xff]  }
0x1284   :  { %10747 = vmatpush1.bf16.msra.mxu0 %v14400_v23  ;;  %10584 = vmatprep.subr.bf16.mxu1 %v14401_v27  ;;  %v14454_v23 = vld [vmem:[#allocation2 + $0x584] ss:$28 sps:$4 sm:$0xff]   ;;  %v14455_v27 = vld [vmem:[#allocation2 + $0x578] ss:$28 sps:$4 sm:$0xff]  }
0x1285   :  { %10748 = vmatprep.subr.bf16.mxu0 %v14402_v28  ;;  %v14456_v28 = vld [vmem:[#allocation2 + $0x580] ss:$28 sps:$4 sm:$0xff]  }
0x1287   :  { %10585 = vmatpush1.bf16.msra.mxu1 %v14403_v54  ;;  %v14457_v54 = vld [vmem:[#allocation2 + $0x5b4] ss:$28 sps:$4 sm:$0xff]  }
0x1288   :  { %10749 = vmatpush1.bf16.msra.mxu0 %v14404_v1  ;;  %10586 = vmatprep.subr.bf16.mxu1 %v14405_v6  ;;  %v14458_v1 = vld [vmem:[#allocation2 + $0x5bc] ss:$28 sps:$4 sm:$0xff]   ;;  %v14459_v6 = vld [vmem:[#allocation2 + $0x5b0] ss:$28 sps:$4 sm:$0xff]  }
0x1289   :  { %10750 = vmatprep.subr.bf16.mxu0 %v14406_v46  ;;  %v14460_v46 = vld [vmem:[#allocation2 + $0x5b8] ss:$28 sps:$4 sm:$0xff]  }
0x128b   :  { %10587 = vmatpush1.bf16.msra.mxu1 %v14407_v14  ;;  %v14461_v14 = vld [vmem:[#allocation2 + $0x5ec] ss:$28 sps:$4 sm:$0xff]  }
0x128c   :  { %10751 = vmatpush1.bf16.msra.mxu0 %v14408_v16  ;;  %10588 = vmatprep.subr.bf16.mxu1 %v14409_v56  ;;  %v14464_v16 = vld [vmem:[#allocation2 + $0x5f0] ss:$28 sps:$4 sm:$0xff]   ;;  %v14465_v56 = vld [vmem:[#allocation2 + $0x624] ss:$28 sps:$4 sm:$0xff]  }
0x128d   :  { %10752 = vmatprep.subr.bf16.mxu0 %v14410_v50  ;;  %v14466_v50 = vld [vmem:[#allocation2 + $0x62c] ss:$28 sps:$4 sm:$0xff]  }
0x128f   :  { %10589 = vmatpush1.bf16.msra.mxu1 %v14411_v62  ;;  %v14469_v62 = vld [vmem:[#allocation2 + $0x65c] ss:$28 sps:$4 sm:$0xff]  }
0x1290   :  { %10753 = vmatpush1.bf16.msra.mxu0 %v14412_v9  ;;  %10590 = vmatprep.subr.bf16.mxu1 %v14413_v18  ;;  %v14471_v9 = vld [vmem:[#allocation2 + $0x658] ss:$28 sps:$4 sm:$0xff]  }
0x1291   :  { %10754 = vmatprep.subr.bf16.mxu0 %v14414_v63  ;;  %v19138_v18 = vld [vmem:[#allocation151_spill] sm:$0xff] }
0x1292   :  { %v12835_v63 = vadd.f32 %v17576_v12, %v19138_v18  ;;  %v14480_v12 = vld [vmem:[#allocation2 + $0x6d0] ss:$28 sps:$4 sm:$0xff]   ;;  %v14529_v18 = vld [vmem:[#allocation2 + $0x9a4] ss:$28 sps:$4 sm:$0xff]  }
0x1293   :  { %10591 = vmatpush1.bf16.msra.mxu1 %v14415_v55  ;;  %v14473_v55 = vld [vmem:[#allocation2 + $0x694] ss:$28 sps:$4 sm:$0xff]  }
0x1294   :  { %10755 = vmatpush1.bf16.msra.mxu0 %v14416_v48  ;;  %10601 = vmatprep.subr.bf16.mxu1 %v14417_v20  ;;  %v14474_v48 = vld [vmem:[#allocation2 + $0x69c] ss:$28 sps:$4 sm:$0xff]   ;;  %v14475_v20 = vld [vmem:[#allocation2 + $0x690] ss:$28 sps:$4 sm:$0xff]  }
0x1295   :  { %10765 = vmatprep.subr.bf16.mxu0 %v14418_v38  ;;  %v10506_v38 = vmax.f32 %v12835_v63, 0.0  ;;  %v14530_v63 = vld [vmem:[#allocation2 + $0x9ac] ss:$28 sps:$4 sm:$0xff]  }
0x1296   :  { %10593 = vmatmul.mubr.bf16.vlgmr.msra.gmra.mrb[56].mxu1 %v17602_v57 }
0x1297   :  { %10757 = vmatmul.mubr.bf16.vlgmr.msra.gmra.mrb[48].mxu0 %v17602_v57  ;;  %10602 = vmatpush1.bf16.msra.mxu1 %v14419_v52  ;;  %v14476_v52 = vld [vmem:[#allocation2 + $0x698] ss:$28 sps:$4 sm:$0xff]  }
0x1298   :  { %10633 = vmatprep.mubr.bf16.mxu1 %v17604_v19  ;;  %10766 = vmatpush1.bf16.msra.mxu0 %v14420_v61  ;;  %v14477_v61 = vld [vmem:[#allocation2 + $0x6cc] ss:$28 sps:$4 sm:$0xff]  }
0x1299   :  { %10797 = vmatprep.mubr.bf16.mxu0 %v17604_v19  ;;  %10603 = vmatprep.subr.bf16.mxu1 %v14421_v40  ;;  %v14478_v40 = vld [vmem:[#allocation2 + $0x6d4] ss:$28 sps:$4 sm:$0xff]  }
0x129a   :  { %10767 = vmatprep.subr.bf16.mxu0 %v14422_v32  ;;  %v14479_v32 = vld [vmem:[#allocation2 + $0x6c8] ss:$28 sps:$4 sm:$0xff]  }
0x129b   :  { %10604 = vmatpush1.bf16.msra.mxu1 %v14423_v25  ;;  %v17612_v25 = vpack.c.bf16 %v10506_v38, %v10506_v38  ;;  %v14535_v38 = vld [vmem:[#allocation2 + $0x9d8] ss:$28 sps:$4 sm:$0xff]  }
0x129c   :  { %10768 = vmatpush1.bf16.msra.mxu0 %v14424_v13  ;;  %10605 = vmatprep.subr.bf16.mxu1 %v14425_v31  ;;  %v14481_v13 = vld [vmem:[#allocation2 + $0x704] ss:$28 sps:$4 sm:$0xff]   ;;  %v14482_v31 = vld [vmem:[#allocation2 + $0x70c] ss:$28 sps:$4 sm:$0xff]  }
0x129d   :  { %10769 = vmatprep.subr.bf16.mxu0 %v14426_v29  ;;  %v14483_v29 = vld [vmem:[#allocation2 + $0x700] ss:$28 sps:$4 sm:$0xff]  }
0x129f   :  { %10606 = vmatpush1.bf16.msra.mxu1 %v14427_v22  ;;  %v14484_v22 = vld [vmem:[#allocation2 + $0x708] ss:$28 sps:$4 sm:$0xff]  }
0x12a0   :  { %10770 = vmatpush1.bf16.msra.mxu0 %v14428_v4  ;;  %10607 = vmatprep.subr.bf16.mxu1 %v14429_v33  ;;  %v14485_v4 = vld [vmem:[#allocation2 + $0x73c] ss:$28 sps:$4 sm:$0xff]   ;;  %v14486_v33 = vld [vmem:[#allocation2 + $0x744] ss:$28 sps:$4 sm:$0xff]  }
0x12a1   :  { %10771 = vmatprep.subr.bf16.mxu0 %v14430_v47  ;;  %v14487_v47 = vld [vmem:[#allocation2 + $0x738] ss:$28 sps:$4 sm:$0xff]  }
0x12a3   :  { %10608 = vmatpush1.bf16.msra.mxu1 %v14431_v44  ;;  %v14488_v44 = vld [vmem:[#allocation2 + $0x740] ss:$28 sps:$4 sm:$0xff]  }
0x12a4   :  { %10772 = vmatpush1.bf16.msra.mxu0 %v14432_v36  ;;  %10609 = vmatprep.subr.bf16.mxu1 %v14433_v24  ;;  %v14489_v36 = vld [vmem:[#allocation2 + $0x774] ss:$28 sps:$4 sm:$0xff]   ;;  %v14490_v24 = vld [vmem:[#allocation2 + $0x77c] ss:$28 sps:$4 sm:$0xff]  }
0x12a5   :  { %10773 = vmatprep.subr.bf16.mxu0 %v14434_v11  ;;  %v14491_v11 = vld [vmem:[#allocation2 + $0x770] ss:$28 sps:$4 sm:$0xff]  }
0x12a7   :  { %10610 = vmatpush1.bf16.msra.mxu1 %v14435_v17  ;;  %v14492_v17 = vld [vmem:[#allocation2 + $0x778] ss:$28 sps:$4 sm:$0xff]  }
0x12a8   :  { %10774 = vmatpush1.bf16.msra.mxu0 %v14436_v0  ;;  %10611 = vmatprep.subr.bf16.mxu1 %v14437_v49  ;;  %v14493_v0 = vld [vmem:[#allocation2 + $0x7ac] ss:$28 sps:$4 sm:$0xff]   ;;  %v14494_v49 = vld [vmem:[#allocation2 + $0x7b4] ss:$28 sps:$4 sm:$0xff]  }
0x12a9   :  { %10775 = vmatprep.subr.bf16.mxu0 %v14438_v7  ;;  %v14495_v7 = vld [vmem:[#allocation2 + $0x7a8] ss:$28 sps:$4 sm:$0xff]  }
0x12ab   :  { %10612 = vmatpush1.bf16.msra.mxu1 %v14439_v39  ;;  %v14496_v39 = vld [vmem:[#allocation2 + $0x7b0] ss:$28 sps:$4 sm:$0xff]  }
0x12ac   :  { %10776 = vmatpush1.bf16.msra.mxu0 %v14440_v34  ;;  %10613 = vmatprep.subr.bf16.mxu1 %v14441_v59  ;;  %v14497_v34 = vld [vmem:[#allocation2 + $0x7e4] ss:$28 sps:$4 sm:$0xff]   ;;  %v14498_v59 = vld [vmem:[#allocation2 + $0x7ec] ss:$28 sps:$4 sm:$0xff]  }
0x12ad   :  { %10777 = vmatprep.subr.bf16.mxu0 %v14442_v41  ;;  %v14499_v41 = vld [vmem:[#allocation2 + $0x7e0] ss:$28 sps:$4 sm:$0xff]  }
0x12af   :  { %10614 = vmatpush1.bf16.msra.mxu1 %v14443_v43  ;;  %v14500_v43 = vld [vmem:[#allocation2 + $0x7e8] ss:$28 sps:$4 sm:$0xff]  }
0x12b0   :  { %10778 = vmatpush1.bf16.msra.mxu0 %v14444_v26  ;;  %10615 = vmatprep.subr.bf16.mxu1 %v14445_v10  ;;  %v14501_v26 = vld [vmem:[#allocation2 + $0x81c] ss:$28 sps:$4 sm:$0xff]   ;;  %v14502_v10 = vld [vmem:[#allocation2 + $0x824] ss:$28 sps:$4 sm:$0xff]  }
0x12b1   :  { %10779 = vmatprep.subr.bf16.mxu0 %v14446_v60  ;;  %v14503_v60 = vld [vmem:[#allocation2 + $0x818] ss:$28 sps:$4 sm:$0xff]  }
0x12b3   :  { %10616 = vmatpush1.bf16.msra.mxu1 %v14447_v42  ;;  %v14504_v42 = vld [vmem:[#allocation2 + $0x820] ss:$28 sps:$4 sm:$0xff]  }
0x12b4   :  { %10780 = vmatpush1.bf16.msra.mxu0 %v14448_v58  ;;  %10617 = vmatprep.subr.bf16.mxu1 %v14449_v2  ;;  %v14505_v58 = vld [vmem:[#allocation2 + $0x854] ss:$28 sps:$4 sm:$0xff]   ;;  %v14506_v2 = vld [vmem:[#allocation2 + $0x85c] ss:$28 sps:$4 sm:$0xff]  }
0x12b5   :  { %10781 = vmatprep.subr.bf16.mxu0 %v14450_v5  ;;  %v14507_v5 = vld [vmem:[#allocation2 + $0x850] ss:$28 sps:$4 sm:$0xff]  }
0x12b7   :  { %10618 = vmatpush1.bf16.msra.mxu1 %v14451_v15  ;;  %v14508_v15 = vld [vmem:[#allocation2 + $0x858] ss:$28 sps:$4 sm:$0xff]  }
0x12b8   :  { %10782 = vmatpush1.bf16.msra.mxu0 %v14452_v51  ;;  %10619 = vmatprep.subr.bf16.mxu1 %v14453_v21  ;;  %v14509_v51 = vld [vmem:[#allocation2 + $0x88c] ss:$28 sps:$4 sm:$0xff]   ;;  %v14510_v21 = vld [vmem:[#allocation2 + $0x894] ss:$28 sps:$4 sm:$0xff]  }
0x12b9   :  { %10783 = vmatprep.subr.bf16.mxu0 %v14454_v23  ;;  %v14511_v23 = vld [vmem:[#allocation2 + $0x888] ss:$28 sps:$4 sm:$0xff]  }
0x12bb   :  { %10620 = vmatpush1.bf16.msra.mxu1 %v14455_v27  ;;  %v14512_v27 = vld [vmem:[#allocation2 + $0x890] ss:$28 sps:$4 sm:$0xff]  }
0x12bc   :  { %10784 = vmatpush1.bf16.msra.mxu0 %v14456_v28  ;;  %10621 = vmatprep.subr.bf16.mxu1 %v14457_v54  ;;  %v14513_v28 = vld [vmem:[#allocation2 + $0x8c4] ss:$28 sps:$4 sm:$0xff]   ;;  %v14514_v54 = vld [vmem:[#allocation2 + $0x8cc] ss:$28 sps:$4 sm:$0xff]  }
0x12bd   :  { %10785 = vmatprep.subr.bf16.mxu0 %v14458_v1  ;;  %v14515_v1 = vld [vmem:[#allocation2 + $0x8c0] ss:$28 sps:$4 sm:$0xff]  }
0x12bf   :  { %10622 = vmatpush1.bf16.msra.mxu1 %v14459_v6  ;;  %v14516_v6 = vld [vmem:[#allocation2 + $0x8c8] ss:$28 sps:$4 sm:$0xff]  }
0x12c0   :  { %10786 = vmatpush1.bf16.msra.mxu0 %v14460_v46  ;;  %10623 = vmatprep.subr.bf16.mxu1 %v14461_v14  ;;  %v14517_v46 = vld [vmem:[#allocation2 + $0x8fc] ss:$28 sps:$4 sm:$0xff]   ;;  %v14518_v14 = vld [vmem:[#allocation2 + $0x904] ss:$28 sps:$4 sm:$0xff]  }
0x12c1   :  { %10787 = vmatprep.subr.bf16.mxu0 %v14462_v30  ;;  %v14519_v30 = vld [vmem:[#allocation2 + $0x8f8] ss:$28 sps:$4 sm:$0xff]  }
0x12c3   :  { %10624 = vmatpush1.bf16.msra.mxu1 %v14463_v45  ;;  %v14520_v45 = vld [vmem:[#allocation2 + $0x900] ss:$28 sps:$4 sm:$0xff]  }
0x12c4   :  { %10788 = vmatpush1.bf16.msra.mxu0 %v14464_v16  ;;  %10625 = vmatprep.subr.bf16.mxu1 %v14465_v56  ;;  %v14521_v16 = vld [vmem:[#allocation2 + $0x934] ss:$28 sps:$4 sm:$0xff]   ;;  %v14522_v56 = vld [vmem:[#allocation2 + $0x93c] ss:$28 sps:$4 sm:$0xff]  }
0x12c5   :  { %10789 = vmatprep.subr.bf16.mxu0 %v14466_v50  ;;  %v14523_v50 = vld [vmem:[#allocation2 + $0x930] ss:$28 sps:$4 sm:$0xff]  }
0x12c7   :  { %10626 = vmatpush1.bf16.msra.mxu1 %v14467_v53  ;;  %v14524_v53 = vld [vmem:[#allocation2 + $0x938] ss:$28 sps:$4 sm:$0xff]  }
0x12c8   :  { %10790 = vmatpush1.bf16.msra.mxu0 %v14468_v35  ;;  %10627 = vmatprep.subr.bf16.mxu1 %v14469_v62  ;;  %v14525_v35 = vld [vmem:[#allocation2 + $0x96c] ss:$28 sps:$4 sm:$0xff]   ;;  %v14526_v62 = vld [vmem:[#allocation2 + $0x974] ss:$28 sps:$4 sm:$0xff]  }
0x12c9   :  { %10791 = vmatprep.subr.bf16.mxu0 %v14470_v8  ;;  %v14527_v8 = vld [vmem:[#allocation2 + $0x968] ss:$28 sps:$4 sm:$0xff]  }
0x12cb   :  { %10628 = vmatpush1.bf16.msra.mxu1 %v14471_v9  ;;  %v14528_v9 = vld [vmem:[#allocation2 + $0x970] ss:$28 sps:$4 sm:$0xff]  }
0x12cc   :  { %10792 = vmatpush1.bf16.msra.mxu0 %v14472_v37  ;;  %10629 = vmatprep.subr.bf16.mxu1 %v14473_v55  ;;  %v14531_v37 = vld [vmem:[#allocation2 + $0x9a0] ss:$28 sps:$4 sm:$0xff]   ;;  %v14532_v55 = vld [vmem:[#allocation2 + $0x9a8] ss:$28 sps:$4 sm:$0xff]  }
0x12cd   :  { %10793 = vmatprep.subr.bf16.mxu0 %v14474_v48  ;;  %v14533_v48 = vld [vmem:[#allocation2 + $0x9dc] ss:$28 sps:$4 sm:$0xff]  }
0x12cf   :  { %10630 = vmatpush1.bf16.msra.mxu1 %v14475_v20  ;;  %v14534_v20 = vld [vmem:[#allocation2 + $0x9e4] ss:$28 sps:$4 sm:$0xff]  }
0x12d0   :  { %10794 = vmatpush1.bf16.msra.mxu0 %v14476_v52  ;;  %10631 = vmatprep.subr.bf16.mxu1 %v14477_v61  ;;  %v14536_v52 = vld [vmem:[#allocation2 + $0x9e0] ss:$28 sps:$4 sm:$0xff]   ;;  %v14537_v61 = vld [vmem:[#allocation2 + $0xa14] ss:$28 sps:$4 sm:$0xff]  }
0x12d1   :  { %10795 = vmatprep.subr.bf16.mxu0 %v14478_v40  ;;  %v14538_v40 = vld [vmem:[#allocation2 + $0xa1c] ss:$28 sps:$4 sm:$0xff]  }
0x12d3   :  { %10632 = vmatpush1.bf16.msra.mxu1 %v14479_v32  ;;  %v14539_v32 = vld [vmem:[#allocation2 + $0xa10] ss:$28 sps:$4 sm:$0xff]  }
0x12d4   :  { %10796 = vmatpush1.bf16.msra.mxu0 %v14480_v12  ;;  %10642 = vmatprep.subr.bf16.mxu1 %v14481_v13  ;;  %v14540_v12 = vld [vmem:[#allocation2 + $0xa18] ss:$28 sps:$4 sm:$0xff]   ;;  %v14541_v13 = vld [vmem:[#allocation2 + $0xa4c] ss:$28 sps:$4 sm:$0xff]  }
0x12d5   :  { %10806 = vmatprep.subr.bf16.mxu0 %v14482_v31  ;;  %v14542_v31 = vld [vmem:[#allocation2 + $0xa54] ss:$28 sps:$4 sm:$0xff]  }
0x12d6   :  { %10634 = vmatmul.mubr.bf16.vlgmr.msra.gmra.mrb[56].mxu1 %v17612_v25 }
0x12d7   :  { %10798 = vmatmul.mubr.bf16.vlgmr.msra.gmra.mrb[48].mxu0 %v17612_v25  ;;  %10643 = vmatpush1.bf16.msra.mxu1 %v14483_v29  ;;  %v14543_v29 = vld [vmem:[#allocation2 + $0xa48] ss:$28 sps:$4 sm:$0xff]  }
0x12d8   :  { %10807 = vmatpush1.bf16.msra.mxu0 %v14484_v22  ;;  %10644 = vmatprep.subr.bf16.mxu1 %v14485_v4  ;;  %v14544_v22 = vld [vmem:[#allocation2 + $0xa50] ss:$28 sps:$4 sm:$0xff]   ;;  %v14545_v4 = vld [vmem:[#allocation2 + $0xa84] ss:$28 sps:$4 sm:$0xff]  }
0x12d9   :  { %10808 = vmatprep.subr.bf16.mxu0 %v14486_v33  ;;  %v14546_v33 = vld [vmem:[#allocation2 + $0xa8c] ss:$28 sps:$4 sm:$0xff]  }
0x12db   :  { %10645 = vmatpush1.bf16.msra.mxu1 %v14487_v47 }
0x12dc   :  { %10809 = vmatpush1.bf16.msra.mxu0 %v14488_v44  ;;  %10646 = vmatprep.subr.bf16.mxu1 %v14489_v36  ;;  %v19139_v44 = vld [vmem:[#allocation218_spill] sm:$0xff] }
0x12dd   :  { %10810 = vmatprep.subr.bf16.mxu0 %v14490_v24 }
0x12df   :  { %10647 = vmatpush1.bf16.msra.mxu1 %v14491_v11 }
0x12e0   :  { %10811 = vmatpush1.bf16.msra.mxu0 %v14492_v17  ;;  %10648 = vmatprep.subr.bf16.mxu1 %v14493_v0  ;;  %v19140_v17 = vld [vmem:[#allocation152_spill] sm:$0xff] }
0x12e1   :  { %10812 = vmatprep.subr.bf16.mxu0 %v14494_v49 }
0x12e3   :  { %10649 = vmatpush1.bf16.msra.mxu1 %v14495_v7 }
0x12e4   :  { %10813 = vmatpush1.bf16.msra.mxu0 %v14496_v39  ;;  %10650 = vmatprep.subr.bf16.mxu1 %v14497_v34  ;;  %v19141_v34 = vld [vmem:[#allocation219_spill] sm:$0xff] }
0x12e5   :  { %10814 = vmatprep.subr.bf16.mxu0 %v14498_v59 }
0x12e7   :  { %10651 = vmatpush1.bf16.msra.mxu1 %v14499_v41 }
0x12e8   :  { %10815 = vmatpush1.bf16.msra.mxu0 %v14500_v43  ;;  %10652 = vmatprep.subr.bf16.mxu1 %v14501_v26 }
0x12e9   :  { %10816 = vmatprep.subr.bf16.mxu0 %v14502_v10 }
0x12eb   :  { %10653 = vmatpush1.bf16.msra.mxu1 %v14503_v60 }
0x12ec   :  { %10817 = vmatpush1.bf16.msra.mxu0 %v14504_v42  ;;  %10654 = vmatprep.subr.bf16.mxu1 %v14505_v58 }
0x12ed   :  { %10818 = vmatprep.subr.bf16.mxu0 %v14506_v2 }
0x12ef   :  { %10655 = vmatpush1.bf16.msra.mxu1 %v14507_v5  ;;  %v14547_v5 = vld [vmem:[#allocation2 + $0xa80] ss:$28 sps:$4 sm:$0xff]  }
0x12f0   :  { %10819 = vmatpush1.bf16.msra.mxu0 %v14508_v15  ;;  %10656 = vmatprep.subr.bf16.mxu1 %v14509_v51  ;;  %v14548_v15 = vld [vmem:[#allocation2 + $0xa88] ss:$28 sps:$4 sm:$0xff]   ;;  %v14549_v51 = vld [vmem:[#allocation2 + $0xabc] ss:$28 sps:$4 sm:$0xff]  }
0x12f1   :  { %10820 = vmatprep.subr.bf16.mxu0 %v14510_v21  ;;  %v14550_v21 = vld [vmem:[#allocation2 + $0xac4] ss:$28 sps:$4 sm:$0xff]  }
0x12f3   :  { %10657 = vmatpush1.bf16.msra.mxu1 %v14511_v23  ;;  %v14551_v23 = vld [vmem:[#allocation2 + $0xab8] ss:$28 sps:$4 sm:$0xff]  }
0x12f4   :  { %10821 = vmatpush1.bf16.msra.mxu0 %v14512_v27  ;;  %10658 = vmatprep.subr.bf16.mxu1 %v14513_v28  ;;  %v14552_v27 = vld [vmem:[#allocation2 + $0xac0] ss:$28 sps:$4 sm:$0xff]   ;;  %v14553_v28 = vld [vmem:[#allocation2 + $0xaf4] ss:$28 sps:$4 sm:$0xff]  }
0x12f5   :  { %10822 = vmatprep.subr.bf16.mxu0 %v14514_v54  ;;  %v14554_v54 = vld [vmem:[#allocation2 + $0xafc] ss:$28 sps:$4 sm:$0xff]  }
0x12f7   :  { %10659 = vmatpush1.bf16.msra.mxu1 %v14515_v1  ;;  %v14555_v1 = vld [vmem:[#allocation2 + $0xaf0] ss:$28 sps:$4 sm:$0xff]  }
0x12f8   :  { %10823 = vmatpush1.bf16.msra.mxu0 %v14516_v6  ;;  %10660 = vmatprep.subr.bf16.mxu1 %v14517_v46  ;;  %v14556_v6 = vld [vmem:[#allocation2 + $0xaf8] ss:$28 sps:$4 sm:$0xff]   ;;  %v14557_v46 = vld [vmem:[#allocation2 + $0xb2c] ss:$28 sps:$4 sm:$0xff]  }
0x12f9   :  { %10824 = vmatprep.subr.bf16.mxu0 %v14518_v14  ;;  %v14558_v14 = vld [vmem:[#allocation2 + $0xb34] ss:$28 sps:$4 sm:$0xff]  }
0x12fb   :  { %10661 = vmatpush1.bf16.msra.mxu1 %v14519_v30  ;;  %v14559_v30 = vld [vmem:[#allocation2 + $0xb28] ss:$28 sps:$4 sm:$0xff]  }
0x12fc   :  { %10825 = vmatpush1.bf16.msra.mxu0 %v14520_v45  ;;  %10662 = vmatprep.subr.bf16.mxu1 %v14521_v16  ;;  %v14560_v45 = vld [vmem:[#allocation2 + $0xb30] ss:$28 sps:$4 sm:$0xff]   ;;  %v14561_v16 = vld [vmem:[#allocation2 + $0xb64] ss:$28 sps:$4 sm:$0xff]  }
0x12fd   :  { %10826 = vmatprep.subr.bf16.mxu0 %v14522_v56  ;;  %v14562_v56 = vld [vmem:[#allocation2 + $0xb6c] ss:$28 sps:$4 sm:$0xff]  }
0x12ff   :  { %10663 = vmatpush1.bf16.msra.mxu1 %v14523_v50  ;;  %v14563_v50 = vld [vmem:[#allocation2 + $0xb60] ss:$28 sps:$4 sm:$0xff]  }
0x1300   :  { %10827 = vmatpush1.bf16.msra.mxu0 %v14524_v53  ;;  %10664 = vmatprep.subr.bf16.mxu1 %v14525_v35  ;;  %v14564_v53 = vld [vmem:[#allocation2 + $0xb68] ss:$28 sps:$4 sm:$0xff]   ;;  %v14565_v35 = vld [vmem:[#allocation2 + $0xb9c] ss:$28 sps:$4 sm:$0xff]  }
0x1301   :  { %10828 = vmatprep.subr.bf16.mxu0 %v14526_v62  ;;  %v14566_v62 = vld [vmem:[#allocation2 + $0xba4] ss:$28 sps:$4 sm:$0xff]  }
0x1303   :  { %10665 = vmatpush1.bf16.msra.mxu1 %v14527_v8  ;;  %v14567_v8 = vld [vmem:[#allocation2 + $0xb98] ss:$28 sps:$4 sm:$0xff]  }
0x1304   :  { %10829 = vmatpush1.bf16.msra.mxu0 %v14528_v9  ;;  %10666 = vmatprep.subr.bf16.mxu1 %v14529_v18  ;;  %v14568_v9 = vld [vmem:[#allocation2 + $0xba0] ss:$28 sps:$4 sm:$0xff]   ;;  %v14569_v18 = vld [vmem:[#allocation2 + $0xbd4] ss:$28 sps:$4 sm:$0xff]  }
0x1305   :  { %10830 = vmatprep.subr.bf16.mxu0 %v14530_v63  ;;  %v14570_v63 = vld [vmem:[#allocation2 + $0xbdc] ss:$28 sps:$4 sm:$0xff]  }
0x1307   :  { %10667 = vmatpush1.bf16.msra.mxu1 %v14531_v37  ;;  %v14571_v37 = vld [vmem:[#allocation2 + $0xbd0] ss:$28 sps:$4 sm:$0xff]  }
0x1308   :  { %10831 = vmatpush1.bf16.msra.mxu0 %v14532_v55  ;;  %10668 = vmatprep.subr.bf16.mxu1 %v14533_v48  ;;  %v14572_v55 = vld [vmem:[#allocation2 + $0xbd8] ss:$28 sps:$4 sm:$0xff]   ;;  %v14573_v48 = vld [vmem:[#allocation2 + $0xc0c] ss:$28 sps:$4 sm:$0xff]  }
0x1309   :  { %10832 = vmatprep.subr.bf16.mxu0 %v14534_v20  ;;  %v14574_v20 = vld [vmem:[#allocation2 + $0xc14] ss:$28 sps:$4 sm:$0xff]  }
0x130b   :  { %10669 = vmatpush1.bf16.msra.mxu1 %v14535_v38  ;;  %v14575_v38 = vld [vmem:[#allocation2 + $0xc08] ss:$28 sps:$4 sm:$0xff]  }
0x130c   :  { %10833 = vmatpush1.bf16.msra.mxu0 %v14536_v52  ;;  %10670 = vmatprep.subr.bf16.mxu1 %v14537_v61  ;;  %v14576_v52 = vld [vmem:[#allocation2 + $0xc10] ss:$28 sps:$4 sm:$0xff]   ;;  %v14577_v61 = vld [vmem:[#allocation2 + $0xc44] ss:$28 sps:$4 sm:$0xff]  }
0x130d   :  { %10834 = vmatprep.subr.bf16.mxu0 %v14538_v40  ;;  %v14578_v40 = vld [vmem:[#allocation2 + $0xc4c] ss:$28 sps:$4 sm:$0xff]  }
0x130f   :  { %10671 = vmatpush1.bf16.msra.mxu1 %v14539_v32  ;;  %v14579_v32 = vld [vmem:[#allocation2 + $0xc40] ss:$28 sps:$4 sm:$0xff]  }
0x1310   :  { %10835 = vmatpush1.bf16.msra.mxu0 %v14540_v12  ;;  %10672 = vmatprep.subr.bf16.mxu1 %v14541_v13  ;;  %v14580_v12 = vld [vmem:[#allocation2 + $0xc48] ss:$28 sps:$4 sm:$0xff]   ;;  %v14581_v13 = vld [vmem:[#allocation2 + $0xc7c] ss:$28 sps:$4 sm:$0xff]  }
0x1311   :  { %10836 = vmatprep.subr.bf16.mxu0 %v14542_v31  ;;  %v14582_v31 = vld [vmem:[#allocation2 + $0xc84] ss:$28 sps:$4 sm:$0xff]  }
0x1313   :  { %10673 = vmatpush1.bf16.msra.mxu1 %v14543_v29  ;;  %v14583_v29 = vld [vmem:[#allocation2 + $0xc78] ss:$28 sps:$4 sm:$0xff]  }
0x1314   :  { %10837 = vmatpush1.bf16.msra.mxu0 %v14544_v22  ;;  %10683 = vmatprep.subr.bf16.mxu1 %v14545_v4  ;;  %v14584_v22 = vld [vmem:[#allocation2 + $0xc80] ss:$28 sps:$4 sm:$0xff]   ;;  %v14585_v4 = vld [vmem:[#allocation2 + $0xcb4] ss:$28 sps:$4 sm:$0xff]  }
0x1315   :  { %10847 = vmatprep.subr.bf16.mxu0 %v14546_v33  ;;  %v14586_v33 = vld [vmem:[#allocation2 + $0xcbc] ss:$28 sps:$4 sm:$0xff]  }
0x1329   :  { %v10333_v47 = vpop.f32.mrb[52].mxu1 }
0x132a   :  { %v12837_v36 = vadd.f32 %v10333_v47, %v19139_v44  ;;  %v17617_v24 = vpop.f32.mrb[44].mxu0  ;;  %v10335_v11 = vpop.f32.mrb[53].mxu1  ;;  %v14587_v47 = vld [vmem:[#allocation2 + $0xcb0] ss:$28 sps:$4 sm:$0xff]   ;;  %v14588_v44 = vld [vmem:[#allocation2 + $0xcb8] ss:$28 sps:$4 sm:$0xff]  }
0x132b   :  { %v12838_v0 = vadd.f32 %v10335_v11, %v19140_v17  ;;  %v10499_v49 = vpop.f32.mrb[45].mxu0  ;;  %v10337_v7 = vpop.f32.mrb[54].mxu1  ;;  %v14590_v11 = vld [vmem:[#allocation2 + $0xcf4] ss:$28 sps:$4 sm:$0xff]   ;;  %v14591_v17 = vld [vmem:[#allocation2 + $0xce8] ss:$28 sps:$4 sm:$0xff]  }
0x132c   :  { %v10508_v39 = vmax.f32 %v12837_v36, 0.0  ;;  %v12840_v59 = vadd.f32 %v10499_v49, %v19141_v34  ;;  %v10501_v41 = vpop.f32.mrb[46].mxu0  ;;  %v10338_v43 = vpop.f32.mrb[55].mxu1  ;;  %v14589_v36 = vld [vmem:[#allocation2 + $0xcec] ss:$28 sps:$4 sm:$0xff]  }
0x132d   :  { %v10509_v26 = vmax.f32 %v12838_v0, 0.0  ;;  %v10502_v10 = vpop.f32.mrb[47].mxu0  ;;  %v14592_v0 = vld [vmem:[#allocation2 + $0xcf0] ss:$28 sps:$4 sm:$0xff]   ;;  %v14593_v49 = vld [vmem:[#allocation2 + $0xd24] ss:$28 sps:$4 sm:$0xff]  }
0x132e   :  { %v10511_v60 = vmax.f32 %v12840_v59, 0.0  ;;  %v17623_v58 = vpack.c.bf16 %v10508_v39, %v10508_v39  ;;  %v14594_v7 = vld [vmem:[#allocation2 + $0xd2c] ss:$28 sps:$4 sm:$0xff]   ;;  %v14595_v39 = vld [vmem:[#allocation2 + $0xd20] ss:$28 sps:$4 sm:$0xff]  }
0x132f   :  { %v17621_v42 = vpack.c.bf16 %v10509_v26, %v10509_v26  ;;  %v14596_v34 = vld [vmem:[#allocation2 + $0xd28] ss:$28 sps:$4 sm:$0xff]   ;;  %v14597_v59 = vld [vmem:[#allocation2 + $0xd5c] ss:$28 sps:$4 sm:$0xff]  }
0x1330   :  { %v17627_v2 = vpack.c.bf16 %v10511_v60, %v10511_v60  ;;  %v14598_v41 = vld [vmem:[#allocation2 + $0xd64] ss:$28 sps:$4 sm:$0xff]   ;;  %v14599_v43 = vld [vmem:[#allocation2 + $0xd58] ss:$28 sps:$4 sm:$0xff]  }
0x1331   :  { %10674 = vmatprep.mubr.bf16.mxu1 %v17621_v42  ;;  %10838 = vmatprep.mubr.bf16.mxu0 %v17621_v42  ;;  %v14600_v26 = vld [vmem:[#allocation2 + $0xd60] ss:$28 sps:$4 sm:$0xff]  }
0x1332   :  { %10675 = vmatmul.mubr.bf16.vlgmr.msra.gmra.mrb[56].mxu1 %v17623_v58  ;;  %10839 = vmatmul.mubr.bf16.vlgmr.msra.gmra.mrb[48].mxu0 %v17623_v58  ;;  %v19142_v10 = vld [vmem:[#allocation285_spill] sm:$0xff] }
0x1333   :  { %10684 = vmatpush1.bf16.msra.mxu1 %v14547_v5  ;;  %10848 = vmatpush1.bf16.msra.mxu0 %v14548_v15  ;;  %v12839_v60 = vadd.f32 %v17617_v24, %v19142_v10  ;;  %v14601_v5 = vld [vmem:[#allocation2 + $0xd94] ss:$28 sps:$4 sm:$0xff]   ;;  %v14602_v15 = vld [vmem:[#allocation2 + $0xd9c] ss:$28 sps:$4 sm:$0xff]  }
0x1334   :  { %10715 = vmatprep.mubr.bf16.mxu1 %v17627_v2  ;;  %10879 = vmatprep.mubr.bf16.mxu0 %v17627_v2  ;;  %v14609_v24 = vld [vmem:[#allocation2 + $0x14] ss:$28 sps:$4 sm:$0xff]  }
0x1335   :  { %10685 = vmatprep.subr.bf16.mxu1 %v14549_v51  ;;  %10849 = vmatprep.subr.bf16.mxu0 %v14550_v21  ;;  %v14603_v51 = vld [vmem:[#allocation2 + $0xd90] ss:$28 sps:$4 sm:$0xff]   ;;  %v14604_v21 = vld [vmem:[#allocation2 + $0xd98] ss:$28 sps:$4 sm:$0xff]  }
0x1336   :  { %v14655_v10 = vld [vmem:[#allocation2 + $0x278] ss:$28 sps:$4 sm:$0xff]  }
0x1337   :  { %10686 = vmatpush1.bf16.msra.mxu1 %v14551_v23  ;;  %10850 = vmatpush1.bf16.msra.mxu0 %v14552_v27  ;;  %v10510_v23 = vmax.f32 %v12839_v60, 0.0  ;;  %v14605_v27 = vld [vmem:[#allocation2 + $0xdcc] ss:$28 sps:$4 sm:$0xff]   ;;  %v14656_v60 = vld [vmem:[#allocation2 + $0x440] ss:$28 sps:$4 sm:$0xff]  }
0x1338   :  { %10687 = vmatprep.subr.bf16.mxu1 %v14553_v28  ;;  %10851 = vmatprep.subr.bf16.mxu0 %v14554_v54  ;;  %v14606_v28 = vld [vmem:[#allocation2 + $0xdd4] ss:$28 sps:$4 sm:$0xff]   ;;  %v14607_v54 = vld [vmem:[#allocation2 + $0xdc8] ss:$28 sps:$4 sm:$0xff]  }
0x133b   :  { %10688 = vmatpush1.bf16.msra.mxu1 %v14555_v1  ;;  %10852 = vmatpush1.bf16.msra.mxu0 %v14556_v6  ;;  %v14608_v1 = vld [vmem:[#allocation2 + $0xdd0] ss:$28 sps:$4 sm:$0xff]   ;;  %v17635_v6 = vpack.c.bf16 %v10510_v23, %v10510_v23 }
0x133c   :  { %10689 = vmatprep.subr.bf16.mxu1 %v14557_v46  ;;  %10853 = vmatprep.subr.bf16.mxu0 %v14558_v14  ;;  %v14610_v46 = vld [vmem:[#allocation2 + $0x1d8] ss:$28 sps:$4 sm:$0xff]   ;;  %v14611_v14 = vld [vmem:[#allocation2 + $0x10] ss:$28 sps:$4 sm:$0xff]  }
0x133d   :  { %v14661_v23 = vld [vmem:[#allocation2 + $0x2ec] ss:$28 sps:$4 sm:$0xff]  }
0x133f   :  { %10690 = vmatpush1.bf16.msra.mxu1 %v14559_v30  ;;  %10854 = vmatpush1.bf16.msra.mxu0 %v14560_v45  ;;  %v14612_v30 = vld [vmem:[#allocation2 + $0x18] ss:$28 sps:$4 sm:$0xff]   ;;  %v14613_v45 = vld [vmem:[#allocation2 + $0x4c] ss:$28 sps:$4 sm:$0xff]  }
0x1340   :  { %10691 = vmatprep.subr.bf16.mxu1 %v14561_v16  ;;  %10855 = vmatprep.subr.bf16.mxu0 %v14562_v56  ;;  %v14614_v16 = vld [vmem:[#allocation2 + $0x210] ss:$28 sps:$4 sm:$0xff]   ;;  %v14615_v56 = vld [vmem:[#allocation2 + $0x48] ss:$28 sps:$4 sm:$0xff]  }
0x1343   :  { %10692 = vmatpush1.bf16.msra.mxu1 %v14563_v50  ;;  %10856 = vmatpush1.bf16.msra.mxu0 %v14564_v53  ;;  %v14616_v50 = vld [vmem:[#allocation2 + $0x50] ss:$28 sps:$4 sm:$0xff]   ;;  %v14617_v53 = vld [vmem:[#allocation2 + $0x84] ss:$28 sps:$4 sm:$0xff]  }
0x1344   :  { %10693 = vmatprep.subr.bf16.mxu1 %v14565_v35  ;;  %10857 = vmatprep.subr.bf16.mxu0 %v14566_v62  ;;  %v14618_v35 = vld [vmem:[#allocation2 + $0x248] ss:$28 sps:$4 sm:$0xff]   ;;  %v14619_v62 = vld [vmem:[#allocation2 + $0x80] ss:$28 sps:$4 sm:$0xff]  }
0x1347   :  { %10694 = vmatpush1.bf16.msra.mxu1 %v14567_v8  ;;  %10858 = vmatpush1.bf16.msra.mxu0 %v14568_v9  ;;  %v14620_v8 = vld [vmem:[#allocation2 + $0x88] ss:$28 sps:$4 sm:$0xff]   ;;  %v14621_v9 = vld [vmem:[#allocation2 + $0xbc] ss:$28 sps:$4 sm:$0xff]  }
0x1348   :  { %10695 = vmatprep.subr.bf16.mxu1 %v14569_v18  ;;  %10859 = vmatprep.subr.bf16.mxu0 %v14570_v63  ;;  %v14622_v18 = vld [vmem:[#allocation2 + $0x280] ss:$28 sps:$4 sm:$0xff]  }
0x1349   :  { %v14624_v63 = vld [vmem:[#allocation2 + $0xc0] ss:$28 sps:$4 sm:$0xff]  }
0x134b   :  { %10696 = vmatpush1.bf16.msra.mxu1 %v14571_v37  ;;  %10860 = vmatpush1.bf16.msra.mxu0 %v14572_v55  ;;  %v14625_v37 = vld [vmem:[#allocation2 + $0xf4] ss:$28 sps:$4 sm:$0xff]  }
0x134c   :  { %10697 = vmatprep.subr.bf16.mxu1 %v14573_v48  ;;  %10861 = vmatprep.subr.bf16.mxu0 %v14574_v20  ;;  %v14626_v55 = vld [vmem:[#allocation2 + $0x2b8] ss:$28 sps:$4 sm:$0xff]   ;;  %v14627_v48 = vld [vmem:[#allocation2 + $0xf0] ss:$28 sps:$4 sm:$0xff]  }
0x134d   :  { %v14628_v20 = vld [vmem:[#allocation2 + $0xf8] ss:$28 sps:$4 sm:$0xff]  }
0x134f   :  { %10698 = vmatpush1.bf16.msra.mxu1 %v14575_v38  ;;  %10862 = vmatpush1.bf16.msra.mxu0 %v14576_v52  ;;  %v14629_v38 = vld [vmem:[#allocation2 + $0x12c] ss:$28 sps:$4 sm:$0xff]  }
0x1350   :  { %10699 = vmatprep.subr.bf16.mxu1 %v14577_v61  ;;  %10863 = vmatprep.subr.bf16.mxu0 %v14578_v40  ;;  %v14630_v52 = vld [vmem:[#allocation2 + $0x2f0] ss:$28 sps:$4 sm:$0xff]   ;;  %v14631_v61 = vld [vmem:[#allocation2 + $0x128] ss:$28 sps:$4 sm:$0xff]  }
0x1351   :  { %v14632_v40 = vld [vmem:[#allocation2 + $0x130] ss:$28 sps:$4 sm:$0xff]  }
0x1353   :  { %10700 = vmatpush1.bf16.msra.mxu1 %v14579_v32  ;;  %10864 = vmatpush1.bf16.msra.mxu0 %v14580_v12  ;;  %v14633_v32 = vld [vmem:[#allocation2 + $0x164] ss:$28 sps:$4 sm:$0xff]  }
0x1354   :  { %10701 = vmatprep.subr.bf16.mxu1 %v14581_v13  ;;  %10865 = vmatprep.subr.bf16.mxu0 %v14582_v31  ;;  %v14634_v12 = vld [vmem:[#allocation2 + $0x328] ss:$28 sps:$4 sm:$0xff]   ;;  %v14635_v13 = vld [vmem:[#allocation2 + $0x160] ss:$28 sps:$4 sm:$0xff]  }
0x1355   :  { %v14636_v31 = vld [vmem:[#allocation2 + $0x168] ss:$28 sps:$4 sm:$0xff]  }
0x1357   :  { %10702 = vmatpush1.bf16.msra.mxu1 %v14583_v29  ;;  %10866 = vmatpush1.bf16.msra.mxu0 %v14584_v22  ;;  %v14637_v29 = vld [vmem:[#allocation2 + $0x19c] ss:$28 sps:$4 sm:$0xff]  }
0x1358   :  { %10703 = vmatprep.subr.bf16.mxu1 %v14585_v4  ;;  %10867 = vmatprep.subr.bf16.mxu0 %v14586_v33  ;;  %v14638_v22 = vld [vmem:[#allocation2 + $0x360] ss:$28 sps:$4 sm:$0xff]   ;;  %v14639_v4 = vld [vmem:[#allocation2 + $0x198] ss:$28 sps:$4 sm:$0xff]  }
0x1359   :  { %v14640_v33 = vld [vmem:[#allocation2 + $0x1a0] ss:$28 sps:$4 sm:$0xff]  }
0x135b   :  { %10704 = vmatpush1.bf16.msra.mxu1 %v14587_v47  ;;  %10868 = vmatpush1.bf16.msra.mxu0 %v14588_v44  ;;  %v14641_v47 = vld [vmem:[#allocation2 + $0x1d4] ss:$28 sps:$4 sm:$0xff]  }
0x135c   :  { %10705 = vmatprep.subr.bf16.mxu1 %v14589_v36  ;;  %10869 = vmatprep.subr.bf16.mxu0 %v14590_v11  ;;  %v14642_v44 = vld [vmem:[#allocation2 + $0x558] ss:$28 sps:$4 sm:$0xff]   ;;  %v14643_v36 = vld [vmem:[#allocation2 + $0x1d0] ss:$28 sps:$4 sm:$0xff]  }
0x135d   :  { %v14644_v11 = vld [vmem:[#allocation2 + $0x398] ss:$28 sps:$4 sm:$0xff]  }
0x135f   :  { %10706 = vmatpush1.bf16.msra.mxu1 %v14591_v17  ;;  %10870 = vmatpush1.bf16.msra.mxu0 %v14592_v0  ;;  %v14645_v17 = vld [vmem:[#allocation2 + $0x20c] ss:$28 sps:$4 sm:$0xff]  }
0x1360   :  { %10707 = vmatprep.subr.bf16.mxu1 %v14593_v49  ;;  %10871 = vmatprep.subr.bf16.mxu0 %v14594_v7  ;;  %v14646_v0 = vld [vmem:[#allocation2 + $0x590] ss:$28 sps:$4 sm:$0xff]   ;;  %v14647_v49 = vld [vmem:[#allocation2 + $0x208] ss:$28 sps:$4 sm:$0xff]  }
0x1361   :  { %v14648_v7 = vld [vmem:[#allocation2 + $0x3d0] ss:$28 sps:$4 sm:$0xff]  }
0x1363   :  { %10708 = vmatpush1.bf16.msra.mxu1 %v14595_v39  ;;  %10872 = vmatpush1.bf16.msra.mxu0 %v14596_v34  ;;  %v14649_v39 = vld [vmem:[#allocation2 + $0x244] ss:$28 sps:$4 sm:$0xff]  }
0x1364   :  { %10709 = vmatprep.subr.bf16.mxu1 %v14597_v59  ;;  %10873 = vmatprep.subr.bf16.mxu0 %v14598_v41  ;;  %v14650_v34 = vld [vmem:[#allocation2 + $0x5c8] ss:$28 sps:$4 sm:$0xff]   ;;  %v14651_v59 = vld [vmem:[#allocation2 + $0x240] ss:$28 sps:$4 sm:$0xff]  }
0x1365   :  { %v14652_v41 = vld [vmem:[#allocation2 + $0x408] ss:$28 sps:$4 sm:$0xff]  }
0x1367   :  { %10710 = vmatpush1.bf16.msra.mxu1 %v14599_v43  ;;  %10874 = vmatpush1.bf16.msra.mxu0 %v14600_v26  ;;  %v14653_v43 = vld [vmem:[#allocation2 + $0x27c] ss:$28 sps:$4 sm:$0xff]  }
0x1368   :  { %10711 = vmatprep.subr.bf16.mxu1 %v14601_v5  ;;  %10875 = vmatprep.subr.bf16.mxu0 %v14602_v15  ;;  %v14654_v26 = vld [vmem:[#allocation2 + $0x600] ss:$28 sps:$4 sm:$0xff]   ;;  %v14657_v5 = vld [vmem:[#allocation2 + $0x2b4] ss:$28 sps:$4 sm:$0xff]  }
0x1369   :  { %v14658_v15 = vld [vmem:[#allocation2 + $0x638] ss:$28 sps:$4 sm:$0xff]  }
0x136b   :  { %10712 = vmatpush1.bf16.msra.mxu1 %v14603_v51  ;;  %10876 = vmatpush1.bf16.msra.mxu0 %v14604_v21  ;;  %v14659_v51 = vld [vmem:[#allocation2 + $0x2b0] ss:$28 sps:$4 sm:$0xff]   ;;  %v14660_v21 = vld [vmem:[#allocation2 + $0x478] ss:$28 sps:$4 sm:$0xff]  }
0x136c   :  { %10713 = vmatprep.subr.bf16.mxu1 %v14605_v27  ;;  %10877 = vmatprep.subr.bf16.mxu0 %v14606_v28  ;;  %v14662_v27 = vld [vmem:[#allocation2 + $0x670] ss:$28 sps:$4 sm:$0xff]   ;;  %v14663_v28 = vld [vmem:[#allocation2 + $0x2e8] ss:$28 sps:$4 sm:$0xff]  }
0x136f   :  { %10714 = vmatpush1.bf16.msra.mxu1 %v14607_v54  ;;  %10878 = vmatpush1.bf16.msra.mxu0 %v14608_v1  ;;  %v14664_v54 = vld [vmem:[#allocation2 + $0x4b0] ss:$28 sps:$4 sm:$0xff]   ;;  %v14665_v1 = vld [vmem:[#allocation2 + $0x324] ss:$28 sps:$4 sm:$0xff]  }
0x1370   :  { %10888 = vmatprep.subr.bf16.mxu1 %v14609_v24  ;;  %12639 = vmatprep.subr.bf16.mxu0 %v14610_v46  ;;  %v14666_v24 = vld [vmem:[#allocation2 + $0x6a8] ss:$28 sps:$4 sm:$0xff]   ;;  %v14667_v46 = vld [vmem:[#allocation2 + $0x320] ss:$28 sps:$4 sm:$0xff]  }
0x1372   :  { %10716 = vmatmul.mubr.bf16.vlgmr.msra.gmra.mrb[56].mxu1 %v17635_v6  ;;  %10880 = vmatmul.mubr.bf16.vlgmr.msra.gmra.mrb[48].mxu0 %v17635_v6 }
0x1373   :  { %10889 = vmatpush1.bf16.msra.mxu1 %v14611_v14  ;;  %10920 = vmatprep.mubr.bf16.mxu1 %v17592_v3  ;;  %v14668_v14 = vld [vmem:[#allocation2 + $0x4e8] ss:$28 sps:$4 sm:$0xff]  }
0x1374   :  { %12640 = vmatpush3.bf16.msra.mxu0 %v14612_v30  ;;  %11084 = vmatprep.mubr.bf16.mxu0 %v17592_v3  ;;  %v14623_v3 = vld [vmem:[#allocation2 + $0xb8] ss:$28 sps:$4 sm:$0xff]  }
0x1375   :  { %10890 = vmatprep.subr.bf16.mxu1 %v14613_v45  ;;  %12641 = vmatprep.subr.bf16.mxu0 %v14614_v16  ;;  %v14669_v30 = vld [vmem:[#allocation2 + $0x35c] ss:$28 sps:$4 sm:$0xff]  }
0x1376   :  { %v14670_v45 = vld [vmem:[#allocation2 + $0x6e0] ss:$28 sps:$4 sm:$0xff]   ;;  %v14671_v16 = vld [vmem:[#allocation2 + $0x358] ss:$28 sps:$4 sm:$0xff]  }
0x1377   :  { %10891 = vmatpush1.bf16.msra.mxu1 %v14615_v56  ;;  %v14672_v56 = vld [vmem:[#allocation2 + $0x520] ss:$28 sps:$4 sm:$0xff]  }
0x1378   :  { %12642 = vmatpush3.bf16.msra.mxu0 %v14616_v50  ;;  %10892 = vmatprep.subr.bf16.mxu1 %v14617_v53  ;;  %v14673_v50 = vld [vmem:[#allocation2 + $0x394] ss:$28 sps:$4 sm:$0xff]  }
0x1379   :  { %12643 = vmatprep.subr.bf16.mxu0 %v14618_v35  ;;  %v14674_v53 = vld [vmem:[#allocation2 + $0x8d8] ss:$28 sps:$4 sm:$0xff]   ;;  %v14675_v35 = vld [vmem:[#allocation2 + $0x390] ss:$28 sps:$4 sm:$0xff]  }
0x137b   :  { %10893 = vmatpush1.bf16.msra.mxu1 %v14619_v62  ;;  %v14676_v62 = vld [vmem:[#allocation2 + $0x718] ss:$28 sps:$4 sm:$0xff]  }
0x137c   :  { %12644 = vmatpush3.bf16.msra.mxu0 %v14620_v8  ;;  %10894 = vmatprep.subr.bf16.mxu1 %v14621_v9  ;;  %v14677_v8 = vld [vmem:[#allocation2 + $0x3cc] ss:$28 sps:$4 sm:$0xff]  }
0x137d   :  { %12645 = vmatprep.subr.bf16.mxu0 %v14622_v18  ;;  %v14678_v9 = vld [vmem:[#allocation2 + $0x910] ss:$28 sps:$4 sm:$0xff]   ;;  %v14679_v18 = vld [vmem:[#allocation2 + $0x3c8] ss:$28 sps:$4 sm:$0xff]  }
0x137f   :  { %10895 = vmatpush1.bf16.msra.mxu1 %v14623_v3  ;;  %v14680_v3 = vld [vmem:[#allocation2 + $0x750] ss:$28 sps:$4 sm:$0xff]  }
0x1380   :  { %12646 = vmatpush3.bf16.msra.mxu0 %v14624_v63  ;;  %10896 = vmatprep.subr.bf16.mxu1 %v14625_v37  ;;  %v14681_v63 = vld [vmem:[#allocation2 + $0x404] ss:$28 sps:$4 sm:$0xff]  }
0x1381   :  { %12647 = vmatprep.subr.bf16.mxu0 %v14626_v55  ;;  %v14683_v37 = vld [vmem:[#allocation2 + $0x400] ss:$28 sps:$4 sm:$0xff]   ;;  %v14684_v55 = vld [vmem:[#allocation2 + $0x788] ss:$28 sps:$4 sm:$0xff]  }
0x1383   :  { %10897 = vmatpush1.bf16.msra.mxu1 %v14627_v48  ;;  %v14686_v48 = vld [vmem:[#allocation2 + $0x980] ss:$28 sps:$4 sm:$0xff]  }
0x1384   :  { %12648 = vmatpush3.bf16.msra.mxu0 %v14628_v20  ;;  %10898 = vmatprep.subr.bf16.mxu1 %v14629_v38  ;;  %v14687_v20 = vld [vmem:[#allocation2 + $0x438] ss:$28 sps:$4 sm:$0xff]   ;;  %v14688_v38 = vld [vmem:[#allocation2 + $0x7c0] ss:$28 sps:$4 sm:$0xff]  }
0x1385   :  { %12649 = vmatprep.subr.bf16.mxu0 %v14630_v52  ;;  %v14689_v52 = vld [vmem:[#allocation2 + $0x474] ss:$28 sps:$4 sm:$0xff]  }
0x1387   :  { %10899 = vmatpush1.bf16.msra.mxu1 %v14631_v61  ;;  %v14690_v61 = vld [vmem:[#allocation2 + $0x9b8] ss:$28 sps:$4 sm:$0xff]  }
0x1388   :  { %12650 = vmatpush3.bf16.msra.mxu0 %v14632_v40  ;;  %10900 = vmatprep.subr.bf16.mxu1 %v14633_v32  ;;  %v14691_v40 = vld [vmem:[#allocation2 + $0x470] ss:$28 sps:$4 sm:$0xff]   ;;  %v14692_v32 = vld [vmem:[#allocation2 + $0x7f8] ss:$28 sps:$4 sm:$0xff]  }
0x1389   :  { %12651 = vmatprep.subr.bf16.mxu0 %v14634_v12  ;;  %v14693_v12 = vld [vmem:[#allocation2 + $0x4ac] ss:$28 sps:$4 sm:$0xff]  }
0x138b   :  { %10901 = vmatpush1.bf16.msra.mxu1 %v14635_v13  ;;  %v14694_v13 = vld [vmem:[#allocation2 + $0x9f0] ss:$28 sps:$4 sm:$0xff]  }
0x138c   :  { %12652 = vmatpush3.bf16.msra.mxu0 %v14636_v31  ;;  %10902 = vmatprep.subr.bf16.mxu1 %v14637_v29  ;;  %v14695_v31 = vld [vmem:[#allocation2 + $0x4a8] ss:$28 sps:$4 sm:$0xff]   ;;  %v14696_v29 = vld [vmem:[#allocation2 + $0x830] ss:$28 sps:$4 sm:$0xff]  }
0x138d   :  { %12653 = vmatprep.subr.bf16.mxu0 %v14638_v22  ;;  %v14697_v22 = vld [vmem:[#allocation2 + $0x4e4] ss:$28 sps:$4 sm:$0xff]  }
0x138f   :  { %10903 = vmatpush1.bf16.msra.mxu1 %v14639_v4  ;;  %v14698_v4 = vld [vmem:[#allocation2 + $0xa28] ss:$28 sps:$4 sm:$0xff]  }
0x1390   :  { %12654 = vmatpush3.bf16.msra.mxu0 %v14640_v33  ;;  %10904 = vmatprep.subr.bf16.mxu1 %v14641_v47  ;;  %v14699_v33 = vld [vmem:[#allocation2 + $0x4e0] ss:$28 sps:$4 sm:$0xff]   ;;  %v14700_v47 = vld [vmem:[#allocation2 + $0x868] ss:$28 sps:$4 sm:$0xff]  }
0x1391   :  { %12661 = vmatprep.subr.bf16.mxu0 %v14642_v44  ;;  %v14701_v44 = vld [vmem:[#allocation2 + $0x51c] ss:$28 sps:$4 sm:$0xff]  }
0x1393   :  { %11085 = vmatmul.mubr.bf16.vlgmr.msra.gmra.mrb[52].mxu0 %v17602_v57  ;;  %10905 = vmatpush1.bf16.msra.mxu1 %v14643_v36  ;;  %v14702_v36 = vld [vmem:[#allocation2 + $0xa60] ss:$28 sps:$4 sm:$0xff]  }
0x1394   :  { %12662 = vmatpush3.bf16.msra.mxu0 %v14644_v11  ;;  %11124 = vmatprep.mubr.bf16.mxu0 %v17604_v19  ;;  %v14703_v11 = vld [vmem:[#allocation2 + $0x518] ss:$28 sps:$4 sm:$0xff]  }
0x1395   :  { %10906 = vmatprep.subr.bf16.mxu1 %v14645_v17  ;;  %12663 = vmatprep.subr.bf16.mxu0 %v14646_v0  ;;  %v14704_v17 = vld [vmem:[#allocation2 + $0x8a0] ss:$28 sps:$4 sm:$0xff]   ;;  %v14705_v0 = vld [vmem:[#allocation2 + $0x554] ss:$28 sps:$4 sm:$0xff]  }
0x1397   :  { %10907 = vmatpush1.bf16.msra.mxu1 %v14647_v49  ;;  %v14706_v49 = vld [vmem:[#allocation2 + $0xc58] ss:$28 sps:$4 sm:$0xff]  }
0x1398   :  { %12664 = vmatpush3.bf16.msra.mxu0 %v14648_v7  ;;  %10908 = vmatprep.subr.bf16.mxu1 %v14649_v39  ;;  %v14707_v7 = vld [vmem:[#allocation2 + $0x550] ss:$28 sps:$4 sm:$0xff]   ;;  %v14708_v39 = vld [vmem:[#allocation2 + $0xa98] ss:$28 sps:$4 sm:$0xff]  }
0x1399   :  { %12665 = vmatprep.subr.bf16.mxu0 %v14650_v34  ;;  %v14709_v34 = vld [vmem:[#allocation2 + $0x58c] ss:$28 sps:$4 sm:$0xff]  }
0x139b   :  { %10909 = vmatpush1.bf16.msra.mxu1 %v14651_v59  ;;  %v14710_v59 = vld [vmem:[#allocation2 + $0xc90] ss:$28 sps:$4 sm:$0xff]  }
0x139c   :  { %12666 = vmatpush3.bf16.msra.mxu0 %v14652_v41  ;;  %10910 = vmatprep.subr.bf16.mxu1 %v14653_v43  ;;  %v14711_v41 = vld [vmem:[#allocation2 + $0x588] ss:$28 sps:$4 sm:$0xff]   ;;  %v14712_v43 = vld [vmem:[#allocation2 + $0xad0] ss:$28 sps:$4 sm:$0xff]  }
0x139d   :  { %12667 = vmatprep.subr.bf16.mxu0 %v14654_v26  ;;  %v14713_v26 = vld [vmem:[#allocation2 + $0x5c4] ss:$28 sps:$4 sm:$0xff]  }
0x139f   :  { %10911 = vmatpush1.bf16.msra.mxu1 %v14655_v10  ;;  %v14714_v10 = vld [vmem:[#allocation2 + $0xcc8] ss:$28 sps:$4 sm:$0xff]  }
0x13a0   :  { %12668 = vmatpush3.bf16.msra.mxu0 %v14656_v60  ;;  %10912 = vmatprep.subr.bf16.mxu1 %v14657_v5  ;;  %v14715_v60 = vld [vmem:[#allocation2 + $0x5c0] ss:$28 sps:$4 sm:$0xff]   ;;  %v14716_v5 = vld [vmem:[#allocation2 + $0xb08] ss:$28 sps:$4 sm:$0xff]  }
0x13a1   :  { %12669 = vmatprep.subr.bf16.mxu0 %v14658_v15  ;;  %v14717_v15 = vld [vmem:[#allocation2 + $0x5fc] ss:$28 sps:$4 sm:$0xff]  }
0x13a3   :  { %10913 = vmatpush1.bf16.msra.mxu1 %v14659_v51  ;;  %v14718_v51 = vld [vmem:[#allocation2 + $0xd00] ss:$28 sps:$4 sm:$0xff]  }
0x13a4   :  { %12670 = vmatpush3.bf16.msra.mxu0 %v14660_v21  ;;  %10914 = vmatprep.subr.bf16.mxu1 %v14661_v23  ;;  %v14719_v21 = vld [vmem:[#allocation2 + $0x5f8] ss:$28 sps:$4 sm:$0xff]   ;;  %v14720_v23 = vld [vmem:[#allocation2 + $0xb40] ss:$28 sps:$4 sm:$0xff]  }
0x13a5   :  { %12671 = vmatprep.subr.bf16.mxu0 %v14662_v27  ;;  %v14721_v27 = vld [vmem:[#allocation2 + $0x634] ss:$28 sps:$4 sm:$0xff]  }
0x13a7   :  { %10915 = vmatpush1.bf16.msra.mxu1 %v14663_v28  ;;  %v14722_v28 = vld [vmem:[#allocation2 + $0xd38] ss:$28 sps:$4 sm:$0xff]  }
0x13a8   :  { %12672 = vmatpush3.bf16.msra.mxu0 %v14664_v54  ;;  %10916 = vmatprep.subr.bf16.mxu1 %v14665_v1  ;;  %v14723_v54 = vld [vmem:[#allocation2 + $0x630] ss:$28 sps:$4 sm:$0xff]   ;;  %v14724_v1 = vld [vmem:[#allocation2 + $0xb78] ss:$28 sps:$4 sm:$0xff]  }
0x13a9   :  { %12673 = vmatprep.subr.bf16.mxu0 %v14666_v24  ;;  %v14725_v24 = vld [vmem:[#allocation2 + $0x66c] ss:$28 sps:$4 sm:$0xff]  }
0x13ab   :  { %10917 = vmatpush1.bf16.msra.mxu1 %v14667_v46  ;;  %v14726_v46 = vld [vmem:[#allocation2 + $0xd70] ss:$28 sps:$4 sm:$0xff]  }
0x13ac   :  { %12674 = vmatpush3.bf16.msra.mxu0 %v14668_v14  ;;  %10918 = vmatprep.subr.bf16.mxu1 %v14669_v30  ;;  %v14727_v14 = vld [vmem:[#allocation2 + $0x668] ss:$28 sps:$4 sm:$0xff]   ;;  %v14728_v30 = vld [vmem:[#allocation2 + $0xbb0] ss:$28 sps:$4 sm:$0xff]  }
0x13ad   :  { %12675 = vmatprep.subr.bf16.mxu0 %v14670_v45  ;;  %v14729_v45 = vld [vmem:[#allocation2 + $0x6a4] ss:$28 sps:$4 sm:$0xff]  }
0x13af   :  { %10919 = vmatpush1.bf16.msra.mxu1 %v14671_v16  ;;  %v14730_v16 = vld [vmem:[#allocation2 + $0xda8] ss:$28 sps:$4 sm:$0xff]  }
0x13b0   :  { %12676 = vmatpush3.bf16.msra.mxu0 %v14672_v56  ;;  %10929 = vmatprep.subr.bf16.mxu1 %v14673_v50  ;;  %v14731_v56 = vld [vmem:[#allocation2 + $0x6a0] ss:$28 sps:$4 sm:$0xff]   ;;  %v14732_v50 = vld [vmem:[#allocation2 + $0xbe8] ss:$28 sps:$4 sm:$0xff]  }
0x13b1   :  { %12683 = vmatprep.subr.bf16.mxu0 %v14674_v53  ;;  %v14733_v53 = vld [vmem:[#allocation2 + $0x6dc] ss:$28 sps:$4 sm:$0xff]  }
0x13b2   :  { %10921 = vmatmul.mubr.bf16.vlgmr.msra.gmra.mrb[60].mxu1 %v17602_v57  ;;  %v14682_v57 = vld [vmem:[#allocation2 + $0x948] ss:$28 sps:$4 sm:$0xff]  }
0x13b3   :  { %11125 = vmatmul.mubr.bf16.vlgmr.msra.gmra.mrb[56].mxu0 %v17612_v25  ;;  %10930 = vmatpush1.bf16.msra.mxu1 %v14675_v35  ;;  %v14734_v35 = vld [vmem:[#allocation2 + $0xde0] ss:$28 sps:$4 sm:$0xff]  }
0x13b4   :  { %10961 = vmatprep.mubr.bf16.mxu1 %v17604_v19  ;;  %12684 = vmatpush3.bf16.msra.mxu0 %v14676_v62  ;;  %v14685_v19 = vld [vmem:[#allocation2 + $0x43c] ss:$28 sps:$4 sm:$0xff]  }
0x13b5   :  { %11164 = vmatprep.mubr.bf16.mxu0 %v17621_v42  ;;  %10931 = vmatprep.subr.bf16.mxu1 %v14677_v8  ;;  %v14735_v62 = vld [vmem:[#allocation2 + $0x6d8] ss:$28 sps:$4 sm:$0xff]   ;;  %v14736_v8 = vld [vmem:[#allocation2 + $0xc20] ss:$28 sps:$4 sm:$0xff]  }
0x13b6   :  { %12685 = vmatprep.subr.bf16.mxu0 %v14678_v9  ;;  %v14737_v9 = vld [vmem:[#allocation2 + $0x714] ss:$28 sps:$4 sm:$0xff]  }
0x13b7   :  { %10932 = vmatpush1.bf16.msra.mxu1 %v14679_v18  ;;  %v14738_v18 = vld [vmem:[#allocation2 + $0x710] ss:$28 sps:$4 sm:$0xff]  }
0x13b8   :  { %12686 = vmatpush3.bf16.msra.mxu0 %v14680_v3  ;;  %10933 = vmatprep.subr.bf16.mxu1 %v14681_v63  ;;  %v14739_v3 = vld [vmem:[#allocation2 + $0x74c] ss:$28 sps:$4 sm:$0xff]  }
0x13b9   :  { %12687 = vmatprep.subr.bf16.mxu0 %v14682_v57  ;;  %v14740_v63 = vld [vmem:[#allocation2 + $0x748] ss:$28 sps:$4 sm:$0xff]  }
0x13ba   :  { %v14741_v57 = vld [vmem:[#allocation2 + $0x784] ss:$28 sps:$4 sm:$0xff]  }
0x13bb   :  { %10934 = vmatpush1.bf16.msra.mxu1 %v14683_v37  ;;  %v14742_v37 = vld [vmem:[#allocation2 + $0x780] ss:$28 sps:$4 sm:$0xff]  }
0x13bc   :  { %12688 = vmatpush3.bf16.msra.mxu0 %v14684_v55  ;;  %10935 = vmatprep.subr.bf16.mxu1 %v14685_v19  ;;  %v14743_v55 = vld [vmem:[#allocation2 + $0x7bc] ss:$28 sps:$4 sm:$0xff]  }
0x13bd   :  { %12689 = vmatprep.subr.bf16.mxu0 %v14686_v48  ;;  %v14744_v19 = vld [vmem:[#allocation2 + $0x7b8] ss:$28 sps:$4 sm:$0xff]  }
0x13be   :  { %v14745_v48 = vld [vmem:[#allocation2 + $0x7f4] ss:$28 sps:$4 sm:$0xff]  }
0x13bf   :  { %10936 = vmatpush1.bf16.msra.mxu1 %v14687_v20  ;;  %v14747_v20 = vld [vmem:[#allocation2 + $0x82c] ss:$28 sps:$4 sm:$0xff]  }
0x13c0   :  { %12690 = vmatpush3.bf16.msra.mxu0 %v14688_v38  ;;  %10937 = vmatprep.subr.bf16.mxu1 %v14689_v52  ;;  %v14748_v38 = vld [vmem:[#allocation2 + $0x828] ss:$28 sps:$4 sm:$0xff]   ;;  %v14750_v52 = vld [vmem:[#allocation2 + $0x860] ss:$28 sps:$4 sm:$0xff]  }
0x13c1   :  { %12691 = vmatprep.subr.bf16.mxu0 %v14690_v61  ;;  %v14751_v61 = vld [vmem:[#allocation2 + $0x89c] ss:$28 sps:$4 sm:$0xff]  }
0x13c3   :  { %10938 = vmatpush1.bf16.msra.mxu1 %v14691_v40  ;;  %v14752_v40 = vld [vmem:[#allocation2 + $0x898] ss:$28 sps:$4 sm:$0xff]  }
0x13c4   :  { %12692 = vmatpush3.bf16.msra.mxu0 %v14692_v32  ;;  %10939 = vmatprep.subr.bf16.mxu1 %v14693_v12  ;;  %v14753_v32 = vld [vmem:[#allocation2 + $0x8d4] ss:$28 sps:$4 sm:$0xff]  }
0x13c5   :  { %12693 = vmatprep.subr.bf16.mxu0 %v14694_v13  ;;  %v14754_v12 = vld [vmem:[#allocation2 + $0x8d0] ss:$28 sps:$4 sm:$0xff]  }
0x13c6   :  { %v14755_v13 = vld [vmem:[#allocation2 + $0x90c] ss:$28 sps:$4 sm:$0xff]  }
0x13c7   :  { %10940 = vmatpush1.bf16.msra.mxu1 %v14695_v31  ;;  %v14756_v31 = vld [vmem:[#allocation2 + $0x908] ss:$28 sps:$4 sm:$0xff]  }
0x13c8   :  { %12694 = vmatpush3.bf16.msra.mxu0 %v14696_v29  ;;  %10941 = vmatprep.subr.bf16.mxu1 %v14697_v22  ;;  %v14757_v29 = vld [vmem:[#allocation2 + $0x944] ss:$28 sps:$4 sm:$0xff]  }
0x13c9   :  { %12695 = vmatprep.subr.bf16.mxu0 %v14698_v4  ;;  %v14758_v22 = vld [vmem:[#allocation2 + $0x940] ss:$28 sps:$4 sm:$0xff]  }
0x13ca   :  { %v14759_v4 = vld [vmem:[#allocation2 + $0x97c] ss:$28 sps:$4 sm:$0xff]  }
0x13cb   :  { %10942 = vmatpush1.bf16.msra.mxu1 %v14699_v33  ;;  %v14760_v33 = vld [vmem:[#allocation2 + $0x978] ss:$28 sps:$4 sm:$0xff]  }
0x13cc   :  { %12696 = vmatpush3.bf16.msra.mxu0 %v14700_v47  ;;  %10943 = vmatprep.subr.bf16.mxu1 %v14701_v44  ;;  %v14761_v47 = vld [vmem:[#allocation2 + $0x9b4] ss:$28 sps:$4 sm:$0xff]  }
0x13cd   :  { %12697 = vmatprep.subr.bf16.mxu0 %v14702_v36  ;;  %v14762_v44 = vld [vmem:[#allocation2 + $0x9b0] ss:$28 sps:$4 sm:$0xff]  }
0x13ce   :  { %v14763_v36 = vld [vmem:[#allocation2 + $0x9ec] ss:$28 sps:$4 sm:$0xff]  }
0x13cf   :  { %10944 = vmatpush1.bf16.msra.mxu1 %v14703_v11  ;;  %v14764_v11 = vld [vmem:[#allocation2 + $0x9e8] ss:$28 sps:$4 sm:$0xff]  }
0x13d0   :  { %12698 = vmatpush3.bf16.msra.mxu0 %v14704_v17  ;;  %10945 = vmatprep.subr.bf16.mxu1 %v14705_v0  ;;  %v14765_v17 = vld [vmem:[#allocation2 + $0xa24] ss:$28 sps:$4 sm:$0xff]  }
0x13d1   :  { %12705 = vmatprep.subr.bf16.mxu0 %v14706_v49  ;;  %v14766_v0 = vld [vmem:[#allocation2 + $0xa20] ss:$28 sps:$4 sm:$0xff]  }
0x13d2   :  { %v14767_v49 = vld [vmem:[#allocation2 + $0xa5c] ss:$28 sps:$4 sm:$0xff]  }
0x13d3   :  { %11165 = vmatmul.mubr.bf16.vlgmr.msra.gmra.mrb[60].mxu0 %v17623_v58  ;;  %10946 = vmatpush1.bf16.msra.mxu1 %v14707_v7  ;;  %v14768_v7 = vld [vmem:[#allocation2 + $0xa58] ss:$28 sps:$4 sm:$0xff]  }
0x13d4   :  { %12706 = vmatpush3.bf16.msra.mxu0 %v14708_v39  ;;  %11204 = vmatprep.mubr.bf16.mxu0 %v17627_v2  ;;  %v14769_v39 = vld [vmem:[#allocation2 + $0xa94] ss:$28 sps:$4 sm:$0xff]  }
0x13d5   :  { %10947 = vmatprep.subr.bf16.mxu1 %v14709_v34  ;;  %12707 = vmatprep.subr.bf16.mxu0 %v14710_v59  ;;  %v14770_v34 = vld [vmem:[#allocation2 + $0xa90] ss:$28 sps:$4 sm:$0xff]  }
0x13d6   :  { %v14771_v59 = vld [vmem:[#allocation2 + $0xacc] ss:$28 sps:$4 sm:$0xff]  }
0x13d7   :  { %10948 = vmatpush1.bf16.msra.mxu1 %v14711_v41  ;;  %v14772_v41 = vld [vmem:[#allocation2 + $0xac8] ss:$28 sps:$4 sm:$0xff]  }
0x13d8   :  { %12708 = vmatpush3.bf16.msra.mxu0 %v14712_v43  ;;  %10949 = vmatprep.subr.bf16.mxu1 %v14713_v26  ;;  %v14773_v43 = vld [vmem:[#allocation2 + $0xb04] ss:$28 sps:$4 sm:$0xff]  }
0x13d9   :  { %12709 = vmatprep.subr.bf16.mxu0 %v14714_v10  ;;  %v14774_v26 = vld [vmem:[#allocation2 + $0xb00] ss:$28 sps:$4 sm:$0xff]  }
0x13da   :  { %v10521_v10 = vld [vmem:[#allocation12 + $0x6] ss:$8 sm:$0xf] }
0x13db   :  { %10950 = vmatpush1.bf16.msra.mxu1 %v14715_v60  ;;  %v10522_v60 = vld [vmem:[#allocation12 + $0x6] ss:$8 sm:$0xf0] }
0x13dc   :  { %12710 = vmatpush3.bf16.msra.mxu0 %v14716_v5  ;;  %10951 = vmatprep.subr.bf16.mxu1 %v14717_v15  ;;  %v14775_v5 = vld [vmem:[#allocation2 + $0xb3c] ss:$28 sps:$4 sm:$0xff]   ;;  %v17654_v15 = vor.u32 %v10522_v60, %v10521_v10 }
0x13dd   :  { %12711 = vmatprep.subr.bf16.mxu0 %v14718_v51  ;;  %v14776_v51 = vld [vmem:[#allocation2 + $0xb38] ss:$28 sps:$4 sm:$0xff]  }
0x13df   :  { %10952 = vmatpush1.bf16.msra.mxu1 %v14719_v21  ;;  %v19143_v21 = vld [vmem:[#allocation78_spill] sm:$0xff] }
0x13e0   :  { %12712 = vmatpush3.bf16.msra.mxu0 %v14720_v23  ;;  %10953 = vmatprep.subr.bf16.mxu1 %v14721_v27  ;;  %v19144_v23 = vld [vmem:[#allocation146_spill] sm:$0xff] }
0x13e1   :  { %12713 = vmatprep.subr.bf16.mxu0 %v14722_v28  ;;  %v10536_v27 = vrot.slane %v17654_v15, %v19144_v23  ;;  %v14778_v28 = vld [vmem:[#allocation2 + $0xb70] ss:$28 sps:$4 sm:$0xff]   ;;  %v19147_v23 = vld [vmem:[#allocation281_spill] sm:$0xff] }
0x13e3   :  { %10954 = vmatpush1.bf16.msra.mxu1 %v14723_v54  ;;  %v19145_v54 = vld [vmem:[#allocation17_spill] sm:$0xff] }
0x13e4   :  { %12714 = vmatpush3.bf16.msra.mxu0 %v14724_v1  ;;  %10955 = vmatprep.subr.bf16.mxu1 %v14725_v24  ;;  %v10532_v1 = vrot.slane %v17654_v15, %v19145_v54  ;;  %v19146_v24 = vld [vmem:[#allocation82_spill] sm:$0xff] }
0x13e5   :  { %12715 = vmatprep.subr.bf16.mxu0 %v14726_v46  ;;  %v10540_v46 = vrot.slane %v17654_v15, %v19146_v24 }
0x13e7   :  { %10956 = vmatpush1.bf16.msra.mxu1 %v14727_v14  ;;  %v14779_v14 = vld [vmem:[#allocation2 + $0xbac] ss:$28 sps:$4 sm:$0xff]  }
0x13e8   :  { %12716 = vmatpush3.bf16.msra.mxu0 %v14728_v30  ;;  %10957 = vmatprep.subr.bf16.mxu1 %v14729_v45 }
0x13e9   :  { %12717 = vmatprep.subr.bf16.mxu0 %v14730_v16 }
0x13eb   :  { %10958 = vmatpush1.bf16.msra.mxu1 %v14731_v56 }
0x13ec   :  { %12718 = vmatpush3.bf16.msra.mxu0 %v14732_v50  ;;  %10959 = vmatprep.subr.bf16.mxu1 %v14733_v53 }
0x13ed   :  { %12719 = vmatprep.subr.bf16.mxu0 %v14734_v35 }
0x13ef   :  { %10960 = vmatpush1.bf16.msra.mxu1 %v14735_v62 }
0x13f0   :  { %12720 = vmatpush3.bf16.msra.mxu0 %v14736_v8  ;;  %10970 = vmatprep.subr.bf16.mxu1 %v14737_v9 }
0x13f2   :  { %10962 = vmatmul.mubr.bf16.vlgmr.msra.gmra.mrb[60].mxu1 %v17612_v25  ;;  %v14746_v25 = vld [vmem:[#allocation2 + $0x7f0] ss:$28 sps:$4 sm:$0xff]  }
0x13f3   :  { %11205 = vmatmul.mubr.bf16.vlgmr.msra.gmra.mrb[64].mxu0 %v17635_v6  ;;  %10971 = vmatpush1.bf16.msra.mxu1 %v14738_v18  ;;  %v14780_v18 = vld [vmem:[#allocation2 + $0xba8] ss:$28 sps:$4 sm:$0xff]  }
0x13f4   :  { %11002 = vmatprep.mubr.bf16.mxu1 %v17621_v42  ;;  %10972 = vmatprep.subr.bf16.mxu1 %v14739_v3  ;;  %v14749_v42 = vld [vmem:[#allocation2 + $0x864] ss:$28 sps:$4 sm:$0xff]  }
0x13f7   :  { %10973 = vmatpush1.bf16.msra.mxu1 %v14740_v63 }
0x13f8   :  { %10974 = vmatprep.subr.bf16.mxu1 %v14741_v57 }
0x13fb   :  { %10975 = vmatpush1.bf16.msra.mxu1 %v14742_v37 }
0x13fc   :  { %10976 = vmatprep.subr.bf16.mxu1 %v14743_v55  ;;  %v14781_v55 = vld [vmem:[#allocation2 + $0xbe4] ss:$28 sps:$4 sm:$0xff]  }
0x13ff   :  { %10977 = vmatpush1.bf16.msra.mxu1 %v14744_v19 }
0x1400   :  { %10978 = vmatprep.subr.bf16.mxu1 %v14745_v48 }
0x1403   :  { %10979 = vmatpush1.bf16.msra.mxu1 %v14746_v25  ;;  %v14782_v25 = vld [vmem:[#allocation2 + $0xbe0] ss:$28 sps:$4 sm:$0xff]  }
0x1404   :  { %10980 = vmatprep.subr.bf16.mxu1 %v14747_v20  ;;  %v14783_v20 = vld [vmem:[#allocation2 + $0xc1c] ss:$28 sps:$4 sm:$0xff]  }
0x1407   :  { %10981 = vmatpush1.bf16.msra.mxu1 %v14748_v38  ;;  %v14784_v38 = vld [vmem:[#allocation2 + $0xc18] ss:$28 sps:$4 sm:$0xff]  }
0x1408   :  { %10982 = vmatprep.subr.bf16.mxu1 %v14749_v42  ;;  %v14785_v42 = vld [vmem:[#allocation2 + $0xc54] ss:$28 sps:$4 sm:$0xff]  }
0x140b   :  { %10983 = vmatpush1.bf16.msra.mxu1 %v14750_v52  ;;  %v14786_v52 = vld [vmem:[#allocation2 + $0xc50] ss:$28 sps:$4 sm:$0xff]  }
0x140c   :  { %10984 = vmatprep.subr.bf16.mxu1 %v14751_v61 }
0x140f   :  { %10985 = vmatpush1.bf16.msra.mxu1 %v14752_v40  ;;  %v14787_v40 = vld [vmem:[#allocation2 + $0xc8c] ss:$28 sps:$4 sm:$0xff]  }
0x1410   :  { %10986 = vmatprep.subr.bf16.mxu1 %v14753_v32 }
0x1413   :  { %10987 = vmatpush1.bf16.msra.mxu1 %v14754_v12 }
0x1414   :  { %10988 = vmatprep.subr.bf16.mxu1 %v14755_v13 }
0x1417   :  { %10989 = vmatpush1.bf16.msra.mxu1 %v14756_v31 }
0x1418   :  { %10990 = vmatprep.subr.bf16.mxu1 %v14757_v29 }
0x141b   :  { %10991 = vmatpush1.bf16.msra.mxu1 %v14758_v22 }
0x141c   :  { %10992 = vmatprep.subr.bf16.mxu1 %v14759_v4  ;;  %v14788_v4 = vld [vmem:[#allocation2 + $0xc88] ss:$28 sps:$4 sm:$0xff]  }
0x141f   :  { %10993 = vmatpush1.bf16.msra.mxu1 %v14760_v33 }
0x1420   :  { %10994 = vmatprep.subr.bf16.mxu1 %v14761_v47  ;;  %v14789_v47 = vld [vmem:[#allocation2 + $0xcc4] ss:$28 sps:$4 sm:$0xff]  }
0x1423   :  { %10995 = vmatpush1.bf16.msra.mxu1 %v14762_v44  ;;  %v14790_v44 = vld [vmem:[#allocation2 + $0xcc0] ss:$28 sps:$4 sm:$0xff]  }
0x1424   :  { %10996 = vmatprep.subr.bf16.mxu1 %v14763_v36  ;;  %v14791_v36 = vld [vmem:[#allocation2 + $0xcfc] ss:$28 sps:$4 sm:$0xff]  }
0x1427   :  { %10997 = vmatpush1.bf16.msra.mxu1 %v14764_v11  ;;  %v14792_v11 = vld [vmem:[#allocation2 + $0xcf8] ss:$28 sps:$4 sm:$0xff]  }
0x1428   :  { %10998 = vmatprep.subr.bf16.mxu1 %v14765_v17  ;;  %v14793_v17 = vld [vmem:[#allocation2 + $0xd34] ss:$28 sps:$4 sm:$0xff]  }
0x142b   :  { %10999 = vmatpush1.bf16.msra.mxu1 %v14766_v0 }
0x142c   :  { %11000 = vmatprep.subr.bf16.mxu1 %v14767_v49 }
0x142f   :  { %11001 = vmatpush1.bf16.msra.mxu1 %v14768_v7 }
0x1430   :  { %11011 = vmatprep.subr.bf16.mxu1 %v14769_v39  ;;  %v14794_v39 = vld [vmem:[#allocation2 + $0xd30] ss:$28 sps:$4 sm:$0xff]  }
0x1432   :  { %11003 = vmatmul.mubr.bf16.vlgmr.msra.gmra.mrb[60].mxu1 %v17623_v58  ;;  %v14777_v58 = vld [vmem:[#allocation2 + $0xb74] ss:$28 sps:$4 sm:$0xff]  }
0x1433   :  { %11012 = vmatpush1.bf16.msra.mxu1 %v14770_v34  ;;  %11043 = vmatprep.mubr.bf16.mxu1 %v17627_v2  ;;  %v10528_v2 = vrot.slane %v17654_v15, %v19143_v21  ;;  %v14799_v21 = vld [vmem:[#allocation2 + $0xddc] ss:$28 sps:$4 sm:$0xff]  }
0x1434   :  { %11013 = vmatprep.subr.bf16.mxu1 %v14771_v59  ;;  %v14795_v59 = vld [vmem:[#allocation2 + $0xd6c] ss:$28 sps:$4 sm:$0xff]  }
0x1437   :  { %11014 = vmatpush1.bf16.msra.mxu1 %v14772_v41 }
0x1438   :  { %11015 = vmatprep.subr.bf16.mxu1 %v14773_v43 }
0x143b   :  { %11016 = vmatpush1.bf16.msra.mxu1 %v14774_v26  ;;  %v14796_v26 = vld [vmem:[#allocation2 + $0xd68] ss:$28 sps:$4 sm:$0xff]  }
0x143c   :  { %11017 = vmatprep.subr.bf16.mxu1 %v14775_v5  ;;  %v14797_v5 = vld [vmem:[#allocation2 + $0xda4] ss:$28 sps:$4 sm:$0xff]  }
0x143f   :  { %11018 = vmatpush1.bf16.msra.mxu1 %v14776_v51 }
0x1440   :  { %11019 = vmatprep.subr.bf16.mxu1 %v14777_v58  ;;  %v14798_v58 = vld [vmem:[#allocation2 + $0xda0] ss:$28 sps:$4 sm:$0xff]  }
0x1443   :  { %11020 = vmatpush1.bf16.msra.mxu1 %v14778_v28 }
0x1444   :  { %11021 = vmatprep.subr.bf16.mxu1 %v14779_v14 }
0x1445   :  { %v10717_v30 = vpop.f32.mrb[56].mxu1  ;;  %v10881_v45 = vpop.f32.mrb[48].mxu0 }
0x1446   :  { %v12841_v16 = vadd.f32 %v10717_v30, %v10528_v2  ;;  %v12843_v56 = vadd.f32 %v10881_v45, %v10536_v27  ;;  %v10719_v50 = vpop.f32.mrb[57].mxu1  ;;  %v10883_v53 = vpop.f32.mrb[49].mxu0  ;;  %v14800_v2 = vld [vmem:[#allocation2 + $0xdd8] ss:$28 sps:$4 sm:$0xff]   ;;  %v10552_v27 = vrot.slane %v17654_v15, %v19147_v23 }
0x1447   :  { %v12842_v35 = vadd.f32 %v10719_v50, %v10532_v1  ;;  %v12844_v62 = vadd.f32 %v10883_v53, %v10540_v46  ;;  %v10721_v8 = vpop.f32.mrb[58].mxu1  ;;  %v10885_v9 = vpop.f32.mrb[50].mxu0  ;;  %11022 = vmatpush1.bf16.msra.mxu1 %v14780_v18 }
0x1448   :  { %v12444_v3 = vmul.f32 -1.442695, %v12841_v16  ;;  %v12446_v63 = vmul.f32 -1.442695, %v12843_v56  ;;  %v10722_v57 = vpop.f32.mrb[59].mxu1  ;;  %v10886_v37 = vpop.f32.mrb[51].mxu0  ;;  %11023 = vmatprep.subr.bf16.mxu1 %v14781_v55 }
0x1449   :  { %v12445_v19 = vmul.f32 -1.442695, %v12842_v35  ;;  %v12447_v48 = vmul.f32 -1.442695, %v12844_v62 }
0x144a   :  { %14116 = vpow2.f32 %v12444_v3 }
0x144b   :  { %14118 = vpow2.f32 %v12446_v63  ;;  %11024 = vmatpush1.bf16.msra.mxu1 %v14782_v25  ;;  %v19149_v25 = vld [vmem:[#allocation150_spill] sm:$0xff] }
0x144c   :  { %14120 = vpow2.f32 %v12445_v19  ;;  %11025 = vmatprep.subr.bf16.mxu1 %v14783_v20  ;;  %v19148_v19 = vld [vmem:[#allocation214_spill] sm:$0xff]  ;;  %v10548_v20 = vrot.slane %v17654_v15, %v19149_v25 }
0x144d   :  { %14122 = vpow2.f32 %v12447_v48  ;;  %v10544_v48 = vrot.slane %v17654_v15, %v19148_v19 }
0x144f   :  { %11026 = vmatpush1.bf16.msra.mxu1 %v14784_v38 }
0x1450   :  { %11027 = vmatprep.subr.bf16.mxu1 %v14785_v42 }
0x1453   :  { %11028 = vmatpush1.bf16.msra.mxu1 %v14786_v52 }
0x1454   :  { %v14117_v61 = vpop.eup %14116  ;;  %11029 = vmatprep.subr.bf16.mxu1 %v14787_v40 }
0x1455   :  { %v14119_v32 = vpop.eup %14118  ;;  %v11233_v12 = vadd.f32 1.0, %v14117_v61 }
0x1456   :  { %v14121_v13 = vpop.eup %14120  ;;  %v11235_v31 = vadd.f32 1.0, %v14119_v32 }
0x1457   :  { %v14123_v29 = vpop.eup %14122  ;;  %14124 = vrcp.f32 %v11233_v12  ;;  %v11234_v22 = vadd.f32 1.0, %v14121_v13  ;;  %11030 = vmatpush1.bf16.msra.mxu1 %v14788_v4 }
0x1458   :  { %14126 = vrcp.f32 %v11235_v31  ;;  %v11236_v33 = vadd.f32 1.0, %v14123_v29  ;;  %11031 = vmatprep.subr.bf16.mxu1 %v14789_v47 }
0x1459   :  { %14128 = vrcp.f32 %v11234_v22 }
0x145a   :  { %14130 = vrcp.f32 %v11236_v33 }
0x145b   :  { %11032 = vmatpush1.bf16.msra.mxu1 %v14790_v44 }
0x145c   :  { %11033 = vmatprep.subr.bf16.mxu1 %v14791_v36 }
0x145f   :  { %11034 = vmatpush1.bf16.msra.mxu1 %v14792_v11 }
0x1460   :  { %11035 = vmatprep.subr.bf16.mxu1 %v14793_v17 }
0x1461   :  { %v14125_v0 = vpop.eup %14124 }
0x1462   :  { %v14127_v49 = vpop.eup %14126  ;;  %11254 = vst [vmem:[%s17700_s8] sm:$0xff] %v14125_v0 }
0x1463   :  { %v14129_v7 = vpop.eup %14128  ;;  %11256 = vst [vmem:[%s17700_s8 + $0x10] sm:$0xff] %v14127_v49  ;;  %11036 = vmatpush1.bf16.msra.mxu1 %v14794_v39 }
0x1464   :  { %v14131_v34 = vpop.eup %14130  ;;  %11255 = vst [vmem:[%s17700_s8 + $0x8] sm:$0xff] %v14129_v7  ;;  %11037 = vmatprep.subr.bf16.mxu1 %v14795_v59 }
0x1465   :  { %11257 = vst [vmem:[%s17700_s8 + $0x18] sm:$0xff] %v14131_v34 }
0x1466   :  { %v12655_v41 = vpop.f32.mrb[52].mxu0 }
0x1467   :  { %v12656_v43 = vpop.f32.mrb[53].mxu0  ;;  %11038 = vmatpush1.bf16.msra.mxu1 %v14796_v26 }
0x1468   :  { %v12657_v10 = vadd.f32 %v12656_v43, %v12655_v41  ;;  %v12658_v60 = vpop.f32.mrb[54].mxu0  ;;  %11039 = vmatprep.subr.bf16.mxu1 %v14797_v5 }
0x1469   :  { %v12659_v51 = vpop.f32.mrb[55].mxu0 }
0x146a   :  { %v11087_v1 = vadd.f32 %v12657_v10, %v10552_v27 }
0x146b   :  { %11040 = vmatpush1.bf16.msra.mxu1 %v14798_v58 }
0x146c   :  { %11041 = vmatprep.subr.bf16.mxu1 %v14799_v21 }
0x146f   :  { %11042 = vmatpush1.bf16.msra.mxu1 %v14800_v2 }
0x1472   :  { %11044 = vmatmul.mubr.bf16.vlgmr.msra.gmra.mrb[60].mxu1 %v17635_v6 }
0x1486   :  { %v12677_v28 = vpop.f32.mrb[56].mxu0 }
0x1487   :  { %v12678_v54 = vpop.f32.mrb[57].mxu0 }
0x1488   :  { %v12679_v24 = vadd.f32 %v12678_v54, %v12677_v28  ;;  %v12680_v46 = vpop.f32.mrb[58].mxu0 }
0x1489   :  { %v12681_v14 = vpop.f32.mrb[59].mxu0 }
0x148a   :  { %v11127_v30 = vadd.f32 %v12679_v24, %v11087_v1 }
0x14a6   :  { %v12699_v45 = vpop.f32.mrb[60].mxu0 }
0x14a7   :  { %v12700_v16 = vpop.f32.mrb[61].mxu0 }
0x14a8   :  { %v12701_v56 = vadd.f32 %v12700_v16, %v12699_v45  ;;  %v12702_v50 = vpop.f32.mrb[62].mxu0 }
0x14a9   :  { %v12703_v53 = vpop.f32.mrb[63].mxu0 }
0x14aa   :  { %v11167_v35 = vadd.f32 %v12701_v56, %v11127_v30 }
0x14c6   :  { %v12721_v62 = vpop.f32.mrb[64].mxu0 }
0x14c7   :  { %v12722_v8 = vpop.f32.mrb[65].mxu0 }
0x14c8   :  { %v12723_v9 = vadd.f32 %v12722_v8, %v12721_v62  ;;  %v12724_v6 = vpop.f32.mrb[66].mxu0 }
0x14c9   :  { %v12725_v18 = vpop.f32.mrb[67].mxu0 }
0x14ca   :  { %v11207_v3 = vadd.f32 %v12723_v9, %v11167_v35 }
0x14cc   :  { %v12450_v63 = vmul.f32 -1.442695, %v11207_v3 }
0x14ce   :  { %14132 = vpow2.f32 %v12450_v63 }
0x14d8   :  { %v14133_v57 = vpop.eup %14132 }
0x14d9   :  { %v11239_v37 = vadd.f32 1.0, %v14133_v57 }
0x14db   :  { %14134 = vrcp.f32 %v11239_v37 }
0x14e5   :  { %v14135_v55 = vpop.eup %14134 }
0x14e6   :  { %11260 = vst [vmem:[%s17700_s8 + $0x30] sm:$0xff] %v14135_v55 }
0x1545   :  { %v11045_v38 = vpop.f32.mrb[60].mxu1 }
0x1546   :  { %v12845_v42 = vadd.f32 %v11045_v38, %v10544_v48  ;;  %v11047_v52 = vpop.f32.mrb[61].mxu1 }
0x1547   :  { %v12846_v61 = vadd.f32 %v11047_v52, %v10548_v20  ;;  %v11049_v40 = vpop.f32.mrb[62].mxu1 }
0x1548   :  { %v12448_v32 = vmul.f32 -1.442695, %v12845_v42  ;;  %v11050_v12 = vpop.f32.mrb[63].mxu1 }
0x1549   :  { %v12449_v13 = vmul.f32 -1.442695, %v12846_v61 }
0x154a   :  { %14136 = vpow2.f32 %v12448_v32 }
0x154b   :  { %14138 = vpow2.f32 %v12449_v13 }
0x1554   :  { %v14137_v31 = vpop.eup %14136 }
0x1555   :  { %v14139_v29 = vpop.eup %14138  ;;  %v11237_v22 = vadd.f32 1.0, %v14137_v31 }
0x1556   :  { %v11238_v4 = vadd.f32 1.0, %v14139_v29 }
0x1557   :  { %14140 = vrcp.f32 %v11237_v22 }
0x1558   :  { %14142 = vrcp.f32 %v11238_v4 }
0x1561   :  { %v14141_v33 = vpop.eup %14140 }
0x1562   :  { %v14143_v47 = vpop.eup %14142  ;;  %11258 = vst [vmem:[%s17700_s8 + $0x20] sm:$0xff] %v14141_v33 }
0x1563   :  { %11259 = vst [vmem:[%s17700_s8 + $0x28] sm:$0xff] %v14143_v47 }
0x1564   :  { %11265 = vsyncpa [#allocation3], 1 }
0x1565   :  { %11266 = vsyncpa [#allocation5], 1 }
0x1566   :  { %11267 = vsyncpa [#allocation8], 1 }
0x1567   :  { %11268 = vsyncpa [#allocation11], 1 }

</bundles_post_ra>
